<compile_context>
chip_gen: v5e
topology: v5e:2x2
jax: 0.10.0
libtpu: 0.0.40
codegen_flags: <defaults>
</compile_context>

<pallas_src>
import functools

import jax
import jax.numpy as jnp
from jax.experimental import pallas as pl
from jax.experimental.pallas import tpu as pltpu


def _round_up(n, m):
    return ((n + m - 1) // m) * m


def _cpad(c):
    return _round_up(max(c, 128), 128)


def _pad_rows(x, rp):
    r = x.shape[0]
    if r == rp:
        return x
    return jnp.pad(x, ((0, rp - r), (0, 0)))


def _device_kind():
    try:
        return jax.devices()[0].device_kind.lower()
    except Exception:  # pragma: no cover - no backend at import time
        return ""


_KIND = _device_kind()
_IS_V5 = "v5" in _KIND
_IS_V7 = ("v7" in _KIND) or ("7x" in _KIND)
_MXU_TILE = 128 if _IS_V5 else 256        # v5e MXU is 128x128; v6e/v7x prefer 256


# ----------------------------------------------------------------------------
# Tiled MXU matmul: bf16 operands, f32 accumulation, fused bias / ReLU epilogue
# and (optionally) fused BatchNorm pass-1 (per-channel sum / sum-of-squares).
# ----------------------------------------------------------------------------
def _matmul_kernel(*refs, do_relu, has_bias, do_stats):
    if has_bias:
        a_ref, b_ref, bias_ref = refs[0], refs[1], refs[2]
        rest = refs[3:]
    else:
        a_ref, b_ref = refs[0], refs[1]
        bias_ref = None
        rest = refs[2:]
    if do_stats:
        o_ref, sum_ref, sq_ref, acc_ref = rest
    else:
        o_ref, acc_ref = rest
        sum_ref = sq_ref = None

    k = pl.program_id(2)

    @pl.when(k == 0)
    def _():
        acc_ref[...] = jnp.zeros_like(acc_ref)

    acc_ref[...] += jnp.dot(a_ref[...], b_ref[...],
                            preferred_element_type=jnp.float32)

    @pl.when(k == pl.num_programs(2) - 1)
    def _():
        out = acc_ref[...]
        if has_bias:
            out = out + bias_ref[...]
        if do_stats:
            # BN pass-1 fused into the epilogue: per-(m,n)-tile partial
            # per-channel sum / sum-of-squares of the (pre-ReLU) output.
            sum_ref[...] = jnp.sum(out, axis=0, keepdims=True)[None]
            sq_ref[...] = jnp.sum(out * out, axis=0, keepdims=True)[None]
        if do_relu:
            out = jnp.maximum(out, 0.0)
        o_ref[...] = out.astype(o_ref.dtype)


def pallas_matmul(a, b, bias=None, relu=False, bn_stats=False,
                  out_dtype=jnp.bfloat16):
    """a:[M,K] @ b:[K,N] (+bias) (+ReLU).  bf16 MXU inputs, f32 accumulation.

    If bn_stats=True also returns (sum, sumsq) per output channel (computed on
    the pre-ReLU, bias-free output; callers use it for training-mode BN).
    """
    M, K = a.shape
    K2, N = b.shape
    assert K == K2 and K % 128 == 0, (K, K2)

    Np = _round_up(max(N, 128), 128)                 # always lane-dense output
    Mp = _round_up(max(M, 16), 16)                   # bf16 sublane packing
    TM = min(256, Mp)
    Mp = _round_up(Mp, TM)
    TK = _MXU_TILE if K % _MXU_TILE == 0 else 128
    TN = _MXU_TILE if Np % _MXU_TILE == 0 else 128
    if _IS_V7:
        # Guarantee >=2 parallel blocks so both TensorCores get work.
        while (Mp // TM) * (Np // TN) < 2:
            if TN > 128:
                TN //= 2
            elif TM >= 32:
                TM //= 2
            else:
                break

    a_p = a.astype(jnp.bfloat16)
    if Mp != M:
        a_p = jnp.pad(a_p, ((0, Mp - M), (0, 0)))
    b_p = b.astype(jnp.bfloat16)
    if Np != N:
        b_p = jnp.pad(b_p, ((0, 0), (0, Np - N)))

    has_bias = bias is not None
    in_specs = [pl.BlockSpec((TM, TK), lambda i, j, k: (i, k)),
                pl.BlockSpec((TK, TN), lambda i, j, k: (k, j))]
    args = [a_p, b_p]
    if has_bias:
        bias_p = bias.reshape(1, -1).astype(jnp.float32)
        if Np != N:
            bias_p = jnp.pad(bias_p, ((0, 0), (0, Np - N)))
        in_specs.append(pl.BlockSpec((1, TN), lambda i, j, k: (0, j)))
        args.append(bias_p)

    m_t, n_t, k_t = Mp // TM, Np // TN, K // TK
    out_shape = [jax.ShapeDtypeStruct((Mp, Np), out_dtype)]
    out_specs = [pl.BlockSpec((TM, TN), lambda i, j, k: (i, j))]
    if bn_stats:
        out_shape += [jax.ShapeDtypeStruct((m_t, 1, Np), jnp.float32)] * 2
        out_specs += [pl.BlockSpec((1, 1, TN), lambda i, j, k: (i, 0, j))] * 2

    res = pl.pallas_call(
        functools.partial(_matmul_kernel, do_relu=relu, has_bias=has_bias,
                          do_stats=bn_stats),
        out_shape=tuple(out_shape),
        grid_spec=pltpu.PrefetchScalarGridSpec(
            num_scalar_prefetch=0,
            grid=(m_t, n_t, k_t),
            in_specs=in_specs,
            out_specs=tuple(out_specs),
            scratch_shapes=[pltpu.VMEM((TM, TN), jnp.float32)]),
        compiler_params=pltpu.CompilerParams(
            dimension_semantics=("parallel", "parallel", "arbitrary")),
    )(*args)

    out = res[0]
    if Mp != M:
        out = out[:M]
    if Np != N:
        out = out[:, :N]
    if not bn_stats:
        return out
    s = jnp.sum(res[1], axis=(0, 1))      # reduce the tiny per-m-tile partials
    q = jnp.sum(res[2], axis=(0, 1))
    if Np != N:
        s, q = s[:N], q[:N]
    return out, (s, q)


# ----------------------------------------------------------------------------
# Training-mode BatchNorm:
#   pass 1 = fused into the producing matmul (above);
#   scale/shift folding = tiny per-channel XLA glue;
#   pass 2 = row-tiled apply kernel with fused residual add + ReLU.
# ----------------------------------------------------------------------------
def bn_scale_shift(s, q, gamma, beta, rows, eps=1e-5):
    rows = float(rows)
    mean = s / rows
    # Guard the single-pass variance against tiny negative values (cancellation).
    var = jnp.maximum(q / rows - mean * mean, 0.0)
    inv = jax.lax.rsqrt(var + eps)
    scale = gamma.astype(jnp.float32) * inv
    shift = beta.astype(jnp.float32) - mean * scale
    return scale, shift


def _bn_apply_kernel(*refs, relu, has_res):
    if has_res:
        x_ref, r_ref, sc_ref, sh_ref, o_ref = refs
    else:
        x_ref, sc_ref, sh_ref, o_ref = refs
        r_ref = None
    y = x_ref[...].astype(jnp.float32) * sc_ref[...] + sh_ref[...]
    if has_res:
        y = y + r_ref[...].astype(jnp.float32)
    if relu:
        y = jnp.maximum(y, 0.0)
    o_ref[...] = y.astype(o_ref.dtype)


def _row_tile(R):
    Rp = _round_up(max(R, 8), 8)
    if Rp <= 1024:
        TR = Rp
    else:
        TR = 1024
        Rp = _round_up(R, TR)
    if _IS_V7:
        # Split the row grid so both TensorCores can be used.
        while Rp // TR < 2 and TR % 16 == 0 and TR >= 16:
            TR //= 2
    return Rp, TR


def pallas_bn_apply(x, scale, shift, relu=False, residual=None,
                    out_dtype=jnp.bfloat16):
    """y = BN(x)*  (+ residual) (+ ReLU), row-tiled; x:[R, C] with C % 128 == 0."""
    R, C = x.shape
    assert C % 128 == 0, C
    Rp, TR = _row_tile(R)

    x_p = _pad_rows(x.astype(jnp.bfloat16), Rp)
    has_res = residual is not None
    in_specs = [pl.BlockSpec((TR, C), lambda i: (i, 0))]
    args = [x_p]
    if has_res:
        in_specs.append(pl.BlockSpec((TR, C), lambda i: (i, 0)))
        args.append(_pad_rows(residual.astype(jnp.bfloat16), Rp))
    in_specs += [pl.BlockSpec((1, C), lambda i: (0, 0))] * 2
    args += [scale.reshape(1, C).astype(jnp.float32),
             shift.reshape(1, C).astype(jnp.float32)]

    out = pl.pallas_call(
        functools.partial(_bn_apply_kernel, relu=relu, has_res=has_res),
        out_shape=jax.ShapeDtypeStruct((Rp, C), out_dtype),
        grid_spec=pltpu.PrefetchScalarGridSpec(
            num_scalar_prefetch=0, grid=(Rp // TR,),
            in_specs=in_specs,
            out_specs=pl.BlockSpec((TR, C), lambda i: (i, 0))),
        compiler_params=pltpu.CompilerParams(
            dimension_semantics=("parallel",)),
    )(*args)
    return out[:R] if Rp != R else out


# ----------------------------------------------------------------------------
# Maxpool 3x3/s2/p1: elementwise max of 9 shifted bf16 views, row-tiled VPU kernel.
# (Inputs are post-ReLU >= 0 and padded channels are exactly 0, so zero border
#  padding is equivalent to -inf padding here.)
# ----------------------------------------------------------------------------
def _max9_kernel(*refs):
    o_ref = refs[-1]
    m = refs[0][...]
    for r in refs[1:-1]:
        m = jnp.maximum(m, r[...])
    o_ref[...] = m


def pallas_maxpool(x_nhwc, kh=3, kw=3, stride=2, pad=1):
    N, H, W, C = x_nhwc.shape
    Ho = (H + 2 * pad - kh) // stride + 1
    Wo = (W + 2 * pad - kw) // stride + 1
    xp = jnp.pad(x_nhwc.astype(jnp.bfloat16),
                 ((0, 0), (pad, pad), (pad, pad), (0, 0)))
    R = N * Ho * Wo
    Rp, TR = _row_tile(R)

    views = []
    for i in range(kh):
        for j in range(kw):
            v = xp[:, i:i + stride * Ho:stride,
                   j:j + stride * Wo:stride, :].reshape(R, C)
            views.append(_pad_rows(v, Rp))

    spec = pl.BlockSpec((TR, C), lambda i: (i, 0))
    out = pl.pallas_call(
        _max9_kernel,
        out_shape=jax.ShapeDtypeStruct((Rp, C), jnp.bfloat16),
        grid_spec=pltpu.PrefetchScalarGridSpec(
            num_scalar_prefetch=0, grid=(Rp // TR,),
            in_specs=[spec] * (kh * kw),
            out_specs=spec),
        compiler_params=pltpu.CompilerParams(
            dimension_semantics=("parallel",)),
    )(*views)
    out = out[:R] if Rp != R else out
    return out.reshape(N, Ho, Wo, C)


# ----------------------------------------------------------------------------
# Conv as bf16 im2col + Pallas matmul (im2col / reshapes are plain-JAX glue)
# ----------------------------------------------------------------------------
def im2col(x, kh, kw, stride, pad):
    N, H, W, C = x.shape
    Ho = (H + 2 * pad - kh) // stride + 1
    Wo = (W + 2 * pad - kw) // stride + 1
    xp = jnp.pad(x, ((0, 0), (pad, pad), (pad, pad), (0, 0))) if pad else x
    cols = []
    for i in range(kh):
        for j in range(kw):
            cols.append(xp[:, i:i + stride * Ho:stride,
                           j:j + stride * Wo:stride, :])
    patches = jnp.stack(cols, axis=3)          # [N,Ho,Wo,kh*kw,C]
    return patches.reshape(N * Ho * Wo, kh * kw * C), (N, Ho, Wo)


def conv2d(x_nhwc, wp, stride, pad, bn_stats=False):
    """wp = (prepared [K, Cout_pad] bf16 weight, (kh, kw)); x is bf16 NHWC."""
    w2d, (kh, kw) = wp
    cols, dims = im2col(x_nhwc.astype(jnp.bfloat16), kh, kw, stride, pad)
    Kw = w2d.shape[0]
    if cols.shape[1] != Kw:                     # only the stem (147 -> 256)
        cols = jnp.pad(cols, ((0, 0), (0, Kw - cols.shape[1])))
    res = pallas_matmul(cols, w2d, bn_stats=bn_stats)
    if bn_stats:
        out, stats = res
        return out, stats, dims
    return res, None, dims


# ----------------------------------------------------------------------------
# resnet18 backbone (fc removed) + heads
# ----------------------------------------------------------------------------
def basic_block(x_nhwc, p, stride):
    N, H, W, Cin = x_nhwc.shape
    out1, st1, (_, Ho, Wo) = conv2d(x_nhwc, p["conv1"], stride, 1, bn_stats=True)
    rows = N * Ho * Wo
    sc, sh = bn_scale_shift(*st1, p["bn1_g"], p["bn1_b"], rows)
    Cmid = out1.shape[1]
    y1 = pallas_bn_apply(out1, sc, sh, relu=True).reshape(N, Ho, Wo, Cmid)

    out2, st2, _ = conv2d(y1, p["conv2"], 1, 1, bn_stats=True)

    if "down_conv" in p:
        idn, std, _ = conv2d(x_nhwc, p["down_conv"], stride, 0, bn_stats=True)
        scd, shd = bn_scale_shift(*std, p["down_bn_g"], p["down_bn_b"], rows)
        idn = pallas_bn_apply(idn, scd, shd, relu=False)
    else:
        idn = x_nhwc.reshape(N * H * W, Cin)

    # BN2 + residual add + ReLU fused into one apply kernel.
    sc2, sh2 = bn_scale_shift(*st2, p["bn2_g"], p["bn2_b"], rows)
    y = pallas_bn_apply(out2, sc2, sh2, relu=True, residual=idn)
    return y.reshape(N, Ho, Wo, Cmid)


def backbone_forward(x_nchw, P):
    x = jnp.transpose(x_nchw, (0, 2, 3, 1)).astype(jnp.bfloat16)   # NCHW -> NHWC
    out, st, (N, Ho, Wo) = conv2d(x, P["conv1"], 2, 3, bn_stats=True)
    sc, sh = bn_scale_shift(*st, P["bn1_g"], P["bn1_b"], N * Ho * Wo)
    y = pallas_bn_apply(out, sc, sh, relu=True)
    x = y.reshape(N, Ho, Wo, out.shape[1])
    x = pallas_maxpool(x, 3, 3, 2, 1)
    for lname in ("layer1", "layer2", "layer3", "layer4"):
        for bi, blk in enumerate(P[lname]):
            stride = 2 if (lname != "layer1" and bi == 0) else 1
            x = basic_block(x, blk, stride)
    # AdaptiveAvgPool2d((1,1)) + flatten — trivial spatial mean (glue).
    h = jnp.mean(x.astype(jnp.float32), axis=(1, 2))   # [N, 512]
    return h


def head_CL_forward(h, P):
    z = pallas_matmul(h, P["w1"], bias=P["b1"], relu=True)
    z = pallas_matmul(z, P["w2"], bias=P["b2"], relu=False,
                      out_dtype=jnp.float32)
    return z


def head_BT_forward(h, P):
    rows = h.shape[0]
    z, st = pallas_matmul(h, P["w1"], bn_stats=True)          # Linear(no bias)
    sc, sh = bn_scale_shift(*st, P["bn1_g"], P["bn1_b"], rows)
    z = pallas_bn_apply(z, sc, sh, relu=True)                  # BN1d + ReLU
    z, st = pallas_matmul(z, P["w2"], bn_stats=True)
    sc, sh = bn_scale_shift(*st, P["bn2_g"], P["bn2_b"], rows)
    z = pallas_bn_apply(z, sc, sh, relu=True)
    z = pallas_matmul(z, P["w3"], out_dtype=jnp.float32)
    return z


# ----------------------------------------------------------------------------
# Parameter preparation: PyTorch-layout -> padded, bf16, matmul-ready tensors.
# ----------------------------------------------------------------------------
def prepare_params(params):
    def prep_conv(w):
        cout, cin, kh, kw = w.shape
        cin_p = cin if cin < 64 else _cpad(cin)      # stem keeps cin=3
        cout_p = _cpad(cout)
        wt = jnp.transpose(w, (2, 3, 1, 0))          # (kh, kw, cin, cout)
        wt = jnp.pad(wt, ((0, 0), (0, 0), (0, cin_p - cin), (0, cout_p - cout)))
        w2d = wt.reshape(kh * kw * cin_p, cout_p)
        Kp = _round_up(w2d.shape[0], 128)
        if Kp != w2d.shape[0]:                       # stem only: 147 -> 256
            w2d = jnp.pad(w2d, ((0, Kp - w2d.shape[0]), (0, 0)))
        return (w2d.astype(jnp.bfloat16), (kh, kw))

    def prep_bn(g, b):
        c = g.shape[0]
        cp = _cpad(c)
        return (jnp.pad(g.astype(jnp.float32), (0, cp - c)),
                jnp.pad(b.astype(jnp.float32), (0, cp - c)))

    B = params["backbone"]
    pb = {"conv1": prep_conv(B["conv1"])}
    pb["bn1_g"], pb["bn1_b"] = prep_bn(B["bn1_g"], B["bn1_b"])
    for lname in ("layer1", "layer2", "layer3", "layer4"):
        blocks = []
        for blk in B[lname]:
            q = {"conv1": prep_conv(blk["conv1"]),
                 "conv2": prep_conv(blk["conv2"])}
            q["bn1_g"], q["bn1_b"] = prep_bn(blk["bn1_g"], blk["bn1_b"])
            q["bn2_g"], q["bn2_b"] = prep_bn(blk["bn2_g"], blk["bn2_b"])
            if "down_conv" in blk:
                q["down_conv"] = prep_conv(blk["down_conv"])
                q["down_bn_g"], q["down_bn_b"] = prep_bn(blk["down_bn_g"],
                                                         blk["down_bn_b"])
            blocks.append(q)
        pb[lname] = blocks

    CL = params["head_CL"]
    p_cl = {"w1": CL["w1"].astype(jnp.bfloat16), "b1": CL["b1"],
            "w2": CL["w2"].astype(jnp.bfloat16), "b2": CL["b2"]}
    BT = params["head_BT"]
    p_bt = {"w1": BT["w1"].astype(jnp.bfloat16),
            "w2": BT["w2"].astype(jnp.bfloat16),
            "w3": BT["w3"].astype(jnp.bfloat16),
            "bn1_g": BT["bn1_g"].astype(jnp.float32),
            "bn1_b": BT["bn1_b"].astype(jnp.float32),
            "bn2_g": BT["bn2_g"].astype(jnp.float32),
            "bn2_b": BT["bn2_b"].astype(jnp.float32)}
    return {"backbone": pb, "head_CL": p_cl, "head_BT": p_bt}


def model_pretrain_forward(x_nchw, params):
    P = prepare_params(params)
    h = backbone_forward(x_nchw, P["backbone"])
    z_CL = head_CL_forward(h, P["head_CL"])
    z_BT = head_BT_forward(h, P["head_BT"])
    return z_CL, z_BT


# ----------------------------------------------------------------------------
# Deterministic parameter init (shapes follow torchvision resnet18 + the heads)
# ----------------------------------------------------------------------------
def init_params(key, CL_num=128, BT_num=128, E_num=10):
    keys = iter(jax.random.split(key, 128))

    def conv_w(cout, cin, kh, kw):
        return jax.random.normal(next(keys), (cout, cin, kh, kw), jnp.float32) * 0.05

    def lin(din, dout, bias=True):
        w = jax.random.normal(next(keys), (din, dout), jnp.float32) * 0.05
        b = (jax.random.normal(next(keys), (dout,), jnp.float32) * 0.05
             if bias else None)
        return w, b

    def bn(c):
        return jnp.ones((c,), jnp.float32), jnp.zeros((c,), jnp.float32)

    def make_layer(cin, cout, nblocks, stride):
        layer = []
        for bi in range(nblocks):
            s = stride if bi == 0 else 1
            ic = cin if bi == 0 else cout
            p = {"conv1": conv_w(cout, ic, 3, 3),
                 "conv2": conv_w(cout, cout, 3, 3)}
            p["bn1_g"], p["bn1_b"] = bn(cout)
            p["bn2_g"], p["bn2_b"] = bn(cout)
            if s != 1 or ic != cout:
                p["down_conv"] = conv_w(cout, ic, 1, 1)
                p["down_bn_g"], p["down_bn_b"] = bn(cout)
            layer.append(p)
        return layer

    backbone = {"conv1": conv_w(64, 3, 7, 7)}
    backbone["bn1_g"], backbone["bn1_b"] = bn(64)
    backbone["layer1"] = make_layer(64, 64, 2, 1)
    backbone["layer2"] = make_layer(64, 128, 2, 2)
    backbone["layer3"] = make_layer(128, 256, 2, 2)
    backbone["layer4"] = make_layer(256, 512, 2, 2)

    dim_mlp = 512
    w1, b1 = lin(dim_mlp, 512)
    w2, b2 = lin(512, CL_num)
    head_CL = {"w1": w1, "b1": b1, "w2": w2, "b2": b2}

    bw1, _ = lin(dim_mlp, BT_num, bias=False)
    bw2, _ = lin(BT_num, BT_num, bias=False)
    bw3, _ = lin(BT_num, BT_num, bias=False)
    head_BT = {"w1": bw1, "w2": bw2, "w3": bw3}
    head_BT["bn1_g"], head_BT["bn1_b"] = bn(BT_num)
    head_BT["bn2_g"], head_BT["bn2_b"] = bn(BT_num)

    # head_E exists in __init__ but is never used by forward() — keep shapes only.
    ew1, eb1 = lin(dim_mlp, 512)
    ew2, eb2 = lin(512, E_num)
    head_E = {"w1": ew1, "b1": eb1, "w2": ew2, "b2": eb2}

    return {"backbone": backbone, "head_CL": head_CL,
            "head_BT": head_BT, "head_E": head_E}


if __name__ == "__main__":
    key = jax.random.PRNGKey(0)
    kx, kp = jax.random.split(key)

    N, C, H, W = 2, 3, 32, 32          # NCHW, matching the PyTorch input convention
    CL_num, BT_num = 128, 128
    x = jax.random.normal(kx, (N, C, H, W), jnp.float32)
    params = init_params(kp, CL_num=CL_num, BT_num=BT_num)

    fwd = jax.jit(model_pretrain_forward)
    z_CL, z_BT = fwd(x, params)
    jax.block_until_ready((z_CL, z_BT))

    assert z_CL.shape == (N, CL_num) and z_CL.dtype == jnp.float32
    assert z_BT.shape == (N, BT_num) and z_BT.dtype == jnp.float32
    assert bool(jnp.all(jnp.isfinite(z_CL))) and bool(jnp.all(jnp.isfinite(z_BT)))
    print("KERNEL_OK")
</pallas_src>

<mosaic_0001>
module attributes {stable_mosaic.version = 11 : i64} {
  func.func @_matmul_kernel(%arg0: i32, %arg1: i32, %arg2: i32, %arg3: memref<256x256xbf16, #tpu.memory_space<vmem>>, %arg4: memref<256x128xbf16, #tpu.memory_space<vmem>>, %arg5: memref<256x128xbf16, #tpu.memory_space<vmem>>, %arg6: memref<1x1x128xf32, #tpu.memory_space<vmem>>, %arg7: memref<1x1x128xf32, #tpu.memory_space<vmem>>, %arg8: memref<256x128xf32, #tpu.memory_space<vmem>>) attributes {dimension_semantics = [#tpu.dimension_semantics<parallel>, #tpu.dimension_semantics<parallel>, #tpu.dimension_semantics<arbitrary>], iteration_bounds = array<i64: 2, 1, 1>, scalar_prefetch = 0 : i64, scratch_operands = 1 : i64, tpu.core_type = #tpu.core_type<tc>, window_params = [{transform_indices = @transform_0, window_bounds = array<i64: 256, 256>}, {transform_indices = @transform_1, window_bounds = array<i64: 256, 128>}, {transform_indices = @transform_2, window_bounds = array<i64: 256, 128>}, {transform_indices = @transform_3, window_bounds = array<i64: 1, 1, 128>}, {transform_indices = @transform_4, window_bounds = array<i64: 1, 1, 128>}]} {
    %c0_i32 = arith.constant 0 : i32
    %0 = arith.cmpi eq, %arg2, %c0_i32 : i32
    %1 = arith.extui %0 : i1 to i32
    %c0_i32_0 = arith.constant 0 : i32
    %2 = arith.cmpi ne, %1, %c0_i32_0 : i32
    scf.if %2 {
      %cst_10 = arith.constant 0.000000e+00 : f32
      %12 = vector.broadcast %cst_10 : f32 to vector<256x128xf32>
      %c0_11 = arith.constant 0 : index
      %c0_12 = arith.constant 0 : index
      %13 = vector.load %arg8[%c0_11, %c0_12] : memref<256x128xf32, #tpu.memory_space<vmem>>, vector<256x128xf32>
      tpu.vector_store %arg8[%c0_11, %c0_12], %12 {strides = array<i32>} : memref<256x128xf32, #tpu.memory_space<vmem>>, vector<256x128xf32>,
    } else {
    }
    %c0 = arith.constant 0 : index
    %c0_1 = arith.constant 0 : index
    %3 = vector.load %arg8[%c0, %c0_1] : memref<256x128xf32, #tpu.memory_space<vmem>>, vector<256x128xf32>
    %c0_2 = arith.constant 0 : index
    %c0_3 = arith.constant 0 : index
    %4 = vector.load %arg3[%c0_2, %c0_3] : memref<256x256xbf16, #tpu.memory_space<vmem>>, vector<256x256xbf16>
    %c0_4 = arith.constant 0 : index
    %c0_5 = arith.constant 0 : index
    %5 = vector.load %arg4[%c0_4, %c0_5] : memref<256x128xbf16, #tpu.memory_space<vmem>>, vector<256x128xbf16>
    %cst = arith.constant dense<0.000000e+00> : vector<256x128xf32>
    %6 = tpu.matmul %4, %5, %cst {dimension_numbers = #tpu.dot_dimension_numbers<[1], [0], [0], [1], [0, 0, 1, 1], [], []>} : vector<256x256xbf16>, vector<256x128xbf16>, vector<256x128xf32> -> vector<256x128xf32>
    %7 = arith.addf %3, %6 : vector<256x128xf32>
    %c0_6 = arith.constant 0 : index
    %c0_7 = arith.constant 0 : index
    %8 = vector.load %arg8[%c0_6, %c0_7] : memref<256x128xf32, #tpu.memory_space<vmem>>, vector<256x128xf32>
    tpu.vector_store %arg8[%c0_6, %c0_7], %7 {strides = array<i32>} : memref<256x128xf32, #tpu.memory_space<vmem>>, vector<256x128xf32>,
    %c0_i32_8 = arith.constant 0 : i32
    %9 = arith.cmpi eq, %arg2, %c0_i32_8 : i32
    %10 = arith.extui %9 : i1 to i32
    %c0_i32_9 = arith.constant 0 : i32
    %11 = arith.cmpi ne, %10, %c0_i32_9 : i32
    scf.if %11 {
      %c0_10 = arith.constant 0 : index
      %c0_11 = arith.constant 0 : index
      %12 = vector.load %arg8[%c0_10, %c0_11] : memref<256x128xf32, #tpu.memory_space<vmem>>, vector<256x128xf32>
      %cst_12 = arith.constant dense<0.000000e+00> : vector<128xf32>
      %13 = vector.multi_reduction <add>, %12, %cst_12 [0] : vector<256x128xf32> to vector<128xf32>
      %14 = vector.shape_cast %13 : vector<128xf32> to vector<1x128xf32>
      %15 = vector.shape_cast %14 : vector<1x128xf32> to vector<1x1x128xf32>
      %c0_13 = arith.constant 0 : index
      %c0_14 = arith.constant 0 : index
      %c0_15 = arith.constant 0 : index
      %16 = vector.load %arg6[%c0_13, %c0_14, %c0_15] : memref<1x1x128xf32, #tpu.memory_space<vmem>>, vector<1x1x128xf32>
      tpu.vector_store %arg6[%c0_13, %c0_14, %c0_15], %15 {strides = array<i32>} : memref<1x1x128xf32, #tpu.memory_space<vmem>>, vector<1x1x128xf32>,
      %17 = arith.mulf %12, %12 : vector<256x128xf32>
      %cst_16 = arith.constant dense<0.000000e+00> : vector<128xf32>
      %18 = vector.multi_reduction <add>, %17, %cst_16 [0] : vector<256x128xf32> to vector<128xf32>
      %19 = vector.shape_cast %18 : vector<128xf32> to vector<1x128xf32>
      %20 = vector.shape_cast %19 : vector<1x128xf32> to vector<1x1x128xf32>
      %c0_17 = arith.constant 0 : index
      %c0_18 = arith.constant 0 : index
      %c0_19 = arith.constant 0 : index
      %21 = vector.load %arg7[%c0_17, %c0_18, %c0_19] : memref<1x1x128xf32, #tpu.memory_space<vmem>>, vector<1x1x128xf32>
      tpu.vector_store %arg7[%c0_17, %c0_18, %c0_19], %20 {strides = array<i32>} : memref<1x1x128xf32, #tpu.memory_space<vmem>>, vector<1x1x128xf32>,
      %22 = arith.truncf %12 : vector<256x128xf32> to vector<256x128xbf16>
      %c0_20 = arith.constant 0 : index
      %c0_21 = arith.constant 0 : index
      %23 = vector.load %arg5[%c0_20, %c0_21] : memref<256x128xbf16, #tpu.memory_space<vmem>>, vector<256x128xbf16>
      tpu.vector_store %arg5[%c0_20, %c0_21], %22 {strides = array<i32>} : memref<256x128xbf16, #tpu.memory_space<vmem>>, vector<256x128xbf16>,
    } else {
    }
    return
  }
  func.func @transform_0(%arg0: i32, %arg1: i32, %arg2: i32) -> (i32, i32) {
    %c0_i32 = arith.constant 0 : i32
    return %arg0, %arg2 : i32, i32
  }
  func.func @transform_1(%arg0: i32, %arg1: i32, %arg2: i32) -> (i32, i32) {
    %c0_i32 = arith.constant 0 : i32
    return %arg2, %arg1 : i32, i32
  }
  func.func @transform_2(%arg0: i32, %arg1: i32, %arg2: i32) -> (i32, i32) {
    %c0_i32 = arith.constant 0 : i32
    return %arg0, %arg1 : i32, i32
  }
  func.func @transform_3(%arg0: i32, %arg1: i32, %arg2: i32) -> (i32, i32, i32) {
    %c0_i32 = arith.constant 0 : i32
    %c0_i32_0 = arith.constant 0 : i32
    return %arg0, %c0_i32, %arg1 : i32, i32, i32
  }
  func.func @transform_4(%arg0: i32, %arg1: i32, %arg2: i32) -> (i32, i32, i32) {
    %c0_i32 = arith.constant 0 : i32
    %c0_i32_0 = arith.constant 0 : i32
    return %arg0, %c0_i32, %arg1 : i32, i32, i32
  }
}

module attributes {stable_mosaic.version = 11 : i64} {
  func.func @_bn_apply_kernel(%arg0: i32, %arg1: memref<512x128xbf16, #tpu.memory_space<vmem>>, %arg2: memref<1x128xf32, #tpu.memory_space<vmem>>, %arg3: memref<1x128xf32, #tpu.memory_space<vmem>>, %arg4: memref<512x128xbf16, #tpu.memory_space<vmem>>) attributes {dimension_semantics = [#tpu.dimension_semantics<parallel>], iteration_bounds = array<i64: 1>, scalar_prefetch = 0 : i64, scratch_operands = 0 : i64, tpu.core_type = #tpu.core_type<tc>, window_params = [{transform_indices = @transform_0, window_bounds = array<i64: 512, 128>}, {pipeline_mode = #tpu.pipeline_mode<synchronous>, transform_indices = @transform_1, window_bounds = array<i64: 1, 128>}, {pipeline_mode = #tpu.pipeline_mode<synchronous>, transform_indices = @transform_2, window_bounds = array<i64: 1, 128>}, {transform_indices = @transform_3, window_bounds = array<i64: 512, 128>}]} {
    %c0 = arith.constant 0 : index
    %c0_0 = arith.constant 0 : index
    %0 = vector.load %arg1[%c0, %c0_0] : memref<512x128xbf16, #tpu.memory_space<vmem>>, vector<512x128xbf16>
    %1 = arith.extf %0 : vector<512x128xbf16> to vector<512x128xf32>
    %c0_1 = arith.constant 0 : index
    %c0_2 = arith.constant 0 : index
    %2 = vector.load %arg2[%c0_1, %c0_2] : memref<1x128xf32, #tpu.memory_space<vmem>>, vector<1x128xf32>
    %3 = vector.broadcast %2 : vector<1x128xf32> to vector<512x128xf32>
    %4 = arith.mulf %1, %3 : vector<512x128xf32>
    %c0_3 = arith.constant 0 : index
    %c0_4 = arith.constant 0 : index
    %5 = vector.load %arg3[%c0_3, %c0_4] : memref<1x128xf32, #tpu.memory_space<vmem>>, vector<1x128xf32>
    %6 = vector.broadcast %5 : vector<1x128xf32> to vector<512x128xf32>
    %7 = arith.addf %4, %6 : vector<512x128xf32>
    %cst = arith.constant 0.000000e+00 : f32
    %8 = vector.broadcast %cst : f32 to vector<512x128xf32>
    %9 = arith.maximumf %7, %8 : vector<512x128xf32>
    %10 = arith.truncf %9 : vector<512x128xf32> to vector<512x128xbf16>
    %c0_5 = arith.constant 0 : index
    %c0_6 = arith.constant 0 : index
    %11 = vector.load %arg4[%c0_5, %c0_6] : memref<512x128xbf16, #tpu.memory_space<vmem>>, vector<512x128xbf16>
    tpu.vector_store %arg4[%c0_5, %c0_6], %10 {strides = array<i32>} : memref<512x128xbf16, #tpu.memory_space<vmem>>, vector<512x128xbf16>,
    return
  }
  func.func @transform_0(%arg0: i32) -> (i32, i32) {
    %c0_i32 = arith.constant 0 : i32
    %c0_i32_0 = arith.constant 0 : i32
    return %arg0, %c0_i32 : i32, i32
  }
  func.func @transform_1(%arg0: i32) -> (i32, i32) {
    %c0_i32 = arith.constant 0 : i32
    %c0_i32_0 = arith.constant 0 : i32
    %c0_i32_1 = arith.constant 0 : i32
    return %c0_i32, %c0_i32_0 : i32, i32
  }
  func.func @transform_2(%arg0: i32) -> (i32, i32) {
    %c0_i32 = arith.constant 0 : i32
    %c0_i32_0 = arith.constant 0 : i32
    %c0_i32_1 = arith.constant 0 : i32
    return %c0_i32, %c0_i32_0 : i32, i32
  }
  func.func @transform_3(%arg0: i32) -> (i32, i32) {
    %c0_i32 = arith.constant 0 : i32
    %c0_i32_0 = arith.constant 0 : i32
    return %arg0, %c0_i32 : i32, i32
  }
}

module attributes {stable_mosaic.version = 11 : i64} {
  func.func @_max9_kernel(%arg0: i32, %arg1: memref<128x128xbf16, #tpu.memory_space<vmem>>, %arg2: memref<128x128xbf16, #tpu.memory_space<vmem>>, %arg3: memref<128x128xbf16, #tpu.memory_space<vmem>>, %arg4: memref<128x128xbf16, #tpu.memory_space<vmem>>, %arg5: memref<128x128xbf16, #tpu.memory_space<vmem>>, %arg6: memref<128x128xbf16, #tpu.memory_space<vmem>>, %arg7: memref<128x128xbf16, #tpu.memory_space<vmem>>, %arg8: memref<128x128xbf16, #tpu.memory_space<vmem>>, %arg9: memref<128x128xbf16, #tpu.memory_space<vmem>>, %arg10: memref<128x128xbf16, #tpu.memory_space<vmem>>) attributes {dimension_semantics = [#tpu.dimension_semantics<parallel>], iteration_bounds = array<i64: 1>, scalar_prefetch = 0 : i64, scratch_operands = 0 : i64, tpu.core_type = #tpu.core_type<tc>, window_params = [{transform_indices = @transform_0, window_bounds = array<i64: 128, 128>}, {transform_indices = @transform_1, window_bounds = array<i64: 128, 128>}, {transform_indices = @transform_2, window_bounds = array<i64: 128, 128>}, {transform_indices = @transform_3, window_bounds = array<i64: 128, 128>}, {transform_indices = @transform_4, window_bounds = array<i64: 128, 128>}, {transform_indices = @transform_5, window_bounds = array<i64: 128, 128>}, {transform_indices = @transform_6, window_bounds = array<i64: 128, 128>}, {transform_indices = @transform_7, window_bounds = array<i64: 128, 128>}, {transform_indices = @transform_8, window_bounds = array<i64: 128, 128>}, {transform_indices = @transform_9, window_bounds = array<i64: 128, 128>}]} {
    %c0 = arith.constant 0 : index
    %c0_0 = arith.constant 0 : index
    %0 = vector.load %arg1[%c0, %c0_0] : memref<128x128xbf16, #tpu.memory_space<vmem>>, vector<128x128xbf16>
    %c0_1 = arith.constant 0 : index
    %c0_2 = arith.constant 0 : index
    %1 = vector.load %arg2[%c0_1, %c0_2] : memref<128x128xbf16, #tpu.memory_space<vmem>>, vector<128x128xbf16>
    %2 = arith.maximumf %0, %1 : vector<128x128xbf16>
    %c0_3 = arith.constant 0 : index
    %c0_4 = arith.constant 0 : index
    %3 = vector.load %arg3[%c0_3, %c0_4] : memref<128x128xbf16, #tpu.memory_space<vmem>>, vector<128x128xbf16>
    %4 = arith.maximumf %2, %3 : vector<128x128xbf16>
    %c0_5 = arith.constant 0 : index
    %c0_6 = arith.constant 0 : index
    %5 = vector.load %arg4[%c0_5, %c0_6] : memref<128x128xbf16, #tpu.memory_space<vmem>>, vector<128x128xbf16>
    %6 = arith.maximumf %4, %5 : vector<128x128xbf16>
    %c0_7 = arith.constant 0 : index
    %c0_8 = arith.constant 0 : index
    %7 = vector.load %arg5[%c0_7, %c0_8] : memref<128x128xbf16, #tpu.memory_space<vmem>>, vector<128x128xbf16>
    %8 = arith.maximumf %6, %7 : vector<128x128xbf16>
    %c0_9 = arith.constant 0 : index
    %c0_10 = arith.constant 0 : index
    %9 = vector.load %arg6[%c0_9, %c0_10] : memref<128x128xbf16, #tpu.memory_space<vmem>>, vector<128x128xbf16>
    %10 = arith.maximumf %8, %9 : vector<128x128xbf16>
    %c0_11 = arith.constant 0 : index
    %c0_12 = arith.constant 0 : index
    %11 = vector.load %arg7[%c0_11, %c0_12] : memref<128x128xbf16, #tpu.memory_space<vmem>>, vector<128x128xbf16>
    %12 = arith.maximumf %10, %11 : vector<128x128xbf16>
    %c0_13 = arith.constant 0 : index
    %c0_14 = arith.constant 0 : index
    %13 = vector.load %arg8[%c0_13, %c0_14] : memref<128x128xbf16, #tpu.memory_space<vmem>>, vector<128x128xbf16>
    %14 = arith.maximumf %12, %13 : vector<128x128xbf16>
    %c0_15 = arith.constant 0 : index
    %c0_16 = arith.constant 0 : index
    %15 = vector.load %arg9[%c0_15, %c0_16] : memref<128x128xbf16, #tpu.memory_space<vmem>>, vector<128x128xbf16>
    %16 = arith.maximumf %14, %15 : vector<128x128xbf16>
    %c0_17 = arith.constant 0 : index
    %c0_18 = arith.constant 0 : index
    %17 = vector.load %arg10[%c0_17, %c0_18] : memref<128x128xbf16, #tpu.memory_space<vmem>>, vector<128x128xbf16>
    tpu.vector_store %arg10[%c0_17, %c0_18], %16 {strides = array<i32>} : memref<128x128xbf16, #tpu.memory_space<vmem>>, vector<128x128xbf16>,
    return
  }
  func.func @transform_0(%arg0: i32) -> (i32, i32) {
    %c0_i32 = arith.constant 0 : i32
    %c0_i32_0 = arith.constant 0 : i32
    return %arg0, %c0_i32 : i32, i32
  }
  func.func @transform_1(%arg0: i32) -> (i32, i32) {
    %c0_i32 = arith.constant 0 : i32
    %c0_i32_0 = arith.constant 0 : i32
    return %arg0, %c0_i32 : i32, i32
  }
  func.func @transform_2(%arg0: i32) -> (i32, i32) {
    %c0_i32 = arith.constant 0 : i32
    %c0_i32_0 = arith.constant 0 : i32
    return %arg0, %c0_i32 : i32, i32
  }
  func.func @transform_3(%arg0: i32) -> (i32, i32) {
    %c0_i32 = arith.constant 0 : i32
    %c0_i32_0 = arith.constant 0 : i32
    return %arg0, %c0_i32 : i32, i32
  }
  func.func @transform_4(%arg0: i32) -> (i32, i32) {
    %c0_i32 = arith.constant 0 : i32
    %c0_i32_0 = arith.constant 0 : i32
    return %arg0, %c0_i32 : i32, i32
  }
  func.func @transform_5(%arg0: i32) -> (i32, i32) {
    %c0_i32 = arith.constant 0 : i32
    %c0_i32_0 = arith.constant 0 : i32
    return %arg0, %c0_i32 : i32, i32
  }
  func.func @transform_6(%arg0: i32) -> (i32, i32) {
    %c0_i32 = arith.constant 0 : i32
    %c0_i32_0 = arith.constant 0 : i32
    return %arg0, %c0_i32 : i32, i32
  }
  func.func @transform_7(%arg0: i32) -> (i32, i32) {
    %c0_i32 = arith.constant 0 : i32
    %c0_i32_0 = arith.constant 0 : i32
    return %arg0, %c0_i32 : i32, i32
  }
  func.func @transform_8(%arg0: i32) -> (i32, i32) {
    %c0_i32 = arith.constant 0 : i32
    %c0_i32_0 = arith.constant 0 : i32
    return %arg0, %c0_i32 : i32, i32
  }
  func.func @transform_9(%arg0: i32) -> (i32, i32) {
    %c0_i32 = arith.constant 0 : i32
    %c0_i32_0 = arith.constant 0 : i32
    return %arg0, %c0_i32 : i32, i32
  }
}

module attributes {stable_mosaic.version = 11 : i64} {
  func.func @_matmul_kernel(%arg0: i32, %arg1: i32, %arg2: i32, %arg3: memref<128x128xbf16, #tpu.memory_space<vmem>>, %arg4: memref<128x128xbf16, #tpu.memory_space<vmem>>, %arg5: memref<128x128xbf16, #tpu.memory_space<vmem>>, %arg6: memref<1x1x128xf32, #tpu.memory_space<vmem>>, %arg7: memref<1x1x128xf32, #tpu.memory_space<vmem>>, %arg8: memref<128x128xf32, #tpu.memory_space<vmem>>) attributes {dimension_semantics = [#tpu.dimension_semantics<parallel>, #tpu.dimension_semantics<parallel>, #tpu.dimension_semantics<arbitrary>], iteration_bounds = array<i64: 1, 1, 9>, scalar_prefetch = 0 : i64, scratch_operands = 1 : i64, tpu.core_type = #tpu.core_type<tc>, window_params = [{transform_indices = @transform_0, window_bounds = array<i64: 128, 128>}, {transform_indices = @transform_1, window_bounds = array<i64: 128, 128>}, {transform_indices = @transform_2, window_bounds = array<i64: 128, 128>}, {transform_indices = @transform_3, window_bounds = array<i64: 1, 1, 128>}, {transform_indices = @transform_4, window_bounds = array<i64: 1, 1, 128>}]} {
    %c0_i32 = arith.constant 0 : i32
    %0 = arith.cmpi eq, %arg2, %c0_i32 : i32
    %1 = arith.extui %0 : i1 to i32
    %c0_i32_0 = arith.constant 0 : i32
    %2 = arith.cmpi ne, %1, %c0_i32_0 : i32
    scf.if %2 {
      %cst_9 = arith.constant 0.000000e+00 : f32
      %12 = vector.broadcast %cst_9 : f32 to vector<128x128xf32>
      %c0_10 = arith.constant 0 : index
      %c0_11 = arith.constant 0 : index
      %13 = vector.load %arg8[%c0_10, %c0_11] : memref<128x128xf32, #tpu.memory_space<vmem>>, vector<128x128xf32>
      tpu.vector_store %arg8[%c0_10, %c0_11], %12 {strides = array<i32>} : memref<128x128xf32, #tpu.memory_space<vmem>>, vector<128x128xf32>,
    } else {
    }
    %c0 = arith.constant 0 : index
    %c0_1 = arith.constant 0 : index
    %3 = vector.load %arg8[%c0, %c0_1] : memref<128x128xf32, #tpu.memory_space<vmem>>, vector<128x128xf32>
    %c0_2 = arith.constant 0 : index
    %c0_3 = arith.constant 0 : index
    %4 = vector.load %arg3[%c0_2, %c0_3] : memref<128x128xbf16, #tpu.memory_space<vmem>>, vector<128x128xbf16>
    %c0_4 = arith.constant 0 : index
    %c0_5 = arith.constant 0 : index
    %5 = vector.load %arg4[%c0_4, %c0_5] : memref<128x128xbf16, #tpu.memory_space<vmem>>, vector<128x128xbf16>
    %cst = arith.constant dense<0.000000e+00> : vector<128x128xf32>
    %6 = tpu.matmul %4, %5, %cst {dimension_numbers = #tpu.dot_dimension_numbers<[1], [0], [0], [1], [0, 0, 1, 1], [], []>} : vector<128x128xbf16>, vector<128x128xbf16>, vector<128x128xf32> -> vector<128x128xf32>
    %7 = arith.addf %3, %6 : vector<128x128xf32>
    %c0_6 = arith.constant 0 : index
    %c0_7 = arith.constant 0 : index
    %8 = vector.load %arg8[%c0_6, %c0_7] : memref<128x128xf32, #tpu.memory_space<vmem>>, vector<128x128xf32>
    tpu.vector_store %arg8[%c0_6, %c0_7], %7 {strides = array<i32>} : memref<128x128xf32, #tpu.memory_space<vmem>>, vector<128x128xf32>,
    %c8_i32 = arith.constant 8 : i32
    %9 = arith.cmpi eq, %arg2, %c8_i32 : i32
    %10 = arith.extui %9 : i1 to i32
    %c0_i32_8 = arith.constant 0 : i32
    %11 = arith.cmpi ne, %10, %c0_i32_8 : i32
    scf.if %11 {
      %c0_9 = arith.constant 0 : index
      %c0_10 = arith.constant 0 : index
      %12 = vector.load %arg8[%c0_9, %c0_10] : memref<128x128xf32, #tpu.memory_space<vmem>>, vector<128x128xf32>
      %cst_11 = arith.constant dense<0.000000e+00> : vector<128xf32>
      %13 = vector.multi_reduction <add>, %12, %cst_11 [0] : vector<128x128xf32> to vector<128xf32>
      %14 = vector.shape_cast %13 : vector<128xf32> to vector<1x128xf32>
      %15 = vector.shape_cast %14 : vector<1x128xf32> to vector<1x1x128xf32>
      %c0_12 = arith.constant 0 : index
      %c0_13 = arith.constant 0 : index
      %c0_14 = arith.constant 0 : index
      %16 = vector.load %arg6[%c0_12, %c0_13, %c0_14] : memref<1x1x128xf32, #tpu.memory_space<vmem>>, vector<1x1x128xf32>
      tpu.vector_store %arg6[%c0_12, %c0_13, %c0_14], %15 {strides = array<i32>} : memref<1x1x128xf32, #tpu.memory_space<vmem>>, vector<1x1x128xf32>,
      %17 = arith.mulf %12, %12 : vector<128x128xf32>
      %cst_15 = arith.constant dense<0.000000e+00> : vector<128xf32>
      %18 = vector.multi_reduction <add>, %17, %cst_15 [0] : vector<128x128xf32> to vector<128xf32>
      %19 = vector.shape_cast %18 : vector<128xf32> to vector<1x128xf32>
      %20 = vector.shape_cast %19 : vector<1x128xf32> to vector<1x1x128xf32>
      %c0_16 = arith.constant 0 : index
      %c0_17 = arith.constant 0 : index
      %c0_18 = arith.constant 0 : index
      %21 = vector.load %arg7[%c0_16, %c0_17, %c0_18] : memref<1x1x128xf32, #tpu.memory_space<vmem>>, vector<1x1x128xf32>
      tpu.vector_store %arg7[%c0_16, %c0_17, %c0_18], %20 {strides = array<i32>} : memref<1x1x128xf32, #tpu.memory_space<vmem>>, vector<1x1x128xf32>,
      %22 = arith.truncf %12 : vector<128x128xf32> to vector<128x128xbf16>
      %c0_19 = arith.constant 0 : index
      %c0_20 = arith.constant 0 : index
      %23 = vector.load %arg5[%c0_19, %c0_20] : memref<128x128xbf16, #tpu.memory_space<vmem>>, vector<128x128xbf16>
      tpu.vector_store %arg5[%c0_19, %c0_20], %22 {strides = array<i32>} : memref<128x128xbf16, #tpu.memory_space<vmem>>, vector<128x128xbf16>,
    } else {
    }
    return
  }
  func.func @transform_0(%arg0: i32, %arg1: i32, %arg2: i32) -> (i32, i32) {
    %c0_i32 = arith.constant 0 : i32
    return %arg0, %arg2 : i32, i32
  }
  func.func @transform_1(%arg0: i32, %arg1: i32, %arg2: i32) -> (i32, i32) {
    %c0_i32 = arith.constant 0 : i32
    return %arg2, %arg1 : i32, i32
  }
  func.func @transform_2(%arg0: i32, %arg1: i32, %arg2: i32) -> (i32, i32) {
    %c0_i32 = arith.constant 0 : i32
    return %arg0, %arg1 : i32, i32
  }
  func.func @transform_3(%arg0: i32, %arg1: i32, %arg2: i32) -> (i32, i32, i32) {
    %c0_i32 = arith.constant 0 : i32
    %c0_i32_0 = arith.constant 0 : i32
    return %arg0, %c0_i32, %arg1 : i32, i32, i32
  }
  func.func @transform_4(%arg0: i32, %arg1: i32, %arg2: i32) -> (i32, i32, i32) {
    %c0_i32 = arith.constant 0 : i32
    %c0_i32_0 = arith.constant 0 : i32
    return %arg0, %c0_i32, %arg1 : i32, i32, i32
  }
}

module attributes {stable_mosaic.version = 11 : i64} {
  func.func @_bn_apply_kernel(%arg0: i32, %arg1: memref<128x128xbf16, #tpu.memory_space<vmem>>, %arg2: memref<1x128xf32, #tpu.memory_space<vmem>>, %arg3: memref<1x128xf32, #tpu.memory_space<vmem>>, %arg4: memref<128x128xbf16, #tpu.memory_space<vmem>>) attributes {dimension_semantics = [#tpu.dimension_semantics<parallel>], iteration_bounds = array<i64: 1>, scalar_prefetch = 0 : i64, scratch_operands = 0 : i64, tpu.core_type = #tpu.core_type<tc>, window_params = [{transform_indices = @transform_0, window_bounds = array<i64: 128, 128>}, {pipeline_mode = #tpu.pipeline_mode<synchronous>, transform_indices = @transform_1, window_bounds = array<i64: 1, 128>}, {pipeline_mode = #tpu.pipeline_mode<synchronous>, transform_indices = @transform_2, window_bounds = array<i64: 1, 128>}, {transform_indices = @transform_3, window_bounds = array<i64: 128, 128>}]} {
    %c0 = arith.constant 0 : index
    %c0_0 = arith.constant 0 : index
    %0 = vector.load %arg1[%c0, %c0_0] : memref<128x128xbf16, #tpu.memory_space<vmem>>, vector<128x128xbf16>
    %1 = arith.extf %0 : vector<128x128xbf16> to vector<128x128xf32>
    %c0_1 = arith.constant 0 : index
    %c0_2 = arith.constant 0 : index
    %2 = vector.load %arg2[%c0_1, %c0_2] : memref<1x128xf32, #tpu.memory_space<vmem>>, vector<1x128xf32>
    %3 = vector.broadcast %2 : vector<1x128xf32> to vector<128x128xf32>
    %4 = arith.mulf %1, %3 : vector<128x128xf32>
    %c0_3 = arith.constant 0 : index
    %c0_4 = arith.constant 0 : index
    %5 = vector.load %arg3[%c0_3, %c0_4] : memref<1x128xf32, #tpu.memory_space<vmem>>, vector<1x128xf32>
    %6 = vector.broadcast %5 : vector<1x128xf32> to vector<128x128xf32>
    %7 = arith.addf %4, %6 : vector<128x128xf32>
    %cst = arith.constant 0.000000e+00 : f32
    %8 = vector.broadcast %cst : f32 to vector<128x128xf32>
    %9 = arith.maximumf %7, %8 : vector<128x128xf32>
    %10 = arith.truncf %9 : vector<128x128xf32> to vector<128x128xbf16>
    %c0_5 = arith.constant 0 : index
    %c0_6 = arith.constant 0 : index
    %11 = vector.load %arg4[%c0_5, %c0_6] : memref<128x128xbf16, #tpu.memory_space<vmem>>, vector<128x128xbf16>
    tpu.vector_store %arg4[%c0_5, %c0_6], %10 {strides = array<i32>} : memref<128x128xbf16, #tpu.memory_space<vmem>>, vector<128x128xbf16>,
    return
  }
  func.func @transform_0(%arg0: i32) -> (i32, i32) {
    %c0_i32 = arith.constant 0 : i32
    %c0_i32_0 = arith.constant 0 : i32
    return %arg0, %c0_i32 : i32, i32
  }
  func.func @transform_1(%arg0: i32) -> (i32, i32) {
    %c0_i32 = arith.constant 0 : i32
    %c0_i32_0 = arith.constant 0 : i32
    %c0_i32_1 = arith.constant 0 : i32
    return %c0_i32, %c0_i32_0 : i32, i32
  }
  func.func @transform_2(%arg0: i32) -> (i32, i32) {
    %c0_i32 = arith.constant 0 : i32
    %c0_i32_0 = arith.constant 0 : i32
    %c0_i32_1 = arith.constant 0 : i32
    return %c0_i32, %c0_i32_0 : i32, i32
  }
  func.func @transform_3(%arg0: i32) -> (i32, i32) {
    %c0_i32 = arith.constant 0 : i32
    %c0_i32_0 = arith.constant 0 : i32
    return %arg0, %c0_i32 : i32, i32
  }
}

module attributes {stable_mosaic.version = 11 : i64} {
  func.func @_bn_apply_kernel(%arg0: i32, %arg1: memref<128x128xbf16, #tpu.memory_space<vmem>>, %arg2: memref<128x128xbf16, #tpu.memory_space<vmem>>, %arg3: memref<1x128xf32, #tpu.memory_space<vmem>>, %arg4: memref<1x128xf32, #tpu.memory_space<vmem>>, %arg5: memref<128x128xbf16, #tpu.memory_space<vmem>>) attributes {dimension_semantics = [#tpu.dimension_semantics<parallel>], iteration_bounds = array<i64: 1>, scalar_prefetch = 0 : i64, scratch_operands = 0 : i64, tpu.core_type = #tpu.core_type<tc>, window_params = [{transform_indices = @transform_0, window_bounds = array<i64: 128, 128>}, {transform_indices = @transform_1, window_bounds = array<i64: 128, 128>}, {pipeline_mode = #tpu.pipeline_mode<synchronous>, transform_indices = @transform_2, window_bounds = array<i64: 1, 128>}, {pipeline_mode = #tpu.pipeline_mode<synchronous>, transform_indices = @transform_3, window_bounds = array<i64: 1, 128>}, {transform_indices = @transform_4, window_bounds = array<i64: 128, 128>}]} {
    %c0 = arith.constant 0 : index
    %c0_0 = arith.constant 0 : index
    %0 = vector.load %arg1[%c0, %c0_0] : memref<128x128xbf16, #tpu.memory_space<vmem>>, vector<128x128xbf16>
    %1 = arith.extf %0 : vector<128x128xbf16> to vector<128x128xf32>
    %c0_1 = arith.constant 0 : index
    %c0_2 = arith.constant 0 : index
    %2 = vector.load %arg3[%c0_1, %c0_2] : memref<1x128xf32, #tpu.memory_space<vmem>>, vector<1x128xf32>
    %3 = vector.broadcast %2 : vector<1x128xf32> to vector<128x128xf32>
    %4 = arith.mulf %1, %3 : vector<128x128xf32>
    %c0_3 = arith.constant 0 : index
    %c0_4 = arith.constant 0 : index
    %5 = vector.load %arg4[%c0_3, %c0_4] : memref<1x128xf32, #tpu.memory_space<vmem>>, vector<1x128xf32>
    %6 = vector.broadcast %5 : vector<1x128xf32> to vector<128x128xf32>
    %7 = arith.addf %4, %6 : vector<128x128xf32>
    %c0_5 = arith.constant 0 : index
    %c0_6 = arith.constant 0 : index
    %8 = vector.load %arg2[%c0_5, %c0_6] : memref<128x128xbf16, #tpu.memory_space<vmem>>, vector<128x128xbf16>
    %9 = arith.extf %8 : vector<128x128xbf16> to vector<128x128xf32>
    %10 = arith.addf %7, %9 : vector<128x128xf32>
    %cst = arith.constant 0.000000e+00 : f32
    %11 = vector.broadcast %cst : f32 to vector<128x128xf32>
    %12 = arith.maximumf %10, %11 : vector<128x128xf32>
    %13 = arith.truncf %12 : vector<128x128xf32> to vector<128x128xbf16>
    %c0_7 = arith.constant 0 : index
    %c0_8 = arith.constant 0 : index
    %14 = vector.load %arg5[%c0_7, %c0_8] : memref<128x128xbf16, #tpu.memory_space<vmem>>, vector<128x128xbf16>
    tpu.vector_store %arg5[%c0_7, %c0_8], %13 {strides = array<i32>} : memref<128x128xbf16, #tpu.memory_space<vmem>>, vector<128x128xbf16>,
    return
  }
  func.func @transform_0(%arg0: i32) -> (i32, i32) {
    %c0_i32 = arith.constant 0 : i32
    %c0_i32_0 = arith.constant 0 : i32
    return %arg0, %c0_i32 : i32, i32
  }
  func.func @transform_1(%arg0: i32) -> (i32, i32) {
    %c0_i32 = arith.constant 0 : i32
    %c0_i32_0 = arith.constant 0 : i32
    return %arg0, %c0_i32 : i32, i32
  }
  func.func @transform_2(%arg0: i32) -> (i32, i32) {
    %c0_i32 = arith.constant 0 : i32
    %c0_i32_0 = arith.constant 0 : i32
    %c0_i32_1 = arith.constant 0 : i32
    return %c0_i32, %c0_i32_0 : i32, i32
  }
  func.func @transform_3(%arg0: i32) -> (i32, i32) {
    %c0_i32 = arith.constant 0 : i32
    %c0_i32_0 = arith.constant 0 : i32
    %c0_i32_1 = arith.constant 0 : i32
    return %c0_i32, %c0_i32_0 : i32, i32
  }
  func.func @transform_4(%arg0: i32) -> (i32, i32) {
    %c0_i32 = arith.constant 0 : i32
    %c0_i32_0 = arith.constant 0 : i32
    return %arg0, %c0_i32 : i32, i32
  }
}

module attributes {stable_mosaic.version = 11 : i64} {
  func.func @_matmul_kernel(%arg0: i32, %arg1: i32, %arg2: i32, %arg3: memref<32x128xbf16, #tpu.memory_space<vmem>>, %arg4: memref<128x128xbf16, #tpu.memory_space<vmem>>, %arg5: memref<32x128xbf16, #tpu.memory_space<vmem>>, %arg6: memref<1x1x128xf32, #tpu.memory_space<vmem>>, %arg7: memref<1x1x128xf32, #tpu.memory_space<vmem>>, %arg8: memref<32x128xf32, #tpu.memory_space<vmem>>) attributes {dimension_semantics = [#tpu.dimension_semantics<parallel>, #tpu.dimension_semantics<parallel>, #tpu.dimension_semantics<arbitrary>], iteration_bounds = array<i64: 1, 1, 9>, scalar_prefetch = 0 : i64, scratch_operands = 1 : i64, tpu.core_type = #tpu.core_type<tc>, window_params = [{transform_indices = @transform_0, window_bounds = array<i64: 32, 128>}, {transform_indices = @transform_1, window_bounds = array<i64: 128, 128>}, {transform_indices = @transform_2, window_bounds = array<i64: 32, 128>}, {transform_indices = @transform_3, window_bounds = array<i64: 1, 1, 128>}, {transform_indices = @transform_4, window_bounds = array<i64: 1, 1, 128>}]} {
    %c0_i32 = arith.constant 0 : i32
    %0 = arith.cmpi eq, %arg2, %c0_i32 : i32
    %1 = arith.extui %0 : i1 to i32
    %c0_i32_0 = arith.constant 0 : i32
    %2 = arith.cmpi ne, %1, %c0_i32_0 : i32
    scf.if %2 {
      %cst_9 = arith.constant 0.000000e+00 : f32
      %12 = vector.broadcast %cst_9 : f32 to vector<32x128xf32>
      %c0_10 = arith.constant 0 : index
      %c0_11 = arith.constant 0 : index
      %13 = vector.load %arg8[%c0_10, %c0_11] : memref<32x128xf32, #tpu.memory_space<vmem>>, vector<32x128xf32>
      tpu.vector_store %arg8[%c0_10, %c0_11], %12 {strides = array<i32>} : memref<32x128xf32, #tpu.memory_space<vmem>>, vector<32x128xf32>,
    } else {
    }
    %c0 = arith.constant 0 : index
    %c0_1 = arith.constant 0 : index
    %3 = vector.load %arg8[%c0, %c0_1] : memref<32x128xf32, #tpu.memory_space<vmem>>, vector<32x128xf32>
    %c0_2 = arith.constant 0 : index
    %c0_3 = arith.constant 0 : index
    %4 = vector.load %arg3[%c0_2, %c0_3] : memref<32x128xbf16, #tpu.memory_space<vmem>>, vector<32x128xbf16>
    %c0_4 = arith.constant 0 : index
    %c0_5 = arith.constant 0 : index
    %5 = vector.load %arg4[%c0_4, %c0_5] : memref<128x128xbf16, #tpu.memory_space<vmem>>, vector<128x128xbf16>
    %cst = arith.constant dense<0.000000e+00> : vector<32x128xf32>
    %6 = tpu.matmul %4, %5, %cst {dimension_numbers = #tpu.dot_dimension_numbers<[1], [0], [0], [1], [0, 0, 1, 1], [], []>} : vector<32x128xbf16>, vector<128x128xbf16>, vector<32x128xf32> -> vector<32x128xf32>
    %7 = arith.addf %3, %6 : vector<32x128xf32>
    %c0_6 = arith.constant 0 : index
    %c0_7 = arith.constant 0 : index
    %8 = vector.load %arg8[%c0_6, %c0_7] : memref<32x128xf32, #tpu.memory_space<vmem>>, vector<32x128xf32>
    tpu.vector_store %arg8[%c0_6, %c0_7], %7 {strides = array<i32>} : memref<32x128xf32, #tpu.memory_space<vmem>>, vector<32x128xf32>,
    %c8_i32 = arith.constant 8 : i32
    %9 = arith.cmpi eq, %arg2, %c8_i32 : i32
    %10 = arith.extui %9 : i1 to i32
    %c0_i32_8 = arith.constant 0 : i32
    %11 = arith.cmpi ne, %10, %c0_i32_8 : i32
    scf.if %11 {
      %c0_9 = arith.constant 0 : index
      %c0_10 = arith.constant 0 : index
      %12 = vector.load %arg8[%c0_9, %c0_10] : memref<32x128xf32, #tpu.memory_space<vmem>>, vector<32x128xf32>
      %cst_11 = arith.constant dense<0.000000e+00> : vector<128xf32>
      %13 = vector.multi_reduction <add>, %12, %cst_11 [0] : vector<32x128xf32> to vector<128xf32>
      %14 = vector.shape_cast %13 : vector<128xf32> to vector<1x128xf32>
      %15 = vector.shape_cast %14 : vector<1x128xf32> to vector<1x1x128xf32>
      %c0_12 = arith.constant 0 : index
      %c0_13 = arith.constant 0 : index
      %c0_14 = arith.constant 0 : index
      %16 = vector.load %arg6[%c0_12, %c0_13, %c0_14] : memref<1x1x128xf32, #tpu.memory_space<vmem>>, vector<1x1x128xf32>
      tpu.vector_store %arg6[%c0_12, %c0_13, %c0_14], %15 {strides = array<i32>} : memref<1x1x128xf32, #tpu.memory_space<vmem>>, vector<1x1x128xf32>,
      %17 = arith.mulf %12, %12 : vector<32x128xf32>
      %cst_15 = arith.constant dense<0.000000e+00> : vector<128xf32>
      %18 = vector.multi_reduction <add>, %17, %cst_15 [0] : vector<32x128xf32> to vector<128xf32>
      %19 = vector.shape_cast %18 : vector<128xf32> to vector<1x128xf32>
      %20 = vector.shape_cast %19 : vector<1x128xf32> to vector<1x1x128xf32>
      %c0_16 = arith.constant 0 : index
      %c0_17 = arith.constant 0 : index
      %c0_18 = arith.constant 0 : index
      %21 = vector.load %arg7[%c0_16, %c0_17, %c0_18] : memref<1x1x128xf32, #tpu.memory_space<vmem>>, vector<1x1x128xf32>
      tpu.vector_store %arg7[%c0_16, %c0_17, %c0_18], %20 {strides = array<i32>} : memref<1x1x128xf32, #tpu.memory_space<vmem>>, vector<1x1x128xf32>,
      %22 = arith.truncf %12 : vector<32x128xf32> to vector<32x128xbf16>
      %c0_19 = arith.constant 0 : index
      %c0_20 = arith.constant 0 : index
      %23 = vector.load %arg5[%c0_19, %c0_20] : memref<32x128xbf16, #tpu.memory_space<vmem>>, vector<32x128xbf16>
      tpu.vector_store %arg5[%c0_19, %c0_20], %22 {strides = array<i32>} : memref<32x128xbf16, #tpu.memory_space<vmem>>, vector<32x128xbf16>,
    } else {
    }
    return
  }
  func.func @transform_0(%arg0: i32, %arg1: i32, %arg2: i32) -> (i32, i32) {
    %c0_i32 = arith.constant 0 : i32
    return %arg0, %arg2 : i32, i32
  }
  func.func @transform_1(%arg0: i32, %arg1: i32, %arg2: i32) -> (i32, i32) {
    %c0_i32 = arith.constant 0 : i32
    return %arg2, %arg1 : i32, i32
  }
  func.func @transform_2(%arg0: i32, %arg1: i32, %arg2: i32) -> (i32, i32) {
    %c0_i32 = arith.constant 0 : i32
    return %arg0, %arg1 : i32, i32
  }
  func.func @transform_3(%arg0: i32, %arg1: i32, %arg2: i32) -> (i32, i32, i32) {
    %c0_i32 = arith.constant 0 : i32
    %c0_i32_0 = arith.constant 0 : i32
    return %arg0, %c0_i32, %arg1 : i32, i32, i32
  }
  func.func @transform_4(%arg0: i32, %arg1: i32, %arg2: i32) -> (i32, i32, i32) {
    %c0_i32 = arith.constant 0 : i32
    %c0_i32_0 = arith.constant 0 : i32
    return %arg0, %c0_i32, %arg1 : i32, i32, i32
  }
}

module attributes {stable_mosaic.version = 11 : i64} {
  func.func @_bn_apply_kernel(%arg0: i32, %arg1: memref<32x128xbf16, #tpu.memory_space<vmem>>, %arg2: memref<1x128xf32, #tpu.memory_space<vmem>>, %arg3: memref<1x128xf32, #tpu.memory_space<vmem>>, %arg4: memref<32x128xbf16, #tpu.memory_space<vmem>>) attributes {dimension_semantics = [#tpu.dimension_semantics<parallel>], iteration_bounds = array<i64: 1>, scalar_prefetch = 0 : i64, scratch_operands = 0 : i64, tpu.core_type = #tpu.core_type<tc>, window_params = [{transform_indices = @transform_0, window_bounds = array<i64: 32, 128>}, {pipeline_mode = #tpu.pipeline_mode<synchronous>, transform_indices = @transform_1, window_bounds = array<i64: 1, 128>}, {pipeline_mode = #tpu.pipeline_mode<synchronous>, transform_indices = @transform_2, window_bounds = array<i64: 1, 128>}, {transform_indices = @transform_3, window_bounds = array<i64: 32, 128>}]} {
    %c0 = arith.constant 0 : index
    %c0_0 = arith.constant 0 : index
    %0 = vector.load %arg1[%c0, %c0_0] : memref<32x128xbf16, #tpu.memory_space<vmem>>, vector<32x128xbf16>
    %1 = arith.extf %0 : vector<32x128xbf16> to vector<32x128xf32>
    %c0_1 = arith.constant 0 : index
    %c0_2 = arith.constant 0 : index
    %2 = vector.load %arg2[%c0_1, %c0_2] : memref<1x128xf32, #tpu.memory_space<vmem>>, vector<1x128xf32>
    %3 = vector.broadcast %2 : vector<1x128xf32> to vector<32x128xf32>
    %4 = arith.mulf %1, %3 : vector<32x128xf32>
    %c0_3 = arith.constant 0 : index
    %c0_4 = arith.constant 0 : index
    %5 = vector.load %arg3[%c0_3, %c0_4] : memref<1x128xf32, #tpu.memory_space<vmem>>, vector<1x128xf32>
    %6 = vector.broadcast %5 : vector<1x128xf32> to vector<32x128xf32>
    %7 = arith.addf %4, %6 : vector<32x128xf32>
    %cst = arith.constant 0.000000e+00 : f32
    %8 = vector.broadcast %cst : f32 to vector<32x128xf32>
    %9 = arith.maximumf %7, %8 : vector<32x128xf32>
    %10 = arith.truncf %9 : vector<32x128xf32> to vector<32x128xbf16>
    %c0_5 = arith.constant 0 : index
    %c0_6 = arith.constant 0 : index
    %11 = vector.load %arg4[%c0_5, %c0_6] : memref<32x128xbf16, #tpu.memory_space<vmem>>, vector<32x128xbf16>
    tpu.vector_store %arg4[%c0_5, %c0_6], %10 {strides = array<i32>} : memref<32x128xbf16, #tpu.memory_space<vmem>>, vector<32x128xbf16>,
    return
  }
  func.func @transform_0(%arg0: i32) -> (i32, i32) {
    %c0_i32 = arith.constant 0 : i32
    %c0_i32_0 = arith.constant 0 : i32
    return %arg0, %c0_i32 : i32, i32
  }
  func.func @transform_1(%arg0: i32) -> (i32, i32) {
    %c0_i32 = arith.constant 0 : i32
    %c0_i32_0 = arith.constant 0 : i32
    %c0_i32_1 = arith.constant 0 : i32
    return %c0_i32, %c0_i32_0 : i32, i32
  }
  func.func @transform_2(%arg0: i32) -> (i32, i32) {
    %c0_i32 = arith.constant 0 : i32
    %c0_i32_0 = arith.constant 0 : i32
    %c0_i32_1 = arith.constant 0 : i32
    return %c0_i32, %c0_i32_0 : i32, i32
  }
  func.func @transform_3(%arg0: i32) -> (i32, i32) {
    %c0_i32 = arith.constant 0 : i32
    %c0_i32_0 = arith.constant 0 : i32
    return %arg0, %c0_i32 : i32, i32
  }
}

module attributes {stable_mosaic.version = 11 : i64} {
  func.func @_matmul_kernel(%arg0: i32, %arg1: i32, %arg2: i32, %arg3: memref<32x128xbf16, #tpu.memory_space<vmem>>, %arg4: memref<128x128xbf16, #tpu.memory_space<vmem>>, %arg5: memref<32x128xbf16, #tpu.memory_space<vmem>>, %arg6: memref<1x1x128xf32, #tpu.memory_space<vmem>>, %arg7: memref<1x1x128xf32, #tpu.memory_space<vmem>>, %arg8: memref<32x128xf32, #tpu.memory_space<vmem>>) attributes {dimension_semantics = [#tpu.dimension_semantics<parallel>, #tpu.dimension_semantics<parallel>, #tpu.dimension_semantics<arbitrary>], iteration_bounds = array<i64: 1, 1, 1>, scalar_prefetch = 0 : i64, scratch_operands = 1 : i64, tpu.core_type = #tpu.core_type<tc>, window_params = [{transform_indices = @transform_0, window_bounds = array<i64: 32, 128>}, {transform_indices = @transform_1, window_bounds = array<i64: 128, 128>}, {transform_indices = @transform_2, window_bounds = array<i64: 32, 128>}, {transform_indices = @transform_3, window_bounds = array<i64: 1, 1, 128>}, {transform_indices = @transform_4, window_bounds = array<i64: 1, 1, 128>}]} {
    %c0_i32 = arith.constant 0 : i32
    %0 = arith.cmpi eq, %arg2, %c0_i32 : i32
    %1 = arith.extui %0 : i1 to i32
    %c0_i32_0 = arith.constant 0 : i32
    %2 = arith.cmpi ne, %1, %c0_i32_0 : i32
    scf.if %2 {
      %cst_10 = arith.constant 0.000000e+00 : f32
      %12 = vector.broadcast %cst_10 : f32 to vector<32x128xf32>
      %c0_11 = arith.constant 0 : index
      %c0_12 = arith.constant 0 : index
      %13 = vector.load %arg8[%c0_11, %c0_12] : memref<32x128xf32, #tpu.memory_space<vmem>>, vector<32x128xf32>
      tpu.vector_store %arg8[%c0_11, %c0_12], %12 {strides = array<i32>} : memref<32x128xf32, #tpu.memory_space<vmem>>, vector<32x128xf32>,
    } else {
    }
    %c0 = arith.constant 0 : index
    %c0_1 = arith.constant 0 : index
    %3 = vector.load %arg8[%c0, %c0_1] : memref<32x128xf32, #tpu.memory_space<vmem>>, vector<32x128xf32>
    %c0_2 = arith.constant 0 : index
    %c0_3 = arith.constant 0 : index
    %4 = vector.load %arg3[%c0_2, %c0_3] : memref<32x128xbf16, #tpu.memory_space<vmem>>, vector<32x128xbf16>
    %c0_4 = arith.constant 0 : index
    %c0_5 = arith.constant 0 : index
    %5 = vector.load %arg4[%c0_4, %c0_5] : memref<128x128xbf16, #tpu.memory_space<vmem>>, vector<128x128xbf16>
    %cst = arith.constant dense<0.000000e+00> : vector<32x128xf32>
    %6 = tpu.matmul %4, %5, %cst {dimension_numbers = #tpu.dot_dimension_numbers<[1], [0], [0], [1], [0, 0, 1, 1], [], []>} : vector<32x128xbf16>, vector<128x128xbf16>, vector<32x128xf32> -> vector<32x128xf32>
    %7 = arith.addf %3, %6 : vector<32x128xf32>
    %c0_6 = arith.constant 0 : index
    %c0_7 = arith.constant 0 : index
    %8 = vector.load %arg8[%c0_6, %c0_7] : memref<32x128xf32, #tpu.memory_space<vmem>>, vector<32x128xf32>
    tpu.vector_store %arg8[%c0_6, %c0_7], %7 {strides = array<i32>} : memref<32x128xf32, #tpu.memory_space<vmem>>, vector<32x128xf32>,
    %c0_i32_8 = arith.constant 0 : i32
    %9 = arith.cmpi eq, %arg2, %c0_i32_8 : i32
    %10 = arith.extui %9 : i1 to i32
    %c0_i32_9 = arith.constant 0 : i32
    %11 = arith.cmpi ne, %10, %c0_i32_9 : i32
    scf.if %11 {
      %c0_10 = arith.constant 0 : index
      %c0_11 = arith.constant 0 : index
      %12 = vector.load %arg8[%c0_10, %c0_11] : memref<32x128xf32, #tpu.memory_space<vmem>>, vector<32x128xf32>
      %cst_12 = arith.constant dense<0.000000e+00> : vector<128xf32>
      %13 = vector.multi_reduction <add>, %12, %cst_12 [0] : vector<32x128xf32> to vector<128xf32>
      %14 = vector.shape_cast %13 : vector<128xf32> to vector<1x128xf32>
      %15 = vector.shape_cast %14 : vector<1x128xf32> to vector<1x1x128xf32>
      %c0_13 = arith.constant 0 : index
      %c0_14 = arith.constant 0 : index
      %c0_15 = arith.constant 0 : index
      %16 = vector.load %arg6[%c0_13, %c0_14, %c0_15] : memref<1x1x128xf32, #tpu.memory_space<vmem>>, vector<1x1x128xf32>
      tpu.vector_store %arg6[%c0_13, %c0_14, %c0_15], %15 {strides = array<i32>} : memref<1x1x128xf32, #tpu.memory_space<vmem>>, vector<1x1x128xf32>,
      %17 = arith.mulf %12, %12 : vector<32x128xf32>
      %cst_16 = arith.constant dense<0.000000e+00> : vector<128xf32>
      %18 = vector.multi_reduction <add>, %17, %cst_16 [0] : vector<32x128xf32> to vector<128xf32>
      %19 = vector.shape_cast %18 : vector<128xf32> to vector<1x128xf32>
      %20 = vector.shape_cast %19 : vector<1x128xf32> to vector<1x1x128xf32>
      %c0_17 = arith.constant 0 : index
      %c0_18 = arith.constant 0 : index
      %c0_19 = arith.constant 0 : index
      %21 = vector.load %arg7[%c0_17, %c0_18, %c0_19] : memref<1x1x128xf32, #tpu.memory_space<vmem>>, vector<1x1x128xf32>
      tpu.vector_store %arg7[%c0_17, %c0_18, %c0_19], %20 {strides = array<i32>} : memref<1x1x128xf32, #tpu.memory_space<vmem>>, vector<1x1x128xf32>,
      %22 = arith.truncf %12 : vector<32x128xf32> to vector<32x128xbf16>
      %c0_20 = arith.constant 0 : index
      %c0_21 = arith.constant 0 : index
      %23 = vector.load %arg5[%c0_20, %c0_21] : memref<32x128xbf16, #tpu.memory_space<vmem>>, vector<32x128xbf16>
      tpu.vector_store %arg5[%c0_20, %c0_21], %22 {strides = array<i32>} : memref<32x128xbf16, #tpu.memory_space<vmem>>, vector<32x128xbf16>,
    } else {
    }
    return
  }
  func.func @transform_0(%arg0: i32, %arg1: i32, %arg2: i32) -> (i32, i32) {
    %c0_i32 = arith.constant 0 : i32
    return %arg0, %arg2 : i32, i32
  }
  func.func @transform_1(%arg0: i32, %arg1: i32, %arg2: i32) -> (i32, i32) {
    %c0_i32 = arith.constant 0 : i32
    return %arg2, %arg1 : i32, i32
  }
  func.func @transform_2(%arg0: i32, %arg1: i32, %arg2: i32) -> (i32, i32) {
    %c0_i32 = arith.constant 0 : i32
    return %arg0, %arg1 : i32, i32
  }
  func.func @transform_3(%arg0: i32, %arg1: i32, %arg2: i32) -> (i32, i32, i32) {
    %c0_i32 = arith.constant 0 : i32
    %c0_i32_0 = arith.constant 0 : i32
    return %arg0, %c0_i32, %arg1 : i32, i32, i32
  }
  func.func @transform_4(%arg0: i32, %arg1: i32, %arg2: i32) -> (i32, i32, i32) {
    %c0_i32 = arith.constant 0 : i32
    %c0_i32_0 = arith.constant 0 : i32
    return %arg0, %c0_i32, %arg1 : i32, i32, i32
  }
}

module attributes {stable_mosaic.version = 11 : i64} {
  func.func @_bn_apply_kernel(%arg0: i32, %arg1: memref<32x128xbf16, #tpu.memory_space<vmem>>, %arg2: memref<1x128xf32, #tpu.memory_space<vmem>>, %arg3: memref<1x128xf32, #tpu.memory_space<vmem>>, %arg4: memref<32x128xbf16, #tpu.memory_space<vmem>>) attributes {dimension_semantics = [#tpu.dimension_semantics<parallel>], iteration_bounds = array<i64: 1>, scalar_prefetch = 0 : i64, scratch_operands = 0 : i64, tpu.core_type = #tpu.core_type<tc>, window_params = [{transform_indices = @transform_0, window_bounds = array<i64: 32, 128>}, {pipeline_mode = #tpu.pipeline_mode<synchronous>, transform_indices = @transform_1, window_bounds = array<i64: 1, 128>}, {pipeline_mode = #tpu.pipeline_mode<synchronous>, transform_indices = @transform_2, window_bounds = array<i64: 1, 128>}, {transform_indices = @transform_3, window_bounds = array<i64: 32, 128>}]} {
    %c0 = arith.constant 0 : index
    %c0_0 = arith.constant 0 : index
    %0 = vector.load %arg1[%c0, %c0_0] : memref<32x128xbf16, #tpu.memory_space<vmem>>, vector<32x128xbf16>
    %1 = arith.extf %0 : vector<32x128xbf16> to vector<32x128xf32>
    %c0_1 = arith.constant 0 : index
    %c0_2 = arith.constant 0 : index
    %2 = vector.load %arg2[%c0_1, %c0_2] : memref<1x128xf32, #tpu.memory_space<vmem>>, vector<1x128xf32>
    %3 = vector.broadcast %2 : vector<1x128xf32> to vector<32x128xf32>
    %4 = arith.mulf %1, %3 : vector<32x128xf32>
    %c0_3 = arith.constant 0 : index
    %c0_4 = arith.constant 0 : index
    %5 = vector.load %arg3[%c0_3, %c0_4] : memref<1x128xf32, #tpu.memory_space<vmem>>, vector<1x128xf32>
    %6 = vector.broadcast %5 : vector<1x128xf32> to vector<32x128xf32>
    %7 = arith.addf %4, %6 : vector<32x128xf32>
    %8 = arith.truncf %7 : vector<32x128xf32> to vector<32x128xbf16>
    %c0_5 = arith.constant 0 : index
    %c0_6 = arith.constant 0 : index
    %9 = vector.load %arg4[%c0_5, %c0_6] : memref<32x128xbf16, #tpu.memory_space<vmem>>, vector<32x128xbf16>
    tpu.vector_store %arg4[%c0_5, %c0_6], %8 {strides = array<i32>} : memref<32x128xbf16, #tpu.memory_space<vmem>>, vector<32x128xbf16>,
    return
  }
  func.func @transform_0(%arg0: i32) -> (i32, i32) {
    %c0_i32 = arith.constant 0 : i32
    %c0_i32_0 = arith.constant 0 : i32
    return %arg0, %c0_i32 : i32, i32
  }
  func.func @transform_1(%arg0: i32) -> (i32, i32) {
    %c0_i32 = arith.constant 0 : i32
    %c0_i32_0 = arith.constant 0 : i32
    %c0_i32_1 = arith.constant 0 : i32
    return %c0_i32, %c0_i32_0 : i32, i32
  }
  func.func @transform_2(%arg0: i32) -> (i32, i32) {
    %c0_i32 = arith.constant 0 : i32
    %c0_i32_0 = arith.constant 0 : i32
    %c0_i32_1 = arith.constant 0 : i32
    return %c0_i32, %c0_i32_0 : i32, i32
  }
  func.func @transform_3(%arg0: i32) -> (i32, i32) {
    %c0_i32 = arith.constant 0 : i32
    %c0_i32_0 = arith.constant 0 : i32
    return %arg0, %c0_i32 : i32, i32
  }
}

module attributes {stable_mosaic.version = 11 : i64} {
  func.func @_bn_apply_kernel(%arg0: i32, %arg1: memref<32x128xbf16, #tpu.memory_space<vmem>>, %arg2: memref<32x128xbf16, #tpu.memory_space<vmem>>, %arg3: memref<1x128xf32, #tpu.memory_space<vmem>>, %arg4: memref<1x128xf32, #tpu.memory_space<vmem>>, %arg5: memref<32x128xbf16, #tpu.memory_space<vmem>>) attributes {dimension_semantics = [#tpu.dimension_semantics<parallel>], iteration_bounds = array<i64: 1>, scalar_prefetch = 0 : i64, scratch_operands = 0 : i64, tpu.core_type = #tpu.core_type<tc>, window_params = [{transform_indices = @transform_0, window_bounds = array<i64: 32, 128>}, {transform_indices = @transform_1, window_bounds = array<i64: 32, 128>}, {pipeline_mode = #tpu.pipeline_mode<synchronous>, transform_indices = @transform_2, window_bounds = array<i64: 1, 128>}, {pipeline_mode = #tpu.pipeline_mode<synchronous>, transform_indices = @transform_3, window_bounds = array<i64: 1, 128>}, {transform_indices = @transform_4, window_bounds = array<i64: 32, 128>}]} {
    %c0 = arith.constant 0 : index
    %c0_0 = arith.constant 0 : index
    %0 = vector.load %arg1[%c0, %c0_0] : memref<32x128xbf16, #tpu.memory_space<vmem>>, vector<32x128xbf16>
    %1 = arith.extf %0 : vector<32x128xbf16> to vector<32x128xf32>
    %c0_1 = arith.constant 0 : index
    %c0_2 = arith.constant 0 : index
    %2 = vector.load %arg3[%c0_1, %c0_2] : memref<1x128xf32, #tpu.memory_space<vmem>>, vector<1x128xf32>
    %3 = vector.broadcast %2 : vector<1x128xf32> to vector<32x128xf32>
    %4 = arith.mulf %1, %3 : vector<32x128xf32>
    %c0_3 = arith.constant 0 : index
    %c0_4 = arith.constant 0 : index
    %5 = vector.load %arg4[%c0_3, %c0_4] : memref<1x128xf32, #tpu.memory_space<vmem>>, vector<1x128xf32>
    %6 = vector.broadcast %5 : vector<1x128xf32> to vector<32x128xf32>
    %7 = arith.addf %4, %6 : vector<32x128xf32>
    %c0_5 = arith.constant 0 : index
    %c0_6 = arith.constant 0 : index
    %8 = vector.load %arg2[%c0_5, %c0_6] : memref<32x128xbf16, #tpu.memory_space<vmem>>, vector<32x128xbf16>
    %9 = arith.extf %8 : vector<32x128xbf16> to vector<32x128xf32>
    %10 = arith.addf %7, %9 : vector<32x128xf32>
    %cst = arith.constant 0.000000e+00 : f32
    %11 = vector.broadcast %cst : f32 to vector<32x128xf32>
    %12 = arith.maximumf %10, %11 : vector<32x128xf32>
    %13 = arith.truncf %12 : vector<32x128xf32> to vector<32x128xbf16>
    %c0_7 = arith.constant 0 : index
    %c0_8 = arith.constant 0 : index
    %14 = vector.load %arg5[%c0_7, %c0_8] : memref<32x128xbf16, #tpu.memory_space<vmem>>, vector<32x128xbf16>
    tpu.vector_store %arg5[%c0_7, %c0_8], %13 {strides = array<i32>} : memref<32x128xbf16, #tpu.memory_space<vmem>>, vector<32x128xbf16>,
    return
  }
  func.func @transform_0(%arg0: i32) -> (i32, i32) {
    %c0_i32 = arith.constant 0 : i32
    %c0_i32_0 = arith.constant 0 : i32
    return %arg0, %c0_i32 : i32, i32
  }
  func.func @transform_1(%arg0: i32) -> (i32, i32) {
    %c0_i32 = arith.constant 0 : i32
    %c0_i32_0 = arith.constant 0 : i32
    return %arg0, %c0_i32 : i32, i32
  }
  func.func @transform_2(%arg0: i32) -> (i32, i32) {
    %c0_i32 = arith.constant 0 : i32
    %c0_i32_0 = arith.constant 0 : i32
    %c0_i32_1 = arith.constant 0 : i32
    return %c0_i32, %c0_i32_0 : i32, i32
  }
  func.func @transform_3(%arg0: i32) -> (i32, i32) {
    %c0_i32 = arith.constant 0 : i32
    %c0_i32_0 = arith.constant 0 : i32
    %c0_i32_1 = arith.constant 0 : i32
    return %c0_i32, %c0_i32_0 : i32, i32
  }
  func.func @transform_4(%arg0: i32) -> (i32, i32) {
    %c0_i32 = arith.constant 0 : i32
    %c0_i32_0 = arith.constant 0 : i32
    return %arg0, %c0_i32 : i32, i32
  }
}

module attributes {stable_mosaic.version = 11 : i64} {
  func.func @_matmul_kernel(%arg0: i32, %arg1: i32, %arg2: i32, %arg3: memref<16x128xbf16, #tpu.memory_space<vmem>>, %arg4: memref<128x256xbf16, #tpu.memory_space<vmem>>, %arg5: memref<16x256xbf16, #tpu.memory_space<vmem>>, %arg6: memref<1x1x256xf32, #tpu.memory_space<vmem>>, %arg7: memref<1x1x256xf32, #tpu.memory_space<vmem>>, %arg8: memref<16x256xf32, #tpu.memory_space<vmem>>) attributes {dimension_semantics = [#tpu.dimension_semantics<parallel>, #tpu.dimension_semantics<parallel>, #tpu.dimension_semantics<arbitrary>], iteration_bounds = array<i64: 1, 1, 9>, scalar_prefetch = 0 : i64, scratch_operands = 1 : i64, tpu.core_type = #tpu.core_type<tc>, window_params = [{transform_indices = @transform_0, window_bounds = array<i64: 16, 128>}, {transform_indices = @transform_1, window_bounds = array<i64: 128, 256>}, {transform_indices = @transform_2, window_bounds = array<i64: 16, 256>}, {transform_indices = @transform_3, window_bounds = array<i64: 1, 1, 256>}, {transform_indices = @transform_4, window_bounds = array<i64: 1, 1, 256>}]} {
    %c0_i32 = arith.constant 0 : i32
    %0 = arith.cmpi eq, %arg2, %c0_i32 : i32
    %1 = arith.extui %0 : i1 to i32
    %c0_i32_0 = arith.constant 0 : i32
    %2 = arith.cmpi ne, %1, %c0_i32_0 : i32
    scf.if %2 {
      %cst_9 = arith.constant 0.000000e+00 : f32
      %12 = vector.broadcast %cst_9 : f32 to vector<16x256xf32>
      %c0_10 = arith.constant 0 : index
      %c0_11 = arith.constant 0 : index
      %13 = vector.load %arg8[%c0_10, %c0_11] : memref<16x256xf32, #tpu.memory_space<vmem>>, vector<16x256xf32>
      tpu.vector_store %arg8[%c0_10, %c0_11], %12 {strides = array<i32>} : memref<16x256xf32, #tpu.memory_space<vmem>>, vector<16x256xf32>,
    } else {
    }
    %c0 = arith.constant 0 : index
    %c0_1 = arith.constant 0 : index
    %3 = vector.load %arg8[%c0, %c0_1] : memref<16x256xf32, #tpu.memory_space<vmem>>, vector<16x256xf32>
    %c0_2 = arith.constant 0 : index
    %c0_3 = arith.constant 0 : index
    %4 = vector.load %arg3[%c0_2, %c0_3] : memref<16x128xbf16, #tpu.memory_space<vmem>>, vector<16x128xbf16>
    %c0_4 = arith.constant 0 : index
    %c0_5 = arith.constant 0 : index
    %5 = vector.load %arg4[%c0_4, %c0_5] : memref<128x256xbf16, #tpu.memory_space<vmem>>, vector<128x256xbf16>
    %cst = arith.constant dense<0.000000e+00> : vector<16x256xf32>
    %6 = tpu.matmul %4, %5, %cst {dimension_numbers = #tpu.dot_dimension_numbers<[1], [0], [0], [1], [0, 0, 1, 1], [], []>} : vector<16x128xbf16>, vector<128x256xbf16>, vector<16x256xf32> -> vector<16x256xf32>
    %7 = arith.addf %3, %6 : vector<16x256xf32>
    %c0_6 = arith.constant 0 : index
    %c0_7 = arith.constant 0 : index
    %8 = vector.load %arg8[%c0_6, %c0_7] : memref<16x256xf32, #tpu.memory_space<vmem>>, vector<16x256xf32>
    tpu.vector_store %arg8[%c0_6, %c0_7], %7 {strides = array<i32>} : memref<16x256xf32, #tpu.memory_space<vmem>>, vector<16x256xf32>,
    %c8_i32 = arith.constant 8 : i32
    %9 = arith.cmpi eq, %arg2, %c8_i32 : i32
    %10 = arith.extui %9 : i1 to i32
    %c0_i32_8 = arith.constant 0 : i32
    %11 = arith.cmpi ne, %10, %c0_i32_8 : i32
    scf.if %11 {
      %c0_9 = arith.constant 0 : index
      %c0_10 = arith.constant 0 : index
      %12 = vector.load %arg8[%c0_9, %c0_10] : memref<16x256xf32, #tpu.memory_space<vmem>>, vector<16x256xf32>
      %cst_11 = arith.constant dense<0.000000e+00> : vector<256xf32>
      %13 = vector.multi_reduction <add>, %12, %cst_11 [0] : vector<16x256xf32> to vector<256xf32>
      %14 = vector.shape_cast %13 : vector<256xf32> to vector<1x256xf32>
      %15 = vector.shape_cast %14 : vector<1x256xf32> to vector<1x1x256xf32>
      %c0_12 = arith.constant 0 : index
      %c0_13 = arith.constant 0 : index
      %c0_14 = arith.constant 0 : index
      %16 = vector.load %arg6[%c0_12, %c0_13, %c0_14] : memref<1x1x256xf32, #tpu.memory_space<vmem>>, vector<1x1x256xf32>
      tpu.vector_store %arg6[%c0_12, %c0_13, %c0_14], %15 {strides = array<i32>} : memref<1x1x256xf32, #tpu.memory_space<vmem>>, vector<1x1x256xf32>,
      %17 = arith.mulf %12, %12 : vector<16x256xf32>
      %cst_15 = arith.constant dense<0.000000e+00> : vector<256xf32>
      %18 = vector.multi_reduction <add>, %17, %cst_15 [0] : vector<16x256xf32> to vector<256xf32>
      %19 = vector.shape_cast %18 : vector<256xf32> to vector<1x256xf32>
      %20 = vector.shape_cast %19 : vector<1x256xf32> to vector<1x1x256xf32>
      %c0_16 = arith.constant 0 : index
      %c0_17 = arith.constant 0 : index
      %c0_18 = arith.constant 0 : index
      %21 = vector.load %arg7[%c0_16, %c0_17, %c0_18] : memref<1x1x256xf32, #tpu.memory_space<vmem>>, vector<1x1x256xf32>
      tpu.vector_store %arg7[%c0_16, %c0_17, %c0_18], %20 {strides = array<i32>} : memref<1x1x256xf32, #tpu.memory_space<vmem>>, vector<1x1x256xf32>,
      %22 = arith.truncf %12 : vector<16x256xf32> to vector<16x256xbf16>
      %c0_19 = arith.constant 0 : index
      %c0_20 = arith.constant 0 : index
      %23 = vector.load %arg5[%c0_19, %c0_20] : memref<16x256xbf16, #tpu.memory_space<vmem>>, vector<16x256xbf16>
      tpu.vector_store %arg5[%c0_19, %c0_20], %22 {strides = array<i32>} : memref<16x256xbf16, #tpu.memory_space<vmem>>, vector<16x256xbf16>,
    } else {
    }
    return
  }
  func.func @transform_0(%arg0: i32, %arg1: i32, %arg2: i32) -> (i32, i32) {
    %c0_i32 = arith.constant 0 : i32
    return %arg0, %arg2 : i32, i32
  }
  func.func @transform_1(%arg0: i32, %arg1: i32, %arg2: i32) -> (i32, i32) {
    %c0_i32 = arith.constant 0 : i32
    return %arg2, %arg1 : i32, i32
  }
  func.func @transform_2(%arg0: i32, %arg1: i32, %arg2: i32) -> (i32, i32) {
    %c0_i32 = arith.constant 0 : i32
    return %arg0, %arg1 : i32, i32
  }
  func.func @transform_3(%arg0: i32, %arg1: i32, %arg2: i32) -> (i32, i32, i32) {
    %c0_i32 = arith.constant 0 : i32
    %c0_i32_0 = arith.constant 0 : i32
    return %arg0, %c0_i32, %arg1 : i32, i32, i32
  }
  func.func @transform_4(%arg0: i32, %arg1: i32, %arg2: i32) -> (i32, i32, i32) {
    %c0_i32 = arith.constant 0 : i32
    %c0_i32_0 = arith.constant 0 : i32
    return %arg0, %c0_i32, %arg1 : i32, i32, i32
  }
}

module attributes {stable_mosaic.version = 11 : i64} {
  func.func @_bn_apply_kernel(%arg0: i32, %arg1: memref<8x256xbf16, #tpu.memory_space<vmem>>, %arg2: memref<1x256xf32, #tpu.memory_space<vmem>>, %arg3: memref<1x256xf32, #tpu.memory_space<vmem>>, %arg4: memref<8x256xbf16, #tpu.memory_space<vmem>>) attributes {dimension_semantics = [#tpu.dimension_semantics<parallel>], iteration_bounds = array<i64: 1>, scalar_prefetch = 0 : i64, scratch_operands = 0 : i64, tpu.core_type = #tpu.core_type<tc>, window_params = [{transform_indices = @transform_0, window_bounds = array<i64: 8, 256>}, {pipeline_mode = #tpu.pipeline_mode<synchronous>, transform_indices = @transform_1, window_bounds = array<i64: 1, 256>}, {pipeline_mode = #tpu.pipeline_mode<synchronous>, transform_indices = @transform_2, window_bounds = array<i64: 1, 256>}, {transform_indices = @transform_3, window_bounds = array<i64: 8, 256>}]} {
    %c0 = arith.constant 0 : index
    %c0_0 = arith.constant 0 : index
    %0 = vector.load %arg1[%c0, %c0_0] : memref<8x256xbf16, #tpu.memory_space<vmem>>, vector<8x256xbf16>
    %1 = arith.extf %0 : vector<8x256xbf16> to vector<8x256xf32>
    %c0_1 = arith.constant 0 : index
    %c0_2 = arith.constant 0 : index
    %2 = vector.load %arg2[%c0_1, %c0_2] : memref<1x256xf32, #tpu.memory_space<vmem>>, vector<1x256xf32>
    %3 = vector.broadcast %2 : vector<1x256xf32> to vector<8x256xf32>
    %4 = arith.mulf %1, %3 : vector<8x256xf32>
    %c0_3 = arith.constant 0 : index
    %c0_4 = arith.constant 0 : index
    %5 = vector.load %arg3[%c0_3, %c0_4] : memref<1x256xf32, #tpu.memory_space<vmem>>, vector<1x256xf32>
    %6 = vector.broadcast %5 : vector<1x256xf32> to vector<8x256xf32>
    %7 = arith.addf %4, %6 : vector<8x256xf32>
    %cst = arith.constant 0.000000e+00 : f32
    %8 = vector.broadcast %cst : f32 to vector<8x256xf32>
    %9 = arith.maximumf %7, %8 : vector<8x256xf32>
    %10 = arith.truncf %9 : vector<8x256xf32> to vector<8x256xbf16>
    %c0_5 = arith.constant 0 : index
    %c0_6 = arith.constant 0 : index
    %11 = vector.load %arg4[%c0_5, %c0_6] : memref<8x256xbf16, #tpu.memory_space<vmem>>, vector<8x256xbf16>
    tpu.vector_store %arg4[%c0_5, %c0_6], %10 {strides = array<i32>} : memref<8x256xbf16, #tpu.memory_space<vmem>>, vector<8x256xbf16>,
    return
  }
  func.func @transform_0(%arg0: i32) -> (i32, i32) {
    %c0_i32 = arith.constant 0 : i32
    %c0_i32_0 = arith.constant 0 : i32
    return %arg0, %c0_i32 : i32, i32
  }
  func.func @transform_1(%arg0: i32) -> (i32, i32) {
    %c0_i32 = arith.constant 0 : i32
    %c0_i32_0 = arith.constant 0 : i32
    %c0_i32_1 = arith.constant 0 : i32
    return %c0_i32, %c0_i32_0 : i32, i32
  }
  func.func @transform_2(%arg0: i32) -> (i32, i32) {
    %c0_i32 = arith.constant 0 : i32
    %c0_i32_0 = arith.constant 0 : i32
    %c0_i32_1 = arith.constant 0 : i32
    return %c0_i32, %c0_i32_0 : i32, i32
  }
  func.func @transform_3(%arg0: i32) -> (i32, i32) {
    %c0_i32 = arith.constant 0 : i32
    %c0_i32_0 = arith.constant 0 : i32
    return %arg0, %c0_i32 : i32, i32
  }
}

module attributes {stable_mosaic.version = 11 : i64} {
  func.func @_matmul_kernel(%arg0: i32, %arg1: i32, %arg2: i32, %arg3: memref<16x256xbf16, #tpu.memory_space<vmem>>, %arg4: memref<256x256xbf16, #tpu.memory_space<vmem>>, %arg5: memref<16x256xbf16, #tpu.memory_space<vmem>>, %arg6: memref<1x1x256xf32, #tpu.memory_space<vmem>>, %arg7: memref<1x1x256xf32, #tpu.memory_space<vmem>>, %arg8: memref<16x256xf32, #tpu.memory_space<vmem>>) attributes {dimension_semantics = [#tpu.dimension_semantics<parallel>, #tpu.dimension_semantics<parallel>, #tpu.dimension_semantics<arbitrary>], iteration_bounds = array<i64: 1, 1, 9>, scalar_prefetch = 0 : i64, scratch_operands = 1 : i64, tpu.core_type = #tpu.core_type<tc>, window_params = [{transform_indices = @transform_0, window_bounds = array<i64: 16, 256>}, {transform_indices = @transform_1, window_bounds = array<i64: 256, 256>}, {transform_indices = @transform_2, window_bounds = array<i64: 16, 256>}, {transform_indices = @transform_3, window_bounds = array<i64: 1, 1, 256>}, {transform_indices = @transform_4, window_bounds = array<i64: 1, 1, 256>}]} {
    %c0_i32 = arith.constant 0 : i32
    %0 = arith.cmpi eq, %arg2, %c0_i32 : i32
    %1 = arith.extui %0 : i1 to i32
    %c0_i32_0 = arith.constant 0 : i32
    %2 = arith.cmpi ne, %1, %c0_i32_0 : i32
    scf.if %2 {
      %cst_9 = arith.constant 0.000000e+00 : f32
      %12 = vector.broadcast %cst_9 : f32 to vector<16x256xf32>
      %c0_10 = arith.constant 0 : index
      %c0_11 = arith.constant 0 : index
      %13 = vector.load %arg8[%c0_10, %c0_11] : memref<16x256xf32, #tpu.memory_space<vmem>>, vector<16x256xf32>
      tpu.vector_store %arg8[%c0_10, %c0_11], %12 {strides = array<i32>} : memref<16x256xf32, #tpu.memory_space<vmem>>, vector<16x256xf32>,
    } else {
    }
    %c0 = arith.constant 0 : index
    %c0_1 = arith.constant 0 : index
    %3 = vector.load %arg8[%c0, %c0_1] : memref<16x256xf32, #tpu.memory_space<vmem>>, vector<16x256xf32>
    %c0_2 = arith.constant 0 : index
    %c0_3 = arith.constant 0 : index
    %4 = vector.load %arg3[%c0_2, %c0_3] : memref<16x256xbf16, #tpu.memory_space<vmem>>, vector<16x256xbf16>
    %c0_4 = arith.constant 0 : index
    %c0_5 = arith.constant 0 : index
    %5 = vector.load %arg4[%c0_4, %c0_5] : memref<256x256xbf16, #tpu.memory_space<vmem>>, vector<256x256xbf16>
    %cst = arith.constant dense<0.000000e+00> : vector<16x256xf32>
    %6 = tpu.matmul %4, %5, %cst {dimension_numbers = #tpu.dot_dimension_numbers<[1], [0], [0], [1], [0, 0, 1, 1], [], []>} : vector<16x256xbf16>, vector<256x256xbf16>, vector<16x256xf32> -> vector<16x256xf32>
    %7 = arith.addf %3, %6 : vector<16x256xf32>
    %c0_6 = arith.constant 0 : index
    %c0_7 = arith.constant 0 : index
    %8 = vector.load %arg8[%c0_6, %c0_7] : memref<16x256xf32, #tpu.memory_space<vmem>>, vector<16x256xf32>
    tpu.vector_store %arg8[%c0_6, %c0_7], %7 {strides = array<i32>} : memref<16x256xf32, #tpu.memory_space<vmem>>, vector<16x256xf32>,
    %c8_i32 = arith.constant 8 : i32
    %9 = arith.cmpi eq, %arg2, %c8_i32 : i32
    %10 = arith.extui %9 : i1 to i32
    %c0_i32_8 = arith.constant 0 : i32
    %11 = arith.cmpi ne, %10, %c0_i32_8 : i32
    scf.if %11 {
      %c0_9 = arith.constant 0 : index
      %c0_10 = arith.constant 0 : index
      %12 = vector.load %arg8[%c0_9, %c0_10] : memref<16x256xf32, #tpu.memory_space<vmem>>, vector<16x256xf32>
      %cst_11 = arith.constant dense<0.000000e+00> : vector<256xf32>
      %13 = vector.multi_reduction <add>, %12, %cst_11 [0] : vector<16x256xf32> to vector<256xf32>
      %14 = vector.shape_cast %13 : vector<256xf32> to vector<1x256xf32>
      %15 = vector.shape_cast %14 : vector<1x256xf32> to vector<1x1x256xf32>
      %c0_12 = arith.constant 0 : index
      %c0_13 = arith.constant 0 : index
      %c0_14 = arith.constant 0 : index
      %16 = vector.load %arg6[%c0_12, %c0_13, %c0_14] : memref<1x1x256xf32, #tpu.memory_space<vmem>>, vector<1x1x256xf32>
      tpu.vector_store %arg6[%c0_12, %c0_13, %c0_14], %15 {strides = array<i32>} : memref<1x1x256xf32, #tpu.memory_space<vmem>>, vector<1x1x256xf32>,
      %17 = arith.mulf %12, %12 : vector<16x256xf32>
      %cst_15 = arith.constant dense<0.000000e+00> : vector<256xf32>
      %18 = vector.multi_reduction <add>, %17, %cst_15 [0] : vector<16x256xf32> to vector<256xf32>
      %19 = vector.shape_cast %18 : vector<256xf32> to vector<1x256xf32>
      %20 = vector.shape_cast %19 : vector<1x256xf32> to vector<1x1x256xf32>
      %c0_16 = arith.constant 0 : index
      %c0_17 = arith.constant 0 : index
      %c0_18 = arith.constant 0 : index
      %21 = vector.load %arg7[%c0_16, %c0_17, %c0_18] : memref<1x1x256xf32, #tpu.memory_space<vmem>>, vector<1x1x256xf32>
      tpu.vector_store %arg7[%c0_16, %c0_17, %c0_18], %20 {strides = array<i32>} : memref<1x1x256xf32, #tpu.memory_space<vmem>>, vector<1x1x256xf32>,
      %22 = arith.truncf %12 : vector<16x256xf32> to vector<16x256xbf16>
      %c0_19 = arith.constant 0 : index
      %c0_20 = arith.constant 0 : index
      %23 = vector.load %arg5[%c0_19, %c0_20] : memref<16x256xbf16, #tpu.memory_space<vmem>>, vector<16x256xbf16>
      tpu.vector_store %arg5[%c0_19, %c0_20], %22 {strides = array<i32>} : memref<16x256xbf16, #tpu.memory_space<vmem>>, vector<16x256xbf16>,
    } else {
    }
    return
  }
  func.func @transform_0(%arg0: i32, %arg1: i32, %arg2: i32) -> (i32, i32) {
    %c0_i32 = arith.constant 0 : i32
    return %arg0, %arg2 : i32, i32
  }
  func.func @transform_1(%arg0: i32, %arg1: i32, %arg2: i32) -> (i32, i32) {
    %c0_i32 = arith.constant 0 : i32
    return %arg2, %arg1 : i32, i32
  }
  func.func @transform_2(%arg0: i32, %arg1: i32, %arg2: i32) -> (i32, i32) {
    %c0_i32 = arith.constant 0 : i32
    return %arg0, %arg1 : i32, i32
  }
  func.func @transform_3(%arg0: i32, %arg1: i32, %arg2: i32) -> (i32, i32, i32) {
    %c0_i32 = arith.constant 0 : i32
    %c0_i32_0 = arith.constant 0 : i32
    return %arg0, %c0_i32, %arg1 : i32, i32, i32
  }
  func.func @transform_4(%arg0: i32, %arg1: i32, %arg2: i32) -> (i32, i32, i32) {
    %c0_i32 = arith.constant 0 : i32
    %c0_i32_0 = arith.constant 0 : i32
    return %arg0, %c0_i32, %arg1 : i32, i32, i32
  }
}

module attributes {stable_mosaic.version = 11 : i64} {
  func.func @_matmul_kernel(%arg0: i32, %arg1: i32, %arg2: i32, %arg3: memref<16x128xbf16, #tpu.memory_space<vmem>>, %arg4: memref<128x256xbf16, #tpu.memory_space<vmem>>, %arg5: memref<16x256xbf16, #tpu.memory_space<vmem>>, %arg6: memref<1x1x256xf32, #tpu.memory_space<vmem>>, %arg7: memref<1x1x256xf32, #tpu.memory_space<vmem>>, %arg8: memref<16x256xf32, #tpu.memory_space<vmem>>) attributes {dimension_semantics = [#tpu.dimension_semantics<parallel>, #tpu.dimension_semantics<parallel>, #tpu.dimension_semantics<arbitrary>], iteration_bounds = array<i64: 1, 1, 1>, scalar_prefetch = 0 : i64, scratch_operands = 1 : i64, tpu.core_type = #tpu.core_type<tc>, window_params = [{transform_indices = @transform_0, window_bounds = array<i64: 16, 128>}, {transform_indices = @transform_1, window_bounds = array<i64: 128, 256>}, {transform_indices = @transform_2, window_bounds = array<i64: 16, 256>}, {transform_indices = @transform_3, window_bounds = array<i64: 1, 1, 256>}, {transform_indices = @transform_4, window_bounds = array<i64: 1, 1, 256>}]} {
    %c0_i32 = arith.constant 0 : i32
    %0 = arith.cmpi eq, %arg2, %c0_i32 : i32
    %1 = arith.extui %0 : i1 to i32
    %c0_i32_0 = arith.constant 0 : i32
    %2 = arith.cmpi ne, %1, %c0_i32_0 : i32
    scf.if %2 {
      %cst_10 = arith.constant 0.000000e+00 : f32
      %12 = vector.broadcast %cst_10 : f32 to vector<16x256xf32>
      %c0_11 = arith.constant 0 : index
      %c0_12 = arith.constant 0 : index
      %13 = vector.load %arg8[%c0_11, %c0_12] : memref<16x256xf32, #tpu.memory_space<vmem>>, vector<16x256xf32>
      tpu.vector_store %arg8[%c0_11, %c0_12], %12 {strides = array<i32>} : memref<16x256xf32, #tpu.memory_space<vmem>>, vector<16x256xf32>,
    } else {
    }
    %c0 = arith.constant 0 : index
    %c0_1 = arith.constant 0 : index
    %3 = vector.load %arg8[%c0, %c0_1] : memref<16x256xf32, #tpu.memory_space<vmem>>, vector<16x256xf32>
    %c0_2 = arith.constant 0 : index
    %c0_3 = arith.constant 0 : index
    %4 = vector.load %arg3[%c0_2, %c0_3] : memref<16x128xbf16, #tpu.memory_space<vmem>>, vector<16x128xbf16>
    %c0_4 = arith.constant 0 : index
    %c0_5 = arith.constant 0 : index
    %5 = vector.load %arg4[%c0_4, %c0_5] : memref<128x256xbf16, #tpu.memory_space<vmem>>, vector<128x256xbf16>
    %cst = arith.constant dense<0.000000e+00> : vector<16x256xf32>
    %6 = tpu.matmul %4, %5, %cst {dimension_numbers = #tpu.dot_dimension_numbers<[1], [0], [0], [1], [0, 0, 1, 1], [], []>} : vector<16x128xbf16>, vector<128x256xbf16>, vector<16x256xf32> -> vector<16x256xf32>
    %7 = arith.addf %3, %6 : vector<16x256xf32>
    %c0_6 = arith.constant 0 : index
    %c0_7 = arith.constant 0 : index
    %8 = vector.load %arg8[%c0_6, %c0_7] : memref<16x256xf32, #tpu.memory_space<vmem>>, vector<16x256xf32>
    tpu.vector_store %arg8[%c0_6, %c0_7], %7 {strides = array<i32>} : memref<16x256xf32, #tpu.memory_space<vmem>>, vector<16x256xf32>,
    %c0_i32_8 = arith.constant 0 : i32
    %9 = arith.cmpi eq, %arg2, %c0_i32_8 : i32
    %10 = arith.extui %9 : i1 to i32
    %c0_i32_9 = arith.constant 0 : i32
    %11 = arith.cmpi ne, %10, %c0_i32_9 : i32
    scf.if %11 {
      %c0_10 = arith.constant 0 : index
      %c0_11 = arith.constant 0 : index
      %12 = vector.load %arg8[%c0_10, %c0_11] : memref<16x256xf32, #tpu.memory_space<vmem>>, vector<16x256xf32>
      %cst_12 = arith.constant dense<0.000000e+00> : vector<256xf32>
      %13 = vector.multi_reduction <add>, %12, %cst_12 [0] : vector<16x256xf32> to vector<256xf32>
      %14 = vector.shape_cast %13 : vector<256xf32> to vector<1x256xf32>
      %15 = vector.shape_cast %14 : vector<1x256xf32> to vector<1x1x256xf32>
      %c0_13 = arith.constant 0 : index
      %c0_14 = arith.constant 0 : index
      %c0_15 = arith.constant 0 : index
      %16 = vector.load %arg6[%c0_13, %c0_14, %c0_15] : memref<1x1x256xf32, #tpu.memory_space<vmem>>, vector<1x1x256xf32>
      tpu.vector_store %arg6[%c0_13, %c0_14, %c0_15], %15 {strides = array<i32>} : memref<1x1x256xf32, #tpu.memory_space<vmem>>, vector<1x1x256xf32>,
      %17 = arith.mulf %12, %12 : vector<16x256xf32>
      %cst_16 = arith.constant dense<0.000000e+00> : vector<256xf32>
      %18 = vector.multi_reduction <add>, %17, %cst_16 [0] : vector<16x256xf32> to vector<256xf32>
      %19 = vector.shape_cast %18 : vector<256xf32> to vector<1x256xf32>
      %20 = vector.shape_cast %19 : vector<1x256xf32> to vector<1x1x256xf32>
      %c0_17 = arith.constant 0 : index
      %c0_18 = arith.constant 0 : index
      %c0_19 = arith.constant 0 : index
      %21 = vector.load %arg7[%c0_17, %c0_18, %c0_19] : memref<1x1x256xf32, #tpu.memory_space<vmem>>, vector<1x1x256xf32>
      tpu.vector_store %arg7[%c0_17, %c0_18, %c0_19], %20 {strides = array<i32>} : memref<1x1x256xf32, #tpu.memory_space<vmem>>, vector<1x1x256xf32>,
      %22 = arith.truncf %12 : vector<16x256xf32> to vector<16x256xbf16>
      %c0_20 = arith.constant 0 : index
      %c0_21 = arith.constant 0 : index
      %23 = vector.load %arg5[%c0_20, %c0_21] : memref<16x256xbf16, #tpu.memory_space<vmem>>, vector<16x256xbf16>
      tpu.vector_store %arg5[%c0_20, %c0_21], %22 {strides = array<i32>} : memref<16x256xbf16, #tpu.memory_space<vmem>>, vector<16x256xbf16>,
    } else {
    }
    return
  }
  func.func @transform_0(%arg0: i32, %arg1: i32, %arg2: i32) -> (i32, i32) {
    %c0_i32 = arith.constant 0 : i32
    return %arg0, %arg2 : i32, i32
  }
  func.func @transform_1(%arg0: i32, %arg1: i32, %arg2: i32) -> (i32, i32) {
    %c0_i32 = arith.constant 0 : i32
    return %arg2, %arg1 : i32, i32
  }
  func.func @transform_2(%arg0: i32, %arg1: i32, %arg2: i32) -> (i32, i32) {
    %c0_i32 = arith.constant 0 : i32
    return %arg0, %arg1 : i32, i32
  }
  func.func @transform_3(%arg0: i32, %arg1: i32, %arg2: i32) -> (i32, i32, i32) {
    %c0_i32 = arith.constant 0 : i32
    %c0_i32_0 = arith.constant 0 : i32
    return %arg0, %c0_i32, %arg1 : i32, i32, i32
  }
  func.func @transform_4(%arg0: i32, %arg1: i32, %arg2: i32) -> (i32, i32, i32) {
    %c0_i32 = arith.constant 0 : i32
    %c0_i32_0 = arith.constant 0 : i32
    return %arg0, %c0_i32, %arg1 : i32, i32, i32
  }
}

module attributes {stable_mosaic.version = 11 : i64} {
  func.func @_bn_apply_kernel(%arg0: i32, %arg1: memref<8x256xbf16, #tpu.memory_space<vmem>>, %arg2: memref<1x256xf32, #tpu.memory_space<vmem>>, %arg3: memref<1x256xf32, #tpu.memory_space<vmem>>, %arg4: memref<8x256xbf16, #tpu.memory_space<vmem>>) attributes {dimension_semantics = [#tpu.dimension_semantics<parallel>], iteration_bounds = array<i64: 1>, scalar_prefetch = 0 : i64, scratch_operands = 0 : i64, tpu.core_type = #tpu.core_type<tc>, window_params = [{transform_indices = @transform_0, window_bounds = array<i64: 8, 256>}, {pipeline_mode = #tpu.pipeline_mode<synchronous>, transform_indices = @transform_1, window_bounds = array<i64: 1, 256>}, {pipeline_mode = #tpu.pipeline_mode<synchronous>, transform_indices = @transform_2, window_bounds = array<i64: 1, 256>}, {transform_indices = @transform_3, window_bounds = array<i64: 8, 256>}]} {
    %c0 = arith.constant 0 : index
    %c0_0 = arith.constant 0 : index
    %0 = vector.load %arg1[%c0, %c0_0] : memref<8x256xbf16, #tpu.memory_space<vmem>>, vector<8x256xbf16>
    %1 = arith.extf %0 : vector<8x256xbf16> to vector<8x256xf32>
    %c0_1 = arith.constant 0 : index
    %c0_2 = arith.constant 0 : index
    %2 = vector.load %arg2[%c0_1, %c0_2] : memref<1x256xf32, #tpu.memory_space<vmem>>, vector<1x256xf32>
    %3 = vector.broadcast %2 : vector<1x256xf32> to vector<8x256xf32>
    %4 = arith.mulf %1, %3 : vector<8x256xf32>
    %c0_3 = arith.constant 0 : index
    %c0_4 = arith.constant 0 : index
    %5 = vector.load %arg3[%c0_3, %c0_4] : memref<1x256xf32, #tpu.memory_space<vmem>>, vector<1x256xf32>
    %6 = vector.broadcast %5 : vector<1x256xf32> to vector<8x256xf32>
    %7 = arith.addf %4, %6 : vector<8x256xf32>
    %8 = arith.truncf %7 : vector<8x256xf32> to vector<8x256xbf16>
    %c0_5 = arith.constant 0 : index
    %c0_6 = arith.constant 0 : index
    %9 = vector.load %arg4[%c0_5, %c0_6] : memref<8x256xbf16, #tpu.memory_space<vmem>>, vector<8x256xbf16>
    tpu.vector_store %arg4[%c0_5, %c0_6], %8 {strides = array<i32>} : memref<8x256xbf16, #tpu.memory_space<vmem>>, vector<8x256xbf16>,
    return
  }
  func.func @transform_0(%arg0: i32) -> (i32, i32) {
    %c0_i32 = arith.constant 0 : i32
    %c0_i32_0 = arith.constant 0 : i32
    return %arg0, %c0_i32 : i32, i32
  }
  func.func @transform_1(%arg0: i32) -> (i32, i32) {
    %c0_i32 = arith.constant 0 : i32
    %c0_i32_0 = arith.constant 0 : i32
    %c0_i32_1 = arith.constant 0 : i32
    return %c0_i32, %c0_i32_0 : i32, i32
  }
  func.func @transform_2(%arg0: i32) -> (i32, i32) {
    %c0_i32 = arith.constant 0 : i32
    %c0_i32_0 = arith.constant 0 : i32
    %c0_i32_1 = arith.constant 0 : i32
    return %c0_i32, %c0_i32_0 : i32, i32
  }
  func.func @transform_3(%arg0: i32) -> (i32, i32) {
    %c0_i32 = arith.constant 0 : i32
    %c0_i32_0 = arith.constant 0 : i32
    return %arg0, %c0_i32 : i32, i32
  }
}

module attributes {stable_mosaic.version = 11 : i64} {
  func.func @_bn_apply_kernel(%arg0: i32, %arg1: memref<8x256xbf16, #tpu.memory_space<vmem>>, %arg2: memref<8x256xbf16, #tpu.memory_space<vmem>>, %arg3: memref<1x256xf32, #tpu.memory_space<vmem>>, %arg4: memref<1x256xf32, #tpu.memory_space<vmem>>, %arg5: memref<8x256xbf16, #tpu.memory_space<vmem>>) attributes {dimension_semantics = [#tpu.dimension_semantics<parallel>], iteration_bounds = array<i64: 1>, scalar_prefetch = 0 : i64, scratch_operands = 0 : i64, tpu.core_type = #tpu.core_type<tc>, window_params = [{transform_indices = @transform_0, window_bounds = array<i64: 8, 256>}, {transform_indices = @transform_1, window_bounds = array<i64: 8, 256>}, {pipeline_mode = #tpu.pipeline_mode<synchronous>, transform_indices = @transform_2, window_bounds = array<i64: 1, 256>}, {pipeline_mode = #tpu.pipeline_mode<synchronous>, transform_indices = @transform_3, window_bounds = array<i64: 1, 256>}, {transform_indices = @transform_4, window_bounds = array<i64: 8, 256>}]} {
    %c0 = arith.constant 0 : index
    %c0_0 = arith.constant 0 : index
    %0 = vector.load %arg1[%c0, %c0_0] : memref<8x256xbf16, #tpu.memory_space<vmem>>, vector<8x256xbf16>
    %1 = arith.extf %0 : vector<8x256xbf16> to vector<8x256xf32>
    %c0_1 = arith.constant 0 : index
    %c0_2 = arith.constant 0 : index
    %2 = vector.load %arg3[%c0_1, %c0_2] : memref<1x256xf32, #tpu.memory_space<vmem>>, vector<1x256xf32>
    %3 = vector.broadcast %2 : vector<1x256xf32> to vector<8x256xf32>
    %4 = arith.mulf %1, %3 : vector<8x256xf32>
    %c0_3 = arith.constant 0 : index
    %c0_4 = arith.constant 0 : index
    %5 = vector.load %arg4[%c0_3, %c0_4] : memref<1x256xf32, #tpu.memory_space<vmem>>, vector<1x256xf32>
    %6 = vector.broadcast %5 : vector<1x256xf32> to vector<8x256xf32>
    %7 = arith.addf %4, %6 : vector<8x256xf32>
    %c0_5 = arith.constant 0 : index
    %c0_6 = arith.constant 0 : index
    %8 = vector.load %arg2[%c0_5, %c0_6] : memref<8x256xbf16, #tpu.memory_space<vmem>>, vector<8x256xbf16>
    %9 = arith.extf %8 : vector<8x256xbf16> to vector<8x256xf32>
    %10 = arith.addf %7, %9 : vector<8x256xf32>
    %cst = arith.constant 0.000000e+00 : f32
    %11 = vector.broadcast %cst : f32 to vector<8x256xf32>
    %12 = arith.maximumf %10, %11 : vector<8x256xf32>
    %13 = arith.truncf %12 : vector<8x256xf32> to vector<8x256xbf16>
    %c0_7 = arith.constant 0 : index
    %c0_8 = arith.constant 0 : index
    %14 = vector.load %arg5[%c0_7, %c0_8] : memref<8x256xbf16, #tpu.memory_space<vmem>>, vector<8x256xbf16>
    tpu.vector_store %arg5[%c0_7, %c0_8], %13 {strides = array<i32>} : memref<8x256xbf16, #tpu.memory_space<vmem>>, vector<8x256xbf16>,
    return
  }
  func.func @transform_0(%arg0: i32) -> (i32, i32) {
    %c0_i32 = arith.constant 0 : i32
    %c0_i32_0 = arith.constant 0 : i32
    return %arg0, %c0_i32 : i32, i32
  }
  func.func @transform_1(%arg0: i32) -> (i32, i32) {
    %c0_i32 = arith.constant 0 : i32
    %c0_i32_0 = arith.constant 0 : i32
    return %arg0, %c0_i32 : i32, i32
  }
  func.func @transform_2(%arg0: i32) -> (i32, i32) {
    %c0_i32 = arith.constant 0 : i32
    %c0_i32_0 = arith.constant 0 : i32
    %c0_i32_1 = arith.constant 0 : i32
    return %c0_i32, %c0_i32_0 : i32, i32
  }
  func.func @transform_3(%arg0: i32) -> (i32, i32) {
    %c0_i32 = arith.constant 0 : i32
    %c0_i32_0 = arith.constant 0 : i32
    %c0_i32_1 = arith.constant 0 : i32
    return %c0_i32, %c0_i32_0 : i32, i32
  }
  func.func @transform_4(%arg0: i32) -> (i32, i32) {
    %c0_i32 = arith.constant 0 : i32
    %c0_i32_0 = arith.constant 0 : i32
    return %arg0, %c0_i32 : i32, i32
  }
}

module attributes {stable_mosaic.version = 11 : i64} {
  func.func @_matmul_kernel(%arg0: i32, %arg1: i32, %arg2: i32, %arg3: memref<16x256xbf16, #tpu.memory_space<vmem>>, %arg4: memref<256x256xbf16, #tpu.memory_space<vmem>>, %arg5: memref<16x256xbf16, #tpu.memory_space<vmem>>, %arg6: memref<1x1x256xf32, #tpu.memory_space<vmem>>, %arg7: memref<1x1x256xf32, #tpu.memory_space<vmem>>, %arg8: memref<16x256xf32, #tpu.memory_space<vmem>>) attributes {dimension_semantics = [#tpu.dimension_semantics<parallel>, #tpu.dimension_semantics<parallel>, #tpu.dimension_semantics<arbitrary>], iteration_bounds = array<i64: 1, 2, 9>, scalar_prefetch = 0 : i64, scratch_operands = 1 : i64, tpu.core_type = #tpu.core_type<tc>, window_params = [{transform_indices = @transform_0, window_bounds = array<i64: 16, 256>}, {transform_indices = @transform_1, window_bounds = array<i64: 256, 256>}, {transform_indices = @transform_2, window_bounds = array<i64: 16, 256>}, {transform_indices = @transform_3, window_bounds = array<i64: 1, 1, 256>}, {transform_indices = @transform_4, window_bounds = array<i64: 1, 1, 256>}]} {
    %c0_i32 = arith.constant 0 : i32
    %0 = arith.cmpi eq, %arg2, %c0_i32 : i32
    %1 = arith.extui %0 : i1 to i32
    %c0_i32_0 = arith.constant 0 : i32
    %2 = arith.cmpi ne, %1, %c0_i32_0 : i32
    scf.if %2 {
      %cst_9 = arith.constant 0.000000e+00 : f32
      %12 = vector.broadcast %cst_9 : f32 to vector<16x256xf32>
      %c0_10 = arith.constant 0 : index
      %c0_11 = arith.constant 0 : index
      %13 = vector.load %arg8[%c0_10, %c0_11] : memref<16x256xf32, #tpu.memory_space<vmem>>, vector<16x256xf32>
      tpu.vector_store %arg8[%c0_10, %c0_11], %12 {strides = array<i32>} : memref<16x256xf32, #tpu.memory_space<vmem>>, vector<16x256xf32>,
    } else {
    }
    %c0 = arith.constant 0 : index
    %c0_1 = arith.constant 0 : index
    %3 = vector.load %arg8[%c0, %c0_1] : memref<16x256xf32, #tpu.memory_space<vmem>>, vector<16x256xf32>
    %c0_2 = arith.constant 0 : index
    %c0_3 = arith.constant 0 : index
    %4 = vector.load %arg3[%c0_2, %c0_3] : memref<16x256xbf16, #tpu.memory_space<vmem>>, vector<16x256xbf16>
    %c0_4 = arith.constant 0 : index
    %c0_5 = arith.constant 0 : index
    %5 = vector.load %arg4[%c0_4, %c0_5] : memref<256x256xbf16, #tpu.memory_space<vmem>>, vector<256x256xbf16>
    %cst = arith.constant dense<0.000000e+00> : vector<16x256xf32>
    %6 = tpu.matmul %4, %5, %cst {dimension_numbers = #tpu.dot_dimension_numbers<[1], [0], [0], [1], [0, 0, 1, 1], [], []>} : vector<16x256xbf16>, vector<256x256xbf16>, vector<16x256xf32> -> vector<16x256xf32>
    %7 = arith.addf %3, %6 : vector<16x256xf32>
    %c0_6 = arith.constant 0 : index
    %c0_7 = arith.constant 0 : index
    %8 = vector.load %arg8[%c0_6, %c0_7] : memref<16x256xf32, #tpu.memory_space<vmem>>, vector<16x256xf32>
    tpu.vector_store %arg8[%c0_6, %c0_7], %7 {strides = array<i32>} : memref<16x256xf32, #tpu.memory_space<vmem>>, vector<16x256xf32>,
    %c8_i32 = arith.constant 8 : i32
    %9 = arith.cmpi eq, %arg2, %c8_i32 : i32
    %10 = arith.extui %9 : i1 to i32
    %c0_i32_8 = arith.constant 0 : i32
    %11 = arith.cmpi ne, %10, %c0_i32_8 : i32
    scf.if %11 {
      %c0_9 = arith.constant 0 : index
      %c0_10 = arith.constant 0 : index
      %12 = vector.load %arg8[%c0_9, %c0_10] : memref<16x256xf32, #tpu.memory_space<vmem>>, vector<16x256xf32>
      %cst_11 = arith.constant dense<0.000000e+00> : vector<256xf32>
      %13 = vector.multi_reduction <add>, %12, %cst_11 [0] : vector<16x256xf32> to vector<256xf32>
      %14 = vector.shape_cast %13 : vector<256xf32> to vector<1x256xf32>
      %15 = vector.shape_cast %14 : vector<1x256xf32> to vector<1x1x256xf32>
      %c0_12 = arith.constant 0 : index
      %c0_13 = arith.constant 0 : index
      %c0_14 = arith.constant 0 : index
      %16 = vector.load %arg6[%c0_12, %c0_13, %c0_14] : memref<1x1x256xf32, #tpu.memory_space<vmem>>, vector<1x1x256xf32>
      tpu.vector_store %arg6[%c0_12, %c0_13, %c0_14], %15 {strides = array<i32>} : memref<1x1x256xf32, #tpu.memory_space<vmem>>, vector<1x1x256xf32>,
      %17 = arith.mulf %12, %12 : vector<16x256xf32>
      %cst_15 = arith.constant dense<0.000000e+00> : vector<256xf32>
      %18 = vector.multi_reduction <add>, %17, %cst_15 [0] : vector<16x256xf32> to vector<256xf32>
      %19 = vector.shape_cast %18 : vector<256xf32> to vector<1x256xf32>
      %20 = vector.shape_cast %19 : vector<1x256xf32> to vector<1x1x256xf32>
      %c0_16 = arith.constant 0 : index
      %c0_17 = arith.constant 0 : index
      %c0_18 = arith.constant 0 : index
      %21 = vector.load %arg7[%c0_16, %c0_17, %c0_18] : memref<1x1x256xf32, #tpu.memory_space<vmem>>, vector<1x1x256xf32>
      tpu.vector_store %arg7[%c0_16, %c0_17, %c0_18], %20 {strides = array<i32>} : memref<1x1x256xf32, #tpu.memory_space<vmem>>, vector<1x1x256xf32>,
      %22 = arith.truncf %12 : vector<16x256xf32> to vector<16x256xbf16>
      %c0_19 = arith.constant 0 : index
      %c0_20 = arith.constant 0 : index
      %23 = vector.load %arg5[%c0_19, %c0_20] : memref<16x256xbf16, #tpu.memory_space<vmem>>, vector<16x256xbf16>
      tpu.vector_store %arg5[%c0_19, %c0_20], %22 {strides = array<i32>} : memref<16x256xbf16, #tpu.memory_space<vmem>>, vector<16x256xbf16>,
    } else {
    }
    return
  }
  func.func @transform_0(%arg0: i32, %arg1: i32, %arg2: i32) -> (i32, i32) {
    %c0_i32 = arith.constant 0 : i32
    return %arg0, %arg2 : i32, i32
  }
  func.func @transform_1(%arg0: i32, %arg1: i32, %arg2: i32) -> (i32, i32) {
    %c0_i32 = arith.constant 0 : i32
    return %arg2, %arg1 : i32, i32
  }
  func.func @transform_2(%arg0: i32, %arg1: i32, %arg2: i32) -> (i32, i32) {
    %c0_i32 = arith.constant 0 : i32
    return %arg0, %arg1 : i32, i32
  }
  func.func @transform_3(%arg0: i32, %arg1: i32, %arg2: i32) -> (i32, i32, i32) {
    %c0_i32 = arith.constant 0 : i32
    %c0_i32_0 = arith.constant 0 : i32
    return %arg0, %c0_i32, %arg1 : i32, i32, i32
  }
  func.func @transform_4(%arg0: i32, %arg1: i32, %arg2: i32) -> (i32, i32, i32) {
    %c0_i32 = arith.constant 0 : i32
    %c0_i32_0 = arith.constant 0 : i32
    return %arg0, %c0_i32, %arg1 : i32, i32, i32
  }
}

module attributes {stable_mosaic.version = 11 : i64} {
  func.func @_matmul_kernel(%arg0: i32, %arg1: i32, %arg2: i32, %arg3: memref<16x256xbf16, #tpu.memory_space<vmem>>, %arg4: memref<256x256xbf16, #tpu.memory_space<vmem>>, %arg5: memref<16x256xbf16, #tpu.memory_space<vmem>>, %arg6: memref<1x1x256xf32, #tpu.memory_space<vmem>>, %arg7: memref<1x1x256xf32, #tpu.memory_space<vmem>>, %arg8: memref<16x256xf32, #tpu.memory_space<vmem>>) attributes {dimension_semantics = [#tpu.dimension_semantics<parallel>, #tpu.dimension_semantics<parallel>, #tpu.dimension_semantics<arbitrary>], iteration_bounds = array<i64: 1, 2, 1>, scalar_prefetch = 0 : i64, scratch_operands = 1 : i64, tpu.core_type = #tpu.core_type<tc>, window_params = [{transform_indices = @transform_0, window_bounds = array<i64: 16, 256>}, {transform_indices = @transform_1, window_bounds = array<i64: 256, 256>}, {transform_indices = @transform_2, window_bounds = array<i64: 16, 256>}, {transform_indices = @transform_3, window_bounds = array<i64: 1, 1, 256>}, {transform_indices = @transform_4, window_bounds = array<i64: 1, 1, 256>}]} {
    %c0_i32 = arith.constant 0 : i32
    %0 = arith.cmpi eq, %arg2, %c0_i32 : i32
    %1 = arith.extui %0 : i1 to i32
    %c0_i32_0 = arith.constant 0 : i32
    %2 = arith.cmpi ne, %1, %c0_i32_0 : i32
    scf.if %2 {
      %cst_10 = arith.constant 0.000000e+00 : f32
      %12 = vector.broadcast %cst_10 : f32 to vector<16x256xf32>
      %c0_11 = arith.constant 0 : index
      %c0_12 = arith.constant 0 : index
      %13 = vector.load %arg8[%c0_11, %c0_12] : memref<16x256xf32, #tpu.memory_space<vmem>>, vector<16x256xf32>
      tpu.vector_store %arg8[%c0_11, %c0_12], %12 {strides = array<i32>} : memref<16x256xf32, #tpu.memory_space<vmem>>, vector<16x256xf32>,
    } else {
    }
    %c0 = arith.constant 0 : index
    %c0_1 = arith.constant 0 : index
    %3 = vector.load %arg8[%c0, %c0_1] : memref<16x256xf32, #tpu.memory_space<vmem>>, vector<16x256xf32>
    %c0_2 = arith.constant 0 : index
    %c0_3 = arith.constant 0 : index
    %4 = vector.load %arg3[%c0_2, %c0_3] : memref<16x256xbf16, #tpu.memory_space<vmem>>, vector<16x256xbf16>
    %c0_4 = arith.constant 0 : index
    %c0_5 = arith.constant 0 : index
    %5 = vector.load %arg4[%c0_4, %c0_5] : memref<256x256xbf16, #tpu.memory_space<vmem>>, vector<256x256xbf16>
    %cst = arith.constant dense<0.000000e+00> : vector<16x256xf32>
    %6 = tpu.matmul %4, %5, %cst {dimension_numbers = #tpu.dot_dimension_numbers<[1], [0], [0], [1], [0, 0, 1, 1], [], []>} : vector<16x256xbf16>, vector<256x256xbf16>, vector<16x256xf32> -> vector<16x256xf32>
    %7 = arith.addf %3, %6 : vector<16x256xf32>
    %c0_6 = arith.constant 0 : index
    %c0_7 = arith.constant 0 : index
    %8 = vector.load %arg8[%c0_6, %c0_7] : memref<16x256xf32, #tpu.memory_space<vmem>>, vector<16x256xf32>
    tpu.vector_store %arg8[%c0_6, %c0_7], %7 {strides = array<i32>} : memref<16x256xf32, #tpu.memory_space<vmem>>, vector<16x256xf32>,
    %c0_i32_8 = arith.constant 0 : i32
    %9 = arith.cmpi eq, %arg2, %c0_i32_8 : i32
    %10 = arith.extui %9 : i1 to i32
    %c0_i32_9 = arith.constant 0 : i32
    %11 = arith.cmpi ne, %10, %c0_i32_9 : i32
    scf.if %11 {
      %c0_10 = arith.constant 0 : index
      %c0_11 = arith.constant 0 : index
      %12 = vector.load %arg8[%c0_10, %c0_11] : memref<16x256xf32, #tpu.memory_space<vmem>>, vector<16x256xf32>
      %cst_12 = arith.constant dense<0.000000e+00> : vector<256xf32>
      %13 = vector.multi_reduction <add>, %12, %cst_12 [0] : vector<16x256xf32> to vector<256xf32>
      %14 = vector.shape_cast %13 : vector<256xf32> to vector<1x256xf32>
      %15 = vector.shape_cast %14 : vector<1x256xf32> to vector<1x1x256xf32>
      %c0_13 = arith.constant 0 : index
      %c0_14 = arith.constant 0 : index
      %c0_15 = arith.constant 0 : index
      %16 = vector.load %arg6[%c0_13, %c0_14, %c0_15] : memref<1x1x256xf32, #tpu.memory_space<vmem>>, vector<1x1x256xf32>
      tpu.vector_store %arg6[%c0_13, %c0_14, %c0_15], %15 {strides = array<i32>} : memref<1x1x256xf32, #tpu.memory_space<vmem>>, vector<1x1x256xf32>,
      %17 = arith.mulf %12, %12 : vector<16x256xf32>
      %cst_16 = arith.constant dense<0.000000e+00> : vector<256xf32>
      %18 = vector.multi_reduction <add>, %17, %cst_16 [0] : vector<16x256xf32> to vector<256xf32>
      %19 = vector.shape_cast %18 : vector<256xf32> to vector<1x256xf32>
      %20 = vector.shape_cast %19 : vector<1x256xf32> to vector<1x1x256xf32>
      %c0_17 = arith.constant 0 : index
      %c0_18 = arith.constant 0 : index
      %c0_19 = arith.constant 0 : index
      %21 = vector.load %arg7[%c0_17, %c0_18, %c0_19] : memref<1x1x256xf32, #tpu.memory_space<vmem>>, vector<1x1x256xf32>
      tpu.vector_store %arg7[%c0_17, %c0_18, %c0_19], %20 {strides = array<i32>} : memref<1x1x256xf32, #tpu.memory_space<vmem>>, vector<1x1x256xf32>,
      %22 = arith.truncf %12 : vector<16x256xf32> to vector<16x256xbf16>
      %c0_20 = arith.constant 0 : index
      %c0_21 = arith.constant 0 : index
      %23 = vector.load %arg5[%c0_20, %c0_21] : memref<16x256xbf16, #tpu.memory_space<vmem>>, vector<16x256xbf16>
      tpu.vector_store %arg5[%c0_20, %c0_21], %22 {strides = array<i32>} : memref<16x256xbf16, #tpu.memory_space<vmem>>, vector<16x256xbf16>,
    } else {
    }
    return
  }
  func.func @transform_0(%arg0: i32, %arg1: i32, %arg2: i32) -> (i32, i32) {
    %c0_i32 = arith.constant 0 : i32
    return %arg0, %arg2 : i32, i32
  }
  func.func @transform_1(%arg0: i32, %arg1: i32, %arg2: i32) -> (i32, i32) {
    %c0_i32 = arith.constant 0 : i32
    return %arg2, %arg1 : i32, i32
  }
  func.func @transform_2(%arg0: i32, %arg1: i32, %arg2: i32) -> (i32, i32) {
    %c0_i32 = arith.constant 0 : i32
    return %arg0, %arg1 : i32, i32
  }
  func.func @transform_3(%arg0: i32, %arg1: i32, %arg2: i32) -> (i32, i32, i32) {
    %c0_i32 = arith.constant 0 : i32
    %c0_i32_0 = arith.constant 0 : i32
    return %arg0, %c0_i32, %arg1 : i32, i32, i32
  }
  func.func @transform_4(%arg0: i32, %arg1: i32, %arg2: i32) -> (i32, i32, i32) {
    %c0_i32 = arith.constant 0 : i32
    %c0_i32_0 = arith.constant 0 : i32
    return %arg0, %c0_i32, %arg1 : i32, i32, i32
  }
}

module attributes {stable_mosaic.version = 11 : i64} {
  func.func @_bn_apply_kernel(%arg0: i32, %arg1: memref<8x512xbf16, #tpu.memory_space<vmem>>, %arg2: memref<1x512xf32, #tpu.memory_space<vmem>>, %arg3: memref<1x512xf32, #tpu.memory_space<vmem>>, %arg4: memref<8x512xbf16, #tpu.memory_space<vmem>>) attributes {dimension_semantics = [#tpu.dimension_semantics<parallel>], iteration_bounds = array<i64: 1>, scalar_prefetch = 0 : i64, scratch_operands = 0 : i64, tpu.core_type = #tpu.core_type<tc>, window_params = [{transform_indices = @transform_0, window_bounds = array<i64: 8, 512>}, {pipeline_mode = #tpu.pipeline_mode<synchronous>, transform_indices = @transform_1, window_bounds = array<i64: 1, 512>}, {pipeline_mode = #tpu.pipeline_mode<synchronous>, transform_indices = @transform_2, window_bounds = array<i64: 1, 512>}, {transform_indices = @transform_3, window_bounds = array<i64: 8, 512>}]} {
    %c0 = arith.constant 0 : index
    %c0_0 = arith.constant 0 : index
    %0 = vector.load %arg1[%c0, %c0_0] : memref<8x512xbf16, #tpu.memory_space<vmem>>, vector<8x512xbf16>
    %1 = arith.extf %0 : vector<8x512xbf16> to vector<8x512xf32>
    %c0_1 = arith.constant 0 : index
    %c0_2 = arith.constant 0 : index
    %2 = vector.load %arg2[%c0_1, %c0_2] : memref<1x512xf32, #tpu.memory_space<vmem>>, vector<1x512xf32>
    %3 = vector.broadcast %2 : vector<1x512xf32> to vector<8x512xf32>
    %4 = arith.mulf %1, %3 : vector<8x512xf32>
    %c0_3 = arith.constant 0 : index
    %c0_4 = arith.constant 0 : index
    %5 = vector.load %arg3[%c0_3, %c0_4] : memref<1x512xf32, #tpu.memory_space<vmem>>, vector<1x512xf32>
    %6 = vector.broadcast %5 : vector<1x512xf32> to vector<8x512xf32>
    %7 = arith.addf %4, %6 : vector<8x512xf32>
    %cst = arith.constant 0.000000e+00 : f32
    %8 = vector.broadcast %cst : f32 to vector<8x512xf32>
    %9 = arith.maximumf %7, %8 : vector<8x512xf32>
    %10 = arith.truncf %9 : vector<8x512xf32> to vector<8x512xbf16>
    %c0_5 = arith.constant 0 : index
    %c0_6 = arith.constant 0 : index
    %11 = vector.load %arg4[%c0_5, %c0_6] : memref<8x512xbf16, #tpu.memory_space<vmem>>, vector<8x512xbf16>
    tpu.vector_store %arg4[%c0_5, %c0_6], %10 {strides = array<i32>} : memref<8x512xbf16, #tpu.memory_space<vmem>>, vector<8x512xbf16>,
    return
  }
  func.func @transform_0(%arg0: i32) -> (i32, i32) {
    %c0_i32 = arith.constant 0 : i32
    %c0_i32_0 = arith.constant 0 : i32
    return %arg0, %c0_i32 : i32, i32
  }
  func.func @transform_1(%arg0: i32) -> (i32, i32) {
    %c0_i32 = arith.constant 0 : i32
    %c0_i32_0 = arith.constant 0 : i32
    %c0_i32_1 = arith.constant 0 : i32
    return %c0_i32, %c0_i32_0 : i32, i32
  }
  func.func @transform_2(%arg0: i32) -> (i32, i32) {
    %c0_i32 = arith.constant 0 : i32
    %c0_i32_0 = arith.constant 0 : i32
    %c0_i32_1 = arith.constant 0 : i32
    return %c0_i32, %c0_i32_0 : i32, i32
  }
  func.func @transform_3(%arg0: i32) -> (i32, i32) {
    %c0_i32 = arith.constant 0 : i32
    %c0_i32_0 = arith.constant 0 : i32
    return %arg0, %c0_i32 : i32, i32
  }
}

module attributes {stable_mosaic.version = 11 : i64} {
  func.func @_matmul_kernel(%arg0: i32, %arg1: i32, %arg2: i32, %arg3: memref<16x256xbf16, #tpu.memory_space<vmem>>, %arg4: memref<256x256xbf16, #tpu.memory_space<vmem>>, %arg5: memref<16x256xbf16, #tpu.memory_space<vmem>>, %arg6: memref<1x1x256xf32, #tpu.memory_space<vmem>>, %arg7: memref<1x1x256xf32, #tpu.memory_space<vmem>>, %arg8: memref<16x256xf32, #tpu.memory_space<vmem>>) attributes {dimension_semantics = [#tpu.dimension_semantics<parallel>, #tpu.dimension_semantics<parallel>, #tpu.dimension_semantics<arbitrary>], iteration_bounds = array<i64: 1, 2, 18>, scalar_prefetch = 0 : i64, scratch_operands = 1 : i64, tpu.core_type = #tpu.core_type<tc>, window_params = [{transform_indices = @transform_0, window_bounds = array<i64: 16, 256>}, {transform_indices = @transform_1, window_bounds = array<i64: 256, 256>}, {transform_indices = @transform_2, window_bounds = array<i64: 16, 256>}, {transform_indices = @transform_3, window_bounds = array<i64: 1, 1, 256>}, {transform_indices = @transform_4, window_bounds = array<i64: 1, 1, 256>}]} {
    %c0_i32 = arith.constant 0 : i32
    %0 = arith.cmpi eq, %arg2, %c0_i32 : i32
    %1 = arith.extui %0 : i1 to i32
    %c0_i32_0 = arith.constant 0 : i32
    %2 = arith.cmpi ne, %1, %c0_i32_0 : i32
    scf.if %2 {
      %cst_9 = arith.constant 0.000000e+00 : f32
      %12 = vector.broadcast %cst_9 : f32 to vector<16x256xf32>
      %c0_10 = arith.constant 0 : index
      %c0_11 = arith.constant 0 : index
      %13 = vector.load %arg8[%c0_10, %c0_11] : memref<16x256xf32, #tpu.memory_space<vmem>>, vector<16x256xf32>
      tpu.vector_store %arg8[%c0_10, %c0_11], %12 {strides = array<i32>} : memref<16x256xf32, #tpu.memory_space<vmem>>, vector<16x256xf32>,
    } else {
    }
    %c0 = arith.constant 0 : index
    %c0_1 = arith.constant 0 : index
    %3 = vector.load %arg8[%c0, %c0_1] : memref<16x256xf32, #tpu.memory_space<vmem>>, vector<16x256xf32>
    %c0_2 = arith.constant 0 : index
    %c0_3 = arith.constant 0 : index
    %4 = vector.load %arg3[%c0_2, %c0_3] : memref<16x256xbf16, #tpu.memory_space<vmem>>, vector<16x256xbf16>
    %c0_4 = arith.constant 0 : index
    %c0_5 = arith.constant 0 : index
    %5 = vector.load %arg4[%c0_4, %c0_5] : memref<256x256xbf16, #tpu.memory_space<vmem>>, vector<256x256xbf16>
    %cst = arith.constant dense<0.000000e+00> : vector<16x256xf32>
    %6 = tpu.matmul %4, %5, %cst {dimension_numbers = #tpu.dot_dimension_numbers<[1], [0], [0], [1], [0, 0, 1, 1], [], []>} : vector<16x256xbf16>, vector<256x256xbf16>, vector<16x256xf32> -> vector<16x256xf32>
    %7 = arith.addf %3, %6 : vector<16x256xf32>
    %c0_6 = arith.constant 0 : index
    %c0_7 = arith.constant 0 : index
    %8 = vector.load %arg8[%c0_6, %c0_7] : memref<16x256xf32, #tpu.memory_space<vmem>>, vector<16x256xf32>
    tpu.vector_store %arg8[%c0_6, %c0_7], %7 {strides = array<i32>} : memref<16x256xf32, #tpu.memory_space<vmem>>, vector<16x256xf32>,
    %c17_i32 = arith.constant 17 : i32
    %9 = arith.cmpi eq, %arg2, %c17_i32 : i32
    %10 = arith.extui %9 : i1 to i32
    %c0_i32_8 = arith.constant 0 : i32
    %11 = arith.cmpi ne, %10, %c0_i32_8 : i32
    scf.if %11 {
      %c0_9 = arith.constant 0 : index
      %c0_10 = arith.constant 0 : index
      %12 = vector.load %arg8[%c0_9, %c0_10] : memref<16x256xf32, #tpu.memory_space<vmem>>, vector<16x256xf32>
      %cst_11 = arith.constant dense<0.000000e+00> : vector<256xf32>
      %13 = vector.multi_reduction <add>, %12, %cst_11 [0] : vector<16x256xf32> to vector<256xf32>
      %14 = vector.shape_cast %13 : vector<256xf32> to vector<1x256xf32>
      %15 = vector.shape_cast %14 : vector<1x256xf32> to vector<1x1x256xf32>
      %c0_12 = arith.constant 0 : index
      %c0_13 = arith.constant 0 : index
      %c0_14 = arith.constant 0 : index
      %16 = vector.load %arg6[%c0_12, %c0_13, %c0_14] : memref<1x1x256xf32, #tpu.memory_space<vmem>>, vector<1x1x256xf32>
      tpu.vector_store %arg6[%c0_12, %c0_13, %c0_14], %15 {strides = array<i32>} : memref<1x1x256xf32, #tpu.memory_space<vmem>>, vector<1x1x256xf32>,
      %17 = arith.mulf %12, %12 : vector<16x256xf32>
      %cst_15 = arith.constant dense<0.000000e+00> : vector<256xf32>
      %18 = vector.multi_reduction <add>, %17, %cst_15 [0] : vector<16x256xf32> to vector<256xf32>
      %19 = vector.shape_cast %18 : vector<256xf32> to vector<1x256xf32>
      %20 = vector.shape_cast %19 : vector<1x256xf32> to vector<1x1x256xf32>
      %c0_16 = arith.constant 0 : index
      %c0_17 = arith.constant 0 : index
      %c0_18 = arith.constant 0 : index
      %21 = vector.load %arg7[%c0_16, %c0_17, %c0_18] : memref<1x1x256xf32, #tpu.memory_space<vmem>>, vector<1x1x256xf32>
      tpu.vector_store %arg7[%c0_16, %c0_17, %c0_18], %20 {strides = array<i32>} : memref<1x1x256xf32, #tpu.memory_space<vmem>>, vector<1x1x256xf32>,
      %22 = arith.truncf %12 : vector<16x256xf32> to vector<16x256xbf16>
      %c0_19 = arith.constant 0 : index
      %c0_20 = arith.constant 0 : index
      %23 = vector.load %arg5[%c0_19, %c0_20] : memref<16x256xbf16, #tpu.memory_space<vmem>>, vector<16x256xbf16>
      tpu.vector_store %arg5[%c0_19, %c0_20], %22 {strides = array<i32>} : memref<16x256xbf16, #tpu.memory_space<vmem>>, vector<16x256xbf16>,
    } else {
    }
    return
  }
  func.func @transform_0(%arg0: i32, %arg1: i32, %arg2: i32) -> (i32, i32) {
    %c0_i32 = arith.constant 0 : i32
    return %arg0, %arg2 : i32, i32
  }
  func.func @transform_1(%arg0: i32, %arg1: i32, %arg2: i32) -> (i32, i32) {
    %c0_i32 = arith.constant 0 : i32
    return %arg2, %arg1 : i32, i32
  }
  func.func @transform_2(%arg0: i32, %arg1: i32, %arg2: i32) -> (i32, i32) {
    %c0_i32 = arith.constant 0 : i32
    return %arg0, %arg1 : i32, i32
  }
  func.func @transform_3(%arg0: i32, %arg1: i32, %arg2: i32) -> (i32, i32, i32) {
    %c0_i32 = arith.constant 0 : i32
    %c0_i32_0 = arith.constant 0 : i32
    return %arg0, %c0_i32, %arg1 : i32, i32, i32
  }
  func.func @transform_4(%arg0: i32, %arg1: i32, %arg2: i32) -> (i32, i32, i32) {
    %c0_i32 = arith.constant 0 : i32
    %c0_i32_0 = arith.constant 0 : i32
    return %arg0, %c0_i32, %arg1 : i32, i32, i32
  }
}

module attributes {stable_mosaic.version = 11 : i64} {
  func.func @_bn_apply_kernel(%arg0: i32, %arg1: memref<8x512xbf16, #tpu.memory_space<vmem>>, %arg2: memref<1x512xf32, #tpu.memory_space<vmem>>, %arg3: memref<1x512xf32, #tpu.memory_space<vmem>>, %arg4: memref<8x512xbf16, #tpu.memory_space<vmem>>) attributes {dimension_semantics = [#tpu.dimension_semantics<parallel>], iteration_bounds = array<i64: 1>, scalar_prefetch = 0 : i64, scratch_operands = 0 : i64, tpu.core_type = #tpu.core_type<tc>, window_params = [{transform_indices = @transform_0, window_bounds = array<i64: 8, 512>}, {pipeline_mode = #tpu.pipeline_mode<synchronous>, transform_indices = @transform_1, window_bounds = array<i64: 1, 512>}, {pipeline_mode = #tpu.pipeline_mode<synchronous>, transform_indices = @transform_2, window_bounds = array<i64: 1, 512>}, {transform_indices = @transform_3, window_bounds = array<i64: 8, 512>}]} {
    %c0 = arith.constant 0 : index
    %c0_0 = arith.constant 0 : index
    %0 = vector.load %arg1[%c0, %c0_0] : memref<8x512xbf16, #tpu.memory_space<vmem>>, vector<8x512xbf16>
    %1 = arith.extf %0 : vector<8x512xbf16> to vector<8x512xf32>
    %c0_1 = arith.constant 0 : index
    %c0_2 = arith.constant 0 : index
    %2 = vector.load %arg2[%c0_1, %c0_2] : memref<1x512xf32, #tpu.memory_space<vmem>>, vector<1x512xf32>
    %3 = vector.broadcast %2 : vector<1x512xf32> to vector<8x512xf32>
    %4 = arith.mulf %1, %3 : vector<8x512xf32>
    %c0_3 = arith.constant 0 : index
    %c0_4 = arith.constant 0 : index
    %5 = vector.load %arg3[%c0_3, %c0_4] : memref<1x512xf32, #tpu.memory_space<vmem>>, vector<1x512xf32>
    %6 = vector.broadcast %5 : vector<1x512xf32> to vector<8x512xf32>
    %7 = arith.addf %4, %6 : vector<8x512xf32>
    %8 = arith.truncf %7 : vector<8x512xf32> to vector<8x512xbf16>
    %c0_5 = arith.constant 0 : index
    %c0_6 = arith.constant 0 : index
    %9 = vector.load %arg4[%c0_5, %c0_6] : memref<8x512xbf16, #tpu.memory_space<vmem>>, vector<8x512xbf16>
    tpu.vector_store %arg4[%c0_5, %c0_6], %8 {strides = array<i32>} : memref<8x512xbf16, #tpu.memory_space<vmem>>, vector<8x512xbf16>,
    return
  }
  func.func @transform_0(%arg0: i32) -> (i32, i32) {
    %c0_i32 = arith.constant 0 : i32
    %c0_i32_0 = arith.constant 0 : i32
    return %arg0, %c0_i32 : i32, i32
  }
  func.func @transform_1(%arg0: i32) -> (i32, i32) {
    %c0_i32 = arith.constant 0 : i32
    %c0_i32_0 = arith.constant 0 : i32
    %c0_i32_1 = arith.constant 0 : i32
    return %c0_i32, %c0_i32_0 : i32, i32
  }
  func.func @transform_2(%arg0: i32) -> (i32, i32) {
    %c0_i32 = arith.constant 0 : i32
    %c0_i32_0 = arith.constant 0 : i32
    %c0_i32_1 = arith.constant 0 : i32
    return %c0_i32, %c0_i32_0 : i32, i32
  }
  func.func @transform_3(%arg0: i32) -> (i32, i32) {
    %c0_i32 = arith.constant 0 : i32
    %c0_i32_0 = arith.constant 0 : i32
    return %arg0, %c0_i32 : i32, i32
  }
}

module attributes {stable_mosaic.version = 11 : i64} {
  func.func @_bn_apply_kernel(%arg0: i32, %arg1: memref<8x512xbf16, #tpu.memory_space<vmem>>, %arg2: memref<8x512xbf16, #tpu.memory_space<vmem>>, %arg3: memref<1x512xf32, #tpu.memory_space<vmem>>, %arg4: memref<1x512xf32, #tpu.memory_space<vmem>>, %arg5: memref<8x512xbf16, #tpu.memory_space<vmem>>) attributes {dimension_semantics = [#tpu.dimension_semantics<parallel>], iteration_bounds = array<i64: 1>, scalar_prefetch = 0 : i64, scratch_operands = 0 : i64, tpu.core_type = #tpu.core_type<tc>, window_params = [{transform_indices = @transform_0, window_bounds = array<i64: 8, 512>}, {transform_indices = @transform_1, window_bounds = array<i64: 8, 512>}, {pipeline_mode = #tpu.pipeline_mode<synchronous>, transform_indices = @transform_2, window_bounds = array<i64: 1, 512>}, {pipeline_mode = #tpu.pipeline_mode<synchronous>, transform_indices = @transform_3, window_bounds = array<i64: 1, 512>}, {transform_indices = @transform_4, window_bounds = array<i64: 8, 512>}]} {
    %c0 = arith.constant 0 : index
    %c0_0 = arith.constant 0 : index
    %0 = vector.load %arg1[%c0, %c0_0] : memref<8x512xbf16, #tpu.memory_space<vmem>>, vector<8x512xbf16>
    %1 = arith.extf %0 : vector<8x512xbf16> to vector<8x512xf32>
    %c0_1 = arith.constant 0 : index
    %c0_2 = arith.constant 0 : index
    %2 = vector.load %arg3[%c0_1, %c0_2] : memref<1x512xf32, #tpu.memory_space<vmem>>, vector<1x512xf32>
    %3 = vector.broadcast %2 : vector<1x512xf32> to vector<8x512xf32>
    %4 = arith.mulf %1, %3 : vector<8x512xf32>
    %c0_3 = arith.constant 0 : index
    %c0_4 = arith.constant 0 : index
    %5 = vector.load %arg4[%c0_3, %c0_4] : memref<1x512xf32, #tpu.memory_space<vmem>>, vector<1x512xf32>
    %6 = vector.broadcast %5 : vector<1x512xf32> to vector<8x512xf32>
    %7 = arith.addf %4, %6 : vector<8x512xf32>
    %c0_5 = arith.constant 0 : index
    %c0_6 = arith.constant 0 : index
    %8 = vector.load %arg2[%c0_5, %c0_6] : memref<8x512xbf16, #tpu.memory_space<vmem>>, vector<8x512xbf16>
    %9 = arith.extf %8 : vector<8x512xbf16> to vector<8x512xf32>
    %10 = arith.addf %7, %9 : vector<8x512xf32>
    %cst = arith.constant 0.000000e+00 : f32
    %11 = vector.broadcast %cst : f32 to vector<8x512xf32>
    %12 = arith.maximumf %10, %11 : vector<8x512xf32>
    %13 = arith.truncf %12 : vector<8x512xf32> to vector<8x512xbf16>
    %c0_7 = arith.constant 0 : index
    %c0_8 = arith.constant 0 : index
    %14 = vector.load %arg5[%c0_7, %c0_8] : memref<8x512xbf16, #tpu.memory_space<vmem>>, vector<8x512xbf16>
    tpu.vector_store %arg5[%c0_7, %c0_8], %13 {strides = array<i32>} : memref<8x512xbf16, #tpu.memory_space<vmem>>, vector<8x512xbf16>,
    return
  }
  func.func @transform_0(%arg0: i32) -> (i32, i32) {
    %c0_i32 = arith.constant 0 : i32
    %c0_i32_0 = arith.constant 0 : i32
    return %arg0, %c0_i32 : i32, i32
  }
  func.func @transform_1(%arg0: i32) -> (i32, i32) {
    %c0_i32 = arith.constant 0 : i32
    %c0_i32_0 = arith.constant 0 : i32
    return %arg0, %c0_i32 : i32, i32
  }
  func.func @transform_2(%arg0: i32) -> (i32, i32) {
    %c0_i32 = arith.constant 0 : i32
    %c0_i32_0 = arith.constant 0 : i32
    %c0_i32_1 = arith.constant 0 : i32
    return %c0_i32, %c0_i32_0 : i32, i32
  }
  func.func @transform_3(%arg0: i32) -> (i32, i32) {
    %c0_i32 = arith.constant 0 : i32
    %c0_i32_0 = arith.constant 0 : i32
    %c0_i32_1 = arith.constant 0 : i32
    return %c0_i32, %c0_i32_0 : i32, i32
  }
  func.func @transform_4(%arg0: i32) -> (i32, i32) {
    %c0_i32 = arith.constant 0 : i32
    %c0_i32_0 = arith.constant 0 : i32
    return %arg0, %c0_i32 : i32, i32
  }
}

module attributes {stable_mosaic.version = 11 : i64} {
  func.func @_matmul_kernel(%arg0: i32, %arg1: i32, %arg2: i32, %arg3: memref<16x256xbf16, #tpu.memory_space<vmem>>, %arg4: memref<256x128xbf16, #tpu.memory_space<vmem>>, %arg5: memref<16x128xbf16, #tpu.memory_space<vmem>>, %arg6: memref<1x1x128xf32, #tpu.memory_space<vmem>>, %arg7: memref<1x1x128xf32, #tpu.memory_space<vmem>>, %arg8: memref<16x128xf32, #tpu.memory_space<vmem>>) attributes {dimension_semantics = [#tpu.dimension_semantics<parallel>, #tpu.dimension_semantics<parallel>, #tpu.dimension_semantics<arbitrary>], iteration_bounds = array<i64: 1, 1, 2>, scalar_prefetch = 0 : i64, scratch_operands = 1 : i64, tpu.core_type = #tpu.core_type<tc>, window_params = [{transform_indices = @transform_0, window_bounds = array<i64: 16, 256>}, {transform_indices = @transform_1, window_bounds = array<i64: 256, 128>}, {transform_indices = @transform_2, window_bounds = array<i64: 16, 128>}, {transform_indices = @transform_3, window_bounds = array<i64: 1, 1, 128>}, {transform_indices = @transform_4, window_bounds = array<i64: 1, 1, 128>}]} {
    %c0_i32 = arith.constant 0 : i32
    %0 = arith.cmpi eq, %arg2, %c0_i32 : i32
    %1 = arith.extui %0 : i1 to i32
    %c0_i32_0 = arith.constant 0 : i32
    %2 = arith.cmpi ne, %1, %c0_i32_0 : i32
    scf.if %2 {
      %cst_9 = arith.constant 0.000000e+00 : f32
      %12 = vector.broadcast %cst_9 : f32 to vector<16x128xf32>
      %c0_10 = arith.constant 0 : index
      %c0_11 = arith.constant 0 : index
      %13 = vector.load %arg8[%c0_10, %c0_11] : memref<16x128xf32, #tpu.memory_space<vmem>>, vector<16x128xf32>
      tpu.vector_store %arg8[%c0_10, %c0_11], %12 {strides = array<i32>} : memref<16x128xf32, #tpu.memory_space<vmem>>, vector<16x128xf32>,
    } else {
    }
    %c0 = arith.constant 0 : index
    %c0_1 = arith.constant 0 : index
    %3 = vector.load %arg8[%c0, %c0_1] : memref<16x128xf32, #tpu.memory_space<vmem>>, vector<16x128xf32>
    %c0_2 = arith.constant 0 : index
    %c0_3 = arith.constant 0 : index
    %4 = vector.load %arg3[%c0_2, %c0_3] : memref<16x256xbf16, #tpu.memory_space<vmem>>, vector<16x256xbf16>
    %c0_4 = arith.constant 0 : index
    %c0_5 = arith.constant 0 : index
    %5 = vector.load %arg4[%c0_4, %c0_5] : memref<256x128xbf16, #tpu.memory_space<vmem>>, vector<256x128xbf16>
    %cst = arith.constant dense<0.000000e+00> : vector<16x128xf32>
    %6 = tpu.matmul %4, %5, %cst {dimension_numbers = #tpu.dot_dimension_numbers<[1], [0], [0], [1], [0, 0, 1, 1], [], []>} : vector<16x256xbf16>, vector<256x128xbf16>, vector<16x128xf32> -> vector<16x128xf32>
    %7 = arith.addf %3, %6 : vector<16x128xf32>
    %c0_6 = arith.constant 0 : index
    %c0_7 = arith.constant 0 : index
    %8 = vector.load %arg8[%c0_6, %c0_7] : memref<16x128xf32, #tpu.memory_space<vmem>>, vector<16x128xf32>
    tpu.vector_store %arg8[%c0_6, %c0_7], %7 {strides = array<i32>} : memref<16x128xf32, #tpu.memory_space<vmem>>, vector<16x128xf32>,
    %c1_i32 = arith.constant 1 : i32
    %9 = arith.cmpi eq, %arg2, %c1_i32 : i32
    %10 = arith.extui %9 : i1 to i32
    %c0_i32_8 = arith.constant 0 : i32
    %11 = arith.cmpi ne, %10, %c0_i32_8 : i32
    scf.if %11 {
      %c0_9 = arith.constant 0 : index
      %c0_10 = arith.constant 0 : index
      %12 = vector.load %arg8[%c0_9, %c0_10] : memref<16x128xf32, #tpu.memory_space<vmem>>, vector<16x128xf32>
      %cst_11 = arith.constant dense<0.000000e+00> : vector<128xf32>
      %13 = vector.multi_reduction <add>, %12, %cst_11 [0] : vector<16x128xf32> to vector<128xf32>
      %14 = vector.shape_cast %13 : vector<128xf32> to vector<1x128xf32>
      %15 = vector.shape_cast %14 : vector<1x128xf32> to vector<1x1x128xf32>
      %c0_12 = arith.constant 0 : index
      %c0_13 = arith.constant 0 : index
      %c0_14 = arith.constant 0 : index
      %16 = vector.load %arg6[%c0_12, %c0_13, %c0_14] : memref<1x1x128xf32, #tpu.memory_space<vmem>>, vector<1x1x128xf32>
      tpu.vector_store %arg6[%c0_12, %c0_13, %c0_14], %15 {strides = array<i32>} : memref<1x1x128xf32, #tpu.memory_space<vmem>>, vector<1x1x128xf32>,
      %17 = arith.mulf %12, %12 : vector<16x128xf32>
      %cst_15 = arith.constant dense<0.000000e+00> : vector<128xf32>
      %18 = vector.multi_reduction <add>, %17, %cst_15 [0] : vector<16x128xf32> to vector<128xf32>
      %19 = vector.shape_cast %18 : vector<128xf32> to vector<1x128xf32>
      %20 = vector.shape_cast %19 : vector<1x128xf32> to vector<1x1x128xf32>
      %c0_16 = arith.constant 0 : index
      %c0_17 = arith.constant 0 : index
      %c0_18 = arith.constant 0 : index
      %21 = vector.load %arg7[%c0_16, %c0_17, %c0_18] : memref<1x1x128xf32, #tpu.memory_space<vmem>>, vector<1x1x128xf32>
      tpu.vector_store %arg7[%c0_16, %c0_17, %c0_18], %20 {strides = array<i32>} : memref<1x1x128xf32, #tpu.memory_space<vmem>>, vector<1x1x128xf32>,
      %22 = arith.truncf %12 : vector<16x128xf32> to vector<16x128xbf16>
      %c0_19 = arith.constant 0 : index
      %c0_20 = arith.constant 0 : index
      %23 = vector.load %arg5[%c0_19, %c0_20] : memref<16x128xbf16, #tpu.memory_space<vmem>>, vector<16x128xbf16>
      tpu.vector_store %arg5[%c0_19, %c0_20], %22 {strides = array<i32>} : memref<16x128xbf16, #tpu.memory_space<vmem>>, vector<16x128xbf16>,
    } else {
    }
    return
  }
  func.func @transform_0(%arg0: i32, %arg1: i32, %arg2: i32) -> (i32, i32) {
    %c0_i32 = arith.constant 0 : i32
    return %arg0, %arg2 : i32, i32
  }
  func.func @transform_1(%arg0: i32, %arg1: i32, %arg2: i32) -> (i32, i32) {
    %c0_i32 = arith.constant 0 : i32
    return %arg2, %arg1 : i32, i32
  }
  func.func @transform_2(%arg0: i32, %arg1: i32, %arg2: i32) -> (i32, i32) {
    %c0_i32 = arith.constant 0 : i32
    return %arg0, %arg1 : i32, i32
  }
  func.func @transform_3(%arg0: i32, %arg1: i32, %arg2: i32) -> (i32, i32, i32) {
    %c0_i32 = arith.constant 0 : i32
    %c0_i32_0 = arith.constant 0 : i32
    return %arg0, %c0_i32, %arg1 : i32, i32, i32
  }
  func.func @transform_4(%arg0: i32, %arg1: i32, %arg2: i32) -> (i32, i32, i32) {
    %c0_i32 = arith.constant 0 : i32
    %c0_i32_0 = arith.constant 0 : i32
    return %arg0, %c0_i32, %arg1 : i32, i32, i32
  }
}

module attributes {stable_mosaic.version = 11 : i64} {
  func.func @_bn_apply_kernel(%arg0: i32, %arg1: memref<8x128xbf16, #tpu.memory_space<vmem>>, %arg2: memref<1x128xf32, #tpu.memory_space<vmem>>, %arg3: memref<1x128xf32, #tpu.memory_space<vmem>>, %arg4: memref<8x128xbf16, #tpu.memory_space<vmem>>) attributes {dimension_semantics = [#tpu.dimension_semantics<parallel>], iteration_bounds = array<i64: 1>, scalar_prefetch = 0 : i64, scratch_operands = 0 : i64, tpu.core_type = #tpu.core_type<tc>, window_params = [{transform_indices = @transform_0, window_bounds = array<i64: 8, 128>}, {pipeline_mode = #tpu.pipeline_mode<synchronous>, transform_indices = @transform_1, window_bounds = array<i64: 1, 128>}, {pipeline_mode = #tpu.pipeline_mode<synchronous>, transform_indices = @transform_2, window_bounds = array<i64: 1, 128>}, {transform_indices = @transform_3, window_bounds = array<i64: 8, 128>}]} {
    %c0 = arith.constant 0 : index
    %c0_0 = arith.constant 0 : index
    %0 = vector.load %arg1[%c0, %c0_0] : memref<8x128xbf16, #tpu.memory_space<vmem>>, vector<8x128xbf16>
    %1 = arith.extf %0 : vector<8x128xbf16> to vector<8x128xf32>
    %c0_1 = arith.constant 0 : index
    %c0_2 = arith.constant 0 : index
    %2 = vector.load %arg2[%c0_1, %c0_2] : memref<1x128xf32, #tpu.memory_space<vmem>>, vector<1x128xf32>
    %3 = vector.broadcast %2 : vector<1x128xf32> to vector<8x128xf32>
    %4 = arith.mulf %1, %3 : vector<8x128xf32>
    %c0_3 = arith.constant 0 : index
    %c0_4 = arith.constant 0 : index
    %5 = vector.load %arg3[%c0_3, %c0_4] : memref<1x128xf32, #tpu.memory_space<vmem>>, vector<1x128xf32>
    %6 = vector.broadcast %5 : vector<1x128xf32> to vector<8x128xf32>
    %7 = arith.addf %4, %6 : vector<8x128xf32>
    %cst = arith.constant 0.000000e+00 : f32
    %8 = vector.broadcast %cst : f32 to vector<8x128xf32>
    %9 = arith.maximumf %7, %8 : vector<8x128xf32>
    %10 = arith.truncf %9 : vector<8x128xf32> to vector<8x128xbf16>
    %c0_5 = arith.constant 0 : index
    %c0_6 = arith.constant 0 : index
    %11 = vector.load %arg4[%c0_5, %c0_6] : memref<8x128xbf16, #tpu.memory_space<vmem>>, vector<8x128xbf16>
    tpu.vector_store %arg4[%c0_5, %c0_6], %10 {strides = array<i32>} : memref<8x128xbf16, #tpu.memory_space<vmem>>, vector<8x128xbf16>,
    return
  }
  func.func @transform_0(%arg0: i32) -> (i32, i32) {
    %c0_i32 = arith.constant 0 : i32
    %c0_i32_0 = arith.constant 0 : i32
    return %arg0, %c0_i32 : i32, i32
  }
  func.func @transform_1(%arg0: i32) -> (i32, i32) {
    %c0_i32 = arith.constant 0 : i32
    %c0_i32_0 = arith.constant 0 : i32
    %c0_i32_1 = arith.constant 0 : i32
    return %c0_i32, %c0_i32_0 : i32, i32
  }
  func.func @transform_2(%arg0: i32) -> (i32, i32) {
    %c0_i32 = arith.constant 0 : i32
    %c0_i32_0 = arith.constant 0 : i32
    %c0_i32_1 = arith.constant 0 : i32
    return %c0_i32, %c0_i32_0 : i32, i32
  }
  func.func @transform_3(%arg0: i32) -> (i32, i32) {
    %c0_i32 = arith.constant 0 : i32
    %c0_i32_0 = arith.constant 0 : i32
    return %arg0, %c0_i32 : i32, i32
  }
}

module attributes {stable_mosaic.version = 11 : i64} {
  func.func @_matmul_kernel(%arg0: i32, %arg1: i32, %arg2: i32, %arg3: memref<16x128xbf16, #tpu.memory_space<vmem>>, %arg4: memref<128x128xbf16, #tpu.memory_space<vmem>>, %arg5: memref<16x128xbf16, #tpu.memory_space<vmem>>, %arg6: memref<1x1x128xf32, #tpu.memory_space<vmem>>, %arg7: memref<1x1x128xf32, #tpu.memory_space<vmem>>, %arg8: memref<16x128xf32, #tpu.memory_space<vmem>>) attributes {dimension_semantics = [#tpu.dimension_semantics<parallel>, #tpu.dimension_semantics<parallel>, #tpu.dimension_semantics<arbitrary>], iteration_bounds = array<i64: 1, 1, 1>, scalar_prefetch = 0 : i64, scratch_operands = 1 : i64, tpu.core_type = #tpu.core_type<tc>, window_params = [{transform_indices = @transform_0, window_bounds = array<i64: 16, 128>}, {transform_indices = @transform_1, window_bounds = array<i64: 128, 128>}, {transform_indices = @transform_2, window_bounds = array<i64: 16, 128>}, {transform_indices = @transform_3, window_bounds = array<i64: 1, 1, 128>}, {transform_indices = @transform_4, window_bounds = array<i64: 1, 1, 128>}]} {
    %c0_i32 = arith.constant 0 : i32
    %0 = arith.cmpi eq, %arg2, %c0_i32 : i32
    %1 = arith.extui %0 : i1 to i32
    %c0_i32_0 = arith.constant 0 : i32
    %2 = arith.cmpi ne, %1, %c0_i32_0 : i32
    scf.if %2 {
      %cst_10 = arith.constant 0.000000e+00 : f32
      %12 = vector.broadcast %cst_10 : f32 to vector<16x128xf32>
      %c0_11 = arith.constant 0 : index
      %c0_12 = arith.constant 0 : index
      %13 = vector.load %arg8[%c0_11, %c0_12] : memref<16x128xf32, #tpu.memory_space<vmem>>, vector<16x128xf32>
      tpu.vector_store %arg8[%c0_11, %c0_12], %12 {strides = array<i32>} : memref<16x128xf32, #tpu.memory_space<vmem>>, vector<16x128xf32>,
    } else {
    }
    %c0 = arith.constant 0 : index
    %c0_1 = arith.constant 0 : index
    %3 = vector.load %arg8[%c0, %c0_1] : memref<16x128xf32, #tpu.memory_space<vmem>>, vector<16x128xf32>
    %c0_2 = arith.constant 0 : index
    %c0_3 = arith.constant 0 : index
    %4 = vector.load %arg3[%c0_2, %c0_3] : memref<16x128xbf16, #tpu.memory_space<vmem>>, vector<16x128xbf16>
    %c0_4 = arith.constant 0 : index
    %c0_5 = arith.constant 0 : index
    %5 = vector.load %arg4[%c0_4, %c0_5] : memref<128x128xbf16, #tpu.memory_space<vmem>>, vector<128x128xbf16>
    %cst = arith.constant dense<0.000000e+00> : vector<16x128xf32>
    %6 = tpu.matmul %4, %5, %cst {dimension_numbers = #tpu.dot_dimension_numbers<[1], [0], [0], [1], [0, 0, 1, 1], [], []>} : vector<16x128xbf16>, vector<128x128xbf16>, vector<16x128xf32> -> vector<16x128xf32>
    %7 = arith.addf %3, %6 : vector<16x128xf32>
    %c0_6 = arith.constant 0 : index
    %c0_7 = arith.constant 0 : index
    %8 = vector.load %arg8[%c0_6, %c0_7] : memref<16x128xf32, #tpu.memory_space<vmem>>, vector<16x128xf32>
    tpu.vector_store %arg8[%c0_6, %c0_7], %7 {strides = array<i32>} : memref<16x128xf32, #tpu.memory_space<vmem>>, vector<16x128xf32>,
    %c0_i32_8 = arith.constant 0 : i32
    %9 = arith.cmpi eq, %arg2, %c0_i32_8 : i32
    %10 = arith.extui %9 : i1 to i32
    %c0_i32_9 = arith.constant 0 : i32
    %11 = arith.cmpi ne, %10, %c0_i32_9 : i32
    scf.if %11 {
      %c0_10 = arith.constant 0 : index
      %c0_11 = arith.constant 0 : index
      %12 = vector.load %arg8[%c0_10, %c0_11] : memref<16x128xf32, #tpu.memory_space<vmem>>, vector<16x128xf32>
      %cst_12 = arith.constant dense<0.000000e+00> : vector<128xf32>
      %13 = vector.multi_reduction <add>, %12, %cst_12 [0] : vector<16x128xf32> to vector<128xf32>
      %14 = vector.shape_cast %13 : vector<128xf32> to vector<1x128xf32>
      %15 = vector.shape_cast %14 : vector<1x128xf32> to vector<1x1x128xf32>
      %c0_13 = arith.constant 0 : index
      %c0_14 = arith.constant 0 : index
      %c0_15 = arith.constant 0 : index
      %16 = vector.load %arg6[%c0_13, %c0_14, %c0_15] : memref<1x1x128xf32, #tpu.memory_space<vmem>>, vector<1x1x128xf32>
      tpu.vector_store %arg6[%c0_13, %c0_14, %c0_15], %15 {strides = array<i32>} : memref<1x1x128xf32, #tpu.memory_space<vmem>>, vector<1x1x128xf32>,
      %17 = arith.mulf %12, %12 : vector<16x128xf32>
      %cst_16 = arith.constant dense<0.000000e+00> : vector<128xf32>
      %18 = vector.multi_reduction <add>, %17, %cst_16 [0] : vector<16x128xf32> to vector<128xf32>
      %19 = vector.shape_cast %18 : vector<128xf32> to vector<1x128xf32>
      %20 = vector.shape_cast %19 : vector<1x128xf32> to vector<1x1x128xf32>
      %c0_17 = arith.constant 0 : index
      %c0_18 = arith.constant 0 : index
      %c0_19 = arith.constant 0 : index
      %21 = vector.load %arg7[%c0_17, %c0_18, %c0_19] : memref<1x1x128xf32, #tpu.memory_space<vmem>>, vector<1x1x128xf32>
      tpu.vector_store %arg7[%c0_17, %c0_18, %c0_19], %20 {strides = array<i32>} : memref<1x1x128xf32, #tpu.memory_space<vmem>>, vector<1x1x128xf32>,
      %22 = arith.truncf %12 : vector<16x128xf32> to vector<16x128xbf16>
      %c0_20 = arith.constant 0 : index
      %c0_21 = arith.constant 0 : index
      %23 = vector.load %arg5[%c0_20, %c0_21] : memref<16x128xbf16, #tpu.memory_space<vmem>>, vector<16x128xbf16>
      tpu.vector_store %arg5[%c0_20, %c0_21], %22 {strides = array<i32>} : memref<16x128xbf16, #tpu.memory_space<vmem>>, vector<16x128xbf16>,
    } else {
    }
    return
  }
  func.func @transform_0(%arg0: i32, %arg1: i32, %arg2: i32) -> (i32, i32) {
    %c0_i32 = arith.constant 0 : i32
    return %arg0, %arg2 : i32, i32
  }
  func.func @transform_1(%arg0: i32, %arg1: i32, %arg2: i32) -> (i32, i32) {
    %c0_i32 = arith.constant 0 : i32
    return %arg2, %arg1 : i32, i32
  }
  func.func @transform_2(%arg0: i32, %arg1: i32, %arg2: i32) -> (i32, i32) {
    %c0_i32 = arith.constant 0 : i32
    return %arg0, %arg1 : i32, i32
  }
  func.func @transform_3(%arg0: i32, %arg1: i32, %arg2: i32) -> (i32, i32, i32) {
    %c0_i32 = arith.constant 0 : i32
    %c0_i32_0 = arith.constant 0 : i32
    return %arg0, %c0_i32, %arg1 : i32, i32, i32
  }
  func.func @transform_4(%arg0: i32, %arg1: i32, %arg2: i32) -> (i32, i32, i32) {
    %c0_i32 = arith.constant 0 : i32
    %c0_i32_0 = arith.constant 0 : i32
    return %arg0, %c0_i32, %arg1 : i32, i32, i32
  }
}

module attributes {stable_mosaic.version = 11 : i64} {
  func.func @_matmul_kernel(%arg0: i32, %arg1: i32, %arg2: i32, %arg3: memref<16x128xbf16, #tpu.memory_space<vmem>>, %arg4: memref<128x128xbf16, #tpu.memory_space<vmem>>, %arg5: memref<16x128xf32, #tpu.memory_space<vmem>>, %arg6: memref<16x128xf32, #tpu.memory_space<vmem>>) attributes {dimension_semantics = [#tpu.dimension_semantics<parallel>, #tpu.dimension_semantics<parallel>, #tpu.dimension_semantics<arbitrary>], iteration_bounds = array<i64: 1, 1, 1>, scalar_prefetch = 0 : i64, scratch_operands = 1 : i64, tpu.core_type = #tpu.core_type<tc>, window_params = [{transform_indices = @transform_0, window_bounds = array<i64: 16, 128>}, {transform_indices = @transform_1, window_bounds = array<i64: 128, 128>}, {transform_indices = @transform_2, window_bounds = array<i64: 16, 128>}]} {
    %c0_i32 = arith.constant 0 : i32
    %0 = arith.cmpi eq, %arg2, %c0_i32 : i32
    %1 = arith.extui %0 : i1 to i32
    %c0_i32_0 = arith.constant 0 : i32
    %2 = arith.cmpi ne, %1, %c0_i32_0 : i32
    scf.if %2 {
      %cst_10 = arith.constant 0.000000e+00 : f32
      %12 = vector.broadcast %cst_10 : f32 to vector<16x128xf32>
      %c0_11 = arith.constant 0 : index
      %c0_12 = arith.constant 0 : index
      %13 = vector.load %arg6[%c0_11, %c0_12] : memref<16x128xf32, #tpu.memory_space<vmem>>, vector<16x128xf32>
      tpu.vector_store %arg6[%c0_11, %c0_12], %12 {strides = array<i32>} : memref<16x128xf32, #tpu.memory_space<vmem>>, vector<16x128xf32>,
    } else {
    }
    %c0 = arith.constant 0 : index
    %c0_1 = arith.constant 0 : index
    %3 = vector.load %arg6[%c0, %c0_1] : memref<16x128xf32, #tpu.memory_space<vmem>>, vector<16x128xf32>
    %c0_2 = arith.constant 0 : index
    %c0_3 = arith.constant 0 : index
    %4 = vector.load %arg3[%c0_2, %c0_3] : memref<16x128xbf16, #tpu.memory_space<vmem>>, vector<16x128xbf16>
    %c0_4 = arith.constant 0 : index
    %c0_5 = arith.constant 0 : index
    %5 = vector.load %arg4[%c0_4, %c0_5] : memref<128x128xbf16, #tpu.memory_space<vmem>>, vector<128x128xbf16>
    %cst = arith.constant dense<0.000000e+00> : vector<16x128xf32>
    %6 = tpu.matmul %4, %5, %cst {dimension_numbers = #tpu.dot_dimension_numbers<[1], [0], [0], [1], [0, 0, 1, 1], [], []>} : vector<16x128xbf16>, vector<128x128xbf16>, vector<16x128xf32> -> vector<16x128xf32>
    %7 = arith.addf %3, %6 : vector<16x128xf32>
    %c0_6 = arith.constant 0 : index
    %c0_7 = arith.constant 0 : index
    %8 = vector.load %arg6[%c0_6, %c0_7] : memref<16x128xf32, #tpu.memory_space<vmem>>, vector<16x128xf32>
    tpu.vector_store %arg6[%c0_6, %c0_7], %7 {strides = array<i32>} : memref<16x128xf32, #tpu.memory_space<vmem>>, vector<16x128xf32>,
    %c0_i32_8 = arith.constant 0 : i32
    %9 = arith.cmpi eq, %arg2, %c0_i32_8 : i32
    %10 = arith.extui %9 : i1 to i32
    %c0_i32_9 = arith.constant 0 : i32
    %11 = arith.cmpi ne, %10, %c0_i32_9 : i32
    scf.if %11 {
      %c0_10 = arith.constant 0 : index
      %c0_11 = arith.constant 0 : index
      %12 = vector.load %arg6[%c0_10, %c0_11] : memref<16x128xf32, #tpu.memory_space<vmem>>, vector<16x128xf32>
      %c0_12 = arith.constant 0 : index
      %c0_13 = arith.constant 0 : index
      %13 = vector.load %arg5[%c0_12, %c0_13] : memref<16x128xf32, #tpu.memory_space<vmem>>, vector<16x128xf32>
      tpu.vector_store %arg5[%c0_12, %c0_13], %12 {strides = array<i32>} : memref<16x128xf32, #tpu.memory_space<vmem>>, vector<16x128xf32>,
    } else {
    }
    return
  }
  func.func @transform_0(%arg0: i32, %arg1: i32, %arg2: i32) -> (i32, i32) {
    %c0_i32 = arith.constant 0 : i32
    return %arg0, %arg2 : i32, i32
  }
  func.func @transform_1(%arg0: i32, %arg1: i32, %arg2: i32) -> (i32, i32) {
    %c0_i32 = arith.constant 0 : i32
    return %arg2, %arg1 : i32, i32
  }
  func.func @transform_2(%arg0: i32, %arg1: i32, %arg2: i32) -> (i32, i32) {
    %c0_i32 = arith.constant 0 : i32
    return %arg0, %arg1 : i32, i32
  }
}

module attributes {stable_mosaic.version = 11 : i64} {
  func.func @_matmul_kernel(%arg0: i32, %arg1: i32, %arg2: i32, %arg3: memref<16x256xbf16, #tpu.memory_space<vmem>>, %arg4: memref<256x256xbf16, #tpu.memory_space<vmem>>, %arg5: memref<1x256xf32, #tpu.memory_space<vmem>>, %arg6: memref<16x256xbf16, #tpu.memory_space<vmem>>, %arg7: memref<16x256xf32, #tpu.memory_space<vmem>>) attributes {dimension_semantics = [#tpu.dimension_semantics<parallel>, #tpu.dimension_semantics<parallel>, #tpu.dimension_semantics<arbitrary>], iteration_bounds = array<i64: 1, 2, 2>, scalar_prefetch = 0 : i64, scratch_operands = 1 : i64, tpu.core_type = #tpu.core_type<tc>, window_params = [{transform_indices = @transform_0, window_bounds = array<i64: 16, 256>}, {transform_indices = @transform_1, window_bounds = array<i64: 256, 256>}, {transform_indices = @transform_2, window_bounds = array<i64: 1, 256>}, {transform_indices = @transform_3, window_bounds = array<i64: 16, 256>}]} {
    %c0_i32 = arith.constant 0 : i32
    %0 = arith.cmpi eq, %arg2, %c0_i32 : i32
    %1 = arith.extui %0 : i1 to i32
    %c0_i32_0 = arith.constant 0 : i32
    %2 = arith.cmpi ne, %1, %c0_i32_0 : i32
    scf.if %2 {
      %cst_9 = arith.constant 0.000000e+00 : f32
      %12 = vector.broadcast %cst_9 : f32 to vector<16x256xf32>
      %c0_10 = arith.constant 0 : index
      %c0_11 = arith.constant 0 : index
      %13 = vector.load %arg7[%c0_10, %c0_11] : memref<16x256xf32, #tpu.memory_space<vmem>>, vector<16x256xf32>
      tpu.vector_store %arg7[%c0_10, %c0_11], %12 {strides = array<i32>} : memref<16x256xf32, #tpu.memory_space<vmem>>, vector<16x256xf32>,
    } else {
    }
    %c0 = arith.constant 0 : index
    %c0_1 = arith.constant 0 : index
    %3 = vector.load %arg7[%c0, %c0_1] : memref<16x256xf32, #tpu.memory_space<vmem>>, vector<16x256xf32>
    %c0_2 = arith.constant 0 : index
    %c0_3 = arith.constant 0 : index
    %4 = vector.load %arg3[%c0_2, %c0_3] : memref<16x256xbf16, #tpu.memory_space<vmem>>, vector<16x256xbf16>
    %c0_4 = arith.constant 0 : index
    %c0_5 = arith.constant 0 : index
    %5 = vector.load %arg4[%c0_4, %c0_5] : memref<256x256xbf16, #tpu.memory_space<vmem>>, vector<256x256xbf16>
    %cst = arith.constant dense<0.000000e+00> : vector<16x256xf32>
    %6 = tpu.matmul %4, %5, %cst {dimension_numbers = #tpu.dot_dimension_numbers<[1], [0], [0], [1], [0, 0, 1, 1], [], []>} : vector<16x256xbf16>, vector<256x256xbf16>, vector<16x256xf32> -> vector<16x256xf32>
    %7 = arith.addf %3, %6 : vector<16x256xf32>
    %c0_6 = arith.constant 0 : index
    %c0_7 = arith.constant 0 : index
    %8 = vector.load %arg7[%c0_6, %c0_7] : memref<16x256xf32, #tpu.memory_space<vmem>>, vector<16x256xf32>
    tpu.vector_store %arg7[%c0_6, %c0_7], %7 {strides = array<i32>} : memref<16x256xf32, #tpu.memory_space<vmem>>, vector<16x256xf32>,
    %c1_i32 = arith.constant 1 : i32
    %9 = arith.cmpi eq, %arg2, %c1_i32 : i32
    %10 = arith.extui %9 : i1 to i32
    %c0_i32_8 = arith.constant 0 : i32
    %11 = arith.cmpi ne, %10, %c0_i32_8 : i32
    scf.if %11 {
      %c0_9 = arith.constant 0 : index
      %c0_10 = arith.constant 0 : index
      %12 = vector.load %arg7[%c0_9, %c0_10] : memref<16x256xf32, #tpu.memory_space<vmem>>, vector<16x256xf32>
      %c0_11 = arith.constant 0 : index
      %c0_12 = arith.constant 0 : index
      %13 = vector.load %arg5[%c0_11, %c0_12] : memref<1x256xf32, #tpu.memory_space<vmem>>, vector<1x256xf32>
      %14 = vector.broadcast %13 : vector<1x256xf32> to vector<16x256xf32>
      %15 = arith.addf %12, %14 : vector<16x256xf32>
      %cst_13 = arith.constant 0.000000e+00 : f32
      %16 = vector.broadcast %cst_13 : f32 to vector<16x256xf32>
      %17 = arith.maximumf %15, %16 : vector<16x256xf32>
      %18 = arith.truncf %17 : vector<16x256xf32> to vector<16x256xbf16>
      %c0_14 = arith.constant 0 : index
      %c0_15 = arith.constant 0 : index
      %19 = vector.load %arg6[%c0_14, %c0_15] : memref<16x256xbf16, #tpu.memory_space<vmem>>, vector<16x256xbf16>
      tpu.vector_store %arg6[%c0_14, %c0_15], %18 {strides = array<i32>} : memref<16x256xbf16, #tpu.memory_space<vmem>>, vector<16x256xbf16>,
    } else {
    }
    return
  }
  func.func @transform_0(%arg0: i32, %arg1: i32, %arg2: i32) -> (i32, i32) {
    %c0_i32 = arith.constant 0 : i32
    return %arg0, %arg2 : i32, i32
  }
  func.func @transform_1(%arg0: i32, %arg1: i32, %arg2: i32) -> (i32, i32) {
    %c0_i32 = arith.constant 0 : i32
    return %arg2, %arg1 : i32, i32
  }
  func.func @transform_2(%arg0: i32, %arg1: i32, %arg2: i32) -> (i32, i32) {
    %c0_i32 = arith.constant 0 : i32
    %c0_i32_0 = arith.constant 0 : i32
    return %c0_i32, %arg1 : i32, i32
  }
  func.func @transform_3(%arg0: i32, %arg1: i32, %arg2: i32) -> (i32, i32) {
    %c0_i32 = arith.constant 0 : i32
    return %arg0, %arg1 : i32, i32
  }
}

module attributes {stable_mosaic.version = 11 : i64} {
  func.func @_matmul_kernel(%arg0: i32, %arg1: i32, %arg2: i32, %arg3: memref<16x256xbf16, #tpu.memory_space<vmem>>, %arg4: memref<256x128xbf16, #tpu.memory_space<vmem>>, %arg5: memref<1x128xf32, #tpu.memory_space<vmem>>, %arg6: memref<16x128xf32, #tpu.memory_space<vmem>>, %arg7: memref<16x128xf32, #tpu.memory_space<vmem>>) attributes {dimension_semantics = [#tpu.dimension_semantics<parallel>, #tpu.dimension_semantics<parallel>, #tpu.dimension_semantics<arbitrary>], iteration_bounds = array<i64: 1, 1, 2>, scalar_prefetch = 0 : i64, scratch_operands = 1 : i64, tpu.core_type = #tpu.core_type<tc>, window_params = [{transform_indices = @transform_0, window_bounds = array<i64: 16, 256>}, {transform_indices = @transform_1, window_bounds = array<i64: 256, 128>}, {transform_indices = @transform_2, window_bounds = array<i64: 1, 128>}, {transform_indices = @transform_3, window_bounds = array<i64: 16, 128>}]} {
    %c0_i32 = arith.constant 0 : i32
    %0 = arith.cmpi eq, %arg2, %c0_i32 : i32
    %1 = arith.extui %0 : i1 to i32
    %c0_i32_0 = arith.constant 0 : i32
    %2 = arith.cmpi ne, %1, %c0_i32_0 : i32
    scf.if %2 {
      %cst_9 = arith.constant 0.000000e+00 : f32
      %12 = vector.broadcast %cst_9 : f32 to vector<16x128xf32>
      %c0_10 = arith.constant 0 : index
      %c0_11 = arith.constant 0 : index
      %13 = vector.load %arg7[%c0_10, %c0_11] : memref<16x128xf32, #tpu.memory_space<vmem>>, vector<16x128xf32>
      tpu.vector_store %arg7[%c0_10, %c0_11], %12 {strides = array<i32>} : memref<16x128xf32, #tpu.memory_space<vmem>>, vector<16x128xf32>,
    } else {
    }
    %c0 = arith.constant 0 : index
    %c0_1 = arith.constant 0 : index
    %3 = vector.load %arg7[%c0, %c0_1] : memref<16x128xf32, #tpu.memory_space<vmem>>, vector<16x128xf32>
    %c0_2 = arith.constant 0 : index
    %c0_3 = arith.constant 0 : index
    %4 = vector.load %arg3[%c0_2, %c0_3] : memref<16x256xbf16, #tpu.memory_space<vmem>>, vector<16x256xbf16>
    %c0_4 = arith.constant 0 : index
    %c0_5 = arith.constant 0 : index
    %5 = vector.load %arg4[%c0_4, %c0_5] : memref<256x128xbf16, #tpu.memory_space<vmem>>, vector<256x128xbf16>
    %cst = arith.constant dense<0.000000e+00> : vector<16x128xf32>
    %6 = tpu.matmul %4, %5, %cst {dimension_numbers = #tpu.dot_dimension_numbers<[1], [0], [0], [1], [0, 0, 1, 1], [], []>} : vector<16x256xbf16>, vector<256x128xbf16>, vector<16x128xf32> -> vector<16x128xf32>
    %7 = arith.addf %3, %6 : vector<16x128xf32>
    %c0_6 = arith.constant 0 : index
    %c0_7 = arith.constant 0 : index
    %8 = vector.load %arg7[%c0_6, %c0_7] : memref<16x128xf32, #tpu.memory_space<vmem>>, vector<16x128xf32>
    tpu.vector_store %arg7[%c0_6, %c0_7], %7 {strides = array<i32>} : memref<16x128xf32, #tpu.memory_space<vmem>>, vector<16x128xf32>,
    %c1_i32 = arith.constant 1 : i32
    %9 = arith.cmpi eq, %arg2, %c1_i32 : i32
    %10 = arith.extui %9 : i1 to i32
    %c0_i32_8 = arith.constant 0 : i32
    %11 = arith.cmpi ne, %10, %c0_i32_8 : i32
    scf.if %11 {
      %c0_9 = arith.constant 0 : index
      %c0_10 = arith.constant 0 : index
      %12 = vector.load %arg7[%c0_9, %c0_10] : memref<16x128xf32, #tpu.memory_space<vmem>>, vector<16x128xf32>
      %c0_11 = arith.constant 0 : index
      %c0_12 = arith.constant 0 : index
      %13 = vector.load %arg5[%c0_11, %c0_12] : memref<1x128xf32, #tpu.memory_space<vmem>>, vector<1x128xf32>
      %14 = vector.broadcast %13 : vector<1x128xf32> to vector<16x128xf32>
      %15 = arith.addf %12, %14 : vector<16x128xf32>
      %c0_13 = arith.constant 0 : index
      %c0_14 = arith.constant 0 : index
      %16 = vector.load %arg6[%c0_13, %c0_14] : memref<16x128xf32, #tpu.memory_space<vmem>>, vector<16x128xf32>
      tpu.vector_store %arg6[%c0_13, %c0_14], %15 {strides = array<i32>} : memref<16x128xf32, #tpu.memory_space<vmem>>, vector<16x128xf32>,
    } else {
    }
    return
  }
  func.func @transform_0(%arg0: i32, %arg1: i32, %arg2: i32) -> (i32, i32) {
    %c0_i32 = arith.constant 0 : i32
    return %arg0, %arg2 : i32, i32
  }
  func.func @transform_1(%arg0: i32, %arg1: i32, %arg2: i32) -> (i32, i32) {
    %c0_i32 = arith.constant 0 : i32
    return %arg2, %arg1 : i32, i32
  }
  func.func @transform_2(%arg0: i32, %arg1: i32, %arg2: i32) -> (i32, i32) {
    %c0_i32 = arith.constant 0 : i32
    %c0_i32_0 = arith.constant 0 : i32
    return %c0_i32, %arg1 : i32, i32
  }
  func.func @transform_3(%arg0: i32, %arg1: i32, %arg2: i32) -> (i32, i32) {
    %c0_i32 = arith.constant 0 : i32
    return %arg0, %arg1 : i32, i32
  }
}

</mosaic_0001>

<bundles_post_ra>
// kernel: model_pretrain_forward.49
= control target key start
LH: loop header
LB: loop body
LE: loop exit
PB: predicated region body
PF: predicated region fallthrough
CT: control target
= control target key end

     0   :  { %s1176_s0 = inlined_call_operand.vmem [shape: bf16[512,128], index: 0, kind: input, shape index: {}]   ;;  %s1177_s1 = inlined_call_operand.vmem [shape: f32[1,128], index: 1, kind: input, shape index: {}]   ;;  %s1178_s2 = inlined_call_operand.vmem [shape: f32[1,128], index: 2, kind: input, shape index: {}]   ;;  %s1179_s3 = inlined_call_operand.vmem [shape: bf16[512,128], index: 3, kind: output, shape index: {}]  }
   0x1   :  { %v475_v0 = vld [vmem:[%s1176_s0] sm:$0xff]   ;;  %v762_v5 = vld [vmem:[%s1176_s0 + $0x8] sm:$0xff]   ;;  %v763_v8 = vld [vmem:[%s1176_s0 + $0x10] sm:$0xff]  }
   0x2   :  { %v852_v1 = vld [vmem:[%s1177_s1] ss:$0 sm:$0xff]  ;;  %v476_v2 = vunpack.c.l.bf16 %v475_v0  ;;  %v477_v3 = vunpack.c.h.bf16 %v475_v0  ;;  %v480_v6 = vunpack.c.l.bf16 %v762_v5  ;;  %v481_v7 = vunpack.c.h.bf16 %v762_v5  ;;  %v764_v9 = vld [vmem:[%s1176_s0 + $0x18] sm:$0xff]   ;;  %v766_v35 = vld [vmem:[%s1176_s0 + $0x28] sm:$0xff]  }
   0x3   :  { %v857_v4 = vld [vmem:[%s1178_s2] ss:$0 sm:$0xff]  ;;  %v484_v12 = vunpack.c.l.bf16 %v763_v8  ;;  %v485_v13 = vunpack.c.h.bf16 %v763_v8  ;;  %v488_v16 = vunpack.c.l.bf16 %v764_v9  ;;  %v489_v17 = vunpack.c.h.bf16 %v764_v9  ;;  %v767_v40 = vld [vmem:[%s1176_s0 + $0x30] sm:$0xff]   ;;  %v768_v45 = vld [vmem:[%s1176_s0 + $0x38] sm:$0xff]  }
   0x4   :  { %v146_v10 = vmul.f32 %v852_v1, %v476_v2  ;;  %v147_v11 = vmul.f32 %v852_v1, %v477_v3  ;;  %v148_v14 = vmul.f32 %v852_v1, %v480_v6  ;;  %v149_v15 = vmul.f32 %v852_v1, %v481_v7  ;;  %v765_v26 = vld [vmem:[%s1176_s0 + $0x20] sm:$0xff]  }
   0x5   :  { %v150_v20 = vmul.f32 %v852_v1, %v484_v12  ;;  %v151_v21 = vmul.f32 %v852_v1, %v485_v13  ;;  %v152_v24 = vmul.f32 %v852_v1, %v488_v16  ;;  %v153_v25 = vmul.f32 %v852_v1, %v489_v17  ;;  %v769_v62 = vld [vmem:[%s1176_s0 + $0x40] sm:$0xff]   ;;  %v770_v13 = vld [vmem:[%s1176_s0 + $0x48] sm:$0xff]  }
   0x6   :  { %v214_v18 = vadd.f32 %v857_v4, %v146_v10  ;;  %v215_v19 = vadd.f32 %v857_v4, %v147_v11  ;;  %v216_v22 = vadd.f32 %v857_v4, %v148_v14  ;;  %v217_v23 = vadd.f32 %v857_v4, %v149_v15 }
   0x7   :  { %v218_v29 = vadd.f32 %v857_v4, %v150_v20  ;;  %v219_v30 = vadd.f32 %v857_v4, %v151_v21  ;;  %v220_v33 = vadd.f32 %v857_v4, %v152_v24  ;;  %v221_v34 = vadd.f32 %v857_v4, %v153_v25 }
   0x8   :  { %v278_v27 = vmax.f32 %v214_v18, 0.0  ;;  %v279_v28 = vmax.f32 %v215_v19, 0.0  ;;  %v280_v31 = vmax.f32 %v216_v22, 0.0  ;;  %v281_v32 = vmax.f32 %v217_v23, 0.0  ;;  %v771_v18 = vld [vmem:[%s1176_s0 + $0x50] sm:$0xff]   ;;  %v772_v23 = vld [vmem:[%s1176_s0 + $0x58] sm:$0xff]  }
   0x9   :  { %v282_v37 = vmax.f32 %v218_v29, 0.0  ;;  %v283_v38 = vmax.f32 %v219_v30, 0.0  ;;  %v492_v39 = vunpack.c.l.bf16 %v765_v26  ;;  %v284_v42 = vmax.f32 %v220_v33, 0.0 }
   0xa   :  { %v605_v36 = vpack.c.bf16 %v279_v28, %v278_v27  ;;  %v610_v41 = vpack.c.bf16 %v281_v32, %v280_v31  ;;  %v285_v43 = vmax.f32 %v221_v34, 0.0  ;;  %v493_v44 = vunpack.c.h.bf16 %v765_v26 }
   0xb   :  { %v615_v46 = vpack.c.bf16 %v283_v38, %v282_v37  ;;  %v154_v47 = vmul.f32 %v852_v1, %v492_v39  ;;  %v496_v48 = vunpack.c.l.bf16 %v766_v35  ;;  %v497_v49 = vunpack.c.h.bf16 %v766_v35 }
   0xc   :  { %606 = vst [vmem:[%s1179_s3] sm:$0xff] %v605_v36   ;;  %v620_v50 = vpack.c.bf16 %v285_v43, %v284_v42  ;;  %v155_v51 = vmul.f32 %v852_v1, %v493_v44  ;;  %v500_v52 = vunpack.c.l.bf16 %v767_v40  ;;  %v501_v53 = vunpack.c.h.bf16 %v767_v40  ;;  %v773_v36 = vld [vmem:[%s1176_s0 + $0x60] sm:$0xff]  }
   0xd   :  { %793 = vst [vmem:[%s1179_s3 + $0x8] sm:$0xff] %v610_v41   ;;  %v222_v54 = vadd.f32 %v857_v4, %v154_v47  ;;  %v156_v55 = vmul.f32 %v852_v1, %v496_v48  ;;  %v157_v56 = vmul.f32 %v852_v1, %v497_v49  ;;  %v504_v57 = vunpack.c.l.bf16 %v768_v45 }
   0xe   :  { %794 = vst [vmem:[%s1179_s3 + $0x10] sm:$0xff] %v615_v46   ;;  %v223_v58 = vadd.f32 %v857_v4, %v155_v51  ;;  %v158_v59 = vmul.f32 %v852_v1, %v500_v52  ;;  %v159_v60 = vmul.f32 %v852_v1, %v501_v53  ;;  %v505_v61 = vunpack.c.h.bf16 %v768_v45  ;;  %v774_v53 = vld [vmem:[%s1176_s0 + $0x68] sm:$0xff]  }
   0xf   :  { %795 = vst [vmem:[%s1179_s3 + $0x18] sm:$0xff] %v620_v50   ;;  %v286_v63 = vmax.f32 %v222_v54, 0.0  ;;  %v224_v0 = vadd.f32 %v857_v4, %v156_v55  ;;  %v225_v2 = vadd.f32 %v857_v4, %v157_v56  ;;  %v160_v3 = vmul.f32 %v852_v1, %v504_v57 }
  0x10   :  { %v287_v5 = vmax.f32 %v223_v58, 0.0  ;;  %v226_v6 = vadd.f32 %v857_v4, %v158_v59  ;;  %v227_v7 = vadd.f32 %v857_v4, %v159_v60  ;;  %v161_v8 = vmul.f32 %v852_v1, %v505_v61  ;;  %v775_v58 = vld [vmem:[%s1176_s0 + $0x70] sm:$0xff]  }
  0x11   :  { %v288_v9 = vmax.f32 %v224_v0, 0.0  ;;  %v289_v10 = vmax.f32 %v225_v2, 0.0  ;;  %v228_v11 = vadd.f32 %v857_v4, %v160_v3  ;;  %v508_v12 = vunpack.c.l.bf16 %v769_v62 }
  0x12   :  { %v625_v14 = vpack.c.bf16 %v287_v5, %v286_v63  ;;  %v290_v15 = vmax.f32 %v226_v6, 0.0  ;;  %v291_v16 = vmax.f32 %v227_v7, 0.0  ;;  %v229_v17 = vadd.f32 %v857_v4, %v161_v8  ;;  %v776_v63 = vld [vmem:[%s1176_s0 + $0x78] sm:$0xff]  }
  0x13   :  { %v630_v19 = vpack.c.bf16 %v289_v10, %v288_v9  ;;  %v292_v20 = vmax.f32 %v228_v11, 0.0  ;;  %v509_v21 = vunpack.c.h.bf16 %v769_v62  ;;  %v162_v22 = vmul.f32 %v852_v1, %v508_v12 }
  0x14   :  { %796 = vst [vmem:[%s1179_s3 + $0x20] sm:$0xff] %v625_v14   ;;  %v635_v24 = vpack.c.bf16 %v291_v16, %v290_v15  ;;  %v293_v25 = vmax.f32 %v229_v17, 0.0  ;;  %v512_v26 = vunpack.c.l.bf16 %v770_v13  ;;  %v513_v27 = vunpack.c.h.bf16 %v770_v13  ;;  %v777_v14 = vld [vmem:[%s1176_s0 + $0x80] sm:$0xff]  }
  0x15   :  { %797 = vst [vmem:[%s1179_s3 + $0x28] sm:$0xff] %v630_v19   ;;  %v163_v28 = vmul.f32 %v852_v1, %v509_v21  ;;  %v230_v29 = vadd.f32 %v857_v4, %v162_v22  ;;  %v516_v30 = vunpack.c.l.bf16 %v771_v18  ;;  %v517_v31 = vunpack.c.h.bf16 %v771_v18 }
  0x16   :  { %798 = vst [vmem:[%s1179_s3 + $0x30] sm:$0xff] %v635_v24   ;;  %v640_v32 = vpack.c.bf16 %v293_v25, %v292_v20  ;;  %v164_v33 = vmul.f32 %v852_v1, %v512_v26  ;;  %v165_v34 = vmul.f32 %v852_v1, %v513_v27  ;;  %v520_v35 = vunpack.c.l.bf16 %v772_v23  ;;  %v778_v27 = vld [vmem:[%s1176_s0 + $0x88] sm:$0xff]  }
  0x17   :  { %v231_v37 = vadd.f32 %v857_v4, %v163_v28  ;;  %v294_v38 = vmax.f32 %v230_v29, 0.0  ;;  %v166_v39 = vmul.f32 %v852_v1, %v516_v30  ;;  %v167_v40 = vmul.f32 %v852_v1, %v517_v31 }
  0x18   :  { %799 = vst [vmem:[%s1179_s3 + $0x38] sm:$0xff] %v640_v32   ;;  %v232_v41 = vadd.f32 %v857_v4, %v164_v33  ;;  %v233_v42 = vadd.f32 %v857_v4, %v165_v34  ;;  %v521_v43 = vunpack.c.h.bf16 %v772_v23  ;;  %v168_v44 = vmul.f32 %v852_v1, %v520_v35 }
  0x19   :  { %v295_v45 = vmax.f32 %v231_v37, 0.0  ;;  %v234_v46 = vadd.f32 %v857_v4, %v166_v39  ;;  %v235_v47 = vadd.f32 %v857_v4, %v167_v40  ;;  %v524_v48 = vunpack.c.l.bf16 %v773_v36 }
  0x1a   :  { %v296_v49 = vmax.f32 %v232_v41, 0.0  ;;  %v297_v50 = vmax.f32 %v233_v42, 0.0  ;;  %v169_v51 = vmul.f32 %v852_v1, %v521_v43  ;;  %v236_v52 = vadd.f32 %v857_v4, %v168_v44  ;;  %v780_v41 = vld [vmem:[%s1176_s0 + $0x98] sm:$0xff]  }
  0x1b   :  { %v645_v54 = vpack.c.bf16 %v295_v45, %v294_v38  ;;  %v298_v55 = vmax.f32 %v234_v46, 0.0  ;;  %v299_v56 = vmax.f32 %v235_v47, 0.0  ;;  %v525_v57 = vunpack.c.h.bf16 %v773_v36  ;;  %v779_v36 = vld [vmem:[%s1176_s0 + $0x90] sm:$0xff]  }
  0x1c   :  { %v650_v59 = vpack.c.bf16 %v297_v50, %v296_v49  ;;  %v237_v60 = vadd.f32 %v857_v4, %v169_v51  ;;  %v300_v61 = vmax.f32 %v236_v52, 0.0  ;;  %v170_v62 = vmul.f32 %v852_v1, %v524_v48 }
  0x1d   :  { %800 = vst [vmem:[%s1179_s3 + $0x40] sm:$0xff] %v645_v54   ;;  %v655_v0 = vpack.c.bf16 %v299_v56, %v298_v55  ;;  %v171_v2 = vmul.f32 %v852_v1, %v525_v57  ;;  %v528_v3 = vunpack.c.l.bf16 %v774_v53  ;;  %v529_v5 = vunpack.c.h.bf16 %v774_v53  ;;  %v781_v54 = vld [vmem:[%s1176_s0 + $0xa0] sm:$0xff]  }
  0x1e   :  { %801 = vst [vmem:[%s1179_s3 + $0x48] sm:$0xff] %v650_v59   ;;  %v301_v6 = vmax.f32 %v237_v60, 0.0  ;;  %v238_v7 = vadd.f32 %v857_v4, %v170_v62  ;;  %v532_v8 = vunpack.c.l.bf16 %v775_v58  ;;  %v533_v9 = vunpack.c.h.bf16 %v775_v58 }
  0x1f   :  { %802 = vst [vmem:[%s1179_s3 + $0x50] sm:$0xff] %v655_v0   ;;  %v239_v10 = vadd.f32 %v857_v4, %v171_v2  ;;  %v172_v11 = vmul.f32 %v852_v1, %v528_v3  ;;  %v173_v12 = vmul.f32 %v852_v1, %v529_v5  ;;  %v536_v13 = vunpack.c.l.bf16 %v776_v63  ;;  %v782_v5 = vld [vmem:[%s1176_s0 + $0xa8] sm:$0xff]  }
  0x20   :  { %v660_v15 = vpack.c.bf16 %v301_v6, %v300_v61  ;;  %v302_v16 = vmax.f32 %v238_v7, 0.0  ;;  %v174_v17 = vmul.f32 %v852_v1, %v532_v8  ;;  %v175_v18 = vmul.f32 %v852_v1, %v533_v9 }
  0x21   :  { %v303_v19 = vmax.f32 %v239_v10, 0.0  ;;  %v240_v20 = vadd.f32 %v857_v4, %v172_v11  ;;  %v241_v21 = vadd.f32 %v857_v4, %v173_v12  ;;  %v537_v22 = vunpack.c.h.bf16 %v776_v63 }
  0x22   :  { %803 = vst [vmem:[%s1179_s3 + $0x58] sm:$0xff] %v660_v15   ;;  %v242_v23 = vadd.f32 %v857_v4, %v174_v17  ;;  %v243_v24 = vadd.f32 %v857_v4, %v175_v18  ;;  %v176_v25 = vmul.f32 %v852_v1, %v536_v13  ;;  %v540_v26 = vunpack.c.l.bf16 %v777_v14 }
  0x23   :  { %v665_v28 = vpack.c.bf16 %v303_v19, %v302_v16  ;;  %v304_v29 = vmax.f32 %v240_v20, 0.0  ;;  %v305_v30 = vmax.f32 %v241_v21, 0.0  ;;  %v177_v31 = vmul.f32 %v852_v1, %v537_v22 }
  0x24   :  { %v306_v32 = vmax.f32 %v242_v23, 0.0  ;;  %v307_v33 = vmax.f32 %v243_v24, 0.0  ;;  %v244_v34 = vadd.f32 %v857_v4, %v176_v25  ;;  %v541_v35 = vunpack.c.h.bf16 %v777_v14  ;;  %v783_v14 = vld [vmem:[%s1176_s0 + $0xb0] sm:$0xff]   ;;  %v784_v23 = vld [vmem:[%s1176_s0 + $0xb8] sm:$0xff]  }
  0x25   :  { %804 = vst [vmem:[%s1179_s3 + $0x60] sm:$0xff] %v665_v28   ;;  %v670_v37 = vpack.c.bf16 %v305_v30, %v304_v29  ;;  %v245_v38 = vadd.f32 %v857_v4, %v177_v31  ;;  %v178_v39 = vmul.f32 %v852_v1, %v540_v26  ;;  %v544_v40 = vunpack.c.l.bf16 %v778_v27 }
  0x26   :  { %v675_v42 = vpack.c.bf16 %v307_v33, %v306_v32  ;;  %v308_v43 = vmax.f32 %v244_v34, 0.0  ;;  %v179_v44 = vmul.f32 %v852_v1, %v541_v35  ;;  %v545_v45 = vunpack.c.h.bf16 %v778_v27  ;;  %v785_v32 = vld [vmem:[%s1176_s0 + $0xc0] sm:$0xff]  }
  0x27   :  { %805 = vst [vmem:[%s1179_s3 + $0x68] sm:$0xff] %v670_v37   ;;  %v309_v46 = vmax.f32 %v245_v38, 0.0  ;;  %v246_v47 = vadd.f32 %v857_v4, %v178_v39  ;;  %v180_v48 = vmul.f32 %v852_v1, %v544_v40  ;;  %v548_v49 = vunpack.c.l.bf16 %v779_v36 }
  0x28   :  { %806 = vst [vmem:[%s1179_s3 + $0x70] sm:$0xff] %v675_v42   ;;  %v247_v50 = vadd.f32 %v857_v4, %v179_v44  ;;  %v181_v51 = vmul.f32 %v852_v1, %v545_v45  ;;  %v549_v52 = vunpack.c.h.bf16 %v779_v36  ;;  %v552_v53 = vunpack.c.l.bf16 %v780_v41  ;;  %v786_v45 = vld [vmem:[%s1176_s0 + $0xc8] sm:$0xff]  }
  0x29   :  { %v680_v55 = vpack.c.bf16 %v309_v46, %v308_v43  ;;  %v310_v56 = vmax.f32 %v246_v47, 0.0  ;;  %v248_v57 = vadd.f32 %v857_v4, %v180_v48  ;;  %v182_v58 = vmul.f32 %v852_v1, %v548_v49 }
  0x2a   :  { %v311_v59 = vmax.f32 %v247_v50, 0.0  ;;  %v249_v60 = vadd.f32 %v857_v4, %v181_v51  ;;  %v183_v61 = vmul.f32 %v852_v1, %v549_v52  ;;  %v553_v62 = vunpack.c.h.bf16 %v780_v41 }
  0x2b   :  { %807 = vst [vmem:[%s1179_s3 + $0x78] sm:$0xff] %v680_v55   ;;  %v312_v63 = vmax.f32 %v248_v57, 0.0  ;;  %v250_v0 = vadd.f32 %v857_v4, %v182_v58  ;;  %v184_v2 = vmul.f32 %v852_v1, %v552_v53  ;;  %v556_v3 = vunpack.c.l.bf16 %v781_v54 }
  0x2c   :  { %v685_v6 = vpack.c.bf16 %v311_v59, %v310_v56  ;;  %v313_v7 = vmax.f32 %v249_v60, 0.0  ;;  %v251_v8 = vadd.f32 %v857_v4, %v183_v61  ;;  %v185_v9 = vmul.f32 %v852_v1, %v553_v62 }
  0x2d   :  { %v314_v10 = vmax.f32 %v250_v0, 0.0  ;;  %v252_v11 = vadd.f32 %v857_v4, %v184_v2  ;;  %v557_v12 = vunpack.c.h.bf16 %v781_v54  ;;  %v186_v13 = vmul.f32 %v852_v1, %v556_v3  ;;  %v787_v54 = vld [vmem:[%s1176_s0 + $0xd0] sm:$0xff]  }
  0x2e   :  { %808 = vst [vmem:[%s1179_s3 + $0x80] sm:$0xff] %v685_v6   ;;  %v690_v15 = vpack.c.bf16 %v313_v7, %v312_v63  ;;  %v315_v16 = vmax.f32 %v251_v8, 0.0  ;;  %v253_v17 = vadd.f32 %v857_v4, %v185_v9  ;;  %v560_v18 = vunpack.c.l.bf16 %v782_v5  ;;  %v788_v63 = vld [vmem:[%s1176_s0 + $0xd8] sm:$0xff]  }
  0x2f   :  { %v316_v19 = vmax.f32 %v252_v11, 0.0  ;;  %v187_v20 = vmul.f32 %v852_v1, %v557_v12  ;;  %v254_v21 = vadd.f32 %v857_v4, %v186_v13  ;;  %v561_v22 = vunpack.c.h.bf16 %v782_v5 }
  0x30   :  { %809 = vst [vmem:[%s1179_s3 + $0x88] sm:$0xff] %v690_v15   ;;  %v695_v24 = vpack.c.bf16 %v315_v16, %v314_v10  ;;  %v317_v25 = vmax.f32 %v253_v17, 0.0  ;;  %v188_v26 = vmul.f32 %v852_v1, %v560_v18  ;;  %v564_v27 = vunpack.c.l.bf16 %v783_v14  ;;  %v789_v10 = vld [vmem:[%s1176_s0 + $0xe0] sm:$0xff]  }
  0x31   :  { %v255_v28 = vadd.f32 %v857_v4, %v187_v20  ;;  %v318_v29 = vmax.f32 %v254_v21, 0.0  ;;  %v189_v30 = vmul.f32 %v852_v1, %v561_v22  ;;  %v565_v31 = vunpack.c.h.bf16 %v783_v14 }
  0x32   :  { %810 = vst [vmem:[%s1179_s3 + $0x90] sm:$0xff] %v695_v24   ;;  %v700_v33 = vpack.c.bf16 %v317_v25, %v316_v19  ;;  %v256_v34 = vadd.f32 %v857_v4, %v188_v26  ;;  %v190_v35 = vmul.f32 %v852_v1, %v564_v27  ;;  %v568_v36 = vunpack.c.l.bf16 %v784_v23 }
  0x33   :  { %v319_v37 = vmax.f32 %v255_v28, 0.0  ;;  %v257_v38 = vadd.f32 %v857_v4, %v189_v30  ;;  %v191_v39 = vmul.f32 %v852_v1, %v565_v31  ;;  %v569_v40 = vunpack.c.h.bf16 %v784_v23  ;;  %v790_v23 = vld [vmem:[%s1176_s0 + $0xe8] sm:$0xff]  }
  0x34   :  { %811 = vst [vmem:[%s1179_s3 + $0x98] sm:$0xff] %v700_v33   ;;  %v320_v41 = vmax.f32 %v256_v34, 0.0  ;;  %v258_v42 = vadd.f32 %v857_v4, %v190_v35  ;;  %v192_v43 = vmul.f32 %v852_v1, %v568_v36  ;;  %v572_v44 = vunpack.c.l.bf16 %v785_v32 }
  0x35   :  { %v705_v46 = vpack.c.bf16 %v319_v37, %v318_v29  ;;  %v321_v47 = vmax.f32 %v257_v38, 0.0  ;;  %v259_v48 = vadd.f32 %v857_v4, %v191_v39  ;;  %v193_v49 = vmul.f32 %v852_v1, %v569_v40 }
  0x36   :  { %v322_v50 = vmax.f32 %v258_v42, 0.0  ;;  %v260_v51 = vadd.f32 %v857_v4, %v192_v43  ;;  %v573_v52 = vunpack.c.h.bf16 %v785_v32  ;;  %v194_v53 = vmul.f32 %v852_v1, %v572_v44  ;;  %v791_v32 = vld [vmem:[%s1176_s0 + $0xf0] sm:$0xff]  }
  0x37   :  { %812 = vst [vmem:[%s1179_s3 + $0xa0] sm:$0xff] %v705_v46   ;;  %v710_v55 = vpack.c.bf16 %v321_v47, %v320_v41  ;;  %v323_v56 = vmax.f32 %v259_v48, 0.0  ;;  %v261_v57 = vadd.f32 %v857_v4, %v193_v49  ;;  %v576_v58 = vunpack.c.l.bf16 %v786_v45  ;;  %v792_v41 = vld [vmem:[%s1176_s0 + $0xf8] sm:$0xff]  }
  0x38   :  { %v324_v59 = vmax.f32 %v260_v51, 0.0  ;;  %v195_v60 = vmul.f32 %v852_v1, %v573_v52  ;;  %v262_v61 = vadd.f32 %v857_v4, %v194_v53  ;;  %v577_v62 = vunpack.c.h.bf16 %v786_v45 }
  0x39   :  { %813 = vst [vmem:[%s1179_s3 + $0xa8] sm:$0xff] %v710_v55   ;;  %v715_v0 = vpack.c.bf16 %v323_v56, %v322_v50  ;;  %v325_v2 = vmax.f32 %v261_v57, 0.0  ;;  %v196_v3 = vmul.f32 %v852_v1, %v576_v58  ;;  %v580_v5 = vunpack.c.l.bf16 %v787_v54 }
  0x3a   :  { %v263_v6 = vadd.f32 %v857_v4, %v195_v60  ;;  %v326_v7 = vmax.f32 %v262_v61, 0.0  ;;  %v197_v8 = vmul.f32 %v852_v1, %v577_v62  ;;  %v581_v9 = vunpack.c.h.bf16 %v787_v54 }
  0x3b   :  { %814 = vst [vmem:[%s1179_s3 + $0xb0] sm:$0xff] %v715_v0   ;;  %v720_v11 = vpack.c.bf16 %v325_v2, %v324_v59  ;;  %v264_v12 = vadd.f32 %v857_v4, %v196_v3  ;;  %v198_v13 = vmul.f32 %v852_v1, %v580_v5  ;;  %v584_v14 = vunpack.c.l.bf16 %v788_v63 }
  0x3c   :  { %v327_v15 = vmax.f32 %v263_v6, 0.0  ;;  %v265_v16 = vadd.f32 %v857_v4, %v197_v8  ;;  %v199_v17 = vmul.f32 %v852_v1, %v581_v9  ;;  %v585_v18 = vunpack.c.h.bf16 %v788_v63 }
  0x3d   :  { %815 = vst [vmem:[%s1179_s3 + $0xb8] sm:$0xff] %v720_v11   ;;  %v328_v19 = vmax.f32 %v264_v12, 0.0  ;;  %v266_v20 = vadd.f32 %v857_v4, %v198_v13  ;;  %v200_v21 = vmul.f32 %v852_v1, %v584_v14  ;;  %v588_v22 = vunpack.c.l.bf16 %v789_v10 }
  0x3e   :  { %v725_v24 = vpack.c.bf16 %v327_v15, %v326_v7  ;;  %v329_v25 = vmax.f32 %v265_v16, 0.0  ;;  %v267_v26 = vadd.f32 %v857_v4, %v199_v17  ;;  %v201_v27 = vmul.f32 %v852_v1, %v585_v18 }
  0x3f   :  { %v330_v28 = vmax.f32 %v266_v20, 0.0  ;;  %v268_v29 = vadd.f32 %v857_v4, %v200_v21  ;;  %v589_v30 = vunpack.c.h.bf16 %v789_v10  ;;  %v202_v31 = vmul.f32 %v852_v1, %v588_v22 }
  0x40   :  { %816 = vst [vmem:[%s1179_s3 + $0xc0] sm:$0xff] %v725_v24   ;;  %v730_v33 = vpack.c.bf16 %v329_v25, %v328_v19  ;;  %v331_v34 = vmax.f32 %v267_v26, 0.0  ;;  %v269_v35 = vadd.f32 %v857_v4, %v201_v27  ;;  %v592_v36 = vunpack.c.l.bf16 %v790_v23 }
  0x41   :  { %v332_v37 = vmax.f32 %v268_v29, 0.0  ;;  %v203_v38 = vmul.f32 %v852_v1, %v589_v30  ;;  %v270_v39 = vadd.f32 %v857_v4, %v202_v31  ;;  %v593_v40 = vunpack.c.h.bf16 %v790_v23 }
  0x42   :  { %817 = vst [vmem:[%s1179_s3 + $0xc8] sm:$0xff] %v730_v33   ;;  %v735_v42 = vpack.c.bf16 %v331_v34, %v330_v28  ;;  %v333_v43 = vmax.f32 %v269_v35, 0.0  ;;  %v204_v44 = vmul.f32 %v852_v1, %v592_v36  ;;  %v596_v45 = vunpack.c.l.bf16 %v791_v32 }
  0x43   :  { %v271_v46 = vadd.f32 %v857_v4, %v203_v38  ;;  %v334_v47 = vmax.f32 %v270_v39, 0.0  ;;  %v205_v48 = vmul.f32 %v852_v1, %v593_v40  ;;  %v597_v49 = vunpack.c.h.bf16 %v791_v32 }
  0x44   :  { %818 = vst [vmem:[%s1179_s3 + $0xd0] sm:$0xff] %v735_v42   ;;  %v740_v50 = vpack.c.bf16 %v333_v43, %v332_v37  ;;  %v272_v51 = vadd.f32 %v857_v4, %v204_v44  ;;  %v206_v52 = vmul.f32 %v852_v1, %v596_v45  ;;  %v600_v53 = vunpack.c.l.bf16 %v792_v41 }
  0x45   :  { %v335_v54 = vmax.f32 %v271_v46, 0.0  ;;  %v273_v55 = vadd.f32 %v857_v4, %v205_v48  ;;  %v207_v56 = vmul.f32 %v852_v1, %v597_v49  ;;  %v601_v57 = vunpack.c.h.bf16 %v792_v41 }
  0x46   :  { %819 = vst [vmem:[%s1179_s3 + $0xd8] sm:$0xff] %v740_v50   ;;  %v336_v58 = vmax.f32 %v272_v51, 0.0  ;;  %v274_v59 = vadd.f32 %v857_v4, %v206_v52  ;;  %v208_v60 = vmul.f32 %v852_v1, %v600_v53 }
  0x47   :  { %v745_v61 = vpack.c.bf16 %v335_v54, %v334_v47  ;;  %v337_v62 = vmax.f32 %v273_v55, 0.0  ;;  %v275_v63 = vadd.f32 %v857_v4, %v207_v56  ;;  %v209_v0 = vmul.f32 %v852_v1, %v601_v57 }
  0x48   :  { %v338_v2 = vmax.f32 %v274_v59, 0.0  ;;  %v276_v3 = vadd.f32 %v857_v4, %v208_v60 }
  0x49   :  { %820 = vst [vmem:[%s1179_s3 + $0xe0] sm:$0xff] %v745_v61   ;;  %v750_v5 = vpack.c.bf16 %v337_v62, %v336_v58  ;;  %v339_v6 = vmax.f32 %v275_v63, 0.0  ;;  %v277_v7 = vadd.f32 %v857_v4, %v209_v0 }
  0x4a   :  { %v340_v8 = vmax.f32 %v276_v3, 0.0 }
  0x4b   :  { %821 = vst [vmem:[%s1179_s3 + $0xe8] sm:$0xff] %v750_v5   ;;  %v755_v9 = vpack.c.bf16 %v339_v6, %v338_v2  ;;  %v341_v10 = vmax.f32 %v277_v7, 0.0 }
  0x4d   :  { %822 = vst [vmem:[%s1179_s3 + $0xf0] sm:$0xff] %v755_v9   ;;  %v760_v1 = vpack.c.bf16 %v341_v10, %v340_v8 }
  0x4f   :  { %823 = vst [vmem:[%s1179_s3 + $0xf8] sm:$0xff] %v760_v1  }

// kernel: model_pretrain_forward.48
= control target key start
LH: loop header
LB: loop body
LE: loop exit
PB: predicated region body
PF: predicated region fallthrough
CT: control target
= control target key end

     0   :  { %s1760_s15 = smov 0   ;;  %s1762_s16 = smov 0   ;;  %s2036_s0 = inlined_call_operand.vmem [shape: bf16[512,256], index: 0, kind: input, shape index: {}]   ;;  %s2037_s1 = inlined_call_operand.vmem [shape: bf16[256,128], index: 1, kind: input, shape index: {}]   ;;  %s2038_s2 = inlined_call_operand.vmem [shape: bf16[512,128], index: 2, kind: output, shape index: {0}]   ;;  %s2039_s3 = inlined_call_operand.vmem [shape: f32[2,1,128], index: 3, kind: output, shape index: {1}]   ;;  %s2040_s4 = inlined_call_operand.vmem [shape: f32[2,1,128], index: 4, kind: output, shape index: {2}]  }
   0x1   :  { %s1764_s17 = smov 0  }
   0x2 LB: > { %s34_s18 = sadd.s32 1, %s1729_s16  ;;  %p1327_p0 = scmp.ge.s32.totalorder %s1733_s17, 1  ;;  %s1733_s17 = sphi %s1764_s17, %s15_s17   ;;  %s1729_s16 = sphi %s1762_s16, %s2042_s16   ;;  %s1725_s15 = sphi %s1760_s15, %s2041_s15  }
   0x3   : > { %p36_p1 = scmp.ge.s32.totalorder %s34_s18, 2  ;;  %p217_p2 = scmp.lt.s32.totalorder %s1733_s17, 3 }
   0x5   : > { %s2044_s18 = smov (%p36_p1, %s34_s18), 0  ;;  %p218_p3 = pnand %p1327_p0, %p217_p2 }
   0x6   : > { %s1328_s5 = sshll.u32 (!%p218_p3), %s1725_s15, 5  ;;  %p301_p5 = scmp.lt.s32.totalorder (!%p218_p3), %s1725_s15, 1 }
   0x7   : > { %221 = sbr.rel (%p218_p3) target bundleno = 342 (0x156), region = 28  ;;  %p273_p4 = scmp.lt.s32.totalorder (!%p218_p3), %s1328_s5, 63 }
   0xc   : > { %v1567_v0 = vld [vmem:[%s2037_s1 + $0x38] sm:$0xff]  ;;  %v1566_v2 = vld [vmem:[%s2037_s1 + $0x30] sm:$0xff]  ;;  %v1565_v4 = vld [vmem:[%s2037_s1 + $0x28] sm:$0xff]  ;;  %s2046_s5 = smov (!%p273_p4, %s1328_s5), 63  ;;  %s2048_s15 = smov (!%p301_p5, %s1725_s15), 1 }
   0xd   : > { %v1575_v1 = vld [vmem:[%s2037_s1 + $0x78] sm:$0xff]  ;;  %701 = vmatpush.bf16.msra.mxu0 %v1567_v0  ;;  %v1574_v3 = vld [vmem:[%s2037_s1 + $0x70] sm:$0xff]  ;;  %1671 = vmatpush.bf16.msra.mxu2 %v1567_v0  ;;  %v1573_v5 = vld [vmem:[%s2037_s1 + $0x68] sm:$0xff]  ;;  %s1527_s22 = sshll.u32 %s2046_s5, 3  ;;  %s1332_s9 = sshll.u32 %s2046_s5, 2 }
   0xe   : > { %790 = vmatpush.bf16.msra.mxu1 %v1575_v1  ;;  %1679 = vmatpush.bf16.msra.mxu3 %v1575_v1  ;;  %v1564_v6 = vld [vmem:[%s2037_s1 + $0x20] sm:$0xff]  ;;  %v1563_v8 = vld [vmem:[%s2037_s1 + $0x18] sm:$0xff]  ;;  %v1562_v10 = vld [vmem:[%s2037_s1 + $0x10] sm:$0xff]  ;;  %s1829_s29 = scalar_lea.vmem %s2036_s0, %s1527_s22  ;;  %s1905_s12 = scalar_lea.vmem %s2038_s2, %s1332_s9 }
   0xf   : > { %v1572_v7 = vld [vmem:[%s2037_s1 + $0x60] sm:$0xff]  ;;  %v1571_v9 = vld [vmem:[%s2037_s1 + $0x58] sm:$0xff]  ;;  %v1570_v11 = vld [vmem:[%s2037_s1 + $0x50] sm:$0xff]  ;;  %s306_s14 = scalar_lea.vmem %s2039_s3, %s2048_s15  ;;  %s312_s21 = scalar_lea.vmem %s2040_s4, %s2048_s15 }
  0x10   : > { %v1561_v12 = vld [vmem:[%s2037_s1 + $0x8] sm:$0xff]  ;;  %v1560_v14 = vld [vmem:[%s2037_s1] sm:$0xff]  ;;  %v1343_v28 = vld [vmem:[%s1829_s29 + $0x10] sm:$0xf] }
  0x11   : > { %702 = vmatpush.bf16.msra.mxu0 %v1566_v2  ;;  %1672 = vmatpush.bf16.msra.mxu2 %v1566_v2  ;;  %v1569_v13 = vld [vmem:[%s2037_s1 + $0x48] sm:$0xff]  ;;  %v1568_v15 = vld [vmem:[%s2037_s1 + $0x40] sm:$0xff]  ;;  %v1531_v29 = vld [vmem:[%s1829_s29 + $0x14] sm:$0xf0] }
  0x12   : > { %791 = vmatpush.bf16.msra.mxu1 %v1574_v3  ;;  %1680 = vmatpush.bf16.msra.mxu3 %v1574_v3  ;;  %v1335_v16 = vld [vmem:[%s1829_s29] sm:$0xf]  ;;  %v1529_v17 = vld [vmem:[%s1829_s29 + $0x4] sm:$0xf0]  ;;  %v1528_v18 = vld [vmem:[%s1829_s29 + $0x4] sm:$0xf]  ;;  %v1344_v36 = vor.u32 %v1531_v29, %v1343_v28 }
  0x13   : > { %v1337_v19 = vld [vmem:[%s1829_s29 + $0x8] sm:$0xf0]  ;;  %v1399_v20 = vld [vmem:[%s1829_s29 + $0x80] sm:$0xf]  ;;  %v1545_v21 = vld [vmem:[%s1829_s29 + $0x84] sm:$0xf0]  ;;  %v1336_v24 = vor.u32 %v1529_v17, %v1335_v16 }
  0x14   : > { %v1544_v22 = vld [vmem:[%s1829_s29 + $0x84] sm:$0xf]  ;;  %v1401_v23 = vld [vmem:[%s1829_s29 + $0x88] sm:$0xf0]  ;;  %v1340_v25 = vor.u32 %v1528_v18, %v1337_v19  ;;  %v1400_v26 = vor.u32 %v1545_v21, %v1399_v20  ;;  %v1530_v30 = vld [vmem:[%s1829_s29 + $0x14] sm:$0xf] }
  0x15   : > { %703 = vmatpush.bf16.msra.mxu0 %v1565_v4  ;;  %1673 = vmatpush.bf16.msra.mxu2 %v1565_v4  ;;  %v1404_v27 = vor.u32 %v1544_v22, %v1401_v23  ;;  %v1345_v31 = vld [vmem:[%s1829_s29 + $0x18] sm:$0xf0]  ;;  %v1407_v32 = vld [vmem:[%s1829_s29 + $0x90] sm:$0xf]  ;;  %v1547_v33 = vld [vmem:[%s1829_s29 + $0x94] sm:$0xf0] }
  0x16   : > { %792 = vmatpush.bf16.msra.mxu1 %v1573_v5  ;;  %1681 = vmatpush.bf16.msra.mxu3 %v1573_v5  ;;  %v1546_v34 = vld [vmem:[%s1829_s29 + $0x94] sm:$0xf]  ;;  %v1409_v35 = vld [vmem:[%s1829_s29 + $0x98] sm:$0xf0]  ;;  %v1348_v37 = vor.u32 %v1530_v30, %v1345_v31  ;;  %v1408_v38 = vor.u32 %v1547_v33, %v1407_v32  ;;  %v1351_v40 = vld [vmem:[%s1829_s29 + $0x20] sm:$0xf] }
  0x17   : > { %v1412_v39 = vor.u32 %v1546_v34, %v1409_v35  ;;  %v1533_v41 = vld [vmem:[%s1829_s29 + $0x24] sm:$0xf0]  ;;  %v1532_v42 = vld [vmem:[%s1829_s29 + $0x24] sm:$0xf]  ;;  %v1353_v43 = vld [vmem:[%s1829_s29 + $0x28] sm:$0xf0] }
  0x18   : > { %v1415_v44 = vld [vmem:[%s1829_s29 + $0xa0] sm:$0xf]  ;;  %v1549_v45 = vld [vmem:[%s1829_s29 + $0xa4] sm:$0xf0]  ;;  %v1548_v46 = vld [vmem:[%s1829_s29 + $0xa4] sm:$0xf]  ;;  %v1352_v48 = vor.u32 %v1533_v41, %v1351_v40  ;;  %v1356_v49 = vor.u32 %v1532_v42, %v1353_v43 }
  0x19   : > { %704 = vmatpush.bf16.msra.mxu0 %v1564_v6  ;;  %1674 = vmatpush.bf16.msra.mxu2 %v1564_v6  ;;  %v1417_v47 = vld [vmem:[%s1829_s29 + $0xa8] sm:$0xf0]  ;;  %v1416_v50 = vor.u32 %v1549_v45, %v1415_v44  ;;  %v1359_v52 = vld [vmem:[%s1829_s29 + $0x30] sm:$0xf]  ;;  %v1535_v53 = vld [vmem:[%s1829_s29 + $0x34] sm:$0xf0] }
  0x1a   : > { %793 = vmatpush.bf16.msra.mxu1 %v1572_v7  ;;  %1682 = vmatpush.bf16.msra.mxu3 %v1572_v7  ;;  %v1420_v51 = vor.u32 %v1548_v46, %v1417_v47  ;;  %v1534_v54 = vld [vmem:[%s1829_s29 + $0x34] sm:$0xf]  ;;  %v1361_v55 = vld [vmem:[%s1829_s29 + $0x38] sm:$0xf0]  ;;  %v1423_v56 = vld [vmem:[%s1829_s29 + $0xb0] sm:$0xf]  ;;  %v1360_v60 = vor.u32 %v1535_v53, %v1359_v52 }
  0x1b   : > { %v1551_v57 = vld [vmem:[%s1829_s29 + $0xb4] sm:$0xf0]  ;;  %v1550_v58 = vld [vmem:[%s1829_s29 + $0xb4] sm:$0xf]  ;;  %v1425_v59 = vld [vmem:[%s1829_s29 + $0xb8] sm:$0xf0]  ;;  %v1364_v61 = vor.u32 %v1534_v54, %v1361_v55 }
  0x1c   : > { %v1424_v62 = vor.u32 %v1551_v57, %v1423_v56  ;;  %v1428_v63 = vor.u32 %v1550_v58, %v1425_v59  ;;  %v1367_v0 = vld [vmem:[%s1829_s29 + $0x40] sm:$0xf]  ;;  %v1537_v1 = vld [vmem:[%s1829_s29 + $0x44] sm:$0xf0]  ;;  %v1536_v2 = vld [vmem:[%s1829_s29 + $0x44] sm:$0xf] }
  0x1d   : > { %705 = vmatpush.bf16.msra.mxu0 %v1563_v8  ;;  %1675 = vmatpush.bf16.msra.mxu2 %v1563_v8  ;;  %v1369_v3 = vld [vmem:[%s1829_s29 + $0x48] sm:$0xf0]  ;;  %v1431_v4 = vld [vmem:[%s1829_s29 + $0xc0] sm:$0xf]  ;;  %v1553_v5 = vld [vmem:[%s1829_s29 + $0xc4] sm:$0xf0]  ;;  %v1368_v8 = vor.u32 %v1537_v1, %v1367_v0 }
  0x1e   : > { %794 = vmatpush.bf16.msra.mxu1 %v1571_v9  ;;  %1683 = vmatpush.bf16.msra.mxu3 %v1571_v9  ;;  %v1552_v6 = vld [vmem:[%s1829_s29 + $0xc4] sm:$0xf]  ;;  %v1433_v7 = vld [vmem:[%s1829_s29 + $0xc8] sm:$0xf0]  ;;  %v1372_v9 = vor.u32 %v1536_v2, %v1369_v3  ;;  %v1439_v16 = vld [vmem:[%s1829_s29 + $0xd0] sm:$0xf] }
  0x1f   : > { %v1555_v17 = vld [vmem:[%s1829_s29 + $0xd4] sm:$0xf0]  ;;  %v1554_v18 = vld [vmem:[%s1829_s29 + $0xd4] sm:$0xf]  ;;  %v1441_v19 = vld [vmem:[%s1829_s29 + $0xd8] sm:$0xf0] }
  0x20   : > { %v1440_v22 = vor.u32 %v1555_v17, %v1439_v16  ;;  %v1444_v23 = vor.u32 %v1554_v18, %v1441_v19  ;;  %v1447_v28 = vld [vmem:[%s1829_s29 + $0xe0] sm:$0xf]  ;;  %v1557_v29 = vld [vmem:[%s1829_s29 + $0xe4] sm:$0xf0]  ;;  %v1556_v30 = vld [vmem:[%s1829_s29 + $0xe4] sm:$0xf] }
  0x21   : > { %706 = vmatpush.bf16.msra.mxu0 %v1562_v10  ;;  %1676 = vmatpush.bf16.msra.mxu2 %v1562_v10  ;;  %v1432_v10 = vor.u32 %v1553_v5, %v1431_v4  ;;  %v1449_v31 = vld [vmem:[%s1829_s29 + $0xe8] sm:$0xf0]  ;;  %v1448_v34 = vor.u32 %v1557_v29, %v1447_v28  ;;  %v1455_v40 = vld [vmem:[%s1829_s29 + $0xf0] sm:$0xf]  ;;  %v1559_v41 = vld [vmem:[%s1829_s29 + $0xf4] sm:$0xf0] }
  0x22   : > { %795 = vmatpush.bf16.msra.mxu1 %v1570_v11  ;;  %1684 = vmatpush.bf16.msra.mxu3 %v1570_v11  ;;  %v1436_v11 = vor.u32 %v1552_v6, %v1433_v7  ;;  %v1452_v35 = vor.u32 %v1556_v30, %v1449_v31  ;;  %v1558_v42 = vld [vmem:[%s1829_s29 + $0xf4] sm:$0xf]  ;;  %v1457_v43 = vld [vmem:[%s1829_s29 + $0xf8] sm:$0xf0]  ;;  %v1456_v46 = vor.u32 %v1559_v41, %v1455_v40 }
  0x23   : > { %v1460_v47 = vor.u32 %v1558_v42, %v1457_v43 }
  0x25   : > { %707 = vmatpush.bf16.msra.mxu0 %v1561_v12  ;;  %1677 = vmatpush.bf16.msra.mxu2 %v1561_v12  ;;  %v1375_v12 = vld [vmem:[%s1829_s29 + $0x50] sm:$0xf] }
  0x26   : > { %796 = vmatpush.bf16.msra.mxu1 %v1569_v13  ;;  %1685 = vmatpush.bf16.msra.mxu3 %v1569_v13  ;;  %v1539_v13 = vld [vmem:[%s1829_s29 + $0x54] sm:$0xf0] }
  0x27   : > { %v1376_v20 = vor.u32 %v1539_v13, %v1375_v12 }
  0x29   : > { %708 = vmatpush.bf16.msra.mxu0 %v1560_v14  ;;  %1678 = vmatpush.bf16.msra.mxu2 %v1560_v14  ;;  %v1538_v14 = vld [vmem:[%s1829_s29 + $0x54] sm:$0xf] }
  0x2a   : > { %797 = vmatpush.bf16.msra.mxu1 %v1568_v15  ;;  %1686 = vmatpush.bf16.msra.mxu3 %v1568_v15  ;;  %v1377_v15 = vld [vmem:[%s1829_s29 + $0x58] sm:$0xf0] }
  0x2b   : > { %v1380_v21 = vor.u32 %v1538_v14, %v1377_v15 }
  0x2c   : > { %709 = vmatmul.bf16.vlgmr.msra.gmra.mxu0 %v1336_v24  ;;  %749 = vmatmul.bf16.vlgmr.msra.gmra.mxu2 %v1400_v26  ;;  %v1383_v24 = vld [vmem:[%s1829_s29 + $0x60] sm:$0xf]  ;;  %v1540_v26 = vld [vmem:[%s1829_s29 + $0x64] sm:$0xf] }
  0x2d   : > { %798 = vmatmul.bf16.vlgmr.msra.gmra.mxu1 %v1340_v25  ;;  %838 = vmatmul.bf16.vlgmr.msra.gmra.mxu3 %v1404_v27  ;;  %v1541_v25 = vld [vmem:[%s1829_s29 + $0x64] sm:$0xf0]  ;;  %v1385_v27 = vld [vmem:[%s1829_s29 + $0x68] sm:$0xf0] }
  0x2e   : > { %v1384_v32 = vor.u32 %v1541_v25, %v1383_v24  ;;  %v1388_v33 = vor.u32 %v1540_v26, %v1385_v27 }
  0x3c   : > { %714 = vmatmul.bf16.gmra.mxu0 %v1344_v36  ;;  %754 = vmatmul.bf16.gmra.mxu2 %v1408_v38  ;;  %v1391_v36 = vld [vmem:[%s1829_s29 + $0x70] sm:$0xf]  ;;  %v1542_v38 = vld [vmem:[%s1829_s29 + $0x74] sm:$0xf] }
  0x3d   : > { %803 = vmatmul.bf16.gmra.mxu1 %v1348_v37  ;;  %843 = vmatmul.bf16.gmra.mxu3 %v1412_v39  ;;  %v1543_v37 = vld [vmem:[%s1829_s29 + $0x74] sm:$0xf0]  ;;  %v1393_v39 = vld [vmem:[%s1829_s29 + $0x78] sm:$0xf0] }
  0x3e   : > { %v1392_v44 = vor.u32 %v1543_v37, %v1391_v36  ;;  %v1396_v45 = vor.u32 %v1542_v38, %v1393_v39 }
  0x4c   : > { %719 = vmatmul.bf16.gmra.mxu0 %v1352_v48  ;;  %759 = vmatmul.bf16.gmra.mxu2 %v1416_v50 }
  0x4d   : > { %808 = vmatmul.bf16.gmra.mxu1 %v1356_v49  ;;  %848 = vmatmul.bf16.gmra.mxu3 %v1420_v51 }
  0x5c   : > { %724 = vmatmul.bf16.gmra.mxu0 %v1360_v60  ;;  %764 = vmatmul.bf16.gmra.mxu2 %v1424_v62 }
  0x5d   : > { %813 = vmatmul.bf16.gmra.mxu1 %v1364_v61  ;;  %853 = vmatmul.bf16.gmra.mxu3 %v1428_v63 }
  0x6c   : > { %729 = vmatmul.bf16.gmra.mxu0 %v1368_v8  ;;  %769 = vmatmul.bf16.gmra.mxu2 %v1432_v10 }
  0x6d   : > { %818 = vmatmul.bf16.gmra.mxu1 %v1372_v9  ;;  %858 = vmatmul.bf16.gmra.mxu3 %v1436_v11 }
  0x7c   : > { %734 = vmatmul.bf16.gmra.mxu0 %v1376_v20  ;;  %774 = vmatmul.bf16.gmra.mxu2 %v1440_v22 }
  0x7d   : > { %823 = vmatmul.bf16.gmra.mxu1 %v1380_v21  ;;  %863 = vmatmul.bf16.gmra.mxu3 %v1444_v23 }
  0x8c   : > { %739 = vmatmul.bf16.gmra.mxu0 %v1384_v32  ;;  %779 = vmatmul.bf16.gmra.mxu2 %v1448_v34 }
  0x8d   : > { %828 = vmatmul.bf16.gmra.mxu1 %v1388_v33  ;;  %868 = vmatmul.bf16.gmra.mxu3 %v1452_v35 }
  0x9c   : > { %744 = vmatmul.bf16.gmra.mxu0 %v1392_v44  ;;  %784 = vmatmul.bf16.gmra.mxu2 %v1456_v46 }
  0x9d   : > { %833 = vmatmul.bf16.gmra.mxu1 %v1396_v45  ;;  %873 = vmatmul.bf16.gmra.mxu3 %v1460_v47 }
  0xa9   : > { %v710_v48 = vpop.f32.mrf.mxu0 }
  0xaa   : > { %v799_v49 = vpop.f32.mrf.mxu1 }
  0xab   : > { %v800_v50 = vadd.f32 %v799_v49, %v710_v48 }
  0xad   : > { %v1016_v56 = vmul.f32 %v800_v50, %v800_v50 }
  0xaf   : > { %v750_v51 = vpop.f32.mrf.mxu2 }
  0xb0   : > { %v839_v52 = vpop.f32.mrf.mxu3 }
  0xb1   : > { %v712_v53 = vpop.f32.mrf.mxu0  ;;  %v1908_v61 = vadd.f32 %v839_v52, %v750_v51 }
  0xb2   : > { %v801_v54 = vpop.f32.mrf.mxu1 }
  0xb3   : > { %v802_v55 = vadd.f32 %v801_v54, %v712_v53 }
  0xb5   : > { %v978_v57 = vadd.f32 %v802_v55, %v800_v50  ;;  %v1017_v58 = vmul.f32 %v802_v55, %v802_v55  ;;  %v1579_v59 = vpack.c.bf16 %v802_v55, %v800_v50 }
  0xb7   : > { %v1048_v60 = vadd.f32 %v1017_v58, %v1016_v56  ;;  %1580 = vst [vmem:[%s1905_s12] sm:$0xff] %v1579_v59   ;;  %v752_v62 = vpop.f32.mrf.mxu2 }
  0xb8   : > { %v841_v63 = vpop.f32.mrf.mxu3 }
  0xb9   : > { %v715_v0 = vpop.f32.mrf.mxu0  ;;  %v1910_v2 = vadd.f32 %v841_v63, %v752_v62 }
  0xba   : > { %v804_v1 = vpop.f32.mrf.mxu1 }
  0xbb   : > { %v805_v3 = vadd.f32 %v804_v1, %v715_v0  ;;  %v1619_v4 = vpack.c.bf16 %v1910_v2, %v1908_v61 }
  0xbd   : > { %v979_v5 = vadd.f32 %v978_v57, %v805_v3  ;;  %v1018_v6 = vmul.f32 %v805_v3, %v805_v3  ;;  %1663 = vst [vmem:[%s1905_s12 + $0x40] sm:$0xff] %v1619_v4  }
  0xbf   : > { %v1049_v7 = vadd.f32 %v1048_v60, %v1018_v6  ;;  %v755_v8 = vpop.f32.mrf.mxu2 }
  0xc0   : > { %v844_v9 = vpop.f32.mrf.mxu3 }
  0xc1   : > { %v717_v10 = vpop.f32.mrf.mxu0  ;;  %v1920_v17 = vadd.f32 %v844_v9, %v755_v8 }
  0xc2   : > { %v806_v11 = vpop.f32.mrf.mxu1 }
  0xc3   : > { %v807_v12 = vadd.f32 %v806_v11, %v717_v10 }
  0xc5   : > { %v1915_v13 = vadd.f32 %v979_v5, %v807_v12  ;;  %v1019_v14 = vmul.f32 %v807_v12, %v807_v12  ;;  %v1584_v15 = vpack.c.bf16 %v807_v12, %v805_v3 }
  0xc7   : > { %v1917_v16 = vadd.f32 %v1049_v7, %v1019_v14  ;;  %1656 = vst [vmem:[%s1905_s12 + $0x8] sm:$0xff] %v1584_v15   ;;  %v757_v18 = vpop.f32.mrf.mxu2 }
  0xc8   : > { %v846_v19 = vpop.f32.mrf.mxu3 }
  0xc9   : > { %v720_v20 = vpop.f32.mrf.mxu0  ;;  %v1922_v22 = vadd.f32 %v846_v19, %v757_v18 }
  0xca   : > { %v809_v21 = vpop.f32.mrf.mxu1 }
  0xcb   : > { %v1624_v23 = vpack.c.bf16 %v1922_v22, %v1920_v17  ;;  %v810_v28 = vadd.f32 %v809_v21, %v720_v20 }
  0xcd   : > { %1664 = vst [vmem:[%s1905_s12 + $0x48] sm:$0xff] %v1624_v23   ;;  %v1020_v20 = vmul.f32 %v810_v28, %v810_v28 }
  0xcf   : > { %v760_v24 = vpop.f32.mrf.mxu2 }
  0xd0   : > { %v849_v25 = vpop.f32.mrf.mxu3 }
  0xd1   : > { %v722_v26 = vpop.f32.mrf.mxu0  ;;  %v1931_v31 = vadd.f32 %v849_v25, %v760_v24  ;;  %v981_v24 = vadd.f32 %v1915_v13, %v810_v28  ;;  %v1051_v25 = vadd.f32 %v1917_v16, %v1020_v20 }
  0xd2   : > { %v811_v27 = vpop.f32.mrf.mxu1 }
  0xd3   : > { %v1927_v29 = vadd.f32 %v811_v27, %v722_v26 }
  0xd5   : > { %v1589_v30 = vpack.c.bf16 %v1927_v29, %v810_v28  ;;  %v1021_v23 = vmul.f32 %v1927_v29, %v1927_v29  ;;  %v982_v26 = vadd.f32 %v981_v24, %v1927_v29 }
  0xd7   : > { %1657 = vst [vmem:[%s1905_s12 + $0x10] sm:$0xff] %v1589_v30   ;;  %v762_v32 = vpop.f32.mrf.mxu2 }
  0xd8   : > { %v851_v33 = vpop.f32.mrf.mxu3 }
  0xd9   : > { %v725_v34 = vpop.f32.mrf.mxu0  ;;  %v1933_v36 = vadd.f32 %v851_v33, %v762_v32  ;;  %v1052_v33 = vadd.f32 %v1051_v25, %v1021_v23 }
  0xda   : > { %v814_v35 = vpop.f32.mrf.mxu1 }
  0xdb   : > { %v1629_v37 = vpack.c.bf16 %v1933_v36, %v1931_v31  ;;  %v815_v42 = vadd.f32 %v814_v35, %v725_v34 }
  0xdd   : > { %1665 = vst [vmem:[%s1905_s12 + $0x50] sm:$0xff] %v1629_v37   ;;  %v1022_v27 = vmul.f32 %v815_v42, %v815_v42  ;;  %v983_v37 = vadd.f32 %v982_v26, %v815_v42  ;;  %v1032_v26 = vmul.f32 %v1908_v61, %v1908_v61 }
  0xdf   : > { %v765_v38 = vpop.f32.mrf.mxu2 }
  0xe0   : > { %v854_v39 = vpop.f32.mrf.mxu3 }
  0xe1   : > { %v727_v40 = vpop.f32.mrf.mxu0  ;;  %v1939_v45 = vadd.f32 %v854_v39, %v765_v38 }
  0xe2   : > { %v816_v41 = vpop.f32.mrf.mxu1 }
  0xe3   : > { %v817_v43 = vadd.f32 %v816_v41, %v727_v40  ;;  %v1053_v41 = vadd.f32 %v1052_v33, %v1022_v27  ;;  %v1033_v33 = vmul.f32 %v1910_v2, %v1910_v2 }
  0xe5   : > { %v1594_v44 = vpack.c.bf16 %v817_v43, %v815_v42  ;;  %v1023_v38 = vmul.f32 %v817_v43, %v817_v43 }
  0xe7   : > { %1658 = vst [vmem:[%s1905_s12 + $0x18] sm:$0xff] %v1594_v44   ;;  %v767_v46 = vpop.f32.mrf.mxu2  ;;  %v984_v44 = vadd.f32 %v983_v37, %v817_v43  ;;  %v1054_v13 = vadd.f32 %v1053_v41, %v1023_v38 }
  0xe8   : > { %v856_v47 = vpop.f32.mrf.mxu3 }
  0xe9   : > { %v730_v48 = vpop.f32.mrf.mxu0  ;;  %v1941_v50 = vadd.f32 %v856_v47, %v767_v46 }
  0xea   : > { %v819_v49 = vpop.f32.mrf.mxu1 }
  0xeb   : > { %v1634_v51 = vpack.c.bf16 %v1941_v50, %v1939_v45  ;;  %v820_v56 = vadd.f32 %v819_v49, %v730_v48 }
  0xed   : > { %1666 = vst [vmem:[%s1905_s12 + $0x58] sm:$0xff] %v1634_v51   ;;  %v1024_v46 = vmul.f32 %v820_v56, %v820_v56  ;;  %v985_v28 = vadd.f32 %v984_v44, %v820_v56 }
  0xef   : > { %v770_v52 = vpop.f32.mrf.mxu2  ;;  %v1055_v48 = vadd.f32 %v1054_v13, %v1024_v46  ;;  %v1035_v46 = vmul.f32 %v1922_v22, %v1922_v22 }
  0xf0   : > { %v859_v53 = vpop.f32.mrf.mxu3 }
  0xf1   : > { %v732_v54 = vpop.f32.mrf.mxu0  ;;  %v1947_v59 = vadd.f32 %v859_v53, %v770_v52 }
  0xf2   : > { %v821_v55 = vpop.f32.mrf.mxu1 }
  0xf3   : > { %v822_v57 = vadd.f32 %v821_v55, %v732_v54 }
  0xf5   : > { %v1599_v58 = vpack.c.bf16 %v822_v57, %v820_v56  ;;  %v1025_v16 = vmul.f32 %v822_v57, %v822_v57  ;;  %v986_v49 = vadd.f32 %v985_v28, %v822_v57 }
  0xf7   : > { %1659 = vst [vmem:[%s1905_s12 + $0x20] sm:$0xff] %v1599_v58   ;;  %v772_v60 = vpop.f32.mrf.mxu2  ;;  %v1056_v58 = vadd.f32 %v1055_v48, %v1025_v16  ;;  %v1037_v48 = vmul.f32 %v1933_v36, %v1933_v36 }
  0xf8   : > { %v861_v62 = vpop.f32.mrf.mxu3 }
  0xf9   : > { %v735_v63 = vpop.f32.mrf.mxu0  ;;  %v1949_v1 = vadd.f32 %v861_v62, %v772_v60 }
  0xfa   : > { %v824_v0 = vpop.f32.mrf.mxu1 }
  0xfb   : > { %v1639_v3 = vpack.c.bf16 %v1949_v1, %v1947_v59  ;;  %v825_v8 = vadd.f32 %v824_v0, %v735_v63 }
  0xfd   : > { %1667 = vst [vmem:[%s1905_s12 + $0x60] sm:$0xff] %v1639_v3   ;;  %v1026_v51 = vmul.f32 %v825_v8, %v825_v8  ;;  %v987_v43 = vadd.f32 %v986_v49, %v825_v8 }
  0xff   : > { %v775_v4 = vpop.f32.mrf.mxu2  ;;  %v1057_v62 = vadd.f32 %v1056_v58, %v1026_v51  ;;  %v1038_v51 = vmul.f32 %v1939_v45, %v1939_v45 }
 0x100   : > { %v864_v5 = vpop.f32.mrf.mxu3 }
 0x101   : > { %v737_v6 = vpop.f32.mrf.mxu0  ;;  %v1955_v11 = vadd.f32 %v864_v5, %v775_v4 }
 0x102   : > { %v826_v7 = vpop.f32.mrf.mxu1 }
 0x103   : > { %v827_v9 = vadd.f32 %v826_v7, %v737_v6 }
 0x105   : > { %v1604_v10 = vpack.c.bf16 %v827_v9, %v825_v8  ;;  %v1027_v60 = vmul.f32 %v827_v9, %v827_v9  ;;  %v988_v63 = vadd.f32 %v987_v43, %v827_v9 }
 0x107   : > { %1660 = vst [vmem:[%s1905_s12 + $0x28] sm:$0xff] %v1604_v10   ;;  %v777_v12 = vpop.f32.mrf.mxu2  ;;  %v1058_v4 = vadd.f32 %v1057_v62, %v1027_v60 }
 0x108   : > { %v866_v14 = vpop.f32.mrf.mxu3 }
 0x109   : > { %v740_v15 = vpop.f32.mrf.mxu0  ;;  %v1957_v19 = vadd.f32 %v866_v14, %v777_v12 }
 0x10a   : > { %v829_v18 = vpop.f32.mrf.mxu1 }
 0x10b   : > { %v1644_v21 = vpack.c.bf16 %v1957_v19, %v1955_v11  ;;  %v830_v39 = vadd.f32 %v829_v18, %v740_v15 }
 0x10d   : > { %1668 = vst [vmem:[%s1905_s12 + $0x68] sm:$0xff] %v1644_v21   ;;  %v1028_v0 = vmul.f32 %v830_v39, %v830_v39  ;;  %v989_v57 = vadd.f32 %v988_v63, %v830_v39 }
 0x10f   : > { %v780_v30 = vpop.f32.mrf.mxu2  ;;  %v1059_v6 = vadd.f32 %v1058_v4, %v1028_v0 }
 0x110   : > { %v869_v32 = vpop.f32.mrf.mxu3 }
 0x111   : > { %v742_v34 = vpop.f32.mrf.mxu0  ;;  %v1968_v29 = vadd.f32 %v869_v32, %v780_v30 }
 0x112   : > { %v831_v35 = vpop.f32.mrf.mxu1 }
 0x113   : > { %v832_v40 = vadd.f32 %v831_v35, %v742_v34  ;;  %v1044_v4 = vmul.f32 %v1968_v29, %v1968_v29 }
 0x115   : > { %v1609_v47 = vpack.c.bf16 %v832_v40, %v830_v39  ;;  %v1029_v5 = vmul.f32 %v832_v40, %v832_v40  ;;  %v990_v7 = vadd.f32 %v989_v57, %v832_v40  ;;  %v1034_v40 = vmul.f32 %v1920_v17, %v1920_v17 }
 0x117   : > { %1661 = vst [vmem:[%s1905_s12 + $0x30] sm:$0xff] %v1609_v47   ;;  %v782_v52 = vpop.f32.mrf.mxu2  ;;  %v1060_v18 = vadd.f32 %v1059_v6, %v1029_v5 }
 0x118   : > { %v871_v53 = vpop.f32.mrf.mxu3 }
 0x119   : > { %v745_v42 = vpop.f32.mrf.mxu0  ;;  %v1970_v55 = vadd.f32 %v871_v53, %v782_v52  ;;  %v1039_v53 = vmul.f32 %v1941_v50, %v1941_v50 }
 0x11a   : > { %v834_v54 = vpop.f32.mrf.mxu1 }
 0x11b   : > { %v1649_v56 = vpack.c.bf16 %v1970_v55, %v1968_v29  ;;  %v835_v3 = vadd.f32 %v834_v54, %v745_v42 }
 0x11d   : > { %1669 = vst [vmem:[%s1905_s12 + $0x70] sm:$0xff] %v1649_v56   ;;  %v1030_v10 = vmul.f32 %v835_v3, %v835_v3  ;;  %v991_v20 = vadd.f32 %v990_v7, %v835_v3 }
 0x11f   : > { %v785_v12 = vpop.f32.mrf.mxu2  ;;  %v1061_v23 = vadd.f32 %v1060_v18, %v1030_v10 }
 0x120   : > { %v874_v14 = vpop.f32.mrf.mxu3 }
 0x121   : > { %v747_v15 = vpop.f32.mrf.mxu0  ;;  %v875_v32 = vadd.f32 %v874_v14, %v785_v12 }
 0x122   : > { %v836_v8 = vpop.f32.mrf.mxu1 }
 0x123   : > { %v837_v21 = vadd.f32 %v836_v8, %v747_v15  ;;  %v1046_v10 = vmul.f32 %v875_v32, %v875_v32 }
 0x125   : > { %v992_v24 = vadd.f32 %v991_v20, %v837_v21  ;;  %v1031_v9 = vmul.f32 %v837_v21, %v837_v21  ;;  %v1614_v25 = vpack.c.bf16 %v837_v21, %v835_v3 }
 0x127   : > { %v993_v27 = vadd.f32 %v992_v24, %v1908_v61  ;;  %v1062_v30 = vadd.f32 %v1061_v23, %v1031_v9  ;;  %1662 = vst [vmem:[%s1905_s12 + $0x38] sm:$0xff] %v1614_v25   ;;  %v787_v37 = vpop.f32.mrf.mxu2 }
 0x128   : > { %v876_v38 = vpop.f32.mrf.mxu3 }
 0x129   : > { %v994_v34 = vadd.f32 %v993_v27, %v1910_v2  ;;  %v1063_v35 = vadd.f32 %v1062_v30, %v1032_v26  ;;  %v877_v39 = vadd.f32 %v876_v38, %v787_v37  ;;  %v1036_v2 = vmul.f32 %v1931_v31, %v1931_v31 }
 0x12b   : > { %v995_v41 = vadd.f32 %v994_v34, %v1920_v17  ;;  %v1064_v44 = vadd.f32 %v1063_v35, %v1033_v33  ;;  %v1654_v61 = vpack.c.bf16 %v877_v39, %v875_v32  ;;  %v1047_v14 = vmul.f32 %v877_v39, %v877_v39 }
 0x12d   : > { %v996_v47 = vadd.f32 %v995_v41, %v1922_v22  ;;  %v1065_v13 = vadd.f32 %v1064_v44, %v1034_v40  ;;  %1670 = vst [vmem:[%s1905_s12 + $0x78] sm:$0xff] %v1654_v61  }
 0x12f   : > { %v997_v28 = vadd.f32 %v996_v47, %v1931_v31  ;;  %v1066_v16 = vadd.f32 %v1065_v13, %v1035_v46  ;;  %v1040_v31 = vmul.f32 %v1947_v59, %v1947_v59 }
 0x131   : > { %v998_v17 = vadd.f32 %v997_v28, %v1933_v36  ;;  %v1067_v49 = vadd.f32 %v1066_v16, %v1036_v2  ;;  %v1041_v36 = vmul.f32 %v1949_v1, %v1949_v1 }
 0x133   : > { %v1068_v52 = vadd.f32 %v1067_v49, %v1037_v48  ;;  %v999_v22 = vadd.f32 %v998_v17, %v1939_v45  ;;  %v1042_v45 = vmul.f32 %v1955_v11, %v1955_v11 }
 0x135   : > { %v1000_v42 = vadd.f32 %v999_v22, %v1941_v50  ;;  %v1069_v54 = vadd.f32 %v1068_v52, %v1038_v51  ;;  %v1043_v50 = vmul.f32 %v1957_v19, %v1957_v19 }
 0x137   : > { %v1001_v58 = vadd.f32 %v1000_v42, %v1947_v59  ;;  %v1070_v43 = vadd.f32 %v1069_v54, %v1039_v53 }
 0x139   : > { %v1002_v60 = vadd.f32 %v1001_v58, %v1949_v1  ;;  %v1071_v56 = vadd.f32 %v1070_v43, %v1040_v31 }
 0x13b   : > { %v1003_v62 = vadd.f32 %v1002_v60, %v1955_v11  ;;  %v1072_v63 = vadd.f32 %v1071_v56, %v1041_v36  ;;  %v1045_v11 = vmul.f32 %v1970_v55, %v1970_v55 }
 0x13d   : > { %v1004_v0 = vadd.f32 %v1003_v62, %v1957_v19  ;;  %v1073_v59 = vadd.f32 %v1072_v63, %v1042_v45 }
 0x13f   : > { %v1005_v3 = vadd.f32 %v1004_v0, %v1968_v29  ;;  %v1074_v1 = vadd.f32 %v1073_v59, %v1043_v50 }
 0x141   : > { %v1075_v57 = vadd.f32 %v1074_v1, %v1044_v4  ;;  %v1006_v5 = vadd.f32 %v1005_v3, %v1970_v55 }
 0x143   : > { %v1076_v6 = vadd.f32 %v1075_v57, %v1045_v11  ;;  %v1007_v7 = vadd.f32 %v1006_v5, %v875_v32 }
 0x145   : > { %v1077_v12 = vadd.f32 %v1076_v6, %v1046_v10  ;;  %v1008_v19 = vadd.f32 %v1007_v7, %v877_v39 }
 0x147   : > { %v1009_v15 = vrot.slane %v1008_v19, 4  ;;  %v1078_v8 = vadd.f32 %v1077_v12, %v1047_v14 }
 0x149   : > { %v1010_v18 = vadd.f32 %v1009_v15, %v1008_v19  ;;  %v1079_v20 = vrot.slane %v1078_v8, 4 }
 0x14b   : > { %v1011_v29 = vrot.slane %v1010_v18, 2  ;;  %v1080_v21 = vadd.f32 %v1079_v20, %v1078_v8 }
 0x14d   : > { %v1012_v23 = vadd.f32 %v1011_v29, %v1010_v18  ;;  %v1081_v24 = vrot.slane %v1080_v21, 2 }
 0x14f   : > { %v1013_v9 = vrot.slane %v1012_v23, 1  ;;  %v1082_v25 = vadd.f32 %v1081_v24, %v1080_v21 }
 0x151   : > { %v1014_v55 = vadd.f32 %v1013_v9, %v1012_v23  ;;  %v1083_v26 = vrot.slane %v1082_v25, 1 }
 0x153   : > { %1015 = vst [vmem:[%s306_s14] sm:$0x1] %v1014_v55  ;;  %v1084_v27 = vadd.f32 %v1083_v26, %v1082_v25 }
 0x155   : > { %1085 = vst [vmem:[%s312_s21] sm:$0x1] %v1084_v27 }
 0x156 PF: > { %s15_s17 = sadd.s32 1, %s1733_s17   ;;  %s2041_s15 = smov %s1729_s16 }
 0x157   : > { %p12_p6 = scmp.ge.s32.totalorder %s15_s17, 4   ;;  %s2042_s16 = smov %s2044_s18 }
 0x159   :  { %14 = sbr.rel (!%p12_p6) target bundleno = 2 (0x2), region = 93 }

// kernel: model_pretrain_forward.50
= control target key start
LH: loop header
LB: loop body
LE: loop exit
PB: predicated region body
PF: predicated region fallthrough
CT: control target
= control target key end

     0   :  { %s1404_s0 = inlined_call_operand.vmem [shape: bf16[128,128], index: 0, kind: input, shape index: {}]   ;;  %s1405_s1 = inlined_call_operand.vmem [shape: bf16[128,128], index: 1, kind: input, shape index: {}]   ;;  %s1406_s2 = inlined_call_operand.vmem [shape: bf16[128,128], index: 2, kind: input, shape index: {}]   ;;  %s1407_s3 = inlined_call_operand.vmem [shape: bf16[128,128], index: 3, kind: input, shape index: {}]   ;;  %s1408_s4 = inlined_call_operand.vmem [shape: bf16[128,128], index: 4, kind: input, shape index: {}]   ;;  %s1409_s5 = inlined_call_operand.vmem [shape: bf16[128,128], index: 5, kind: input, shape index: {}]   ;;  %s1410_s6 = inlined_call_operand.vmem [shape: bf16[128,128], index: 6, kind: input, shape index: {}]   ;;  %s1411_s7 = inlined_call_operand.vmem [shape: bf16[128,128], index: 7, kind: input, shape index: {}]   ;;  %s1412_s8 = inlined_call_operand.vmem [shape: bf16[128,128], index: 8, kind: input, shape index: {}]   ;;  %s1413_s9 = inlined_call_operand.vmem [shape: bf16[128,128], index: 9, kind: output, shape index: {}]  }
   0x1   :  { %v709_v0 = vld [vmem:[%s1404_s0] sm:$0xff]   ;;  %v1036_v20 = vld [vmem:[%s1404_s0 + $0x8] sm:$0xff]   ;;  %v1037_v61 = vld [vmem:[%s1404_s0 + $0x10] sm:$0xff]  }
   0x2   :  { %v741_v1 = vld [vmem:[%s1405_s1] sm:$0xff]   ;;  %v710_v3 = vunpack.c.l.bf16 %v709_v0  ;;  %v711_v4 = vunpack.c.h.bf16 %v709_v0  ;;  %v1043_v25 = vld [vmem:[%s1405_s1 + $0x8] sm:$0xff]   ;;  %v714_v34 = vunpack.c.l.bf16 %v1036_v20  ;;  %v715_v35 = vunpack.c.h.bf16 %v1036_v20 }
   0x3   :  { %v773_v2 = vld [vmem:[%s1406_s2] sm:$0xff]   ;;  %v742_v5 = vunpack.c.l.bf16 %v741_v1  ;;  %v743_v6 = vunpack.c.h.bf16 %v741_v1  ;;  %v1050_v30 = vld [vmem:[%s1406_s2 + $0x8] sm:$0xff]   ;;  %v746_v38 = vunpack.c.l.bf16 %v1043_v25  ;;  %v747_v39 = vunpack.c.h.bf16 %v1043_v25  ;;  %v1065_v25 = vld [vmem:[%s1408_s4 + $0x10] sm:$0xff]  }
   0x4   :  { %v805_v7 = vld [vmem:[%s1407_s3] sm:$0xff]   ;;  %v774_v10 = vunpack.c.l.bf16 %v773_v2  ;;  %v775_v11 = vunpack.c.h.bf16 %v773_v2  ;;  %v1057_v31 = vld [vmem:[%s1407_s3 + $0x8] sm:$0xff]   ;;  %v778_v42 = vunpack.c.l.bf16 %v1050_v30  ;;  %v779_v43 = vunpack.c.h.bf16 %v1050_v30  ;;  %v1072_v30 = vld [vmem:[%s1409_s5 + $0x10] sm:$0xff]  }
   0x5   :  { %v837_v8 = vld [vmem:[%s1408_s4] sm:$0xff]   ;;  %v806_v12 = vunpack.c.l.bf16 %v805_v7  ;;  %v96_v15 = vmax.f32 %v710_v3, %v742_v5  ;;  %v97_v16 = vmax.f32 %v711_v4, %v743_v6  ;;  %v807_v17 = vunpack.c.h.bf16 %v805_v7  ;;  %v1064_v40 = vld [vmem:[%s1408_s4 + $0x8] sm:$0xff]   ;;  %v1044_v6 = vld [vmem:[%s1405_s1 + $0x10] sm:$0xff]  }
   0x6   :  { %v869_v9 = vld [vmem:[%s1409_s5] sm:$0xff]   ;;  %v838_v18 = vunpack.c.l.bf16 %v837_v8  ;;  %v839_v21 = vunpack.c.h.bf16 %v837_v8  ;;  %v1071_v41 = vld [vmem:[%s1409_s5 + $0x8] sm:$0xff]   ;;  %v810_v44 = vunpack.c.l.bf16 %v1057_v31  ;;  %v811_v45 = vunpack.c.h.bf16 %v1057_v31  ;;  %v1051_v7 = vld [vmem:[%s1406_s2 + $0x10] sm:$0xff]  }
   0x7   :  { %v901_v13 = vld [vmem:[%s1410_s6] sm:$0xff]   ;;  %v870_v22 = vunpack.c.l.bf16 %v869_v9  ;;  %v871_v23 = vunpack.c.h.bf16 %v869_v9  ;;  %v176_v26 = vmax.f32 %v96_v15, %v774_v10  ;;  %v177_v27 = vmax.f32 %v97_v16, %v775_v11  ;;  %v1078_v50 = vld [vmem:[%s1410_s6 + $0x8] sm:$0xff]   ;;  %v1058_v16 = vld [vmem:[%s1407_s3 + $0x10] sm:$0xff]  }
   0x8   :  { %v1180_v14 = vld [vmem:[%s1411_s7] sm:$0xff]   ;;  %v902_v24 = vunpack.c.l.bf16 %v901_v13  ;;  %v903_v28 = vunpack.c.h.bf16 %v901_v13  ;;  %v98_v48 = vmax.f32 %v714_v34, %v746_v38  ;;  %v99_v49 = vmax.f32 %v715_v35, %v747_v39  ;;  %v1085_v51 = vld [vmem:[%s1411_s7 + $0x8] sm:$0xff]  }
   0x9   :  { %v1185_v19 = vld [vmem:[%s1412_s8] sm:$0xff]   ;;  %v934_v29 = vunpack.c.l.bf16 %v1180_v14  ;;  %v935_v32 = vunpack.c.h.bf16 %v1180_v14  ;;  %v256_v36 = vmax.f32 %v176_v26, %v806_v12  ;;  %v257_v37 = vmax.f32 %v177_v27, %v807_v17  ;;  %v1092_v60 = vld [vmem:[%s1412_s8 + $0x8] sm:$0xff]  }
   0xa   :  { %v966_v33 = vunpack.c.l.bf16 %v1185_v19  ;;  %v967_v52 = vunpack.c.h.bf16 %v1185_v19  ;;  %v842_v53 = vunpack.c.l.bf16 %v1064_v40  ;;  %v843_v54 = vunpack.c.h.bf16 %v1064_v40  ;;  %v1086_v40 = vld [vmem:[%s1411_s7 + $0x10] sm:$0xff]  }
   0xb   :  { %v336_v46 = vmax.f32 %v256_v36, %v838_v18  ;;  %v337_v47 = vmax.f32 %v257_v37, %v839_v21  ;;  %v874_v55 = vunpack.c.l.bf16 %v1071_v41  ;;  %v178_v58 = vmax.f32 %v98_v48, %v778_v42 }
   0xc   :  { %v179_v59 = vmax.f32 %v99_v49, %v779_v43  ;;  %v875_v62 = vunpack.c.h.bf16 %v1071_v41  ;;  %v906_v63 = vunpack.c.l.bf16 %v1078_v50  ;;  %v907_v0 = vunpack.c.h.bf16 %v1078_v50 }
   0xd   :  { %v416_v56 = vmax.f32 %v336_v46, %v870_v22  ;;  %v417_v57 = vmax.f32 %v337_v47, %v871_v23  ;;  %v938_v1 = vunpack.c.l.bf16 %v1085_v51  ;;  %v258_v4 = vmax.f32 %v178_v58, %v810_v44  ;;  %v1038_v46 = vld [vmem:[%s1404_s0 + $0x18] sm:$0xff]  }
   0xe   :  { %v259_v5 = vmax.f32 %v179_v59, %v811_v45  ;;  %v939_v8 = vunpack.c.h.bf16 %v1085_v51  ;;  %v970_v9 = vunpack.c.l.bf16 %v1092_v60  ;;  %v718_v10 = vunpack.c.l.bf16 %v1037_v61  ;;  %v1093_v45 = vld [vmem:[%s1412_s8 + $0x10] sm:$0xff]   ;;  %v1045_v51 = vld [vmem:[%s1405_s1 + $0x18] sm:$0xff]  }
   0xf   :  { %v496_v2 = vmax.f32 %v416_v56, %v902_v24  ;;  %v497_v3 = vmax.f32 %v417_v57, %v903_v28  ;;  %v719_v11 = vunpack.c.h.bf16 %v1037_v61  ;;  %v338_v14 = vmax.f32 %v258_v4, %v842_v53  ;;  %v1052_v56 = vld [vmem:[%s1406_s2 + $0x18] sm:$0xff]  }
  0x10   :  { %v339_v15 = vmax.f32 %v259_v5, %v843_v54  ;;  %v750_v17 = vunpack.c.l.bf16 %v1044_v6  ;;  %v751_v18 = vunpack.c.h.bf16 %v1044_v6  ;;  %v782_v19 = vunpack.c.l.bf16 %v1051_v7  ;;  %v1059_v61 = vld [vmem:[%s1407_s3 + $0x18] sm:$0xff]  }
  0x11   :  { %v576_v12 = vmax.f32 %v496_v2, %v934_v29  ;;  %v577_v13 = vmax.f32 %v497_v3, %v935_v32  ;;  %v783_v20 = vunpack.c.h.bf16 %v1051_v7  ;;  %v418_v23 = vmax.f32 %v338_v14, %v874_v55  ;;  %v1066_v2 = vld [vmem:[%s1408_s4 + $0x18] sm:$0xff]  }
  0x12   :  { %v419_v24 = vmax.f32 %v339_v15, %v875_v62  ;;  %v100_v26 = vmax.f32 %v718_v10, %v750_v17  ;;  %v101_v27 = vmax.f32 %v719_v11, %v751_v18  ;;  %v814_v28 = vunpack.c.l.bf16 %v1058_v16  ;;  %v1073_v7 = vld [vmem:[%s1409_s5 + $0x18] sm:$0xff]  }
  0x13   :  { %v656_v21 = vmax.f32 %v576_v12, %v966_v33  ;;  %v657_v22 = vmax.f32 %v577_v13, %v967_v52  ;;  %v815_v29 = vunpack.c.h.bf16 %v1058_v16  ;;  %v498_v32 = vmax.f32 %v418_v23, %v906_v63  ;;  %v1079_v33 = vld [vmem:[%s1410_s6 + $0x10] sm:$0xff]   ;;  %v1080_v12 = vld [vmem:[%s1410_s6 + $0x18] sm:$0xff]  }
  0x14   :  { %v499_v34 = vmax.f32 %v419_v24, %v907_v0  ;;  %v971_v35 = vunpack.c.h.bf16 %v1092_v60  ;;  %v180_v36 = vmax.f32 %v100_v26, %v782_v19  ;;  %v181_v37 = vmax.f32 %v101_v27, %v783_v20  ;;  %v1087_v17 = vld [vmem:[%s1411_s7 + $0x18] sm:$0xff]   ;;  %v1039_v27 = vld [vmem:[%s1404_s0 + $0x20] sm:$0xff]  }
  0x15   :  { %v999_v31 = vpack.c.bf16 %v657_v22, %v656_v21  ;;  %v846_v38 = vunpack.c.l.bf16 %v1065_v25  ;;  %v847_v39 = vunpack.c.h.bf16 %v1065_v25  ;;  %v578_v41 = vmax.f32 %v498_v32, %v938_v1  ;;  %v1094_v22 = vld [vmem:[%s1412_s8 + $0x18] sm:$0xff]   ;;  %v1046_v32 = vld [vmem:[%s1405_s1 + $0x20] sm:$0xff]  }
  0x16   :  { %v579_v42 = vmax.f32 %v499_v34, %v939_v8  ;;  %v878_v43 = vunpack.c.l.bf16 %v1072_v30  ;;  %v879_v44 = vunpack.c.h.bf16 %v1072_v30  ;;  %v260_v47 = vmax.f32 %v180_v36, %v814_v28  ;;  %v1053_v34 = vld [vmem:[%s1406_s2 + $0x20] sm:$0xff]  }
  0x17   :  { %1000 = vst [vmem:[%s1413_s9] sm:$0xff] %v999_v31   ;;  %v261_v48 = vmax.f32 %v181_v37, %v815_v29  ;;  %v910_v49 = vunpack.c.l.bf16 %v1079_v33  ;;  %v911_v50 = vunpack.c.h.bf16 %v1079_v33  ;;  %v658_v52 = vmax.f32 %v578_v41, %v970_v9 }
  0x18   :  { %v659_v53 = vmax.f32 %v579_v42, %v971_v35  ;;  %v942_v54 = vunpack.c.l.bf16 %v1086_v40  ;;  %v943_v55 = vunpack.c.h.bf16 %v1086_v40  ;;  %v340_v57 = vmax.f32 %v260_v47, %v846_v38  ;;  %v1060_v42 = vld [vmem:[%s1407_s3 + $0x20] sm:$0xff]  }
  0x19   :  { %v341_v58 = vmax.f32 %v261_v48, %v847_v39  ;;  %v974_v59 = vunpack.c.l.bf16 %v1093_v45  ;;  %v722_v60 = vunpack.c.l.bf16 %v1038_v46  ;;  %v723_v63 = vunpack.c.h.bf16 %v1038_v46  ;;  %v1067_v47 = vld [vmem:[%s1408_s4 + $0x20] sm:$0xff]  }
  0x1a   :  { %v1004_v62 = vpack.c.bf16 %v659_v53, %v658_v52  ;;  %v754_v0 = vunpack.c.l.bf16 %v1045_v51  ;;  %v755_v1 = vunpack.c.h.bf16 %v1045_v51  ;;  %v420_v3 = vmax.f32 %v340_v57, %v878_v43  ;;  %v1074_v52 = vld [vmem:[%s1409_s5 + $0x20] sm:$0xff]  }
  0x1b   :  { %v421_v4 = vmax.f32 %v341_v58, %v879_v44  ;;  %v786_v5 = vunpack.c.l.bf16 %v1052_v56  ;;  %v787_v6 = vunpack.c.h.bf16 %v1052_v56  ;;  %v818_v10 = vunpack.c.l.bf16 %v1059_v61  ;;  %v1081_v57 = vld [vmem:[%s1410_s6 + $0x20] sm:$0xff]  }
  0x1c   :  { %1099 = vst [vmem:[%s1413_s9 + $0x8] sm:$0xff] %v1004_v62   ;;  %v102_v8 = vmax.f32 %v722_v60, %v754_v0  ;;  %v103_v9 = vmax.f32 %v723_v63, %v755_v1  ;;  %v819_v11 = vunpack.c.h.bf16 %v1059_v61  ;;  %v500_v13 = vmax.f32 %v420_v3, %v910_v49  ;;  %v1088_v62 = vld [vmem:[%s1411_s7 + $0x20] sm:$0xff]  }
  0x1d   :  { %v501_v14 = vmax.f32 %v421_v4, %v911_v50  ;;  %v975_v15 = vunpack.c.h.bf16 %v1093_v45  ;;  %v850_v16 = vunpack.c.l.bf16 %v1066_v2  ;;  %v851_v20 = vunpack.c.h.bf16 %v1066_v2  ;;  %v1095_v3 = vld [vmem:[%s1412_s8 + $0x20] sm:$0xff]   ;;  %v1040_v4 = vld [vmem:[%s1404_s0 + $0x28] sm:$0xff]  }
  0x1e   :  { %v182_v18 = vmax.f32 %v102_v8, %v786_v5  ;;  %v183_v19 = vmax.f32 %v103_v9, %v787_v6  ;;  %v882_v21 = vunpack.c.l.bf16 %v1073_v7  ;;  %v580_v23 = vmax.f32 %v500_v13, %v942_v54  ;;  %v1047_v9 = vld [vmem:[%s1405_s1 + $0x28] sm:$0xff]  }
  0x1f   :  { %v581_v24 = vmax.f32 %v501_v14, %v943_v55  ;;  %v883_v25 = vunpack.c.h.bf16 %v1073_v7  ;;  %v914_v26 = vunpack.c.l.bf16 %v1080_v12  ;;  %v915_v30 = vunpack.c.h.bf16 %v1080_v12  ;;  %v1054_v14 = vld [vmem:[%s1406_s2 + $0x28] sm:$0xff]  }
  0x20   :  { %v262_v28 = vmax.f32 %v182_v18, %v818_v10  ;;  %v263_v29 = vmax.f32 %v183_v19, %v819_v11  ;;  %v946_v31 = vunpack.c.l.bf16 %v1087_v17  ;;  %v660_v35 = vmax.f32 %v580_v23, %v974_v59  ;;  %v1061_v19 = vld [vmem:[%s1407_s3 + $0x28] sm:$0xff]  }
  0x21   :  { %v661_v33 = vmax.f32 %v581_v24, %v975_v15  ;;  %v947_v36 = vunpack.c.h.bf16 %v1087_v17  ;;  %v978_v37 = vunpack.c.l.bf16 %v1094_v22  ;;  %v726_v40 = vunpack.c.l.bf16 %v1039_v27  ;;  %v1068_v24 = vld [vmem:[%s1408_s4 + $0x28] sm:$0xff]  }
  0x22   :  { %v342_v38 = vmax.f32 %v262_v28, %v850_v16  ;;  %v343_v39 = vmax.f32 %v263_v29, %v851_v20  ;;  %v727_v41 = vunpack.c.h.bf16 %v1039_v27  ;;  %v758_v44 = vunpack.c.l.bf16 %v1046_v32 }
  0x23   :  { %v1009_v43 = vpack.c.bf16 %v661_v33, %v660_v35  ;;  %v759_v45 = vunpack.c.h.bf16 %v1046_v32  ;;  %v790_v46 = vunpack.c.l.bf16 %v1053_v34  ;;  %v979_v50 = vunpack.c.h.bf16 %v1094_v22  ;;  %v1082_v35 = vld [vmem:[%s1410_s6 + $0x28] sm:$0xff]  }
  0x24   :  { %v422_v48 = vmax.f32 %v342_v38, %v882_v21  ;;  %v423_v49 = vmax.f32 %v343_v39, %v883_v25  ;;  %v791_v51 = vunpack.c.h.bf16 %v1053_v34  ;;  %v104_v53 = vmax.f32 %v726_v40, %v758_v44  ;;  %v1075_v34 = vld [vmem:[%s1409_s5 + $0x28] sm:$0xff]  }
  0x25   :  { %1100 = vst [vmem:[%s1413_s9 + $0x10] sm:$0xff] %v1009_v43   ;;  %v105_v54 = vmax.f32 %v727_v41, %v759_v45  ;;  %v822_v55 = vunpack.c.l.bf16 %v1060_v42  ;;  %v823_v56 = vunpack.c.h.bf16 %v1060_v42  ;;  %v854_v60 = vunpack.c.l.bf16 %v1067_v47  ;;  %v1089_v43 = vld [vmem:[%s1411_s7 + $0x28] sm:$0xff]  }
  0x26   :  { %v502_v58 = vmax.f32 %v422_v48, %v914_v26  ;;  %v503_v59 = vmax.f32 %v423_v49, %v915_v30  ;;  %v855_v61 = vunpack.c.h.bf16 %v1067_v47  ;;  %v184_v63 = vmax.f32 %v104_v53, %v790_v46  ;;  %v1096_v44 = vld [vmem:[%s1412_s8 + $0x28] sm:$0xff]   ;;  %v1041_v49 = vld [vmem:[%s1404_s0 + $0x30] sm:$0xff]  }
  0x27   :  { %v185_v0 = vmax.f32 %v105_v54, %v791_v51  ;;  %v886_v1 = vunpack.c.l.bf16 %v1074_v52  ;;  %v887_v2 = vunpack.c.h.bf16 %v1074_v52  ;;  %v918_v7 = vunpack.c.l.bf16 %v1081_v57  ;;  %v1048_v54 = vld [vmem:[%s1405_s1 + $0x30] sm:$0xff]  }
  0x28   :  { %v582_v5 = vmax.f32 %v502_v58, %v946_v31  ;;  %v583_v6 = vmax.f32 %v503_v59, %v947_v36  ;;  %v919_v8 = vunpack.c.h.bf16 %v1081_v57  ;;  %v264_v10 = vmax.f32 %v184_v63, %v822_v55  ;;  %v1055_v59 = vld [vmem:[%s1406_s2 + $0x30] sm:$0xff]  }
  0x29   :  { %v265_v11 = vmax.f32 %v185_v0, %v823_v56  ;;  %v950_v12 = vunpack.c.l.bf16 %v1088_v62  ;;  %v951_v13 = vunpack.c.h.bf16 %v1088_v62  ;;  %v982_v17 = vunpack.c.l.bf16 %v1095_v3  ;;  %v1062_v0 = vld [vmem:[%s1407_s3 + $0x30] sm:$0xff]  }
  0x2a   :  { %v662_v15 = vmax.f32 %v582_v5, %v978_v37  ;;  %v663_v16 = vmax.f32 %v583_v6, %v979_v50  ;;  %v730_v18 = vunpack.c.l.bf16 %v1040_v4  ;;  %v344_v20 = vmax.f32 %v264_v10, %v854_v60  ;;  %v1069_v5 = vld [vmem:[%s1408_s4 + $0x30] sm:$0xff]  }
  0x2b   :  { %v345_v21 = vmax.f32 %v265_v11, %v855_v61  ;;  %v731_v22 = vunpack.c.h.bf16 %v1040_v4  ;;  %v762_v23 = vunpack.c.l.bf16 %v1047_v9  ;;  %v763_v26 = vunpack.c.h.bf16 %v1047_v9 }
  0x2c   :  { %v1014_v25 = vpack.c.bf16 %v663_v16, %v662_v15  ;;  %v794_v27 = vunpack.c.l.bf16 %v1054_v14  ;;  %v795_v28 = vunpack.c.h.bf16 %v1054_v14  ;;  %v424_v29 = vmax.f32 %v344_v20, %v886_v1  ;;  %v1076_v14 = vld [vmem:[%s1409_s5 + $0x30] sm:$0xff]  }
  0x2d   :  { %v425_v30 = vmax.f32 %v345_v21, %v887_v2  ;;  %v106_v31 = vmax.f32 %v730_v18, %v762_v23  ;;  %v826_v32 = vunpack.c.l.bf16 %v1061_v19  ;;  %v983_v33 = vunpack.c.h.bf16 %v1095_v3 }
  0x2e   :  { %1101 = vst [vmem:[%s1413_s9 + $0x18] sm:$0xff] %v1014_v25   ;;  %v107_v36 = vmax.f32 %v731_v22, %v763_v26  ;;  %v827_v37 = vunpack.c.h.bf16 %v1061_v19  ;;  %v858_v38 = vunpack.c.l.bf16 %v1068_v24  ;;  %v504_v39 = vmax.f32 %v424_v29, %v918_v7  ;;  %v1083_v19 = vld [vmem:[%s1410_s6 + $0x30] sm:$0xff]  }
  0x2f   :  { %v505_v40 = vmax.f32 %v425_v30, %v919_v8  ;;  %v186_v41 = vmax.f32 %v106_v31, %v794_v27  ;;  %v859_v42 = vunpack.c.h.bf16 %v1068_v24  ;;  %v890_v46 = vunpack.c.l.bf16 %v1075_v34  ;;  %v1090_v24 = vld [vmem:[%s1411_s7 + $0x30] sm:$0xff]  }
  0x30   :  { %v187_v45 = vmax.f32 %v107_v36, %v795_v28  ;;  %v891_v47 = vunpack.c.h.bf16 %v1075_v34  ;;  %v922_v48 = vunpack.c.l.bf16 %v1082_v35  ;;  %v584_v50 = vmax.f32 %v504_v39, %v950_v12  ;;  %v1042_v28 = vld [vmem:[%s1404_s0 + $0x38] sm:$0xff]  }
  0x31   :  { %v585_v51 = vmax.f32 %v505_v40, %v951_v13  ;;  %v266_v52 = vmax.f32 %v186_v41, %v826_v32  ;;  %v923_v53 = vunpack.c.h.bf16 %v1082_v35  ;;  %v954_v56 = vunpack.c.l.bf16 %v1089_v43  ;;  %v1049_v34 = vld [vmem:[%s1405_s1 + $0x38] sm:$0xff]  }
  0x32   :  { %v267_v55 = vmax.f32 %v187_v45, %v827_v37  ;;  %v955_v57 = vunpack.c.h.bf16 %v1089_v43  ;;  %v986_v58 = vunpack.c.l.bf16 %v1096_v44  ;;  %v664_v60 = vmax.f32 %v584_v50, %v982_v17  ;;  %v1056_v35 = vld [vmem:[%s1406_s2 + $0x38] sm:$0xff]  }
  0x33   :  { %v665_v61 = vmax.f32 %v585_v51, %v983_v33  ;;  %v346_v62 = vmax.f32 %v266_v52, %v858_v38  ;;  %v734_v63 = vunpack.c.l.bf16 %v1041_v49  ;;  %v735_v2 = vunpack.c.h.bf16 %v1041_v49  ;;  %v1063_v43 = vld [vmem:[%s1407_s3 + $0x38] sm:$0xff]  }
  0x34   :  { %v347_v1 = vmax.f32 %v267_v55, %v859_v42  ;;  %v766_v3 = vunpack.c.l.bf16 %v1048_v54  ;;  %v767_v4 = vunpack.c.h.bf16 %v1048_v54  ;;  %v798_v8 = vunpack.c.l.bf16 %v1055_v59 }
  0x35   :  { %v1019_v6 = vpack.c.bf16 %v665_v61, %v664_v60  ;;  %v426_v7 = vmax.f32 %v346_v62, %v890_v46  ;;  %v799_v9 = vunpack.c.h.bf16 %v1055_v59  ;;  %v830_v13 = vunpack.c.l.bf16 %v1062_v0  ;;  %v1077_v62 = vld [vmem:[%s1409_s5 + $0x38] sm:$0xff]  }
  0x36   :  { %v427_v10 = vmax.f32 %v347_v1, %v891_v47  ;;  %v108_v11 = vmax.f32 %v734_v63, %v766_v3  ;;  %v109_v12 = vmax.f32 %v735_v2, %v767_v4  ;;  %v987_v16 = vunpack.c.h.bf16 %v1096_v44  ;;  %v1097_v44 = vld [vmem:[%s1412_s8 + $0x30] sm:$0xff]  }
  0x37   :  { %1102 = vst [vmem:[%s1413_s9 + $0x20] sm:$0xff] %v1019_v6   ;;  %v506_v15 = vmax.f32 %v426_v7, %v922_v48  ;;  %v831_v17 = vunpack.c.h.bf16 %v1062_v0  ;;  %v862_v18 = vunpack.c.l.bf16 %v1069_v5  ;;  %v863_v23 = vunpack.c.h.bf16 %v1069_v5  ;;  %v1084_v5 = vld [vmem:[%s1410_s6 + $0x38] sm:$0xff]  }
  0x38   :  { %v507_v20 = vmax.f32 %v427_v10, %v923_v53  ;;  %v188_v21 = vmax.f32 %v108_v11, %v798_v8  ;;  %v189_v22 = vmax.f32 %v109_v12, %v799_v9  ;;  %v894_v26 = vunpack.c.l.bf16 %v1076_v14  ;;  %v1070_v53 = vld [vmem:[%s1408_s4 + $0x38] sm:$0xff]  }
  0x39   :  { %v586_v25 = vmax.f32 %v506_v15, %v954_v56  ;;  %v895_v27 = vunpack.c.h.bf16 %v1076_v14  ;;  %v926_v32 = vunpack.c.l.bf16 %v1083_v19  ;;  %v927_v36 = vunpack.c.h.bf16 %v1083_v19  ;;  %v1091_v12 = vld [vmem:[%s1411_s7 + $0x38] sm:$0xff]  }
  0x3a   :  { %v587_v29 = vmax.f32 %v507_v20, %v955_v57  ;;  %v268_v30 = vmax.f32 %v188_v21, %v830_v13  ;;  %v269_v31 = vmax.f32 %v189_v22, %v831_v17  ;;  %v958_v37 = vunpack.c.l.bf16 %v1090_v24 }
  0x3b   :  { %v666_v33 = vmax.f32 %v586_v25, %v986_v58  ;;  %v959_v38 = vunpack.c.h.bf16 %v1090_v24  ;;  %v738_v42 = vunpack.c.l.bf16 %v1042_v28  ;;  %v739_v45 = vunpack.c.h.bf16 %v1042_v28 }
  0x3c   :  { %v667_v39 = vmax.f32 %v587_v29, %v987_v16  ;;  %v348_v40 = vmax.f32 %v268_v30, %v862_v18  ;;  %v349_v41 = vmax.f32 %v269_v31, %v863_v23  ;;  %v770_v46 = vunpack.c.l.bf16 %v1049_v34  ;;  %v1098_v18 = vld [vmem:[%s1412_s8 + $0x38] sm:$0xff]  }
  0x3d   :  { %v771_v47 = vunpack.c.h.bf16 %v1049_v34  ;;  %v802_v48 = vunpack.c.l.bf16 %v1056_v35  ;;  %v803_v52 = vunpack.c.h.bf16 %v1056_v35  ;;  %v834_v56 = vunpack.c.l.bf16 %v1063_v43 }
  0x3e   :  { %v1024_v49 = vpack.c.bf16 %v667_v39, %v666_v33  ;;  %v428_v50 = vmax.f32 %v348_v40, %v894_v26  ;;  %v429_v51 = vmax.f32 %v349_v41, %v895_v27  ;;  %v110_v54 = vmax.f32 %v738_v42, %v770_v46 }
  0x3f   :  { %v111_v55 = vmax.f32 %v739_v45, %v771_v47  ;;  %v835_v57 = vunpack.c.h.bf16 %v1063_v43  ;;  %v990_v60 = vunpack.c.l.bf16 %v1097_v44  ;;  %v991_v61 = vunpack.c.h.bf16 %v1097_v44 }
  0x40   :  { %1103 = vst [vmem:[%s1413_s9 + $0x28] sm:$0xff] %v1024_v49   ;;  %v508_v58 = vmax.f32 %v428_v50, %v926_v32  ;;  %v509_v59 = vmax.f32 %v429_v51, %v927_v36  ;;  %v190_v63 = vmax.f32 %v110_v54, %v802_v48  ;;  %v866_v1 = vunpack.c.l.bf16 %v1070_v53 }
  0x41   :  { %v191_v0 = vmax.f32 %v111_v55, %v803_v52  ;;  %v867_v2 = vunpack.c.h.bf16 %v1070_v53  ;;  %v898_v8 = vunpack.c.l.bf16 %v1077_v62  ;;  %v899_v9 = vunpack.c.h.bf16 %v1077_v62 }
  0x42   :  { %v588_v3 = vmax.f32 %v508_v58, %v958_v37  ;;  %v589_v4 = vmax.f32 %v509_v59, %v959_v38  ;;  %v270_v6 = vmax.f32 %v190_v63, %v834_v56  ;;  %v930_v15 = vunpack.c.l.bf16 %v1084_v5 }
  0x43   :  { %v271_v7 = vmax.f32 %v191_v0, %v835_v57  ;;  %v931_v16 = vunpack.c.h.bf16 %v1084_v5  ;;  %v962_v21 = vunpack.c.l.bf16 %v1091_v12  ;;  %v963_v22 = vunpack.c.h.bf16 %v1091_v12 }
  0x44   :  { %v668_v10 = vmax.f32 %v588_v3, %v990_v60  ;;  %v669_v11 = vmax.f32 %v589_v4, %v991_v61  ;;  %v350_v13 = vmax.f32 %v270_v6, %v866_v1  ;;  %v994_v25 = vunpack.c.l.bf16 %v1098_v18 }
  0x45   :  { %v351_v14 = vmax.f32 %v271_v7, %v867_v2  ;;  %v995_v26 = vunpack.c.h.bf16 %v1098_v18 }
  0x46   :  { %v1029_v17 = vpack.c.bf16 %v669_v11, %v668_v10  ;;  %v430_v19 = vmax.f32 %v350_v13, %v898_v8 }
  0x47   :  { %v431_v20 = vmax.f32 %v351_v14, %v899_v9 }
  0x48   :  { %1104 = vst [vmem:[%s1413_s9 + $0x30] sm:$0xff] %v1029_v17   ;;  %v510_v23 = vmax.f32 %v430_v19, %v930_v15 }
  0x49   :  { %v511_v24 = vmax.f32 %v431_v20, %v931_v16 }
  0x4a   :  { %v590_v27 = vmax.f32 %v510_v23, %v962_v21 }
  0x4b   :  { %v591_v28 = vmax.f32 %v511_v24, %v963_v22 }
  0x4c   :  { %v670_v29 = vmax.f32 %v590_v27, %v994_v25 }
  0x4d   :  { %v671_v30 = vmax.f32 %v591_v28, %v995_v26 }
  0x4f   :  { %v1034_v31 = vpack.c.bf16 %v671_v30, %v670_v29 }
  0x51   :  { %1105 = vst [vmem:[%s1413_s9 + $0x38] sm:$0xff] %v1034_v31  }

// kernel: model_pretrain_forward.52
= control target key start
LH: loop header
LB: loop body
LE: loop exit
PB: predicated region body
PF: predicated region fallthrough
CT: control target
= control target key end

     0   :  { %s336_s0 = inlined_call_operand.vmem [shape: bf16[128,128], index: 0, kind: input, shape index: {}]   ;;  %s337_s1 = inlined_call_operand.vmem [shape: f32[1,128], index: 1, kind: input, shape index: {}]   ;;  %s338_s2 = inlined_call_operand.vmem [shape: f32[1,128], index: 2, kind: input, shape index: {}]   ;;  %s339_s3 = inlined_call_operand.vmem [shape: bf16[128,128], index: 3, kind: output, shape index: {}]  }
   0x1   :  { %v139_v0 = vld [vmem:[%s336_s0] sm:$0xff]   ;;  %v210_v5 = vld [vmem:[%s336_s0 + $0x8] sm:$0xff]   ;;  %v211_v8 = vld [vmem:[%s336_s0 + $0x10] sm:$0xff]  }
   0x2   :  { %v252_v1 = vld [vmem:[%s337_s1] ss:$0 sm:$0xff]  ;;  %v140_v2 = vunpack.c.l.bf16 %v139_v0  ;;  %v141_v3 = vunpack.c.h.bf16 %v139_v0  ;;  %v144_v6 = vunpack.c.l.bf16 %v210_v5  ;;  %v145_v7 = vunpack.c.h.bf16 %v210_v5  ;;  %v212_v9 = vld [vmem:[%s336_s0 + $0x18] sm:$0xff]   ;;  %v214_v35 = vld [vmem:[%s336_s0 + $0x28] sm:$0xff]  }
   0x3   :  { %v257_v4 = vld [vmem:[%s338_s2] ss:$0 sm:$0xff]  ;;  %v148_v12 = vunpack.c.l.bf16 %v211_v8  ;;  %v149_v13 = vunpack.c.h.bf16 %v211_v8  ;;  %v152_v16 = vunpack.c.l.bf16 %v212_v9  ;;  %v153_v17 = vunpack.c.h.bf16 %v212_v9  ;;  %v215_v40 = vld [vmem:[%s336_s0 + $0x30] sm:$0xff]   ;;  %v216_v45 = vld [vmem:[%s336_s0 + $0x38] sm:$0xff]  }
   0x4   :  { %v50_v10 = vmul.f32 %v252_v1, %v140_v2  ;;  %v51_v11 = vmul.f32 %v252_v1, %v141_v3  ;;  %v52_v14 = vmul.f32 %v252_v1, %v144_v6  ;;  %v53_v15 = vmul.f32 %v252_v1, %v145_v7  ;;  %v213_v26 = vld [vmem:[%s336_s0 + $0x20] sm:$0xff]  }
   0x5   :  { %v54_v20 = vmul.f32 %v252_v1, %v148_v12  ;;  %v55_v21 = vmul.f32 %v252_v1, %v149_v13  ;;  %v56_v24 = vmul.f32 %v252_v1, %v152_v16  ;;  %v57_v25 = vmul.f32 %v252_v1, %v153_v17 }
   0x6   :  { %v70_v18 = vadd.f32 %v257_v4, %v50_v10  ;;  %v71_v19 = vadd.f32 %v257_v4, %v51_v11  ;;  %v72_v22 = vadd.f32 %v257_v4, %v52_v14  ;;  %v73_v23 = vadd.f32 %v257_v4, %v53_v15 }
   0x7   :  { %v74_v29 = vadd.f32 %v257_v4, %v54_v20  ;;  %v75_v30 = vadd.f32 %v257_v4, %v55_v21  ;;  %v76_v33 = vadd.f32 %v257_v4, %v56_v24  ;;  %v77_v34 = vadd.f32 %v257_v4, %v57_v25 }
   0x8   :  { %v86_v27 = vmax.f32 %v70_v18, 0.0  ;;  %v87_v28 = vmax.f32 %v71_v19, 0.0  ;;  %v88_v31 = vmax.f32 %v72_v22, 0.0  ;;  %v89_v32 = vmax.f32 %v73_v23, 0.0 }
   0x9   :  { %v90_v37 = vmax.f32 %v74_v29, 0.0  ;;  %v91_v38 = vmax.f32 %v75_v30, 0.0  ;;  %v156_v39 = vunpack.c.l.bf16 %v213_v26  ;;  %v92_v42 = vmax.f32 %v76_v33, 0.0 }
   0xa   :  { %v173_v36 = vpack.c.bf16 %v87_v28, %v86_v27  ;;  %v178_v41 = vpack.c.bf16 %v89_v32, %v88_v31  ;;  %v93_v43 = vmax.f32 %v77_v34, 0.0  ;;  %v157_v44 = vunpack.c.h.bf16 %v213_v26 }
   0xb   :  { %v183_v46 = vpack.c.bf16 %v91_v38, %v90_v37  ;;  %v58_v47 = vmul.f32 %v252_v1, %v156_v39  ;;  %v160_v48 = vunpack.c.l.bf16 %v214_v35  ;;  %v161_v49 = vunpack.c.h.bf16 %v214_v35 }
   0xc   :  { %174 = vst [vmem:[%s339_s3] sm:$0xff] %v173_v36   ;;  %v188_v50 = vpack.c.bf16 %v93_v43, %v92_v42  ;;  %v59_v51 = vmul.f32 %v252_v1, %v157_v44  ;;  %v164_v52 = vunpack.c.l.bf16 %v215_v40  ;;  %v165_v53 = vunpack.c.h.bf16 %v215_v40 }
   0xd   :  { %217 = vst [vmem:[%s339_s3 + $0x8] sm:$0xff] %v178_v41   ;;  %v78_v54 = vadd.f32 %v257_v4, %v58_v47  ;;  %v60_v55 = vmul.f32 %v252_v1, %v160_v48  ;;  %v61_v56 = vmul.f32 %v252_v1, %v161_v49  ;;  %v168_v57 = vunpack.c.l.bf16 %v216_v45 }
   0xe   :  { %218 = vst [vmem:[%s339_s3 + $0x10] sm:$0xff] %v183_v46   ;;  %v79_v58 = vadd.f32 %v257_v4, %v59_v51  ;;  %v62_v59 = vmul.f32 %v252_v1, %v164_v52  ;;  %v63_v60 = vmul.f32 %v252_v1, %v165_v53  ;;  %v169_v61 = vunpack.c.h.bf16 %v216_v45 }
   0xf   :  { %219 = vst [vmem:[%s339_s3 + $0x18] sm:$0xff] %v188_v50   ;;  %v94_v62 = vmax.f32 %v78_v54, 0.0  ;;  %v80_v63 = vadd.f32 %v257_v4, %v60_v55  ;;  %v81_v0 = vadd.f32 %v257_v4, %v61_v56  ;;  %v64_v2 = vmul.f32 %v252_v1, %v168_v57 }
  0x10   :  { %v95_v3 = vmax.f32 %v79_v58, 0.0  ;;  %v82_v5 = vadd.f32 %v257_v4, %v62_v59  ;;  %v83_v6 = vadd.f32 %v257_v4, %v63_v60  ;;  %v65_v7 = vmul.f32 %v252_v1, %v169_v61 }
  0x11   :  { %v96_v8 = vmax.f32 %v80_v63, 0.0  ;;  %v97_v9 = vmax.f32 %v81_v0, 0.0  ;;  %v84_v10 = vadd.f32 %v257_v4, %v64_v2 }
  0x12   :  { %v193_v11 = vpack.c.bf16 %v95_v3, %v94_v62  ;;  %v98_v12 = vmax.f32 %v82_v5, 0.0  ;;  %v99_v13 = vmax.f32 %v83_v6, 0.0  ;;  %v85_v14 = vadd.f32 %v257_v4, %v65_v7 }
  0x13   :  { %v198_v15 = vpack.c.bf16 %v97_v9, %v96_v8  ;;  %v100_v16 = vmax.f32 %v84_v10, 0.0 }
  0x14   :  { %220 = vst [vmem:[%s339_s3 + $0x20] sm:$0xff] %v193_v11   ;;  %v203_v17 = vpack.c.bf16 %v99_v13, %v98_v12  ;;  %v101_v18 = vmax.f32 %v85_v14, 0.0 }
  0x15   :  { %221 = vst [vmem:[%s339_s3 + $0x28] sm:$0xff] %v198_v15  }
  0x16   :  { %222 = vst [vmem:[%s339_s3 + $0x30] sm:$0xff] %v203_v17   ;;  %v208_v1 = vpack.c.bf16 %v101_v18, %v100_v16 }
  0x18   :  { %223 = vst [vmem:[%s339_s3 + $0x38] sm:$0xff] %v208_v1  }

// kernel: model_pretrain_forward.51
= control target key start
LH: loop header
LB: loop body
LE: loop exit
PB: predicated region body
PF: predicated region fallthrough
CT: control target
= control target key end

     0   :  { %s1195_s15 = smov 0   ;;  %s1197_s16 = smov 0   ;;  %s1330_s0 = inlined_call_operand.vmem [shape: bf16[128,1152], index: 0, kind: input, shape index: {}]   ;;  %s1331_s1 = inlined_call_operand.vmem [shape: bf16[1152,128], index: 1, kind: input, shape index: {}]   ;;  %s1332_s2 = inlined_call_operand.vmem [shape: bf16[128,128], index: 2, kind: output, shape index: {0}]   ;;  %s1333_s3 = inlined_call_operand.vmem [shape: f32[1,1,128], index: 3, kind: output, shape index: {1}]   ;;  %s1334_s4 = inlined_call_operand.vmem [shape: f32[1,1,128], index: 4, kind: output, shape index: {2}]  }
   0x1   :  { %s1199_s17 = smov 0   ;;  %s1201_s18 = smov 0  }
   0x2   :  { %s1203_s19 = smov 0  }
   0x3 LB: > { %s27_s20 = sadd.s32 1, %s1163_s18  ;;  %p50_p1 = scmp.ne.s32.totalorder %s1155_s16, %s1151_s15  ;;  %s1167_s19 = sphi %s1203_s19, %s15_s19   ;;  %s1163_s18 = sphi %s1201_s18, %s1338_s18   ;;  %s1159_s17 = sphi %s1199_s17, %s1337_s17   ;;  %s1155_s16 = sphi %s1197_s16, %s1336_s16   ;;  %s1151_s15 = sphi %s1195_s15, %s1335_s15  }
   0x4   : > { %p28_p0 = scmp.ge.s32.totalorder %s27_s20, 9  ;;  %p51_p2 = scmp.eq.s32.totalorder %s1167_s19, 0 }
   0x5   : > { %s43_s22 = sadd.s32 1, %s1155_s16  ;;  %p922_p5 = scmp.ge.s32.totalorder %s1167_s19, 9 }
   0x6   : > { %s1340_s20 = smov (%p28_p0, %s27_s20), 0  ;;  %p52_p3 = por %p51_p2, %p50_p1 }
   0x7   : > { %s39_s21 = ssub.s32 %s1163_s18, %s1340_s20  ;;  %188 = sbr.rel (%p922_p5) target bundleno = 32 (0x20), region = 16 }
   0x8   : > { %p41_p4 = scmp.eq.s32.totalorder %s39_s21, 0 }
   0xa   : > { %s1230_s23 = scalar_select %p41_p4, %s1155_s16, %s43_s22  }
   0xc   : > { %191 = sbr.rel (!%p52_p3) target bundleno = 32 (0x20), region = 20  ;;  %s193_s24 = sand.u32 (%p52_p3), 1, %s1155_s16  }
   0xd   : > { %s924_s25 = sshll.u32 (%p52_p3), %s1163_s18, 2  ;;  %s923_s26 = sshll.u32 (%p52_p3), %s193_s24, 6 }
   0xe   : > { %s1238_s29 = scalar_lea.vmem (%p52_p3), %s1330_s0, %s924_s25  ;;  %s195_s30 = scalar_lea.vmem (%p52_p3), [#allocation3], %s923_s26 }
   0xf   : > { %v217_v0 = vld [vmem:[%s1238_s29] sm:$0xf] (%p52_p3)  ;;  %v219_v1 = vld [vmem:[%s1238_s29 + $0x24] sm:$0xf] (%p52_p3)  ;;  %v221_v2 = vld [vmem:[%s1238_s29 + $0x48] sm:$0xf] (%p52_p3) }
  0x10   : > { %218 = vst [vmem:[%s195_s30] sm:$0xf] (%p52_p3), %v217_v0  ;;  %v223_v3 = vld [vmem:[%s1238_s29 + $0x6c] sm:$0xf] (%p52_p3)  ;;  %v225_v4 = vld [vmem:[%s1238_s29 + $0x90] sm:$0xf] (%p52_p3) }
  0x11   : > { %220 = vst [vmem:[%s195_s30 + $0x4] sm:$0xf] %v219_v1  ;;  %v227_v5 = vld [vmem:[%s1238_s29 + $0xb4] sm:$0xf]  ;;  %v229_v6 = vld [vmem:[%s1238_s29 + $0xd8] sm:$0xf] }
  0x12   : > { %222 = vst [vmem:[%s195_s30 + $0x8] sm:$0xf] %v221_v2  ;;  %v231_v7 = vld [vmem:[%s1238_s29 + $0xfc] sm:$0xf]  ;;  %v233_v8 = vld [vmem:[%s1238_s29 + $0x120] sm:$0xf] }
  0x13   : > { %224 = vst [vmem:[%s195_s30 + $0xc] sm:$0xf] %v223_v3  ;;  %v235_v9 = vld [vmem:[%s1238_s29 + $0x144] sm:$0xf]  ;;  %v237_v10 = vld [vmem:[%s1238_s29 + $0x168] sm:$0xf] }
  0x14   : > { %226 = vst [vmem:[%s195_s30 + $0x10] sm:$0xf] %v225_v4  ;;  %v239_v11 = vld [vmem:[%s1238_s29 + $0x18c] sm:$0xf]  ;;  %v241_v12 = vld [vmem:[%s1238_s29 + $0x1b0] sm:$0xf] }
  0x15   : > { %228 = vst [vmem:[%s195_s30 + $0x14] sm:$0xf] %v227_v5  ;;  %v243_v13 = vld [vmem:[%s1238_s29 + $0x1d4] sm:$0xf]  ;;  %v245_v14 = vld [vmem:[%s1238_s29 + $0x1f8] sm:$0xf] }
  0x16   : > { %230 = vst [vmem:[%s195_s30 + $0x18] sm:$0xf] %v229_v6  ;;  %v247_v15 = vld [vmem:[%s1238_s29 + $0x21c] sm:$0xf] }
  0x17   : > { %232 = vst [vmem:[%s195_s30 + $0x1c] sm:$0xf] %v231_v7 }
  0x18   : > { %234 = vst [vmem:[%s195_s30 + $0x20] sm:$0xf] %v233_v8 }
  0x19   : > { %236 = vst [vmem:[%s195_s30 + $0x24] sm:$0xf] %v235_v9 }
  0x1a   : > { %238 = vst [vmem:[%s195_s30 + $0x28] sm:$0xf] %v237_v10 }
  0x1b   : > { %240 = vst [vmem:[%s195_s30 + $0x2c] sm:$0xf] %v239_v11 }
  0x1c   : > { %242 = vst [vmem:[%s195_s30 + $0x30] sm:$0xf] %v241_v12 }
  0x1d   : > { %244 = vst [vmem:[%s195_s30 + $0x34] sm:$0xf] %v243_v13 }
  0x1e   : > { %246 = vst [vmem:[%s195_s30 + $0x38] sm:$0xf] %v245_v14 }
  0x1f   : > { %248 = vst [vmem:[%s195_s30 + $0x3c] sm:$0xf] %v247_v15 }
  0x20 PF: > { %p925_p6 = scmp.ge.s32.totalorder %s1167_s19, 1  ;;  %p315_p7 = scmp.lt.s32.totalorder %s1167_s19, 10 }
  0x22   : > { %p316_p8 = pnand %p925_p6, %p315_p7 }
  0x23   : > { %s322_s5 = sand.u32 (!%p316_p8), 1, %s1151_s15   ;;  %s927_s6 = sshll.u32 (!%p316_p8), %s1159_s17, 4 }
  0x24   : > { %319 = sbr.rel (%p316_p8) target bundleno = 302 (0x12e), region = 65  ;;  %s926_s7 = sshll.u32 (!%p316_p8), %s322_s5, 6 }
  0x25   : > { %p372_p9 = scmp.lt.s32.totalorder (!%p316_p8), %s927_s6, 143  ;;  %s1265_s12 = scalar_lea.vmem (!%p316_p8), [#allocation3], %s926_s7 }
  0x26   : > { %p929_p10 = scmp.ne.s32.totalorder (!%p316_p8), %s1159_s17, 0 }
  0x29   : > { %s1342_s6 = smov (!%p372_p9, %s927_s6), 143  ;;  %404 = sbr.rel (%p929_p10) target bundleno = 63 (0x3f), region = 73 }
  0x2a   : > { %s928_s8 = sshll.u32 %s1342_s6, 2 }
  0x2b   : > { %s1263_s11 = scalar_lea.vmem %s1331_s1, %s928_s8 }
  0x2e   : > { %v1169_v16 = vmov 0.0  }
  0x2f   : > { %405 = vst [vmem:[#allocation2 + $0x30] sm:$0xff] %v1169_v16 }
  0x30   : > { %406 = vst [vmem:[#allocation2] sm:$0xff] %v1169_v16 }
  0x31   : > { %407 = vst [vmem:[#allocation2 + $0x58] sm:$0xff] %v1169_v16 }
  0x32   : > { %408 = vst [vmem:[#allocation2 + $0x18] sm:$0xff] %v1169_v16 }
  0x33   : > { %409 = vst [vmem:[#allocation2 + $0x50] sm:$0xff] %v1169_v16 }
  0x34   : > { %410 = vst [vmem:[#allocation2 + $0x68] sm:$0xff] %v1169_v16 }
  0x35   : > { %411 = vst [vmem:[#allocation2 + $0x8] sm:$0xff] %v1169_v16 }
  0x36   : > { %412 = vst [vmem:[#allocation2 + $0x48] sm:$0xff] %v1169_v16 }
  0x37   : > { %413 = vst [vmem:[#allocation2 + $0x40] sm:$0xff] %v1169_v16 }
  0x38   : > { %414 = vst [vmem:[#allocation2 + $0x20] sm:$0xff] %v1169_v16 }
  0x39   : > { %415 = vst [vmem:[#allocation2 + $0x10] sm:$0xff] %v1169_v16 }
  0x3a   : > { %416 = vst [vmem:[#allocation2 + $0x38] sm:$0xff] %v1169_v16 }
  0x3b   : > { %417 = vst [vmem:[#allocation2 + $0x60] sm:$0xff] %v1169_v16 }
  0x3c   : > { %418 = vst [vmem:[#allocation2 + $0x70] sm:$0xff] %v1169_v16 }
  0x3d   : > { %419 = vst [vmem:[#allocation2 + $0x78] sm:$0xff] %v1169_v16 }
  0x3e   : > { %420 = vst [vmem:[#allocation2 + $0x28] sm:$0xff] %v1169_v16 }
  0x3f PF: > { %v1016_v17 = vld [vmem:[%s1263_s11 + $0x38] sm:$0xff]  ;;  %v1015_v18 = vld [vmem:[%s1263_s11 + $0x30] sm:$0xff]  ;;  %v1014_v19 = vld [vmem:[%s1263_s11 + $0x28] sm:$0xff]  ;;  %p994_p11 = scmp.ne.s32.totalorder %s1159_s17, 8 }
  0x40   : > { %565 = vmatpush.bf16.msra.mxu0 %v1016_v17  ;;  %1064 = vmatpush.bf16.msra.mxu1 %v1016_v17  ;;  %v1013_v20 = vld [vmem:[%s1263_s11 + $0x20] sm:$0xff]  ;;  %v1012_v21 = vld [vmem:[%s1263_s11 + $0x18] sm:$0xff]  ;;  %v1011_v22 = vld [vmem:[%s1263_s11 + $0x10] sm:$0xff] }
  0x41   : > { %1065 = vmatpush.bf16.msra.mxu2 %v1016_v17  ;;  %1066 = vmatpush.bf16.msra.mxu3 %v1016_v17  ;;  %v1010_v23 = vld [vmem:[%s1263_s11 + $0x8] sm:$0xff]  ;;  %v1009_v24 = vld [vmem:[%s1263_s11] sm:$0xff]  ;;  %v1003_v26 = vld [vmem:[%s1265_s12 + $0x10] sm:$0xff] }
  0x42   : > { %v1001_v25 = vld [vmem:[%s1265_s12] sm:$0xff]  ;;  %v1007_v28 = vld [vmem:[%s1265_s12 + $0x30] sm:$0xff]  ;;  %v1002_v29 = vld [vmem:[%s1265_s12 + $0x8] sm:$0xff] }
  0x43   : > { %v1005_v27 = vld [vmem:[%s1265_s12 + $0x20] sm:$0xff]  ;;  %v1004_v30 = vld [vmem:[%s1265_s12 + $0x18] sm:$0xff]  ;;  %v1006_v31 = vld [vmem:[%s1265_s12 + $0x28] sm:$0xff] }
  0x44   : > { %566 = vmatpush.bf16.msra.mxu0 %v1015_v18  ;;  %1067 = vmatpush.bf16.msra.mxu1 %v1015_v18  ;;  %v1008_v32 = vld [vmem:[%s1265_s12 + $0x38] sm:$0xff]  ;;  %v421_v33 = vld [vmem:[#allocation2 + $0x30] sm:$0xff]  ;;  %v429_v39 = vld [vmem:[#allocation2 + $0x40] sm:$0xff] }
  0x45   : > { %1068 = vmatpush.bf16.msra.mxu2 %v1015_v18  ;;  %1069 = vmatpush.bf16.msra.mxu3 %v1015_v18  ;;  %v425_v34 = vld [vmem:[#allocation2 + $0x50] sm:$0xff]  ;;  %v433_v40 = vld [vmem:[#allocation2 + $0x60] sm:$0xff]  ;;  %v426_v42 = vld [vmem:[#allocation2 + $0x68] sm:$0xff] }
  0x46   : > { %v422_v41 = vld [vmem:[#allocation2] sm:$0xff]  ;;  %v434_v52 = vld [vmem:[#allocation2 + $0x70] sm:$0xff]  ;;  %v423_v53 = vld [vmem:[#allocation2 + $0x58] sm:$0xff] }
  0x47   : > { %v430_v51 = vld [vmem:[#allocation2 + $0x20] sm:$0xff]  ;;  %v427_v54 = vld [vmem:[#allocation2 + $0x8] sm:$0xff]  ;;  %v431_v63 = vld [vmem:[#allocation2 + $0x10] sm:$0xff] }
  0x48   : > { %567 = vmatpush.bf16.msra.mxu0 %v1014_v19  ;;  %1070 = vmatpush.bf16.msra.mxu1 %v1014_v19  ;;  %v435_v0 = vld [vmem:[#allocation2 + $0x78] sm:$0xff]  ;;  %v428_v2 = vld [vmem:[#allocation2 + $0x48] sm:$0xff] }
  0x49   : > { %1071 = vmatpush.bf16.msra.mxu2 %v1014_v19  ;;  %1072 = vmatpush.bf16.msra.mxu3 %v1014_v19  ;;  %v424_v1 = vld [vmem:[#allocation2 + $0x18] sm:$0xff]  ;;  %v436_v12 = vld [vmem:[#allocation2 + $0x28] sm:$0xff] }
  0x4a   : > { %v432_v11 = vld [vmem:[#allocation2 + $0x38] sm:$0xff] }
  0x4c   : > { %568 = vmatpush.bf16.msra.mxu0 %v1013_v20  ;;  %1073 = vmatpush.bf16.msra.mxu1 %v1013_v20 }
  0x4d   : > { %1074 = vmatpush.bf16.msra.mxu2 %v1013_v20  ;;  %1075 = vmatpush.bf16.msra.mxu3 %v1013_v20 }
  0x50   : > { %569 = vmatpush.bf16.msra.mxu0 %v1012_v21  ;;  %1076 = vmatpush.bf16.msra.mxu1 %v1012_v21 }
  0x51   : > { %1077 = vmatpush.bf16.msra.mxu2 %v1012_v21  ;;  %1078 = vmatpush.bf16.msra.mxu3 %v1012_v21 }
  0x54   : > { %570 = vmatpush.bf16.msra.mxu0 %v1011_v22  ;;  %1079 = vmatpush.bf16.msra.mxu1 %v1011_v22 }
  0x55   : > { %1080 = vmatpush.bf16.msra.mxu2 %v1011_v22  ;;  %1081 = vmatpush.bf16.msra.mxu3 %v1011_v22 }
  0x58   : > { %571 = vmatpush.bf16.msra.mxu0 %v1010_v23  ;;  %1082 = vmatpush.bf16.msra.mxu1 %v1010_v23 }
  0x59   : > { %1083 = vmatpush.bf16.msra.mxu2 %v1010_v23  ;;  %1084 = vmatpush.bf16.msra.mxu3 %v1010_v23 }
  0x5c   : > { %572 = vmatpush.bf16.msra.mxu0 %v1009_v24  ;;  %1085 = vmatpush.bf16.msra.mxu1 %v1009_v24 }
  0x5d   : > { %1086 = vmatpush.bf16.msra.mxu2 %v1009_v24  ;;  %1087 = vmatpush.bf16.msra.mxu3 %v1009_v24 }
  0x5f   : > { %573 = vmatmul.bf16.vlgmr.msra.gmra.mxu0 %v1001_v25  ;;  %583 = vmatmul.bf16.vlgmr.msra.gmra.mxu1 %v1003_v26 }
  0x60   : > { %593 = vmatmul.bf16.vlgmr.msra.gmra.mxu2 %v1005_v27  ;;  %603 = vmatmul.bf16.vlgmr.msra.gmra.mxu3 %v1007_v28 }
  0x6f   : > { %578 = vmatmul.bf16.gmra.mxu0 %v1002_v29  ;;  %588 = vmatmul.bf16.gmra.mxu1 %v1004_v30 }
  0x70   : > { %598 = vmatmul.bf16.gmra.mxu2 %v1006_v31  ;;  %608 = vmatmul.bf16.gmra.mxu3 %v1008_v32 }
  0xdc   : > { %v574_v35 = vpop.f32.mrf.mxu0  ;;  %v584_v36 = vpop.f32.mrf.mxu1 }
  0xdd   : > { %v614_v37 = vadd.f32 %v574_v35, %v421_v33  ;;  %v618_v38 = vadd.f32 %v584_v36, %v425_v34 }
  0xdf   : > { %630 = vst [vmem:[#allocation2 + $0x30] sm:$0xff] %v614_v37 }
  0xe0   : > { %634 = vst [vmem:[#allocation2 + $0x50] sm:$0xff] %v618_v38 }
  0xe3   : > { %v594_v43 = vpop.f32.mrf.mxu2  ;;  %v604_v44 = vpop.f32.mrf.mxu3 }
  0xe4   : > { %v622_v45 = vadd.f32 %v594_v43, %v429_v39  ;;  %v626_v46 = vadd.f32 %v604_v44, %v433_v40  ;;  %v576_v47 = vpop.f32.mrf.mxu0  ;;  %v586_v48 = vpop.f32.mrf.mxu1 }
  0xe5   : > { %v615_v49 = vadd.f32 %v576_v47, %v422_v41  ;;  %v619_v50 = vadd.f32 %v586_v48, %v426_v42 }
  0xe6   : > { %638 = vst [vmem:[#allocation2 + $0x40] sm:$0xff] %v622_v45 }
  0xe7   : > { %642 = vst [vmem:[#allocation2 + $0x60] sm:$0xff] %v626_v46 }
  0xe8   : > { %631 = vst [vmem:[#allocation2] sm:$0xff] %v615_v49 }
  0xe9   : > { %635 = vst [vmem:[#allocation2 + $0x68] sm:$0xff] %v619_v50 }
  0xeb   : > { %v596_v55 = vpop.f32.mrf.mxu2  ;;  %v606_v56 = vpop.f32.mrf.mxu3 }
  0xec   : > { %v623_v57 = vadd.f32 %v596_v55, %v430_v51  ;;  %v627_v58 = vadd.f32 %v606_v56, %v434_v52  ;;  %v579_v59 = vpop.f32.mrf.mxu0  ;;  %v589_v60 = vpop.f32.mrf.mxu1 }
  0xed   : > { %v616_v61 = vadd.f32 %v579_v59, %v423_v53  ;;  %v620_v62 = vadd.f32 %v589_v60, %v427_v54 }
  0xee   : > { %639 = vst [vmem:[#allocation2 + $0x20] sm:$0xff] %v623_v57 }
  0xef   : > { %643 = vst [vmem:[#allocation2 + $0x70] sm:$0xff] %v627_v58 }
  0xf0   : > { %632 = vst [vmem:[#allocation2 + $0x58] sm:$0xff] %v616_v61 }
  0xf1   : > { %636 = vst [vmem:[#allocation2 + $0x8] sm:$0xff] %v620_v62 }
  0xf3   : > { %v599_v3 = vpop.f32.mrf.mxu2  ;;  %v609_v4 = vpop.f32.mrf.mxu3 }
  0xf4   : > { %v624_v5 = vadd.f32 %v599_v3, %v431_v63  ;;  %v628_v6 = vadd.f32 %v609_v4, %v435_v0  ;;  %v581_v7 = vpop.f32.mrf.mxu0  ;;  %v591_v8 = vpop.f32.mrf.mxu1 }
  0xf5   : > { %v617_v9 = vadd.f32 %v581_v7, %v424_v1  ;;  %v621_v10 = vadd.f32 %v591_v8, %v428_v2 }
  0xf6   : > { %640 = vst [vmem:[#allocation2 + $0x10] sm:$0xff] %v624_v5 }
  0xf7   : > { %644 = vst [vmem:[#allocation2 + $0x78] sm:$0xff] %v628_v6 }
  0xf8   : > { %633 = vst [vmem:[#allocation2 + $0x18] sm:$0xff] %v617_v9 }
  0xf9   : > { %637 = vst [vmem:[#allocation2 + $0x48] sm:$0xff] %v621_v10 }
  0xfb   : > { %v601_v13 = vpop.f32.mrf.mxu2  ;;  %v611_v14 = vpop.f32.mrf.mxu3  ;;  %649 = sbr.rel (%p994_p11) target bundleno = 302 (0x12e), region = 77 }
  0xfc   : > { %v625_v15 = vadd.f32 %v601_v13, %v432_v11  ;;  %v629_v16 = vadd.f32 %v611_v14, %v436_v12 }
  0xfe   : > { %641 = vst [vmem:[#allocation2 + $0x38] sm:$0xff] %v625_v15 }
  0xff   : > { %645 = vst [vmem:[#allocation2 + $0x28] sm:$0xff] %v629_v16 }
 0x100   : > { %v650_v17 = vld [vmem:[#allocation2 + $0x30] sm:$0xff]  ;;  %v651_v18 = vld [vmem:[#allocation2] sm:$0xff]  ;;  %v652_v19 = vld [vmem:[#allocation2 + $0x58] sm:$0xff] }
 0x101   : > { %v653_v20 = vld [vmem:[#allocation2 + $0x18] sm:$0xff]  ;;  %v666_v21 = vadd.f32 %v651_v18, %v650_v17  ;;  %v688_v22 = vmul.f32 %v650_v17, %v650_v17  ;;  %v689_v23 = vmul.f32 %v651_v18, %v651_v18  ;;  %v690_v24 = vmul.f32 %v652_v19, %v652_v19  ;;  %v654_v25 = vld [vmem:[#allocation2 + $0x50] sm:$0xff]  ;;  %v655_v29 = vld [vmem:[#allocation2 + $0x68] sm:$0xff] }
 0x102   : > { %v691_v27 = vmul.f32 %v653_v20, %v653_v20  ;;  %v692_v31 = vmul.f32 %v654_v25, %v654_v25  ;;  %v656_v33 = vld [vmem:[#allocation2 + $0x8] sm:$0xff]  ;;  %v693_v36 = vmul.f32 %v655_v29, %v655_v29  ;;  %v658_v41 = vld [vmem:[#allocation2 + $0x40] sm:$0xff]  ;;  %v1020_v45 = vpack.c.bf16 %v651_v18, %v650_v17  ;;  %v660_v51 = vld [vmem:[#allocation2 + $0x10] sm:$0xff] }
 0x103   : > { %v667_v26 = vadd.f32 %v666_v21, %v652_v19  ;;  %v704_v28 = vadd.f32 %v689_v23, %v688_v22  ;;  %v657_v35 = vld [vmem:[#allocation2 + $0x48] sm:$0xff]  ;;  %v694_v39 = vmul.f32 %v656_v33, %v656_v33  ;;  %v1025_v46 = vpack.c.bf16 %v653_v20, %v652_v19  ;;  %v659_v48 = vld [vmem:[#allocation2 + $0x20] sm:$0xff]  ;;  %v663_v57 = vld [vmem:[#allocation2 + $0x70] sm:$0xff] }
 0x104   : > { %v695_v43 = vmul.f32 %v657_v35, %v657_v35  ;;  %v1030_v47 = vpack.c.bf16 %v655_v29, %v654_v25  ;;  %v1035_v50 = vpack.c.bf16 %v657_v35, %v656_v33  ;;  %v696_v53 = vmul.f32 %v658_v41, %v658_v41  ;;  %1021 = vst [vmem:[%s1332_s2] sm:$0xff] %v1020_v45   ;;  %v662_v56 = vld [vmem:[#allocation2 + $0x60] sm:$0xff]  ;;  %v664_v60 = vld [vmem:[#allocation2 + $0x78] sm:$0xff] }
 0x105   : > { %v668_v30 = vadd.f32 %v667_v26, %v653_v20  ;;  %v705_v32 = vadd.f32 %v704_v28, %v690_v24  ;;  %v661_v52 = vld [vmem:[#allocation2 + $0x38] sm:$0xff]  ;;  %v1040_v55 = vpack.c.bf16 %v659_v48, %v658_v41  ;;  %1057 = vst [vmem:[%s1332_s2 + $0x8] sm:$0xff] %v1025_v46   ;;  %v697_v62 = vmul.f32 %v659_v48, %v659_v48 }
 0x106   : > { %v1045_v59 = vpack.c.bf16 %v661_v52, %v660_v51  ;;  %v665_v61 = vld [vmem:[#allocation2 + $0x28] sm:$0xff]  ;;  %1058 = vst [vmem:[%s1332_s2 + $0x10] sm:$0xff] %v1030_v47   ;;  %v1050_v0 = vpack.c.bf16 %v663_v57, %v662_v56  ;;  %v698_v3 = vmul.f32 %v660_v51, %v660_v51  ;;  %v699_v6 = vmul.f32 %v661_v52, %v661_v52 }
 0x107   : > { %v669_v34 = vadd.f32 %v668_v30, %v654_v25  ;;  %v706_v37 = vadd.f32 %v705_v32, %v691_v27  ;;  %1059 = vst [vmem:[%s1332_s2 + $0x18] sm:$0xff] %v1035_v50   ;;  %v1055_v2 = vpack.c.bf16 %v665_v61, %v664_v60  ;;  %v700_v9 = vmul.f32 %v662_v56, %v662_v56 }
 0x108   : > { %1060 = vst [vmem:[%s1332_s2 + $0x20] sm:$0xff] %v1040_v55   ;;  %v701_v12 = vmul.f32 %v663_v57, %v663_v57  ;;  %v702_v15 = vmul.f32 %v664_v60, %v664_v60  ;;  %v703_v18 = vmul.f32 %v665_v61, %v665_v61 }
 0x109   : > { %v670_v38 = vadd.f32 %v669_v34, %v655_v29  ;;  %v707_v40 = vadd.f32 %v706_v37, %v692_v31  ;;  %1061 = vst [vmem:[%s1332_s2 + $0x28] sm:$0xff] %v1045_v59  }
 0x10a   : > { %1062 = vst [vmem:[%s1332_s2 + $0x30] sm:$0xff] %v1050_v0  }
 0x10b   : > { %v671_v42 = vadd.f32 %v670_v38, %v656_v33  ;;  %v708_v44 = vadd.f32 %v707_v40, %v693_v36  ;;  %1063 = vst [vmem:[%s1332_s2 + $0x38] sm:$0xff] %v1055_v2  }
 0x10d   : > { %v672_v49 = vadd.f32 %v671_v42, %v657_v35  ;;  %v709_v54 = vadd.f32 %v708_v44, %v694_v39 }
 0x10f   : > { %v673_v58 = vadd.f32 %v672_v49, %v658_v41  ;;  %v710_v63 = vadd.f32 %v709_v54, %v695_v43 }
 0x111   : > { %v674_v1 = vadd.f32 %v673_v58, %v659_v48  ;;  %v711_v4 = vadd.f32 %v710_v63, %v696_v53 }
 0x113   : > { %v675_v5 = vadd.f32 %v674_v1, %v660_v51  ;;  %v712_v7 = vadd.f32 %v711_v4, %v697_v62 }
 0x115   : > { %v676_v8 = vadd.f32 %v675_v5, %v661_v52  ;;  %v713_v10 = vadd.f32 %v712_v7, %v698_v3 }
 0x117   : > { %v677_v11 = vadd.f32 %v676_v8, %v662_v56  ;;  %v714_v13 = vadd.f32 %v713_v10, %v699_v6 }
 0x119   : > { %v678_v14 = vadd.f32 %v677_v11, %v663_v57  ;;  %v715_v16 = vadd.f32 %v714_v13, %v700_v9 }
 0x11b   : > { %v679_v17 = vadd.f32 %v678_v14, %v664_v60  ;;  %v716_v19 = vadd.f32 %v715_v16, %v701_v12 }
 0x11d   : > { %v680_v20 = vadd.f32 %v679_v17, %v665_v61  ;;  %v717_v21 = vadd.f32 %v716_v19, %v702_v15 }
 0x11f   : > { %v681_v22 = vrot.slane %v680_v20, 4  ;;  %v718_v23 = vadd.f32 %v717_v21, %v703_v18 }
 0x121   : > { %v682_v24 = vadd.f32 %v681_v22, %v680_v20  ;;  %v719_v25 = vrot.slane %v718_v23, 4 }
 0x123   : > { %v683_v26 = vrot.slane %v682_v24, 2  ;;  %v720_v27 = vadd.f32 %v719_v25, %v718_v23 }
 0x125   : > { %v684_v28 = vadd.f32 %v683_v26, %v682_v24  ;;  %v721_v29 = vrot.slane %v720_v27, 2 }
 0x127   : > { %v685_v30 = vrot.slane %v684_v28, 1  ;;  %v722_v31 = vadd.f32 %v721_v29, %v720_v27 }
 0x129   : > { %v686_v32 = vadd.f32 %v685_v30, %v684_v28  ;;  %v723_v33 = vrot.slane %v722_v31, 1 }
 0x12b   : > { %687 = vst [vmem:[%s1333_s3] sm:$0x1] %v686_v32  ;;  %v724_v34 = vadd.f32 %v723_v33, %v722_v31 }
 0x12d   : > { %725 = vst [vmem:[%s1334_s4] sm:$0x1] %v724_v34 }
 0x12e PF: > { %s15_s19 = sadd.s32 1, %s1167_s19   ;;  %s1335_s15 = smov %s1155_s16 }
 0x12f   : > { %p12_p12 = scmp.ge.s32.totalorder %s15_s19, 11   ;;  %s1336_s16 = smov %s1230_s23 }
 0x130   : > { %s1337_s17 = smov %s1163_s18  ;;  %s1338_s18 = smov %s1340_s20 }
 0x131   :  { %14 = sbr.rel (!%p12_p12) target bundleno = 3 (0x3), region = 139 }

// kernel: model_pretrain_forward.54
= control target key start
LH: loop header
LB: loop body
LE: loop exit
PB: predicated region body
PF: predicated region fallthrough
CT: control target
= control target key end

     0   :  { %s455_s0 = inlined_call_operand.vmem [shape: bf16[128,128], index: 0, kind: input, shape index: {}]   ;;  %s456_s1 = inlined_call_operand.vmem [shape: bf16[128,128], index: 1, kind: input, shape index: {}]   ;;  %s457_s2 = inlined_call_operand.vmem [shape: f32[1,128], index: 2, kind: input, shape index: {}]   ;;  %s458_s3 = inlined_call_operand.vmem [shape: f32[1,128], index: 3, kind: input, shape index: {}]   ;;  %s459_s4 = inlined_call_operand.vmem [shape: bf16[128,128], index: 4, kind: output, shape index: {}]  }
   0x1   :  { %v190_v0 = vld [vmem:[%s455_s0] sm:$0xff]   ;;  %v293_v8 = vld [vmem:[%s455_s0 + $0x8] sm:$0xff]   ;;  %v294_v10 = vld [vmem:[%s455_s0 + $0x10] sm:$0xff]  }
   0x2   :  { %v347_v1 = vld [vmem:[%s457_s2] ss:$0 sm:$0xff]  ;;  %v191_v2 = vunpack.c.l.bf16 %v190_v0  ;;  %v192_v3 = vunpack.c.h.bf16 %v190_v0  ;;  %v300_v9 = vld [vmem:[%s456_s1 + $0x8] sm:$0xff]   ;;  %v195_v13 = vunpack.c.l.bf16 %v293_v8  ;;  %v196_v14 = vunpack.c.h.bf16 %v293_v8  ;;  %v301_v15 = vld [vmem:[%s456_s1 + $0x10] sm:$0xff]  }
   0x3   :  { %v352_v4 = vld [vmem:[%s458_s3] ss:$0 sm:$0xff]  ;;  %v227_v16 = vunpack.c.l.bf16 %v300_v9  ;;  %v228_v17 = vunpack.c.h.bf16 %v300_v9  ;;  %v199_v18 = vunpack.c.l.bf16 %v294_v10  ;;  %v200_v19 = vunpack.c.h.bf16 %v294_v10  ;;  %v295_v24 = vld [vmem:[%s455_s0 + $0x18] sm:$0xff]   ;;  %v297_v56 = vld [vmem:[%s455_s0 + $0x28] sm:$0xff]  }
   0x4   :  { %v222_v5 = vld [vmem:[%s456_s1] sm:$0xff]   ;;  %v53_v11 = vmul.f32 %v347_v1, %v191_v2  ;;  %v54_v12 = vmul.f32 %v347_v1, %v192_v3  ;;  %v55_v22 = vmul.f32 %v347_v1, %v195_v13  ;;  %v56_v23 = vmul.f32 %v347_v1, %v196_v14  ;;  %v302_v37 = vld [vmem:[%s456_s1 + $0x18] sm:$0xff]   ;;  %v304_v61 = vld [vmem:[%s456_s1 + $0x28] sm:$0xff]  }
   0x5   :  { %v223_v6 = vunpack.c.l.bf16 %v222_v5  ;;  %v224_v7 = vunpack.c.h.bf16 %v222_v5  ;;  %v57_v25 = vmul.f32 %v347_v1, %v199_v18  ;;  %v58_v26 = vmul.f32 %v347_v1, %v200_v19  ;;  %v296_v46 = vld [vmem:[%s455_s0 + $0x20] sm:$0xff]   ;;  %v298_v8 = vld [vmem:[%s455_s0 + $0x30] sm:$0xff]  }
   0x6   :  { %v73_v20 = vadd.f32 %v352_v4, %v53_v11  ;;  %v74_v21 = vadd.f32 %v352_v4, %v54_v12  ;;  %v231_v27 = vunpack.c.l.bf16 %v301_v15  ;;  %v232_v28 = vunpack.c.h.bf16 %v301_v15  ;;  %v303_v51 = vld [vmem:[%s456_s1 + $0x20] sm:$0xff]   ;;  %v305_v9 = vld [vmem:[%s456_s1 + $0x30] sm:$0xff]  }
   0x7   :  { %v75_v31 = vadd.f32 %v352_v4, %v55_v22  ;;  %v76_v32 = vadd.f32 %v352_v4, %v56_v23  ;;  %v77_v33 = vadd.f32 %v352_v4, %v57_v25  ;;  %v78_v34 = vadd.f32 %v352_v4, %v58_v26  ;;  %v299_v22 = vld [vmem:[%s455_s0 + $0x38] sm:$0xff]  }
   0x8   :  { %v121_v29 = vadd.f32 %v223_v6, %v73_v20  ;;  %v122_v30 = vadd.f32 %v224_v7, %v74_v21  ;;  %v203_v35 = vunpack.c.l.bf16 %v295_v24  ;;  %v204_v36 = vunpack.c.h.bf16 %v295_v24 }
   0x9   :  { %v123_v40 = vadd.f32 %v227_v16, %v75_v31  ;;  %v124_v41 = vadd.f32 %v228_v17, %v76_v32  ;;  %v125_v42 = vadd.f32 %v231_v27, %v77_v33  ;;  %v126_v43 = vadd.f32 %v232_v28, %v78_v34  ;;  %v306_v31 = vld [vmem:[%s456_s1 + $0x38] sm:$0xff]  }
   0xa   :  { %v137_v38 = vmax.f32 %v121_v29, 0.0  ;;  %v138_v39 = vmax.f32 %v122_v30, 0.0  ;;  %v59_v44 = vmul.f32 %v347_v1, %v203_v35  ;;  %v60_v45 = vmul.f32 %v347_v1, %v204_v36 }
   0xb   :  { %v139_v48 = vmax.f32 %v123_v40, 0.0  ;;  %v140_v49 = vmax.f32 %v124_v41, 0.0  ;;  %v235_v50 = vunpack.c.l.bf16 %v302_v37  ;;  %v141_v52 = vmax.f32 %v125_v42, 0.0 }
   0xc   :  { %v256_v47 = vpack.c.bf16 %v138_v39, %v137_v38  ;;  %v142_v53 = vmax.f32 %v126_v43, 0.0  ;;  %v79_v54 = vadd.f32 %v352_v4, %v59_v44  ;;  %v80_v55 = vadd.f32 %v352_v4, %v60_v45 }
   0xd   :  { %v261_v57 = vpack.c.bf16 %v140_v49, %v139_v48  ;;  %v236_v58 = vunpack.c.h.bf16 %v302_v37  ;;  %v207_v59 = vunpack.c.l.bf16 %v296_v46  ;;  %v208_v60 = vunpack.c.h.bf16 %v296_v46 }
   0xe   :  { %257 = vst [vmem:[%s459_s4] sm:$0xff] %v256_v47   ;;  %v266_v62 = vpack.c.bf16 %v142_v53, %v141_v52  ;;  %v127_v63 = vadd.f32 %v235_v50, %v79_v54  ;;  %v239_v0 = vunpack.c.l.bf16 %v303_v51  ;;  %v240_v2 = vunpack.c.h.bf16 %v303_v51 }
   0xf   :  { %307 = vst [vmem:[%s459_s4 + $0x8] sm:$0xff] %v261_v57   ;;  %v128_v3 = vadd.f32 %v236_v58, %v80_v55  ;;  %v61_v5 = vmul.f32 %v347_v1, %v207_v59  ;;  %v62_v6 = vmul.f32 %v347_v1, %v208_v60  ;;  %v211_v7 = vunpack.c.l.bf16 %v297_v56 }
  0x10   :  { %308 = vst [vmem:[%s459_s4 + $0x10] sm:$0xff] %v266_v62   ;;  %v143_v10 = vmax.f32 %v127_v63, 0.0  ;;  %v212_v11 = vunpack.c.h.bf16 %v297_v56  ;;  %v243_v12 = vunpack.c.l.bf16 %v304_v61  ;;  %v244_v13 = vunpack.c.h.bf16 %v304_v61 }
  0x11   :  { %v144_v14 = vmax.f32 %v128_v3, 0.0  ;;  %v81_v15 = vadd.f32 %v352_v4, %v61_v5  ;;  %v82_v16 = vadd.f32 %v352_v4, %v62_v6  ;;  %v63_v17 = vmul.f32 %v347_v1, %v211_v7 }
  0x12   :  { %v64_v18 = vmul.f32 %v347_v1, %v212_v11  ;;  %v215_v19 = vunpack.c.l.bf16 %v298_v8  ;;  %v216_v20 = vunpack.c.h.bf16 %v298_v8  ;;  %v247_v21 = vunpack.c.l.bf16 %v305_v9 }
  0x13   :  { %v271_v23 = vpack.c.bf16 %v144_v14, %v143_v10  ;;  %v129_v24 = vadd.f32 %v239_v0, %v81_v15  ;;  %v130_v25 = vadd.f32 %v240_v2, %v82_v16  ;;  %v83_v26 = vadd.f32 %v352_v4, %v63_v17 }
  0x14   :  { %v84_v27 = vadd.f32 %v352_v4, %v64_v18  ;;  %v65_v28 = vmul.f32 %v347_v1, %v215_v19  ;;  %v66_v29 = vmul.f32 %v347_v1, %v216_v20  ;;  %v248_v30 = vunpack.c.h.bf16 %v305_v9 }
  0x15   :  { %309 = vst [vmem:[%s459_s4 + $0x18] sm:$0xff] %v271_v23   ;;  %v145_v32 = vmax.f32 %v129_v24, 0.0  ;;  %v146_v33 = vmax.f32 %v130_v25, 0.0  ;;  %v131_v34 = vadd.f32 %v243_v12, %v83_v26  ;;  %v219_v35 = vunpack.c.l.bf16 %v299_v22 }
  0x16   :  { %v132_v36 = vadd.f32 %v244_v13, %v84_v27  ;;  %v85_v37 = vadd.f32 %v352_v4, %v65_v28  ;;  %v86_v38 = vadd.f32 %v352_v4, %v66_v29  ;;  %v220_v39 = vunpack.c.h.bf16 %v299_v22 }
  0x17   :  { %v276_v40 = vpack.c.bf16 %v146_v33, %v145_v32  ;;  %v147_v41 = vmax.f32 %v131_v34, 0.0  ;;  %v67_v42 = vmul.f32 %v347_v1, %v219_v35  ;;  %v251_v43 = vunpack.c.l.bf16 %v306_v31 }
  0x18   :  { %v148_v44 = vmax.f32 %v132_v36, 0.0  ;;  %v133_v45 = vadd.f32 %v247_v21, %v85_v37  ;;  %v134_v46 = vadd.f32 %v248_v30, %v86_v38  ;;  %v68_v47 = vmul.f32 %v347_v1, %v220_v39 }
  0x19   :  { %310 = vst [vmem:[%s459_s4 + $0x20] sm:$0xff] %v276_v40   ;;  %v87_v48 = vadd.f32 %v352_v4, %v67_v42  ;;  %v252_v49 = vunpack.c.h.bf16 %v306_v31 }
  0x1a   :  { %v281_v50 = vpack.c.bf16 %v148_v44, %v147_v41  ;;  %v149_v51 = vmax.f32 %v133_v45, 0.0  ;;  %v150_v52 = vmax.f32 %v134_v46, 0.0  ;;  %v88_v53 = vadd.f32 %v352_v4, %v68_v47 }
  0x1b   :  { %v135_v54 = vadd.f32 %v251_v43, %v87_v48 }
  0x1c   :  { %311 = vst [vmem:[%s459_s4 + $0x28] sm:$0xff] %v281_v50   ;;  %v286_v55 = vpack.c.bf16 %v150_v52, %v149_v51  ;;  %v136_v56 = vadd.f32 %v252_v49, %v88_v53 }
  0x1d   :  { %v151_v1 = vmax.f32 %v135_v54, 0.0 }
  0x1e   :  { %312 = vst [vmem:[%s459_s4 + $0x30] sm:$0xff] %v286_v55   ;;  %v152_v57 = vmax.f32 %v136_v56, 0.0 }
  0x20   :  { %v291_v58 = vpack.c.bf16 %v152_v57, %v151_v1 }
  0x22   :  { %313 = vst [vmem:[%s459_s4 + $0x38] sm:$0xff] %v291_v58  }

// kernel: model_pretrain_forward.60
= control target key start
LH: loop header
LB: loop body
LE: loop exit
PB: predicated region body
PF: predicated region fallthrough
CT: control target
= control target key end

     0   :  { %s114_s0 = inlined_call_operand.vmem [shape: bf16[32,128], index: 0, kind: input, shape index: {}]   ;;  %s115_s1 = inlined_call_operand.vmem [shape: f32[1,128], index: 1, kind: input, shape index: {}]   ;;  %s116_s2 = inlined_call_operand.vmem [shape: f32[1,128], index: 2, kind: input, shape index: {}]   ;;  %s117_s3 = inlined_call_operand.vmem [shape: bf16[32,128], index: 3, kind: output, shape index: {}]  }
   0x1   :  { %v55_v0 = vld [vmem:[%s114_s0] sm:$0xff]   ;;  %v72_v5 = vld [vmem:[%s114_s0 + $0x8] sm:$0xff]  }
   0x2   :  { %v74_v1 = vld [vmem:[%s115_s1] ss:$0 sm:$0xff]  ;;  %v56_v2 = vunpack.c.l.bf16 %v55_v0  ;;  %v57_v3 = vunpack.c.h.bf16 %v55_v0  ;;  %v60_v6 = vunpack.c.l.bf16 %v72_v5  ;;  %v61_v7 = vunpack.c.h.bf16 %v72_v5 }
   0x3   :  { %v75_v4 = vld [vmem:[%s116_s2] ss:$0 sm:$0xff] }
   0x4   :  { %v26_v8 = vmul.f32 %v74_v1, %v56_v2  ;;  %v27_v9 = vmul.f32 %v74_v1, %v57_v3  ;;  %v28_v10 = vmul.f32 %v74_v1, %v60_v6  ;;  %v29_v11 = vmul.f32 %v74_v1, %v61_v7 }
   0x6   :  { %v34_v12 = vadd.f32 %v75_v4, %v26_v8  ;;  %v35_v13 = vadd.f32 %v75_v4, %v27_v9  ;;  %v36_v14 = vadd.f32 %v75_v4, %v28_v10  ;;  %v37_v15 = vadd.f32 %v75_v4, %v29_v11 }
   0x8   :  { %v38_v16 = vmax.f32 %v34_v12, 0.0  ;;  %v39_v17 = vmax.f32 %v35_v13, 0.0  ;;  %v40_v18 = vmax.f32 %v36_v14, 0.0  ;;  %v41_v19 = vmax.f32 %v37_v15, 0.0 }
   0xa   :  { %v65_v20 = vpack.c.bf16 %v39_v17, %v38_v16  ;;  %v70_v21 = vpack.c.bf16 %v41_v19, %v40_v18 }
   0xc   :  { %66 = vst [vmem:[%s117_s3] sm:$0xff] %v65_v20  }
   0xd   :  { %73 = vst [vmem:[%s117_s3 + $0x8] sm:$0xff] %v70_v21  }

// kernel: model_pretrain_forward.59
= control target key start
LH: loop header
LB: loop body
LE: loop exit
PB: predicated region body
PF: predicated region fallthrough
CT: control target
= control target key end

     0   :  { %s867_s15 = smov 0   ;;  %s869_s16 = smov 0   ;;  %s963_s0 = inlined_call_operand.vmem [shape: bf16[32,1152], index: 0, kind: input, shape index: {}]   ;;  %s964_s1 = inlined_call_operand.vmem [shape: bf16[1152,128], index: 1, kind: input, shape index: {}]   ;;  %s965_s2 = inlined_call_operand.vmem [shape: bf16[32,128], index: 2, kind: output, shape index: {0}]   ;;  %s966_s3 = inlined_call_operand.vmem [shape: f32[1,1,128], index: 3, kind: output, shape index: {1}]   ;;  %s967_s4 = inlined_call_operand.vmem [shape: f32[1,1,128], index: 4, kind: output, shape index: {2}]  }
   0x1   :  { %s871_s17 = smov 0   ;;  %s873_s18 = smov 0  }
   0x2   :  { %s875_s19 = smov 0  }
   0x3 LB: > { %s27_s20 = sadd.s32 1, %s835_s18  ;;  %p50_p1 = scmp.ne.s32.totalorder %s827_s16, %s823_s15  ;;  %s839_s19 = sphi %s875_s19, %s15_s19   ;;  %s835_s18 = sphi %s873_s18, %s971_s18   ;;  %s831_s17 = sphi %s871_s17, %s970_s17   ;;  %s827_s16 = sphi %s869_s16, %s969_s16   ;;  %s823_s15 = sphi %s867_s15, %s968_s15  }
   0x4   : > { %p28_p0 = scmp.ge.s32.totalorder %s27_s20, 9  ;;  %p51_p2 = scmp.eq.s32.totalorder %s839_s19, 0 }
   0x5   : > { %s43_s22 = sadd.s32 1, %s827_s16  ;;  %p676_p5 = scmp.ge.s32.totalorder %s839_s19, 9 }
   0x6   : > { %s973_s20 = smov (%p28_p0, %s27_s20), 0  ;;  %p52_p3 = por %p51_p2, %p50_p1 }
   0x7   : > { %s39_s21 = ssub.s32 %s835_s18, %s973_s20  ;;  %188 = sbr.rel (%p676_p5) target bundleno = 20 (0x14), region = 16 }
   0x8   : > { %p41_p4 = scmp.eq.s32.totalorder %s39_s21, 0 }
   0xa   : > { %s902_s23 = scalar_select %p41_p4, %s827_s16, %s43_s22  }
   0xc   : > { %191 = sbr.rel (!%p52_p3) target bundleno = 20 (0x14), region = 20  ;;  %s193_s24 = sand.u32 (%p52_p3), 1, %s827_s16  }
   0xd   : > { %s678_s25 = sshll.u32 (%p52_p3), %s835_s18, 2  ;;  %s677_s26 = sshll.u32 (%p52_p3), %s193_s24, 4 }
   0xe   : > { %s200_s29 = scalar_lea.vmem (%p52_p3), %s963_s0, %s678_s25  ;;  %s195_s30 = scalar_lea.vmem (%p52_p3), [#allocation3], %s677_s26 }
   0xf   : > { %v217_v0 = vld [vmem:[%s200_s29] sm:$0xf] (%p52_p3)  ;;  %v219_v1 = vld [vmem:[%s200_s29 + $0x24] sm:$0xf] (%p52_p3)  ;;  %v221_v2 = vld [vmem:[%s200_s29 + $0x48] sm:$0xf] (%p52_p3) }
  0x10   : > { %218 = vst [vmem:[%s195_s30] sm:$0xf] (%p52_p3), %v217_v0  ;;  %v223_v3 = vld [vmem:[%s200_s29 + $0x6c] sm:$0xf] (%p52_p3) }
  0x11   : > { %220 = vst [vmem:[%s195_s30 + $0x4] sm:$0xf] %v219_v1 }
  0x12   : > { %222 = vst [vmem:[%s195_s30 + $0x8] sm:$0xf] %v221_v2 }
  0x13   : > { %224 = vst [vmem:[%s195_s30 + $0xc] sm:$0xf] %v223_v3 }
  0x14 PF: > { %p679_p6 = scmp.ge.s32.totalorder %s839_s19, 1  ;;  %p267_p7 = scmp.lt.s32.totalorder %s839_s19, 10 }
  0x16   : > { %p268_p8 = pnand %p679_p6, %p267_p7 }
  0x17   : > { %s274_s5 = sand.u32 (!%p268_p8), 1, %s823_s15   ;;  %s681_s6 = sshll.u32 (!%p268_p8), %s831_s17, 4 }
  0x18   : > { %271 = sbr.rel (%p268_p8) target bundleno = 236 (0xec), region = 65  ;;  %s914_s7 = sshll.u32 (!%p268_p8), %s274_s5, 4 }
  0x19   : > { %p324_p9 = scmp.lt.s32.totalorder (!%p268_p8), %s681_s6, 143  ;;  %s276_s12 = scalar_lea.vmem (!%p268_p8), [#allocation3], %s914_s7 }
  0x1a   : > { %p683_p10 = scmp.ne.s32.totalorder (!%p268_p8), %s831_s17, 0 }
  0x1d   : > { %s975_s6 = smov (!%p324_p9, %s681_s6), 143  ;;  %356 = sbr.rel (%p683_p10) target bundleno = 39 (0x27), region = 73 }
  0x1e   : > { %s682_s8 = sshll.u32 %s975_s6, 2 }
  0x1f   : > { %s919_s11 = scalar_lea.vmem %s964_s1, %s682_s8 }
  0x22   : > { %v841_v4 = vmov 0.0  }
  0x23   : > { %357 = vst [vmem:[#allocation2 + $0x10] sm:$0xff] %v841_v4 }
  0x24   : > { %358 = vst [vmem:[#allocation2] sm:$0xff] %v841_v4 }
  0x25   : > { %359 = vst [vmem:[#allocation2 + $0x18] sm:$0xff] %v841_v4 }
  0x26   : > { %360 = vst [vmem:[#allocation2 + $0x8] sm:$0xff] %v841_v4 }
  0x27 PF: > { %v740_v5 = vld [vmem:[%s919_s11 + $0x38] sm:$0xff]  ;;  %v739_v6 = vld [vmem:[%s919_s11 + $0x30] sm:$0xff]  ;;  %v738_v7 = vld [vmem:[%s919_s11 + $0x28] sm:$0xff]  ;;  %p724_p11 = scmp.ne.s32.totalorder %s831_s17, 8 }
  0x28   : > { %445 = vmatpush.bf16.msra.mxu0 %v740_v5  ;;  %752 = vmatpush.bf16.msra.mxu1 %v740_v5  ;;  %v737_v8 = vld [vmem:[%s919_s11 + $0x20] sm:$0xff]  ;;  %v736_v9 = vld [vmem:[%s919_s11 + $0x18] sm:$0xff]  ;;  %v735_v10 = vld [vmem:[%s919_s11 + $0x10] sm:$0xff] }
  0x29   : > { %v734_v11 = vld [vmem:[%s919_s11 + $0x8] sm:$0xff]  ;;  %v733_v12 = vld [vmem:[%s919_s11] sm:$0xff] }
  0x2a   : > { %v731_v13 = vld [vmem:[%s276_s12] sm:$0xff]  ;;  %v732_v14 = vld [vmem:[%s276_s12 + $0x8] sm:$0xff] }
  0x2b   : > { %v361_v15 = vld [vmem:[#allocation2 + $0x10] sm:$0xff]  ;;  %v362_v21 = vld [vmem:[#allocation2] sm:$0xff] }
  0x2c   : > { %446 = vmatpush.bf16.msra.mxu0 %v739_v6  ;;  %753 = vmatpush.bf16.msra.mxu1 %v739_v6  ;;  %v363_v16 = vld [vmem:[#allocation2 + $0x18] sm:$0xff] }
  0x2d   : > { %v364_v22 = vld [vmem:[#allocation2 + $0x8] sm:$0xff] }
  0x30   : > { %447 = vmatpush.bf16.msra.mxu0 %v738_v7  ;;  %754 = vmatpush.bf16.msra.mxu1 %v738_v7 }
  0x34   : > { %448 = vmatpush.bf16.msra.mxu0 %v737_v8  ;;  %755 = vmatpush.bf16.msra.mxu1 %v737_v8 }
  0x38   : > { %449 = vmatpush.bf16.msra.mxu0 %v736_v9  ;;  %756 = vmatpush.bf16.msra.mxu1 %v736_v9 }
  0x3c   : > { %450 = vmatpush.bf16.msra.mxu0 %v735_v10  ;;  %757 = vmatpush.bf16.msra.mxu1 %v735_v10 }
  0x40   : > { %451 = vmatpush.bf16.msra.mxu0 %v734_v11  ;;  %758 = vmatpush.bf16.msra.mxu1 %v734_v11 }
  0x44   : > { %452 = vmatpush.bf16.msra.mxu0 %v733_v12  ;;  %759 = vmatpush.bf16.msra.mxu1 %v733_v12 }
  0x47   : > { %453 = vmatmul.bf16.vlgmr.msra.gmra.mxu0 %v731_v13  ;;  %458 = vmatmul.bf16.vlgmr.msra.gmra.mxu1 %v732_v14 }
  0xc4   : > { %v454_v17 = vpop.f32.mrf.mxu0  ;;  %v459_v18 = vpop.f32.mrf.mxu1 }
  0xc5   : > { %v464_v19 = vadd.f32 %v454_v17, %v361_v15  ;;  %v466_v20 = vadd.f32 %v459_v18, %v363_v16 }
  0xc7   : > { %468 = vst [vmem:[#allocation2 + $0x10] sm:$0xff] %v464_v19 }
  0xc8   : > { %470 = vst [vmem:[#allocation2 + $0x18] sm:$0xff] %v466_v20 }
  0xcc   : > { %v456_v23 = vpop.f32.mrf.mxu0  ;;  %v461_v24 = vpop.f32.mrf.mxu1  ;;  %475 = sbr.rel (%p724_p11) target bundleno = 236 (0xec), region = 77 }
  0xcd   : > { %v465_v25 = vadd.f32 %v456_v23, %v362_v21  ;;  %v467_v26 = vadd.f32 %v461_v24, %v364_v22 }
  0xcf   : > { %469 = vst [vmem:[#allocation2] sm:$0xff] %v465_v25 }
  0xd0   : > { %471 = vst [vmem:[#allocation2 + $0x8] sm:$0xff] %v467_v26 }
  0xd1   : > { %v476_v27 = vld [vmem:[#allocation2 + $0x10] sm:$0xff]  ;;  %v478_v29 = vld [vmem:[#allocation2 + $0x18] sm:$0xff] }
  0xd2   : > { %v490_v32 = vmul.f32 %v476_v27, %v476_v27  ;;  %v492_v34 = vmul.f32 %v478_v29, %v478_v29 }
  0xd6   : > { %v477_v28 = vld [vmem:[#allocation2] sm:$0xff] }
  0xd7   : > { %v479_v30 = vld [vmem:[#allocation2 + $0x8] sm:$0xff]  ;;  %v480_v31 = vadd.f32 %v477_v28, %v476_v27  ;;  %v491_v33 = vmul.f32 %v477_v28, %v477_v28  ;;  %v744_v35 = vpack.c.bf16 %v477_v28, %v476_v27 }
  0xd8   : > { %v749_v36 = vpack.c.bf16 %v479_v30, %v478_v29  ;;  %v493_v38 = vmul.f32 %v479_v30, %v479_v30 }
  0xd9   : > { %v481_v37 = vadd.f32 %v480_v31, %v478_v29  ;;  %v494_v39 = vadd.f32 %v491_v33, %v490_v32  ;;  %745 = vst [vmem:[%s965_s2] sm:$0xff] %v744_v35  }
  0xda   : > { %751 = vst [vmem:[%s965_s2 + $0x8] sm:$0xff] %v749_v36  }
  0xdb   : > { %v482_v40 = vadd.f32 %v481_v37, %v479_v30  ;;  %v495_v41 = vadd.f32 %v494_v39, %v492_v34 }
  0xdd   : > { %v483_v42 = vrot.slane %v482_v40, 4  ;;  %v496_v43 = vadd.f32 %v495_v41, %v493_v38 }
  0xdf   : > { %v484_v44 = vadd.f32 %v483_v42, %v482_v40  ;;  %v497_v45 = vrot.slane %v496_v43, 4 }
  0xe1   : > { %v485_v46 = vrot.slane %v484_v44, 2  ;;  %v498_v47 = vadd.f32 %v497_v45, %v496_v43 }
  0xe3   : > { %v486_v48 = vadd.f32 %v485_v46, %v484_v44  ;;  %v499_v49 = vrot.slane %v498_v47, 2 }
  0xe5   : > { %v487_v50 = vrot.slane %v486_v48, 1  ;;  %v500_v51 = vadd.f32 %v499_v49, %v498_v47 }
  0xe7   : > { %v488_v52 = vadd.f32 %v487_v50, %v486_v48  ;;  %v501_v53 = vrot.slane %v500_v51, 1 }
  0xe9   : > { %489 = vst [vmem:[%s966_s3] sm:$0x1] %v488_v52  ;;  %v502_v54 = vadd.f32 %v501_v53, %v500_v51 }
  0xeb   : > { %503 = vst [vmem:[%s967_s4] sm:$0x1] %v502_v54 }
  0xec PF: > { %s15_s19 = sadd.s32 1, %s839_s19   ;;  %s968_s15 = smov %s827_s16 }
  0xed   : > { %p12_p12 = scmp.ge.s32.totalorder %s15_s19, 11   ;;  %s969_s16 = smov %s902_s23 }
  0xee   : > { %s970_s17 = smov %s835_s18  ;;  %s971_s18 = smov %s973_s20 }
  0xef   :  { %14 = sbr.rel (!%p12_p12) target bundleno = 3 (0x3), region = 139 }

// kernel: model_pretrain_forward.63
= control target key start
LH: loop header
LB: loop body
LE: loop exit
PB: predicated region body
PF: predicated region fallthrough
CT: control target
= control target key end

     0   :  { %s110_s0 = inlined_call_operand.vmem [shape: bf16[32,128], index: 0, kind: input, shape index: {}]   ;;  %s111_s1 = inlined_call_operand.vmem [shape: f32[1,128], index: 1, kind: input, shape index: {}]   ;;  %s112_s2 = inlined_call_operand.vmem [shape: f32[1,128], index: 2, kind: input, shape index: {}]   ;;  %s113_s3 = inlined_call_operand.vmem [shape: bf16[32,128], index: 3, kind: output, shape index: {}]  }
   0x1   :  { %v51_v0 = vld [vmem:[%s110_s0] sm:$0xff]   ;;  %v68_v5 = vld [vmem:[%s110_s0 + $0x8] sm:$0xff]  }
   0x2   :  { %v70_v1 = vld [vmem:[%s111_s1] ss:$0 sm:$0xff]  ;;  %v52_v2 = vunpack.c.l.bf16 %v51_v0  ;;  %v53_v3 = vunpack.c.h.bf16 %v51_v0  ;;  %v56_v6 = vunpack.c.l.bf16 %v68_v5  ;;  %v57_v7 = vunpack.c.h.bf16 %v68_v5 }
   0x3   :  { %v71_v4 = vld [vmem:[%s112_s2] ss:$0 sm:$0xff] }
   0x4   :  { %v26_v8 = vmul.f32 %v70_v1, %v52_v2  ;;  %v27_v9 = vmul.f32 %v70_v1, %v53_v3  ;;  %v28_v10 = vmul.f32 %v70_v1, %v56_v6  ;;  %v29_v11 = vmul.f32 %v70_v1, %v57_v7 }
   0x6   :  { %v34_v12 = vadd.f32 %v71_v4, %v26_v8  ;;  %v35_v13 = vadd.f32 %v71_v4, %v27_v9  ;;  %v36_v14 = vadd.f32 %v71_v4, %v28_v10  ;;  %v37_v15 = vadd.f32 %v71_v4, %v29_v11 }
   0x8   :  { %v61_v16 = vpack.c.bf16 %v35_v13, %v34_v12  ;;  %v66_v17 = vpack.c.bf16 %v37_v15, %v36_v14 }
   0xa   :  { %62 = vst [vmem:[%s113_s3] sm:$0xff] %v61_v16  }
   0xb   :  { %69 = vst [vmem:[%s113_s3 + $0x8] sm:$0xff] %v66_v17  }

// kernel: model_pretrain_forward.62
= control target key start
LH: loop header
LB: loop body
LE: loop exit
PB: predicated region body
PF: predicated region fallthrough
CT: control target
= control target key end

     0   :  { %s320_s1 = inlined_call_operand.vmem [shape: bf16[128,128], index: 1, kind: input, shape index: {}]   ;;  %s321_s0 = inlined_call_operand.vmem [shape: bf16[32,128], index: 0, kind: input, shape index: {}]   ;;  %s322_s2 = inlined_call_operand.vmem [shape: bf16[32,128], index: 2, kind: output, shape index: {0}]   ;;  %s323_s3 = inlined_call_operand.vmem [shape: f32[1,1,128], index: 3, kind: output, shape index: {1}]   ;;  %s324_s4 = inlined_call_operand.vmem [shape: f32[1,1,128], index: 4, kind: output, shape index: {2}]  }
   0x1   :  { %v233_v0 = vld [vmem:[%s320_s1 + $0x38] sm:$0xff]  ;;  %v232_v1 = vld [vmem:[%s320_s1 + $0x30] sm:$0xff]  ;;  %v231_v2 = vld [vmem:[%s320_s1 + $0x28] sm:$0xff] }
   0x2   :  { %106 = vmatpush.bf16.msra.mxu0 %v233_v0  ;;  %245 = vmatpush.bf16.msra.mxu1 %v233_v0  ;;  %v230_v3 = vld [vmem:[%s320_s1 + $0x20] sm:$0xff]  ;;  %v229_v4 = vld [vmem:[%s320_s1 + $0x18] sm:$0xff]  ;;  %v228_v5 = vld [vmem:[%s320_s1 + $0x10] sm:$0xff] }
   0x3   :  { %v227_v6 = vld [vmem:[%s320_s1 + $0x8] sm:$0xff]  ;;  %v226_v7 = vld [vmem:[%s320_s1] sm:$0xff] }
   0x4   :  { %v224_v8 = vld [vmem:[%s321_s0] sm:$0xff]  ;;  %v225_v9 = vld [vmem:[%s321_s0 + $0x8] sm:$0xff] }
   0x6   :  { %107 = vmatpush.bf16.msra.mxu0 %v232_v1  ;;  %246 = vmatpush.bf16.msra.mxu1 %v232_v1 }
   0xa   :  { %108 = vmatpush.bf16.msra.mxu0 %v231_v2  ;;  %247 = vmatpush.bf16.msra.mxu1 %v231_v2 }
   0xe   :  { %109 = vmatpush.bf16.msra.mxu0 %v230_v3  ;;  %248 = vmatpush.bf16.msra.mxu1 %v230_v3 }
  0x12   :  { %110 = vmatpush.bf16.msra.mxu0 %v229_v4  ;;  %249 = vmatpush.bf16.msra.mxu1 %v229_v4 }
  0x16   :  { %111 = vmatpush.bf16.msra.mxu0 %v228_v5  ;;  %250 = vmatpush.bf16.msra.mxu1 %v228_v5 }
  0x1a   :  { %112 = vmatpush.bf16.msra.mxu0 %v227_v6  ;;  %251 = vmatpush.bf16.msra.mxu1 %v227_v6 }
  0x1e   :  { %113 = vmatpush.bf16.msra.mxu0 %v226_v7  ;;  %252 = vmatpush.bf16.msra.mxu1 %v226_v7 }
  0x21   :  { %114 = vmatmul.bf16.vlgmr.msra.gmra.mxu0 %v224_v8  ;;  %119 = vmatmul.bf16.vlgmr.msra.gmra.mxu1 %v225_v9 }
  0x9e   :  { %v115_v10 = vpop.f32.mrf.mxu0  ;;  %v120_v11 = vpop.f32.mrf.mxu1 }
  0x9f   :  { %v150_v14 = vmul.f32 %v115_v10, %v115_v10  ;;  %v152_v19 = vmul.f32 %v120_v11, %v120_v11 }
  0xa6   :  { %v117_v12 = vpop.f32.mrf.mxu0  ;;  %v122_v13 = vpop.f32.mrf.mxu1 }
  0xa7   :  { %v140_v15 = vadd.f32 %v117_v12, %v115_v10  ;;  %v151_v16 = vmul.f32 %v117_v12, %v117_v12  ;;  %v237_v17 = vpack.c.bf16 %v117_v12, %v115_v10  ;;  %v242_v18 = vpack.c.bf16 %v122_v13, %v120_v11 }
  0xa8   :  { %v153_v23 = vmul.f32 %v122_v13, %v122_v13 }
  0xa9   :  { %v154_v20 = vadd.f32 %v151_v16, %v150_v14  ;;  %238 = vst [vmem:[%s322_s2] sm:$0xff] %v237_v17   ;;  %v141_v21 = vadd.f32 %v140_v15, %v120_v11 }
  0xaa   :  { %244 = vst [vmem:[%s322_s2 + $0x8] sm:$0xff] %v242_v18  }
  0xab   :  { %v142_v22 = vadd.f32 %v141_v21, %v122_v13  ;;  %v155_v24 = vadd.f32 %v154_v20, %v152_v19 }
  0xad   :  { %v143_v25 = vrot.slane %v142_v22, 4  ;;  %v156_v26 = vadd.f32 %v155_v24, %v153_v23 }
  0xaf   :  { %v144_v27 = vadd.f32 %v143_v25, %v142_v22  ;;  %v157_v28 = vrot.slane %v156_v26, 4 }
  0xb1   :  { %v145_v29 = vrot.slane %v144_v27, 2  ;;  %v158_v30 = vadd.f32 %v157_v28, %v156_v26 }
  0xb3   :  { %v146_v31 = vadd.f32 %v145_v29, %v144_v27  ;;  %v159_v32 = vrot.slane %v158_v30, 2 }
  0xb5   :  { %v147_v33 = vrot.slane %v146_v31, 1  ;;  %v160_v34 = vadd.f32 %v159_v32, %v158_v30 }
  0xb7   :  { %v148_v35 = vadd.f32 %v147_v33, %v146_v31  ;;  %v161_v36 = vrot.slane %v160_v34, 1 }
  0xb9   :  { %149 = vst [vmem:[%s323_s3] sm:$0x1] %v148_v35  ;;  %v162_v37 = vadd.f32 %v161_v36, %v160_v34 }
  0xbb   :  { %163 = vst [vmem:[%s324_s4] sm:$0x1] %v162_v37 }

// kernel: model_pretrain_forward.64
= control target key start
LH: loop header
LB: loop body
LE: loop exit
PB: predicated region body
PF: predicated region fallthrough
CT: control target
= control target key end

     0   :  { %s149_s0 = inlined_call_operand.vmem [shape: bf16[32,128], index: 0, kind: input, shape index: {}]   ;;  %s150_s1 = inlined_call_operand.vmem [shape: bf16[32,128], index: 1, kind: input, shape index: {}]   ;;  %s151_s2 = inlined_call_operand.vmem [shape: f32[1,128], index: 2, kind: input, shape index: {}]   ;;  %s152_s3 = inlined_call_operand.vmem [shape: f32[1,128], index: 3, kind: input, shape index: {}]   ;;  %s153_s4 = inlined_call_operand.vmem [shape: bf16[32,128], index: 4, kind: output, shape index: {}]  }
   0x1   :  { %v70_v0 = vld [vmem:[%s149_s0] sm:$0xff]   ;;  %v95_v8 = vld [vmem:[%s149_s0 + $0x8] sm:$0xff]  }
   0x2   :  { %v98_v1 = vld [vmem:[%s151_s2] ss:$0 sm:$0xff]  ;;  %v71_v2 = vunpack.c.l.bf16 %v70_v0  ;;  %v72_v3 = vunpack.c.h.bf16 %v70_v0  ;;  %v96_v9 = vld [vmem:[%s150_s1 + $0x8] sm:$0xff]   ;;  %v75_v12 = vunpack.c.l.bf16 %v95_v8  ;;  %v76_v13 = vunpack.c.h.bf16 %v95_v8 }
   0x3   :  { %v99_v4 = vld [vmem:[%s152_s3] ss:$0 sm:$0xff]  ;;  %v83_v14 = vunpack.c.l.bf16 %v96_v9  ;;  %v84_v15 = vunpack.c.h.bf16 %v96_v9 }
   0x4   :  { %v78_v5 = vld [vmem:[%s150_s1] sm:$0xff]   ;;  %v29_v10 = vmul.f32 %v98_v1, %v71_v2  ;;  %v30_v11 = vmul.f32 %v98_v1, %v72_v3  ;;  %v31_v18 = vmul.f32 %v98_v1, %v75_v12  ;;  %v32_v19 = vmul.f32 %v98_v1, %v76_v13 }
   0x5   :  { %v79_v6 = vunpack.c.l.bf16 %v78_v5  ;;  %v80_v7 = vunpack.c.h.bf16 %v78_v5 }
   0x6   :  { %v37_v16 = vadd.f32 %v99_v4, %v29_v10  ;;  %v38_v17 = vadd.f32 %v99_v4, %v30_v11  ;;  %v39_v22 = vadd.f32 %v99_v4, %v31_v18  ;;  %v40_v23 = vadd.f32 %v99_v4, %v32_v19 }
   0x8   :  { %v49_v20 = vadd.f32 %v79_v6, %v37_v16  ;;  %v50_v21 = vadd.f32 %v80_v7, %v38_v17  ;;  %v51_v26 = vadd.f32 %v83_v14, %v39_v22  ;;  %v52_v27 = vadd.f32 %v84_v15, %v40_v23 }
   0xa   :  { %v53_v24 = vmax.f32 %v49_v20, 0.0  ;;  %v54_v25 = vmax.f32 %v50_v21, 0.0  ;;  %v55_v29 = vmax.f32 %v51_v26, 0.0  ;;  %v56_v30 = vmax.f32 %v52_v27, 0.0 }
   0xc   :  { %v88_v28 = vpack.c.bf16 %v54_v25, %v53_v24  ;;  %v93_v31 = vpack.c.bf16 %v56_v30, %v55_v29 }
   0xe   :  { %89 = vst [vmem:[%s153_s4] sm:$0xff] %v88_v28  }
   0xf   :  { %97 = vst [vmem:[%s153_s4 + $0x8] sm:$0xff] %v93_v31  }

// kernel: model_pretrain_forward.69
= control target key start
LH: loop header
LB: loop body
LE: loop exit
PB: predicated region body
PF: predicated region fallthrough
CT: control target
= control target key end

     0   :  { %s986_s15 = smov 0   ;;  %s988_s16 = smov 0   ;;  %s1104_s0 = inlined_call_operand.vmem [shape: bf16[16,1152], index: 0, kind: input, shape index: {}]   ;;  %s1105_s1 = inlined_call_operand.vmem [shape: bf16[1152,256], index: 1, kind: input, shape index: {}]   ;;  %s1106_s2 = inlined_call_operand.vmem [shape: bf16[16,256], index: 2, kind: output, shape index: {0}]   ;;  %s1107_s3 = inlined_call_operand.vmem [shape: f32[1,1,256], index: 3, kind: output, shape index: {1}]   ;;  %s1108_s4 = inlined_call_operand.vmem [shape: f32[1,1,256], index: 4, kind: output, shape index: {2}]  }
   0x1   :  { %s990_s17 = smov 0   ;;  %s992_s18 = smov 0  }
   0x2   :  { %s994_s19 = smov 0  }
   0x3 LB: > { %s27_s20 = sadd.s32 1, %s954_s18  ;;  %p50_p1 = scmp.ne.s32.totalorder %s946_s16, %s942_s15  ;;  %s958_s19 = sphi %s994_s19, %s15_s19   ;;  %s954_s18 = sphi %s992_s18, %s1112_s18   ;;  %s950_s17 = sphi %s990_s17, %s1111_s17   ;;  %s946_s16 = sphi %s988_s16, %s1110_s16   ;;  %s942_s15 = sphi %s986_s15, %s1109_s15  }
   0x4   : > { %p28_p0 = scmp.ge.s32.totalorder %s27_s20, 9  ;;  %p51_p2 = scmp.eq.s32.totalorder %s958_s19, 0 }
   0x5   : > { %s43_s22 = sadd.s32 1, %s946_s16  ;;  %p775_p5 = scmp.ge.s32.totalorder %s958_s19, 9 }
   0x6   : > { %s1114_s20 = smov (%p28_p0, %s27_s20), 0  ;;  %p52_p3 = por %p51_p2, %p50_p1 }
   0x7   : > { %s39_s21 = ssub.s32 %s954_s18, %s1114_s20  ;;  %188 = sbr.rel (%p775_p5) target bundleno = 18 (0x12), region = 16 }
   0x8   : > { %p41_p4 = scmp.eq.s32.totalorder %s39_s21, 0 }
   0xa   : > { %s1021_s23 = scalar_select %p41_p4, %s946_s16, %s43_s22  }
   0xc   : > { %191 = sbr.rel (!%p52_p3) target bundleno = 18 (0x12), region = 20  ;;  %s193_s24 = sand.u32 (%p52_p3), 1, %s946_s16  }
   0xd   : > { %s777_s25 = sshll.u32 (%p52_p3), %s954_s18, 2  ;;  %s776_s26 = sshll.u32 (%p52_p3), %s193_s24, 3 }
   0xe   : > { %s200_s29 = scalar_lea.vmem (%p52_p3), %s1104_s0, %s777_s25  ;;  %s195_s30 = scalar_lea.vmem (%p52_p3), [#allocation3], %s776_s26 }
   0xf   : > { %v217_v0 = vld [vmem:[%s200_s29] sm:$0xf] (%p52_p3)  ;;  %v219_v1 = vld [vmem:[%s200_s29 + $0x24] sm:$0xf] (%p52_p3) }
  0x10   : > { %218 = vst [vmem:[%s195_s30] sm:$0xf] (%p52_p3), %v217_v0 }
  0x11   : > { %220 = vst [vmem:[%s195_s30 + $0x4] sm:$0xf] %v219_v1 }
  0x12 PF: > { %p778_p6 = scmp.ge.s32.totalorder %s958_s19, 1  ;;  %p262_p7 = scmp.lt.s32.totalorder %s958_s19, 10 }
  0x14   : > { %p263_p8 = pnand %p778_p6, %p262_p7 }
  0x15   : > { %s269_s5 = sand.u32 (!%p263_p8), 1, %s942_s15   ;;  %s780_s6 = sshll.u32 (!%p263_p8), %s950_s17, 4 }
  0x16   : > { %266 = sbr.rel (%p263_p8) target bundleno = 236 (0xec), region = 65  ;;  %s1033_s7 = sshll.u32 (!%p263_p8), %s269_s5, 3 }
  0x17   : > { %p328_p9 = scmp.lt.s32.totalorder (!%p263_p8), %s780_s6, 143  ;;  %s271_s12 = scalar_lea.vmem (!%p263_p8), [#allocation3], %s1033_s7 }
  0x18   : > { %p783_p10 = scmp.ne.s32.totalorder (!%p263_p8), %s950_s17, 0 }
  0x1b   : > { %s1116_s6 = smov (!%p328_p9, %s780_s6), 143  ;;  %371 = sbr.rel (%p783_p10) target bundleno = 37 (0x25), region = 73 }
  0x1c   : > { %s861_s8 = sshll.u32 %s1116_s6, 3 }
  0x1d   : > { %s1038_s11 = scalar_lea.vmem %s1105_s1, %s861_s8 }
  0x20   : > { %v960_v2 = vmov 0.0  }
  0x21   : > { %372 = vst [vmem:[#allocation2 + $0x10] sm:$0xff] %v960_v2 }
  0x22   : > { %373 = vst [vmem:[#allocation2] sm:$0xff] %v960_v2 }
  0x23   : > { %374 = vst [vmem:[#allocation2 + $0x18] sm:$0xff] %v960_v2 }
  0x24   : > { %375 = vst [vmem:[#allocation2 + $0x8] sm:$0xff] %v960_v2 }
  0x25 PF: > { %v846_v3 = vld [vmem:[%s1038_s11 + $0x70] sm:$0xf]  ;;  %v878_v4 = vld [vmem:[%s1038_s11 + $0x74] sm:$0xf0]  ;;  %v877_v5 = vld [vmem:[%s1038_s11 + $0x74] sm:$0xf] }
  0x26   : > { %v847_v6 = vor.u32 %v878_v4, %v846_v3  ;;  %v848_v7 = vld [vmem:[%s1038_s11 + $0x78] sm:$0xf0]  ;;  %v838_v8 = vld [vmem:[%s1038_s11 + $0x60] sm:$0xf]  ;;  %v876_v9 = vld [vmem:[%s1038_s11 + $0x64] sm:$0xf0] }
  0x27   : > { %v851_v10 = vor.u32 %v877_v5, %v848_v7  ;;  %v875_v11 = vld [vmem:[%s1038_s11 + $0x64] sm:$0xf]  ;;  %v840_v12 = vld [vmem:[%s1038_s11 + $0x68] sm:$0xf0]  ;;  %v839_v13 = vor.u32 %v876_v9, %v838_v8  ;;  %v830_v15 = vld [vmem:[%s1038_s11 + $0x50] sm:$0xf] }
  0x28   : > { %484 = vmatpush.bf16.msra.mxu0 %v847_v6  ;;  %v843_v14 = vor.u32 %v875_v11, %v840_v12  ;;  %v874_v16 = vld [vmem:[%s1038_s11 + $0x54] sm:$0xf0]  ;;  %v873_v17 = vld [vmem:[%s1038_s11 + $0x54] sm:$0xf]  ;;  %v832_v18 = vld [vmem:[%s1038_s11 + $0x58] sm:$0xf0] }
  0x29   : > { %498 = vmatpush.bf16.msra.mxu1 %v851_v10  ;;  %v831_v19 = vor.u32 %v874_v16, %v830_v15  ;;  %v835_v20 = vor.u32 %v873_v17, %v832_v18  ;;  %v822_v21 = vld [vmem:[%s1038_s11 + $0x40] sm:$0xf]  ;;  %v872_v22 = vld [vmem:[%s1038_s11 + $0x44] sm:$0xf0]  ;;  %v871_v23 = vld [vmem:[%s1038_s11 + $0x44] sm:$0xf] }
  0x2a   : > { %v824_v24 = vld [vmem:[%s1038_s11 + $0x48] sm:$0xf0]  ;;  %v823_v25 = vor.u32 %v872_v22, %v822_v21  ;;  %v814_v27 = vld [vmem:[%s1038_s11 + $0x30] sm:$0xf]  ;;  %v870_v28 = vld [vmem:[%s1038_s11 + $0x34] sm:$0xf0] }
  0x2b   : > { %v827_v26 = vor.u32 %v871_v23, %v824_v24  ;;  %v869_v29 = vld [vmem:[%s1038_s11 + $0x34] sm:$0xf]  ;;  %v816_v30 = vld [vmem:[%s1038_s11 + $0x38] sm:$0xf0]  ;;  %v815_v31 = vor.u32 %v870_v28, %v814_v27  ;;  %v806_v33 = vld [vmem:[%s1038_s11 + $0x20] sm:$0xf] }
  0x2c   : > { %485 = vmatpush.bf16.msra.mxu0 %v839_v13  ;;  %v819_v32 = vor.u32 %v869_v29, %v816_v30  ;;  %v868_v34 = vld [vmem:[%s1038_s11 + $0x24] sm:$0xf0]  ;;  %v867_v35 = vld [vmem:[%s1038_s11 + $0x24] sm:$0xf]  ;;  %v808_v36 = vld [vmem:[%s1038_s11 + $0x28] sm:$0xf0] }
  0x2d   : > { %499 = vmatpush.bf16.msra.mxu1 %v843_v14  ;;  %v807_v37 = vor.u32 %v868_v34, %v806_v33  ;;  %v811_v38 = vor.u32 %v867_v35, %v808_v36  ;;  %v798_v39 = vld [vmem:[%s1038_s11 + $0x10] sm:$0xf]  ;;  %v866_v40 = vld [vmem:[%s1038_s11 + $0x14] sm:$0xf0]  ;;  %v865_v41 = vld [vmem:[%s1038_s11 + $0x14] sm:$0xf] }
  0x2e   : > { %v800_v42 = vld [vmem:[%s1038_s11 + $0x18] sm:$0xf0]  ;;  %v799_v43 = vor.u32 %v866_v40, %v798_v39  ;;  %v790_v45 = vld [vmem:[%s1038_s11] sm:$0xf]  ;;  %v864_v46 = vld [vmem:[%s1038_s11 + $0x4] sm:$0xf0] }
  0x2f   : > { %v803_v44 = vor.u32 %v865_v41, %v800_v42  ;;  %v863_v47 = vld [vmem:[%s1038_s11 + $0x4] sm:$0xf]  ;;  %v792_v48 = vld [vmem:[%s1038_s11 + $0x8] sm:$0xf0]  ;;  %v791_v49 = vor.u32 %v864_v46, %v790_v45  ;;  %v376_v52 = vld [vmem:[#allocation2 + $0x10] sm:$0xff]  ;;  %p852_p11 = scmp.ne.s32.totalorder %s950_s17, 8 }
  0x30   : > { %486 = vmatpush.bf16.msra.mxu0 %v831_v19  ;;  %v795_v50 = vor.u32 %v863_v47, %v792_v48  ;;  %v862_v51 = vld [vmem:[%s271_s12] sm:$0xff]  ;;  %v378_v58 = vld [vmem:[#allocation2 + $0x18] sm:$0xff] }
  0x31   : > { %500 = vmatpush.bf16.msra.mxu1 %v835_v20  ;;  %v377_v53 = vld [vmem:[#allocation2] sm:$0xff]  ;;  %v379_v59 = vld [vmem:[#allocation2 + $0x8] sm:$0xff] }
  0x34   : > { %487 = vmatpush.bf16.msra.mxu0 %v823_v25 }
  0x35   : > { %501 = vmatpush.bf16.msra.mxu1 %v827_v26 }
  0x38   : > { %488 = vmatpush.bf16.msra.mxu0 %v815_v31 }
  0x39   : > { %502 = vmatpush.bf16.msra.mxu1 %v819_v32 }
  0x3c   : > { %489 = vmatpush.bf16.msra.mxu0 %v807_v37 }
  0x3d   : > { %503 = vmatpush.bf16.msra.mxu1 %v811_v38 }
  0x40   : > { %490 = vmatpush.bf16.msra.mxu0 %v799_v43 }
  0x41   : > { %504 = vmatpush.bf16.msra.mxu1 %v803_v44 }
  0x44   : > { %491 = vmatpush.bf16.msra.mxu0 %v791_v49 }
  0x45   : > { %505 = vmatpush.bf16.msra.mxu1 %v795_v50 }
  0x47   : > { %492 = vmatmul.bf16.vlgmr.msra.gmra.mxu0 %v862_v51 }
  0x48   : > { %506 = vmatmul.bf16.vlgmr.msra.gmra.mxu1 %v862_v51 }
  0xc4   : > { %v493_v54 = vpop.f32.mrf.mxu0 }
  0xc5   : > { %v512_v55 = vadd.f32 %v493_v54, %v376_v52  ;;  %v507_v56 = vpop.f32.mrf.mxu1 }
  0xc6   : > { %v513_v57 = vadd.f32 %v507_v56, %v377_v53 }
  0xc7   : > { %516 = vst [vmem:[#allocation2 + $0x10] sm:$0xff] %v512_v55 }
  0xc8   : > { %517 = vst [vmem:[#allocation2] sm:$0xff] %v513_v57 }
  0xcc   : > { %v495_v60 = vpop.f32.mrf.mxu0  ;;  %523 = sbr.rel (%p852_p11) target bundleno = 236 (0xec), region = 77 }
  0xcd   : > { %v514_v61 = vadd.f32 %v495_v60, %v378_v58  ;;  %v509_v62 = vpop.f32.mrf.mxu1 }
  0xce   : > { %v515_v63 = vadd.f32 %v509_v62, %v379_v59 }
  0xcf   : > { %518 = vst [vmem:[#allocation2 + $0x18] sm:$0xff] %v514_v61 }
  0xd0   : > { %519 = vst [vmem:[#allocation2 + $0x8] sm:$0xff] %v515_v63 }
  0xd1   : > { %v524_v0 = vld [vmem:[#allocation2 + $0x10] sm:$0xff]  ;;  %v525_v1 = vld [vmem:[#allocation2] sm:$0xff]  ;;  %v548_v31 = vlaneseq  ;;  %vm545_vm0 = vcmask 1040384  }
  0xd2   : > { %v553_v5 = vmul.f32 %v524_v0, %v524_v0  ;;  %v554_v6 = vmul.f32 %v525_v1, %v525_v1  ;;  %v577_v10 = vpack.c.bf16 %v525_v1, %v524_v0 }
  0xd3   : > { %vm550_vm1 = vcmp.lt.s32.totalorder %v548_v31, 256 }
  0xd4   : > { %579 = vst [vmem:[%s1106_s2] sm:$0xff] %v577_v10 }
  0xd6   : > { %v526_v2 = vld [vmem:[#allocation2 + $0x18] sm:$0xff] }
  0xd7   : > { %v527_v3 = vld [vmem:[#allocation2 + $0x8] sm:$0xff]  ;;  %v528_v4 = vadd.f32 %v526_v2, %v524_v0  ;;  %v555_v7 = vmul.f32 %v526_v2, %v526_v2 }
  0xd8   : > { %v535_v8 = vadd.f32 %v527_v3, %v525_v1  ;;  %v556_v9 = vmul.f32 %v527_v3, %v527_v3  ;;  %v578_v13 = vpack.c.bf16 %v527_v3, %v526_v2 }
  0xd9   : > { %v529_v11 = vrot.slane %v528_v4, 4  ;;  %v557_v12 = vadd.f32 %v555_v7, %v553_v5 }
  0xda   : > { %v536_v14 = vrot.slane %v535_v8, 4  ;;  %v564_v15 = vadd.f32 %v556_v9, %v554_v6  ;;  %580 = vst [vmem:[%s1106_s2 + $0x8] sm:$0xff] %v578_v13 }
  0xdb   : > { %v530_v16 = vadd.f32 %v529_v11, %v528_v4  ;;  %v558_v17 = vrot.slane %v557_v12, 4 }
  0xdc   : > { %v537_v18 = vadd.f32 %v536_v14, %v535_v8  ;;  %v565_v19 = vrot.slane %v564_v15, 4 }
  0xdd   : > { %v531_v20 = vrot.slane %v530_v16, 2  ;;  %v559_v21 = vadd.f32 %v558_v17, %v557_v12 }
  0xde   : > { %v538_v22 = vrot.slane %v537_v18, 2  ;;  %v566_v23 = vadd.f32 %v565_v19, %v564_v15 }
  0xdf   : > { %v532_v24 = vadd.f32 %v531_v20, %v530_v16  ;;  %v560_v25 = vrot.slane %v559_v21, 2 }
  0xe0   : > { %v539_v26 = vadd.f32 %v538_v22, %v537_v18  ;;  %v567_v27 = vrot.slane %v566_v23, 2 }
  0xe1   : > { %v533_v28 = vrot.slane %v532_v24, 1  ;;  %v561_v29 = vadd.f32 %v560_v25, %v559_v21 }
  0xe2   : > { %v540_v30 = vrot.slane %v539_v26, 1  ;;  %v568_v32 = vadd.f32 %v567_v27, %v566_v23 }
  0xe3   : > { %v562_v33 = vrot.slane %v561_v29, 1  ;;  %v534_v34 = vadd.f32 %v533_v28, %v532_v24 }
  0xe4   : > { %v541_v35 = vadd.f32 %v540_v30, %v539_v26  ;;  %v569_v36 = vrot.slane %v568_v32, 1 }
  0xe5   : > { %v563_v38 = vadd.f32 %v562_v33, %v561_v29 }
  0xe6   : > { %v544_v37 = vrot.slane %v541_v35, 7  ;;  %v570_v39 = vadd.f32 %v569_v36, %v568_v32 }
  0xe8   : > { %v546_v40 = vsel %vm545_vm0, %v534_v34, %v544_v37  ;;  %v573_v41 = vrot.slane %v570_v39, 7 }
  0xe9   : > { %552 = vst.msk [vmem:[%s1107_s3] sm:$0x3] %vm550_vm1, %v546_v40 }
  0xea   : > { %v574_v42 = vsel %vm545_vm0, %v563_v38, %v573_v41 }
  0xeb   : > { %576 = vst.msk [vmem:[%s1108_s4] sm:$0x3] %vm550_vm1, %v574_v42 }
  0xec PF: > { %s15_s19 = sadd.s32 1, %s958_s19   ;;  %s1109_s15 = smov %s946_s16 }
  0xed   : > { %p12_p12 = scmp.ge.s32.totalorder %s15_s19, 11   ;;  %s1110_s16 = smov %s1021_s23 }
  0xee   : > { %s1111_s17 = smov %s954_s18  ;;  %s1112_s18 = smov %s1114_s20 }
  0xef   :  { %14 = sbr.rel (!%p12_p12) target bundleno = 3 (0x3), region = 139 }

// kernel: model_pretrain_forward.70
= control target key start
LH: loop header
LB: loop body
LE: loop exit
PB: predicated region body
PF: predicated region fallthrough
CT: control target
= control target key end

     0   :  { %s73_s0 = inlined_call_operand.vmem [shape: bf16[8,256], index: 0, kind: input, shape index: {}]   ;;  %s74_s1 = inlined_call_operand.vmem [shape: f32[1,256], index: 1, kind: input, shape index: {}]   ;;  %s75_s2 = inlined_call_operand.vmem [shape: f32[1,256], index: 2, kind: input, shape index: {}]   ;;  %s76_s3 = inlined_call_operand.vmem [shape: bf16[8,256], index: 3, kind: output, shape index: {}]  }
   0x1   :  { %v14_v0 = vld [vmem:[%s73_s0] sm:$0xff] }
   0x2   :  { %v17_v1 = vld [vmem:[%s74_s1] sm:$0x3]  ;;  %v15_v3 = vunpack.c.l.bf16 %v14_v0  ;;  %v16_v4 = vunpack.c.h.bf16 %v14_v0 }
   0x3   :  { %v25_v2 = vld [vmem:[%s75_s2] sm:$0x3]  ;;  %v19_v5 = vperm.slane %v17_v1, 0  ;;  %v20_v6 = vperm.slane %v17_v1, 1 }
   0x4   :  { %v27_v7 = vperm.slane %v25_v2, 0  ;;  %v28_v8 = vperm.slane %v25_v2, 1 }
   0x5   :  { %v23_v9 = vmul.f32 %v19_v5, %v15_v3  ;;  %v24_v10 = vmul.f32 %v20_v6, %v16_v4 }
   0x7   :  { %v31_v11 = vadd.f32 %v27_v7, %v23_v9  ;;  %v32_v12 = vadd.f32 %v28_v8, %v24_v10 }
   0x9   :  { %v33_v13 = vmax.f32 %v31_v11, 0.0  ;;  %v34_v14 = vmax.f32 %v32_v12, 0.0 }
   0xb   :  { %v35_v15 = vpack.c.bf16 %v34_v14, %v33_v13 }
   0xd   :  { %36 = vst [vmem:[%s76_s3] sm:$0xff] %v35_v15 }

// kernel: model_pretrain_forward.71
= control target key start
LH: loop header
LB: loop body
LE: loop exit
PB: predicated region body
PF: predicated region fallthrough
CT: control target
= control target key end

     0   :  { %s1196_s15 = smov 0   ;;  %s1198_s16 = smov 0   ;;  %s1347_s0 = inlined_call_operand.vmem [shape: bf16[16,2304], index: 0, kind: input, shape index: {}]   ;;  %s1348_s1 = inlined_call_operand.vmem [shape: bf16[2304,256], index: 1, kind: input, shape index: {}]   ;;  %s1349_s2 = inlined_call_operand.vmem [shape: bf16[16,256], index: 2, kind: output, shape index: {0}]   ;;  %s1350_s3 = inlined_call_operand.vmem [shape: f32[1,1,256], index: 3, kind: output, shape index: {1}]   ;;  %s1351_s4 = inlined_call_operand.vmem [shape: f32[1,1,256], index: 4, kind: output, shape index: {2}]  }
   0x1   :  { %s1200_s17 = smov 0   ;;  %s1202_s18 = smov 0  }
   0x2   :  { %s1204_s19 = smov 0  }
   0x3 LB: > { %s27_s20 = sadd.s32 1, %s1164_s18  ;;  %p50_p1 = scmp.ne.s32.totalorder %s1156_s16, %s1152_s15  ;;  %s1168_s19 = sphi %s1204_s19, %s15_s19   ;;  %s1164_s18 = sphi %s1202_s18, %s1355_s18   ;;  %s1160_s17 = sphi %s1200_s17, %s1354_s17   ;;  %s1156_s16 = sphi %s1198_s16, %s1353_s16   ;;  %s1152_s15 = sphi %s1196_s15, %s1352_s15  }
   0x4   : > { %p28_p0 = scmp.ge.s32.totalorder %s27_s20, 9  ;;  %p51_p2 = scmp.eq.s32.totalorder %s1168_s19, 0 }
   0x5   : > { %s43_s22 = sadd.s32 1, %s1156_s16  ;;  %p898_p5 = scmp.ge.s32.totalorder %s1168_s19, 9 }
   0x6   : > { %s1357_s20 = smov (%p28_p0, %s27_s20), 0  ;;  %p52_p3 = por %p51_p2, %p50_p1 }
   0x7   : > { %s39_s21 = ssub.s32 %s1164_s18, %s1357_s20  ;;  %188 = sbr.rel (%p898_p5) target bundleno = 18 (0x12), region = 16 }
   0x8   : > { %p41_p4 = scmp.eq.s32.totalorder %s39_s21, 0 }
   0xa   : > { %s1231_s23 = scalar_select %p41_p4, %s1156_s16, %s43_s22  }
   0xc   : > { %191 = sbr.rel (!%p52_p3) target bundleno = 18 (0x12), region = 20  ;;  %s193_s24 = sand.u32 (%p52_p3), 1, %s1156_s16  }
   0xd   : > { %s1053_s25 = sshll.u32 (%p52_p3), %s1164_s18, 3  ;;  %s899_s26 = sshll.u32 (%p52_p3), %s193_s24, 4 }
   0xe   : > { %s201_s29 = scalar_lea.vmem (%p52_p3), %s1347_s0, %s1053_s25  ;;  %s195_s30 = scalar_lea.vmem (%p52_p3), [#allocation3], %s899_s26 }
   0xf   : > { %v232_v0 = vld [vmem:[%s201_s29] sm:$0xff] (%p52_p3)  ;;  %v234_v1 = vld [vmem:[%s201_s29 + $0x48] sm:$0xff] (%p52_p3) }
  0x10   : > { %233 = vst [vmem:[%s195_s30] sm:$0xff] (%p52_p3), %v232_v0 }
  0x11   : > { %235 = vst [vmem:[%s195_s30 + $0x8] sm:$0xff] %v234_v1 }
  0x12 PF: > { %p902_p6 = scmp.ge.s32.totalorder %s1168_s19, 1  ;;  %p255_p7 = scmp.lt.s32.totalorder %s1168_s19, 10 }
  0x14   : > { %p256_p8 = pnand %p902_p6, %p255_p7 }
  0x15   : > { %s262_s5 = sand.u32 (!%p256_p8), 1, %s1152_s15   ;;  %s904_s6 = sshll.u32 (!%p256_p8), %s1160_s17, 5 }
  0x16   : > { %259 = sbr.rel (%p256_p8) target bundleno = 245 (0xf5), region = 62  ;;  %s903_s7 = sshll.u32 (!%p256_p8), %s262_s5, 4 }
  0x17   : > { %p322_p9 = scmp.lt.s32.totalorder (!%p256_p8), %s904_s6, 287  ;;  %s1248_s12 = scalar_lea.vmem (!%p256_p8), [#allocation3], %s903_s7 }
  0x18   : > { %p907_p10 = scmp.ne.s32.totalorder (!%p256_p8), %s1160_s17, 0 }
  0x1b   : > { %s1359_s6 = smov (!%p322_p9, %s904_s6), 287  ;;  %365 = sbr.rel (%p907_p10) target bundleno = 37 (0x25), region = 70 }
  0x1c   : > { %s1054_s8 = sshll.u32 %s1359_s6, 3 }
  0x1d   : > { %s1246_s11 = scalar_lea.vmem %s1348_s1, %s1054_s8 }
  0x20   : > { %v1170_v2 = vmov 0.0  }
  0x21   : > { %366 = vst [vmem:[#allocation2 + $0x10] sm:$0xff] %v1170_v2 }
  0x22   : > { %367 = vst [vmem:[#allocation2] sm:$0xff] %v1170_v2 }
  0x23   : > { %368 = vst [vmem:[#allocation2 + $0x18] sm:$0xff] %v1170_v2 }
  0x24   : > { %369 = vst [vmem:[#allocation2 + $0x8] sm:$0xff] %v1170_v2 }
  0x25 PF: > { %v974_v3 = vld [vmem:[%s1246_s11 + $0x70] sm:$0xf]  ;;  %v1072_v4 = vld [vmem:[%s1246_s11 + $0x74] sm:$0xf0]  ;;  %v1071_v8 = vld [vmem:[%s1246_s11 + $0x74] sm:$0xf] }
  0x26   : > { %v1038_v5 = vld [vmem:[%s1246_s11 + $0xf0] sm:$0xf]  ;;  %v975_v6 = vor.u32 %v1072_v4, %v974_v3  ;;  %v1088_v7 = vld [vmem:[%s1246_s11 + $0xf4] sm:$0xf0]  ;;  %v976_v9 = vld [vmem:[%s1246_s11 + $0x78] sm:$0xf0] }
  0x27   : > { %v1039_v10 = vor.u32 %v1088_v7, %v1038_v5  ;;  %v979_v11 = vor.u32 %v1071_v8, %v976_v9  ;;  %v1087_v12 = vld [vmem:[%s1246_s11 + $0xf4] sm:$0xf]  ;;  %v1040_v13 = vld [vmem:[%s1246_s11 + $0xf8] sm:$0xf0]  ;;  %v966_v14 = vld [vmem:[%s1246_s11 + $0x60] sm:$0xf] }
  0x28   : > { %578 = vmatpush.bf16.msra.mxu0 %v975_v6  ;;  %v1043_v15 = vor.u32 %v1087_v12, %v1040_v13  ;;  %v1070_v16 = vld [vmem:[%s1246_s11 + $0x64] sm:$0xf0]  ;;  %v1030_v17 = vld [vmem:[%s1246_s11 + $0xe0] sm:$0xf]  ;;  %v1069_v21 = vld [vmem:[%s1246_s11 + $0x64] sm:$0xf] }
  0x29   : > { %v1086_v18 = vld [vmem:[%s1246_s11 + $0xe4] sm:$0xf0]  ;;  %592 = vmatpush.bf16.msra.mxu1 %v1039_v10  ;;  %606 = vmatpush.bf16.msra.mxu2 %v979_v11  ;;  %v967_v19 = vor.u32 %v1070_v16, %v966_v14  ;;  %v968_v22 = vld [vmem:[%s1246_s11 + $0x68] sm:$0xf0]  ;;  %v1085_v23 = vld [vmem:[%s1246_s11 + $0xe4] sm:$0xf] }
  0x2a   : > { %v1031_v20 = vor.u32 %v1086_v18, %v1030_v17  ;;  %620 = vmatpush.bf16.msra.mxu3 %v1043_v15  ;;  %v971_v24 = vor.u32 %v1069_v21, %v968_v22  ;;  %v1032_v25 = vld [vmem:[%s1246_s11 + $0xe8] sm:$0xf0]  ;;  %v958_v26 = vld [vmem:[%s1246_s11 + $0x50] sm:$0xf]  ;;  %v1068_v27 = vld [vmem:[%s1246_s11 + $0x54] sm:$0xf0] }
  0x2b   : > { %v1035_v28 = vor.u32 %v1085_v23, %v1032_v25  ;;  %v1022_v29 = vld [vmem:[%s1246_s11 + $0xd0] sm:$0xf]  ;;  %v1084_v30 = vld [vmem:[%s1246_s11 + $0xd4] sm:$0xf0]  ;;  %v1067_v31 = vld [vmem:[%s1246_s11 + $0x54] sm:$0xf]  ;;  %v959_v32 = vor.u32 %v1068_v27, %v958_v26 }
  0x2c   : > { %579 = vmatpush.bf16.msra.mxu0 %v967_v19  ;;  %v960_v33 = vld [vmem:[%s1246_s11 + $0x58] sm:$0xf0]  ;;  %v1083_v34 = vld [vmem:[%s1246_s11 + $0xd4] sm:$0xf]  ;;  %v1023_v36 = vor.u32 %v1084_v30, %v1022_v29  ;;  %v950_v38 = vld [vmem:[%s1246_s11 + $0x40] sm:$0xf] }
  0x2d   : > { %v1024_v35 = vld [vmem:[%s1246_s11 + $0xd8] sm:$0xf0]  ;;  %593 = vmatpush.bf16.msra.mxu1 %v1031_v20  ;;  %607 = vmatpush.bf16.msra.mxu2 %v971_v24  ;;  %v963_v37 = vor.u32 %v1067_v31, %v960_v33  ;;  %v1066_v39 = vld [vmem:[%s1246_s11 + $0x44] sm:$0xf0]  ;;  %v1014_v40 = vld [vmem:[%s1246_s11 + $0xc0] sm:$0xf] }
  0x2e   : > { %621 = vmatpush.bf16.msra.mxu3 %v1035_v28  ;;  %v1027_v41 = vor.u32 %v1083_v34, %v1024_v35  ;;  %v1082_v42 = vld [vmem:[%s1246_s11 + $0xc4] sm:$0xf0]  ;;  %v1065_v43 = vld [vmem:[%s1246_s11 + $0x44] sm:$0xf]  ;;  %v952_v44 = vld [vmem:[%s1246_s11 + $0x48] sm:$0xf0]  ;;  %v951_v47 = vor.u32 %v1066_v39, %v950_v38 }
  0x2f   : > { %v1081_v45 = vld [vmem:[%s1246_s11 + $0xc4] sm:$0xf]  ;;  %v1016_v46 = vld [vmem:[%s1246_s11 + $0xc8] sm:$0xf0]  ;;  %v1015_v48 = vor.u32 %v1082_v42, %v1014_v40  ;;  %v955_v49 = vor.u32 %v1065_v43, %v952_v44  ;;  %v942_v50 = vld [vmem:[%s1246_s11 + $0x30] sm:$0xf] }
  0x30   : > { %580 = vmatpush.bf16.msra.mxu0 %v959_v32  ;;  %v1064_v51 = vld [vmem:[%s1246_s11 + $0x34] sm:$0xf0]  ;;  %v1006_v52 = vld [vmem:[%s1246_s11 + $0xb0] sm:$0xf]  ;;  %v1019_v53 = vor.u32 %v1081_v45, %v1016_v46  ;;  %v1063_v55 = vld [vmem:[%s1246_s11 + $0x34] sm:$0xf] }
  0x31   : > { %594 = vmatpush.bf16.msra.mxu1 %v1023_v36  ;;  %608 = vmatpush.bf16.msra.mxu2 %v963_v37  ;;  %v1080_v54 = vld [vmem:[%s1246_s11 + $0xb4] sm:$0xf0]  ;;  %v944_v56 = vld [vmem:[%s1246_s11 + $0x38] sm:$0xf0]  ;;  %v1079_v57 = vld [vmem:[%s1246_s11 + $0xb4] sm:$0xf]  ;;  %v943_v59 = vor.u32 %v1064_v51, %v942_v50 }
  0x32   : > { %622 = vmatpush.bf16.msra.mxu3 %v1027_v41  ;;  %v1008_v58 = vld [vmem:[%s1246_s11 + $0xb8] sm:$0xf0]  ;;  %v1007_v60 = vor.u32 %v1080_v54, %v1006_v52  ;;  %v947_v61 = vor.u32 %v1063_v55, %v944_v56  ;;  %v934_v62 = vld [vmem:[%s1246_s11 + $0x20] sm:$0xf]  ;;  %v1062_v63 = vld [vmem:[%s1246_s11 + $0x24] sm:$0xf0] }
  0x33   : > { %v998_v0 = vld [vmem:[%s1246_s11 + $0xa0] sm:$0xf]  ;;  %v1011_v1 = vor.u32 %v1079_v57, %v1008_v58  ;;  %v1078_v2 = vld [vmem:[%s1246_s11 + $0xa4] sm:$0xf0]  ;;  %v1061_v3 = vld [vmem:[%s1246_s11 + $0x24] sm:$0xf]  ;;  %v935_v7 = vor.u32 %v1062_v63, %v934_v62 }
  0x34   : > { %581 = vmatpush.bf16.msra.mxu0 %v951_v47  ;;  %v936_v4 = vld [vmem:[%s1246_s11 + $0x28] sm:$0xf0]  ;;  %v1077_v5 = vld [vmem:[%s1246_s11 + $0xa4] sm:$0xf]  ;;  %v999_v8 = vor.u32 %v1078_v2, %v998_v0  ;;  %v926_v10 = vld [vmem:[%s1246_s11 + $0x10] sm:$0xf] }
  0x35   : > { %595 = vmatpush.bf16.msra.mxu1 %v1015_v48  ;;  %609 = vmatpush.bf16.msra.mxu2 %v955_v49  ;;  %v1000_v6 = vld [vmem:[%s1246_s11 + $0xa8] sm:$0xf0]  ;;  %v939_v9 = vor.u32 %v1061_v3, %v936_v4  ;;  %v1060_v11 = vld [vmem:[%s1246_s11 + $0x14] sm:$0xf0]  ;;  %v990_v12 = vld [vmem:[%s1246_s11 + $0x90] sm:$0xf] }
  0x36   : > { %623 = vmatpush.bf16.msra.mxu3 %v1019_v53  ;;  %v1003_v13 = vor.u32 %v1077_v5, %v1000_v6  ;;  %v1076_v14 = vld [vmem:[%s1246_s11 + $0x94] sm:$0xf0]  ;;  %v1059_v15 = vld [vmem:[%s1246_s11 + $0x14] sm:$0xf]  ;;  %v928_v16 = vld [vmem:[%s1246_s11 + $0x18] sm:$0xf0]  ;;  %v927_v19 = vor.u32 %v1060_v11, %v926_v10 }
  0x37   : > { %v1075_v17 = vld [vmem:[%s1246_s11 + $0x94] sm:$0xf]  ;;  %v992_v18 = vld [vmem:[%s1246_s11 + $0x98] sm:$0xf0]  ;;  %v991_v20 = vor.u32 %v1076_v14, %v990_v12  ;;  %v931_v21 = vor.u32 %v1059_v15, %v928_v16  ;;  %v918_v22 = vld [vmem:[%s1246_s11] sm:$0xf] }
  0x38   : > { %582 = vmatpush.bf16.msra.mxu0 %v943_v59  ;;  %v1058_v23 = vld [vmem:[%s1246_s11 + $0x4] sm:$0xf0]  ;;  %v982_v24 = vld [vmem:[%s1246_s11 + $0x80] sm:$0xf]  ;;  %v995_v25 = vor.u32 %v1075_v17, %v992_v18  ;;  %v1057_v27 = vld [vmem:[%s1246_s11 + $0x4] sm:$0xf] }
  0x39   : > { %596 = vmatpush.bf16.msra.mxu1 %v1007_v60  ;;  %610 = vmatpush.bf16.msra.mxu2 %v947_v61  ;;  %v1074_v26 = vld [vmem:[%s1246_s11 + $0x84] sm:$0xf0]  ;;  %v920_v28 = vld [vmem:[%s1246_s11 + $0x8] sm:$0xf0]  ;;  %v1073_v29 = vld [vmem:[%s1246_s11 + $0x84] sm:$0xf]  ;;  %v919_v31 = vor.u32 %v1058_v23, %v918_v22 }
  0x3a   : > { %624 = vmatpush.bf16.msra.mxu3 %v1011_v1  ;;  %v984_v30 = vld [vmem:[%s1246_s11 + $0x88] sm:$0xf0]  ;;  %v910_v32 = vld [vmem:[%s1248_s12] sm:$0xf]  ;;  %v1056_v33 = vld [vmem:[%s1248_s12 + $0x4] sm:$0xf0]  ;;  %v983_v34 = vor.u32 %v1074_v26, %v982_v24  ;;  %v923_v35 = vor.u32 %v1057_v27, %v920_v28 }
  0x3b   : > { %v1055_v36 = vld [vmem:[%s1248_s12 + $0x4] sm:$0xf]  ;;  %v912_v37 = vld [vmem:[%s1248_s12 + $0x8] sm:$0xf0]  ;;  %v987_v38 = vor.u32 %v1073_v29, %v984_v30  ;;  %v911_v39 = vor.u32 %v1056_v33, %v910_v32  ;;  %p1044_p11 = scmp.ne.s32.totalorder %s1160_s17, 8 }
  0x3c   : > { %583 = vmatpush.bf16.msra.mxu0 %v935_v7  ;;  %v915_v40 = vor.u32 %v1055_v36, %v912_v37  ;;  %v370_v42 = vld [vmem:[#allocation2 + $0x10] sm:$0xff]  ;;  %v371_v47 = vld [vmem:[#allocation2] sm:$0xff]  ;;  %v372_v51 = vld [vmem:[#allocation2 + $0x18] sm:$0xff] }
  0x3d   : > { %597 = vmatpush.bf16.msra.mxu1 %v999_v8  ;;  %611 = vmatpush.bf16.msra.mxu2 %v939_v9  ;;  %v373_v57 = vld [vmem:[#allocation2 + $0x8] sm:$0xff] }
  0x3e   : > { %625 = vmatpush.bf16.msra.mxu3 %v1003_v13 }
  0x40   : > { %584 = vmatpush.bf16.msra.mxu0 %v927_v19 }
  0x41   : > { %598 = vmatpush.bf16.msra.mxu1 %v991_v20  ;;  %612 = vmatpush.bf16.msra.mxu2 %v931_v21 }
  0x42   : > { %626 = vmatpush.bf16.msra.mxu3 %v995_v25 }
  0x44   : > { %585 = vmatpush.bf16.msra.mxu0 %v919_v31 }
  0x45   : > { %599 = vmatpush.bf16.msra.mxu1 %v983_v34  ;;  %613 = vmatpush.bf16.msra.mxu2 %v923_v35 }
  0x46   : > { %627 = vmatpush.bf16.msra.mxu3 %v987_v38 }
  0x47   : > { %586 = vmatmul.bf16.vlgmr.msra.gmra.mxu0 %v911_v39 }
  0x48   : > { %600 = vmatmul.bf16.vlgmr.msra.gmra.mxu1 %v915_v40  ;;  %614 = vmatmul.bf16.vlgmr.msra.gmra.mxu2 %v911_v39 }
  0x49   : > { %628 = vmatmul.bf16.vlgmr.msra.gmra.mxu3 %v915_v40 }
  0xc4   : > { %v587_v41 = vpop.f32.mrf.mxu0 }
  0xc5   : > { %v601_v43 = vpop.f32.mrf.mxu1 }
  0xc6   : > { %v602_v44 = vadd.f32 %v601_v43, %v587_v41 }
  0xc8   : > { %v634_v45 = vadd.f32 %v602_v44, %v370_v42 }
  0xca   : > { %638 = vst [vmem:[#allocation2 + $0x10] sm:$0xff] %v634_v45 }
  0xcb   : > { %v615_v46 = vpop.f32.mrf.mxu2 }
  0xcc   : > { %v629_v48 = vpop.f32.mrf.mxu3  ;;  %v589_v49 = vpop.f32.mrf.mxu0 }
  0xcd   : > { %v630_v50 = vadd.f32 %v629_v48, %v615_v46  ;;  %v603_v52 = vpop.f32.mrf.mxu1 }
  0xce   : > { %v604_v53 = vadd.f32 %v603_v52, %v589_v49 }
  0xcf   : > { %v635_v54 = vadd.f32 %v630_v50, %v371_v47 }
  0xd0   : > { %v636_v55 = vadd.f32 %v604_v53, %v372_v51 }
  0xd1   : > { %639 = vst [vmem:[#allocation2] sm:$0xff] %v635_v54 }
  0xd2   : > { %640 = vst [vmem:[#allocation2 + $0x18] sm:$0xff] %v636_v55 }
  0xd3   : > { %v617_v56 = vpop.f32.mrf.mxu2 }
  0xd4   : > { %v631_v58 = vpop.f32.mrf.mxu3 }
  0xd5   : > { %v632_v59 = vadd.f32 %v631_v58, %v617_v56  ;;  %645 = sbr.rel (%p1044_p11) target bundleno = 245 (0xf5), region = 74 }
  0xd7   : > { %v637_v60 = vadd.f32 %v632_v59, %v373_v57 }
  0xd9   : > { %641 = vst [vmem:[#allocation2 + $0x8] sm:$0xff] %v637_v60 }
  0xda   : > { %v646_v61 = vld [vmem:[#allocation2 + $0x10] sm:$0xff]  ;;  %v647_v62 = vld [vmem:[#allocation2] sm:$0xff]  ;;  %v648_v63 = vld [vmem:[#allocation2 + $0x18] sm:$0xff]  ;;  %v670_v28 = vlaneseq  ;;  %vm667_vm0 = vcmask 1040384  }
  0xdb   : > { %v650_v1 = vadd.f32 %v648_v63, %v646_v61  ;;  %v675_v2 = vmul.f32 %v646_v61, %v646_v61  ;;  %v676_v3 = vmul.f32 %v647_v62, %v647_v62  ;;  %v677_v4 = vmul.f32 %v648_v63, %v648_v63 }
  0xdc   : > { %v699_v7 = vpack.c.bf16 %v647_v62, %v646_v61  ;;  %vm672_vm1 = vcmp.lt.s32.totalorder %v670_v28, 256 }
  0xdd   : > { %v651_v8 = vrot.slane %v650_v1, 4  ;;  %v679_v9 = vadd.f32 %v677_v4, %v675_v2 }
  0xde   : > { %701 = vst [vmem:[%s1349_s2] sm:$0xff] %v699_v7 }
  0xdf   : > { %v652_v13 = vadd.f32 %v651_v8, %v650_v1  ;;  %v680_v14 = vrot.slane %v679_v9, 4 }
  0xe0   : > { %v649_v0 = vld [vmem:[#allocation2 + $0x8] sm:$0xff] }
  0xe1   : > { %v657_v5 = vadd.f32 %v649_v0, %v647_v62  ;;  %v678_v6 = vmul.f32 %v649_v0, %v649_v0  ;;  %v700_v10 = vpack.c.bf16 %v649_v0, %v648_v63  ;;  %v653_v17 = vrot.slane %v652_v13, 2 }
  0xe2   : > { %v681_v18 = vadd.f32 %v680_v14, %v679_v9 }
  0xe3   : > { %v658_v11 = vrot.slane %v657_v5, 4  ;;  %v686_v12 = vadd.f32 %v678_v6, %v676_v3  ;;  %702 = vst [vmem:[%s1349_s2 + $0x8] sm:$0xff] %v700_v10  ;;  %v654_v21 = vadd.f32 %v653_v17, %v652_v13 }
  0xe4   : > { %v682_v22 = vrot.slane %v681_v18, 2 }
  0xe5   : > { %v659_v15 = vadd.f32 %v658_v11, %v657_v5  ;;  %v687_v16 = vrot.slane %v686_v12, 4  ;;  %v655_v25 = vrot.slane %v654_v21, 1 }
  0xe6   : > { %v683_v26 = vadd.f32 %v682_v22, %v681_v18 }
  0xe7   : > { %v660_v19 = vrot.slane %v659_v15, 2  ;;  %v688_v20 = vadd.f32 %v687_v16, %v686_v12  ;;  %v656_v31 = vadd.f32 %v655_v25, %v654_v21 }
  0xe8   : > { %v684_v30 = vrot.slane %v683_v26, 1 }
  0xe9   : > { %v661_v23 = vadd.f32 %v660_v19, %v659_v15  ;;  %v689_v24 = vrot.slane %v688_v20, 2 }
  0xea   : > { %v685_v35 = vadd.f32 %v684_v30, %v683_v26 }
  0xeb   : > { %v662_v27 = vrot.slane %v661_v23, 1  ;;  %v690_v29 = vadd.f32 %v689_v24, %v688_v20 }
  0xed   : > { %v663_v32 = vadd.f32 %v662_v27, %v661_v23  ;;  %v691_v33 = vrot.slane %v690_v29, 1 }
  0xef   : > { %v666_v34 = vrot.slane %v663_v32, 7  ;;  %v692_v36 = vadd.f32 %v691_v33, %v690_v29 }
  0xf1   : > { %v668_v37 = vsel %vm667_vm0, %v656_v31, %v666_v34  ;;  %v695_v38 = vrot.slane %v692_v36, 7 }
  0xf2   : > { %674 = vst.msk [vmem:[%s1350_s3] sm:$0x3] %vm672_vm1, %v668_v37 }
  0xf3   : > { %v696_v39 = vsel %vm667_vm0, %v685_v35, %v695_v38 }
  0xf4   : > { %698 = vst.msk [vmem:[%s1351_s4] sm:$0x3] %vm672_vm1, %v696_v39 }
  0xf5 PF: > { %s15_s19 = sadd.s32 1, %s1168_s19   ;;  %s1352_s15 = smov %s1156_s16 }
  0xf6   : > { %p12_p12 = scmp.ge.s32.totalorder %s15_s19, 11   ;;  %s1353_s16 = smov %s1231_s23 }
  0xf7   : > { %s1354_s17 = smov %s1164_s18  ;;  %s1355_s18 = smov %s1357_s20 }
  0xf8   :  { %14 = sbr.rel (!%p12_p12) target bundleno = 3 (0x3), region = 136 }

// kernel: model_pretrain_forward.73
= control target key start
LH: loop header
LB: loop body
LE: loop exit
PB: predicated region body
PF: predicated region fallthrough
CT: control target
= control target key end

     0   :  { %s71_s0 = inlined_call_operand.vmem [shape: bf16[8,256], index: 0, kind: input, shape index: {}]   ;;  %s72_s1 = inlined_call_operand.vmem [shape: f32[1,256], index: 1, kind: input, shape index: {}]   ;;  %s73_s2 = inlined_call_operand.vmem [shape: f32[1,256], index: 2, kind: input, shape index: {}]   ;;  %s74_s3 = inlined_call_operand.vmem [shape: bf16[8,256], index: 3, kind: output, shape index: {}]  }
   0x1   :  { %v14_v0 = vld [vmem:[%s71_s0] sm:$0xff] }
   0x2   :  { %v17_v1 = vld [vmem:[%s72_s1] sm:$0x3]  ;;  %v15_v3 = vunpack.c.l.bf16 %v14_v0  ;;  %v16_v4 = vunpack.c.h.bf16 %v14_v0 }
   0x3   :  { %v25_v2 = vld [vmem:[%s73_s2] sm:$0x3]  ;;  %v19_v5 = vperm.slane %v17_v1, 0  ;;  %v20_v6 = vperm.slane %v17_v1, 1 }
   0x4   :  { %v27_v7 = vperm.slane %v25_v2, 0  ;;  %v28_v8 = vperm.slane %v25_v2, 1 }
   0x5   :  { %v23_v9 = vmul.f32 %v19_v5, %v15_v3  ;;  %v24_v10 = vmul.f32 %v20_v6, %v16_v4 }
   0x7   :  { %v31_v11 = vadd.f32 %v27_v7, %v23_v9  ;;  %v32_v12 = vadd.f32 %v28_v8, %v24_v10 }
   0x9   :  { %v33_v13 = vpack.c.bf16 %v32_v12, %v31_v11 }
   0xb   :  { %34 = vst [vmem:[%s74_s3] sm:$0xff] %v33_v13 }

// kernel: model_pretrain_forward.72
= control target key start
LH: loop header
LB: loop body
LE: loop exit
PB: predicated region body
PF: predicated region fallthrough
CT: control target
= control target key end

     0   :  { %vm190_vm0 = vcmask 1040384   ;;  %s459_s1 = inlined_call_operand.vmem [shape: bf16[128,256], index: 1, kind: input, shape index: {}]   ;;  %s460_s0 = inlined_call_operand.vmem [shape: bf16[16,128], index: 0, kind: input, shape index: {}]   ;;  %s461_s2 = inlined_call_operand.vmem [shape: bf16[16,256], index: 2, kind: output, shape index: {0}]   ;;  %s462_s3 = inlined_call_operand.vmem [shape: f32[1,1,256], index: 3, kind: output, shape index: {1}]   ;;  %s463_s4 = inlined_call_operand.vmem [shape: f32[1,1,256], index: 4, kind: output, shape index: {2}]  }
   0x1   :  { %v300_v0 = vld [vmem:[%s459_s1 + $0x70] sm:$0xf]  ;;  %v322_v1 = vld [vmem:[%s459_s1 + $0x74] sm:$0xf0]  ;;  %v321_v2 = vld [vmem:[%s459_s1 + $0x74] sm:$0xf] }
   0x2   :  { %v301_v3 = vor.u32 %v322_v1, %v300_v0  ;;  %v302_v4 = vld [vmem:[%s459_s1 + $0x78] sm:$0xf0]  ;;  %v292_v5 = vld [vmem:[%s459_s1 + $0x60] sm:$0xf]  ;;  %v320_v6 = vld [vmem:[%s459_s1 + $0x64] sm:$0xf0] }
   0x3   :  { %v305_v7 = vor.u32 %v321_v2, %v302_v4  ;;  %v319_v8 = vld [vmem:[%s459_s1 + $0x64] sm:$0xf]  ;;  %v294_v9 = vld [vmem:[%s459_s1 + $0x68] sm:$0xf0]  ;;  %v293_v10 = vor.u32 %v320_v6, %v292_v5  ;;  %v284_v12 = vld [vmem:[%s459_s1 + $0x50] sm:$0xf] }
   0x4   :  { %130 = vmatpush.bf16.msra.mxu0 %v301_v3  ;;  %v297_v11 = vor.u32 %v319_v8, %v294_v9  ;;  %v318_v13 = vld [vmem:[%s459_s1 + $0x54] sm:$0xf0]  ;;  %v317_v14 = vld [vmem:[%s459_s1 + $0x54] sm:$0xf]  ;;  %v286_v15 = vld [vmem:[%s459_s1 + $0x58] sm:$0xf0] }
   0x5   :  { %144 = vmatpush.bf16.msra.mxu1 %v305_v7  ;;  %v285_v16 = vor.u32 %v318_v13, %v284_v12  ;;  %v289_v17 = vor.u32 %v317_v14, %v286_v15  ;;  %v276_v18 = vld [vmem:[%s459_s1 + $0x40] sm:$0xf]  ;;  %v316_v19 = vld [vmem:[%s459_s1 + $0x44] sm:$0xf0]  ;;  %v315_v20 = vld [vmem:[%s459_s1 + $0x44] sm:$0xf] }
   0x6   :  { %v278_v21 = vld [vmem:[%s459_s1 + $0x48] sm:$0xf0]  ;;  %v277_v22 = vor.u32 %v316_v19, %v276_v18  ;;  %v268_v24 = vld [vmem:[%s459_s1 + $0x30] sm:$0xf]  ;;  %v314_v25 = vld [vmem:[%s459_s1 + $0x34] sm:$0xf0] }
   0x7   :  { %v281_v23 = vor.u32 %v315_v20, %v278_v21  ;;  %v313_v26 = vld [vmem:[%s459_s1 + $0x34] sm:$0xf]  ;;  %v270_v27 = vld [vmem:[%s459_s1 + $0x38] sm:$0xf0]  ;;  %v269_v28 = vor.u32 %v314_v25, %v268_v24  ;;  %v260_v30 = vld [vmem:[%s459_s1 + $0x20] sm:$0xf] }
   0x8   :  { %131 = vmatpush.bf16.msra.mxu0 %v293_v10  ;;  %v273_v29 = vor.u32 %v313_v26, %v270_v27  ;;  %v312_v31 = vld [vmem:[%s459_s1 + $0x24] sm:$0xf0]  ;;  %v311_v32 = vld [vmem:[%s459_s1 + $0x24] sm:$0xf]  ;;  %v262_v33 = vld [vmem:[%s459_s1 + $0x28] sm:$0xf0] }
   0x9   :  { %145 = vmatpush.bf16.msra.mxu1 %v297_v11  ;;  %v261_v34 = vor.u32 %v312_v31, %v260_v30  ;;  %v265_v35 = vor.u32 %v311_v32, %v262_v33  ;;  %v252_v36 = vld [vmem:[%s459_s1 + $0x10] sm:$0xf]  ;;  %v310_v37 = vld [vmem:[%s459_s1 + $0x14] sm:$0xf0]  ;;  %v309_v38 = vld [vmem:[%s459_s1 + $0x14] sm:$0xf] }
   0xa   :  { %v254_v39 = vld [vmem:[%s459_s1 + $0x18] sm:$0xf0]  ;;  %v253_v40 = vor.u32 %v310_v37, %v252_v36  ;;  %v244_v42 = vld [vmem:[%s459_s1] sm:$0xf]  ;;  %v308_v43 = vld [vmem:[%s459_s1 + $0x4] sm:$0xf0] }
   0xb   :  { %v257_v41 = vor.u32 %v309_v38, %v254_v39  ;;  %v307_v44 = vld [vmem:[%s459_s1 + $0x4] sm:$0xf]  ;;  %v246_v45 = vld [vmem:[%s459_s1 + $0x8] sm:$0xf0]  ;;  %v245_v46 = vor.u32 %v308_v43, %v244_v42 }
   0xc   :  { %132 = vmatpush.bf16.msra.mxu0 %v285_v16  ;;  %v249_v47 = vor.u32 %v307_v44, %v246_v45  ;;  %v306_v48 = vld [vmem:[%s460_s0] sm:$0xff]  ;;  %v193_v16 = vlaneseq }
   0xd   :  { %146 = vmatpush.bf16.msra.mxu1 %v289_v17 }
   0xe   :  { %vm195_vm1 = vcmp.lt.s32.totalorder %v193_v16, 256 }
  0x10   :  { %133 = vmatpush.bf16.msra.mxu0 %v277_v22 }
  0x11   :  { %147 = vmatpush.bf16.msra.mxu1 %v281_v23 }
  0x14   :  { %134 = vmatpush.bf16.msra.mxu0 %v269_v28 }
  0x15   :  { %148 = vmatpush.bf16.msra.mxu1 %v273_v29 }
  0x18   :  { %135 = vmatpush.bf16.msra.mxu0 %v261_v34 }
  0x19   :  { %149 = vmatpush.bf16.msra.mxu1 %v265_v35 }
  0x1c   :  { %136 = vmatpush.bf16.msra.mxu0 %v253_v40 }
  0x1d   :  { %150 = vmatpush.bf16.msra.mxu1 %v257_v41 }
  0x20   :  { %137 = vmatpush.bf16.msra.mxu0 %v245_v46 }
  0x21   :  { %151 = vmatpush.bf16.msra.mxu1 %v249_v47 }
  0x23   :  { %138 = vmatmul.bf16.vlgmr.msra.gmra.mxu0 %v306_v48 }
  0x24   :  { %152 = vmatmul.bf16.vlgmr.msra.gmra.mxu1 %v306_v48 }
  0xa0   :  { %v139_v49 = vpop.f32.mrf.mxu0 }
  0xa1   :  { %v153_v50 = vpop.f32.mrf.mxu1  ;;  %v198_v53 = vmul.f32 %v139_v49, %v139_v49 }
  0xa2   :  { %v222_v51 = vpack.c.bf16 %v153_v50, %v139_v49  ;;  %v199_v57 = vmul.f32 %v153_v50, %v153_v50 }
  0xa4   :  { %224 = vst [vmem:[%s461_s2] sm:$0xff] %v222_v51 }
  0xa8   :  { %v141_v52 = vpop.f32.mrf.mxu0 }
  0xa9   :  { %v173_v54 = vadd.f32 %v141_v52, %v139_v49  ;;  %v200_v55 = vmul.f32 %v141_v52, %v141_v52  ;;  %v155_v56 = vpop.f32.mrf.mxu1 }
  0xaa   :  { %v180_v58 = vadd.f32 %v155_v56, %v153_v50  ;;  %v201_v59 = vmul.f32 %v155_v56, %v155_v56  ;;  %v223_v60 = vpack.c.bf16 %v155_v56, %v141_v52 }
  0xab   :  { %v174_v61 = vrot.slane %v173_v54, 4  ;;  %v202_v62 = vadd.f32 %v200_v55, %v198_v53 }
  0xac   :  { %v181_v63 = vrot.slane %v180_v58, 4  ;;  %v209_v0 = vadd.f32 %v201_v59, %v199_v57  ;;  %225 = vst [vmem:[%s461_s2 + $0x8] sm:$0xff] %v223_v60 }
  0xad   :  { %v175_v1 = vadd.f32 %v174_v61, %v173_v54  ;;  %v203_v2 = vrot.slane %v202_v62, 4 }
  0xae   :  { %v182_v3 = vadd.f32 %v181_v63, %v180_v58  ;;  %v210_v4 = vrot.slane %v209_v0, 4 }
  0xaf   :  { %v176_v5 = vrot.slane %v175_v1, 2  ;;  %v204_v6 = vadd.f32 %v203_v2, %v202_v62 }
  0xb0   :  { %v183_v7 = vrot.slane %v182_v3, 2  ;;  %v211_v8 = vadd.f32 %v210_v4, %v209_v0 }
  0xb1   :  { %v177_v9 = vadd.f32 %v176_v5, %v175_v1  ;;  %v205_v10 = vrot.slane %v204_v6, 2 }
  0xb2   :  { %v184_v11 = vadd.f32 %v183_v7, %v182_v3  ;;  %v212_v12 = vrot.slane %v211_v8, 2 }
  0xb3   :  { %v206_v13 = vadd.f32 %v205_v10, %v204_v6  ;;  %v178_v14 = vrot.slane %v177_v9, 1 }
  0xb4   :  { %v185_v15 = vrot.slane %v184_v11, 1  ;;  %v213_v17 = vadd.f32 %v212_v12, %v211_v8 }
  0xb5   :  { %v207_v18 = vrot.slane %v206_v13, 1  ;;  %v179_v21 = vadd.f32 %v178_v14, %v177_v9 }
  0xb6   :  { %v186_v19 = vadd.f32 %v185_v15, %v184_v11  ;;  %v214_v20 = vrot.slane %v213_v17, 1 }
  0xb7   :  { %v208_v24 = vadd.f32 %v207_v18, %v206_v13 }
  0xb8   :  { %v189_v22 = vrot.slane %v186_v19, 7  ;;  %v215_v23 = vadd.f32 %v214_v20, %v213_v17 }
  0xba   :  { %v191_v25 = vsel %vm190_vm0, %v179_v21, %v189_v22  ;;  %v218_v26 = vrot.slane %v215_v23, 7 }
  0xbb   :  { %197 = vst.msk [vmem:[%s462_s3] sm:$0x3] %vm195_vm1, %v191_v25 }
  0xbc   :  { %v219_v27 = vsel %vm190_vm0, %v208_v24, %v218_v26 }
  0xbd   :  { %221 = vst.msk [vmem:[%s463_s4] sm:$0x3] %vm195_vm1, %v219_v27 }

// kernel: model_pretrain_forward.74
= control target key start
LH: loop header
LB: loop body
LE: loop exit
PB: predicated region body
PF: predicated region fallthrough
CT: control target
= control target key end

     0   :  { %s89_s0 = inlined_call_operand.vmem [shape: bf16[8,256], index: 0, kind: input, shape index: {}]   ;;  %s90_s1 = inlined_call_operand.vmem [shape: bf16[8,256], index: 1, kind: input, shape index: {}]   ;;  %s91_s2 = inlined_call_operand.vmem [shape: f32[1,256], index: 2, kind: input, shape index: {}]   ;;  %s92_s3 = inlined_call_operand.vmem [shape: f32[1,256], index: 3, kind: input, shape index: {}]   ;;  %s93_s4 = inlined_call_operand.vmem [shape: bf16[8,256], index: 4, kind: output, shape index: {}]  }
   0x1   :  { %v17_v0 = vld [vmem:[%s89_s0] sm:$0xff] }
   0x2   :  { %v20_v1 = vld [vmem:[%s91_s2] sm:$0x3]  ;;  %v18_v3 = vunpack.c.l.bf16 %v17_v0  ;;  %v19_v4 = vunpack.c.h.bf16 %v17_v0 }
   0x3   :  { %v28_v2 = vld [vmem:[%s92_s3] sm:$0x3]  ;;  %v22_v5 = vperm.slane %v20_v1, 0  ;;  %v23_v6 = vperm.slane %v20_v1, 1 }
   0x4   :  { %v36_v7 = vld [vmem:[%s90_s1] sm:$0xff]  ;;  %v30_v8 = vperm.slane %v28_v2, 0  ;;  %v31_v9 = vperm.slane %v28_v2, 1 }
   0x5   :  { %v26_v10 = vmul.f32 %v22_v5, %v18_v3  ;;  %v27_v11 = vmul.f32 %v23_v6, %v19_v4  ;;  %v37_v12 = vunpack.c.l.bf16 %v36_v7  ;;  %v38_v13 = vunpack.c.h.bf16 %v36_v7 }
   0x7   :  { %v34_v14 = vadd.f32 %v30_v8, %v26_v10  ;;  %v35_v15 = vadd.f32 %v31_v9, %v27_v11 }
   0x9   :  { %v39_v16 = vadd.f32 %v37_v12, %v34_v14  ;;  %v40_v17 = vadd.f32 %v38_v13, %v35_v15 }
   0xb   :  { %v41_v18 = vmax.f32 %v39_v16, 0.0  ;;  %v42_v19 = vmax.f32 %v40_v17, 0.0 }
   0xd   :  { %v43_v20 = vpack.c.bf16 %v42_v19, %v41_v18 }
   0xf   :  { %44 = vst [vmem:[%s93_s4] sm:$0xff] %v43_v20 }

// kernel: model_pretrain_forward.79
= control target key start
LH: loop header
LB: loop body
LE: loop exit
PB: predicated region body
PF: predicated region fallthrough
CT: control target
= control target key end

     0   :  { %s1470_s15 = smov 0   ;;  %s1472_s16 = smov 0   ;;  %s1797_s0 = inlined_call_operand.vmem [shape: bf16[16,2304], index: 0, kind: input, shape index: {}]   ;;  %s1798_s1 = inlined_call_operand.vmem [shape: bf16[2304,512], index: 1, kind: input, shape index: {}]   ;;  %s1799_s2 = inlined_call_operand.vmem [shape: bf16[16,512], index: 2, kind: output, shape index: {0}]   ;;  %s1800_s3 = inlined_call_operand.vmem [shape: f32[1,1,512], index: 3, kind: output, shape index: {1}]   ;;  %s1801_s4 = inlined_call_operand.vmem [shape: f32[1,1,512], index: 4, kind: output, shape index: {2}]  }
   0x1   :  { %s1474_s17 = smov 0   ;;  %s1476_s18 = smov 0  }
   0x2   :  { %s1478_s19 = smov 0   ;;  %s1480_s20 = smov 0  }
   0x3   :  { %s1482_s21 = smov 0   ;;  %s1484_s22 = smov 0  }
   0x4   :  { %s1486_s23 = smov 0   ;;  %s1488_s24 = smov 0  }
   0x5   :  { %s1490_s25 = smov 0  }
   0x6 LB: > { %1805 = sst [smem:[#allocation6_spill]] %s1422_s20  ;;  %s1069_s26 = sadd.s32 4294967295, %s1442_s25   ;;  %s1442_s25 = sphi %s1490_s25, %s15_s25   ;;  %s1438_s24 = sphi %s1488_s24, %s1823_s24   ;;  %s1434_s23 = sphi %s1486_s23, %s1822_s23   ;;  %s1430_s22 = sphi %s1484_s22, %s1821_s22   ;;  %s1426_s21 = sphi %s1482_s21, %s1820_s21   ;;  %s1422_s20 = sphi %s1480_s20, %s1813_s20   ;;  %s1418_s19 = sphi %s1478_s19, %s1812_s19   ;;  %s1414_s18 = sphi %s1476_s18, %s1819_s18   ;;  %s1410_s17 = sphi %s1474_s17, %s1818_s17   ;;  %s1406_s16 = sphi %s1472_s16, %s1817_s16   ;;  %s1402_s15 = sphi %s1470_s15, %s1816_s15  }
   0x7   : > { %s27_s27 = sadd.s32 1, %s1434_s23  ;;  %s30_s28 = sadd.s32 1, %s1438_s24 }
   0x8   : > { %p28_p0 = scmp.ge.s32.totalorder %s27_s27, 9  ;;  %s43_s29 = sadd.s32 1, %s1422_s20 }
   0x9   : > { %p50_p1 = scmp.ne.s32.totalorder %s1422_s20, %s1418_s19  ;;  %p51_p2 = scmp.eq.s32.totalorder %s1442_s25, 0 }
   0xa   : > { %s1825_s27 = smov (%p28_p0, %s27_s27), 0  ;;  %s1827_s28 = smov (!%p28_p0, %s30_s28), %s1438_s24 }
   0xb   : > { %1806 = sst [smem:[#allocation7_spill]] %s1825_s27  ;;  %s39_s30 = ssub.s32 %s1434_s23, %s1825_s27 }
   0xc   : > { %p32_p3 = scmp.ge.s32.totalorder %s1827_s28, 2  ;;  %p41_p4 = scmp.eq.s32.totalorder %s39_s30, 0 }
   0xd   : > { %p1537_p5 = por %p51_p2, %p50_p1  ;;  %s71_s6 = sadd.s32 1, %s1414_s18 }
   0xe   : > { %s1829_s28 = smov (%p32_p3, %s1827_s28), 0  ;;  %p78_p6 = scmp.ne.s32.totalorder %s1414_s18, %s1410_s17 }
   0xf   : > { %1808 = sst [smem:[#allocation8_spill]] %s1829_s28  ;;  %s67_s8 = ssub.s32 %s1438_s24, %s1829_s28 }
  0x10   : > { %s1545_s7 = scalar_select %p41_p4, %s1422_s20, %s43_s29  }
  0x11   : > { %s68_s9 = sor.u32 %s67_s8, %s39_s30  ;;  %p97_p7 = scmp.eq.s32.totalorder %s67_s8, 0 }
  0x12   : > { %1809 = sst [smem:[#allocation9_spill]] %s1545_s7  ;;  %p69_p8 = scmp.eq.s32.totalorder %s68_s9, 0 }
  0x13   : > { %p1551_p9 = por %p78_p6, %p51_p2  ;;  %s99_s11 = sadd.s32 1, %s1406_s16 }
  0x14   : > { %p109_p10 = scmp.ne.s32.totalorder %s1406_s16, %s1402_s15  ;;  %p110_p11 = scmp.eq.s32.totalorder %s1069_s26, 17 }
  0x15   : > { %s1559_s12 = scalar_select %p69_p8, %s1414_s18, %s71_s6  }
  0x16   : > { %s1562_s13 = scalar_select %p97_p7, %s1406_s16, %s99_s11  }
  0x17   : > { %p1564_p12 = por %p110_p11, %p109_p10  ;;  %p1072_p13 = scmp.ge.s32.totalorder %s1442_s25, 18 }
  0x19   : > { %188 = sbr.rel (%p1072_p13) target bundleno = 75 (0x4b), region = 16 }
  0x1e   : > { %191 = sbr.rel (!%p1537_p5) target bundleno = 36 (0x24), region = 20  ;;  %s193_s29 = sand.u32 (%p1537_p5), 1, %s1422_s20  }
  0x1f   : > { %s1230_s30 = sshll.u32 (%p1537_p5), %s1434_s23, 3  ;;  %s1073_s8 = sshll.u32 (%p1537_p5), %s193_s29, 4 }
  0x20   : > { %s201_s11 = scalar_lea.vmem (%p1537_p5), %s1797_s0, %s1230_s30  ;;  %s195_s26 = scalar_lea.vmem (%p1537_p5), [#allocation3], %s1073_s8 }
  0x21   : > { %v232_v0 = vld [vmem:[%s201_s11] sm:$0xff] (%p1537_p5)  ;;  %v234_v1 = vld [vmem:[%s201_s11 + $0x48] sm:$0xff] (%p1537_p5) }
  0x22   : > { %233 = vst [vmem:[%s195_s26] sm:$0xff] (%p1537_p5), %v232_v0 }
  0x23   : > { %235 = vst [vmem:[%s195_s26 + $0x8] sm:$0xff] %v234_v1 }
  0x24 PF: > { %241 = sbr.rel (!%p1551_p9) target bundleno = 75 (0x4b), region = 58  ;;  %s243_s5 = sand.u32 (%p1551_p9), 1, %s1414_s18  }
  0x25   : > { %s1078_s28 = sshll.u32 (%p1551_p9), %s1438_s24, 1  ;;  %s1076_s27 = sshll.u32 (%p1551_p9), %s243_s5, 8 }
  0x26   : > { %s1231_s29 = sshll.u32 (%p1551_p9), %s1434_s23, 7 }
  0x27   : > { %s249_s7 = sadd.s32 (%p1551_p9), %s1231_s29, %s1078_s28  ;;  %s1589_s28 = scalar_lea.vmem (%p1551_p9), [#allocation4], %s1076_s27 }
  0x28   : > { %s1080_s20 = sshll.u32 (%p1551_p9), %s249_s7, 2 }
  0x29   : > { %s1584_s9 = scalar_lea.vmem %s1798_s1, %s1080_s20 }
  0x2a   : > { %v342_v2 = vld [vmem:[%s1584_s9] sm:$0xff]  ;;  %v344_v3 = vld [vmem:[%s1584_s9 + $0x10] sm:$0xff] }
  0x2b   : > { %v346_v4 = vld [vmem:[%s1584_s9 + $0x20] sm:$0xff]  ;;  %343 = vst [vmem:[%s1589_s28] sm:$0xff] %v342_v2  ;;  %v348_v5 = vld [vmem:[%s1584_s9 + $0x30] sm:$0xff] }
  0x2c   : > { %345 = vst [vmem:[%s1589_s28 + $0x8] sm:$0xff] %v344_v3  ;;  %v350_v6 = vld [vmem:[%s1584_s9 + $0x40] sm:$0xff]  ;;  %v352_v7 = vld [vmem:[%s1584_s9 + $0x50] sm:$0xff] }
  0x2d   : > { %347 = vst [vmem:[%s1589_s28 + $0x10] sm:$0xff] %v346_v4  ;;  %v354_v8 = vld [vmem:[%s1584_s9 + $0x60] sm:$0xff]  ;;  %v356_v9 = vld [vmem:[%s1584_s9 + $0x70] sm:$0xff] }
  0x2e   : > { %349 = vst [vmem:[%s1589_s28 + $0x18] sm:$0xff] %v348_v5  ;;  %v358_v10 = vld [vmem:[%s1584_s9 + $0x80] sm:$0xff]  ;;  %v360_v11 = vld [vmem:[%s1584_s9 + $0x90] sm:$0xff] }
  0x2f   : > { %351 = vst [vmem:[%s1589_s28 + $0x20] sm:$0xff] %v350_v6  ;;  %v362_v12 = vld [vmem:[%s1584_s9 + $0xa0] sm:$0xff]  ;;  %v364_v13 = vld [vmem:[%s1584_s9 + $0xb0] sm:$0xff] }
  0x30   : > { %353 = vst [vmem:[%s1589_s28 + $0x28] sm:$0xff] %v352_v7  ;;  %v366_v14 = vld [vmem:[%s1584_s9 + $0xc0] sm:$0xff]  ;;  %v368_v15 = vld [vmem:[%s1584_s9 + $0xd0] sm:$0xff] }
  0x31   : > { %355 = vst [vmem:[%s1589_s28 + $0x30] sm:$0xff] %v354_v8  ;;  %v370_v16 = vld [vmem:[%s1584_s9 + $0xe0] sm:$0xff]  ;;  %v372_v17 = vld [vmem:[%s1584_s9 + $0xf0] sm:$0xff] }
  0x32   : > { %357 = vst [vmem:[%s1589_s28 + $0x38] sm:$0xff] %v356_v9  ;;  %v374_v18 = vld [vmem:[%s1584_s9 + $0x100] sm:$0xff]  ;;  %v376_v19 = vld [vmem:[%s1584_s9 + $0x110] sm:$0xff] }
  0x33   : > { %359 = vst [vmem:[%s1589_s28 + $0x40] sm:$0xff] %v358_v10  ;;  %v378_v20 = vld [vmem:[%s1584_s9 + $0x120] sm:$0xff]  ;;  %v380_v21 = vld [vmem:[%s1584_s9 + $0x130] sm:$0xff] }
  0x34   : > { %361 = vst [vmem:[%s1589_s28 + $0x48] sm:$0xff] %v360_v11  ;;  %v382_v22 = vld [vmem:[%s1584_s9 + $0x140] sm:$0xff]  ;;  %v384_v23 = vld [vmem:[%s1584_s9 + $0x150] sm:$0xff] }
  0x35   : > { %363 = vst [vmem:[%s1589_s28 + $0x50] sm:$0xff] %v362_v12  ;;  %v386_v24 = vld [vmem:[%s1584_s9 + $0x160] sm:$0xff]  ;;  %v388_v25 = vld [vmem:[%s1584_s9 + $0x170] sm:$0xff] }
  0x36   : > { %365 = vst [vmem:[%s1589_s28 + $0x58] sm:$0xff] %v364_v13  ;;  %v390_v26 = vld [vmem:[%s1584_s9 + $0x180] sm:$0xff]  ;;  %v392_v27 = vld [vmem:[%s1584_s9 + $0x190] sm:$0xff] }
  0x37   : > { %367 = vst [vmem:[%s1589_s28 + $0x60] sm:$0xff] %v366_v14  ;;  %v394_v28 = vld [vmem:[%s1584_s9 + $0x1a0] sm:$0xff]  ;;  %v396_v29 = vld [vmem:[%s1584_s9 + $0x1b0] sm:$0xff] }
  0x38   : > { %369 = vst [vmem:[%s1589_s28 + $0x68] sm:$0xff] %v368_v15  ;;  %v398_v30 = vld [vmem:[%s1584_s9 + $0x1c0] sm:$0xff]  ;;  %v400_v31 = vld [vmem:[%s1584_s9 + $0x1d0] sm:$0xff] }
  0x39   : > { %371 = vst [vmem:[%s1589_s28 + $0x70] sm:$0xff] %v370_v16  ;;  %v402_v32 = vld [vmem:[%s1584_s9 + $0x1e0] sm:$0xff]  ;;  %v404_v33 = vld [vmem:[%s1584_s9 + $0x1f0] sm:$0xff] }
  0x3a   : > { %373 = vst [vmem:[%s1589_s28 + $0x78] sm:$0xff] %v372_v17 }
  0x3b   : > { %375 = vst [vmem:[%s1589_s28 + $0x80] sm:$0xff] %v374_v18 }
  0x3c   : > { %377 = vst [vmem:[%s1589_s28 + $0x88] sm:$0xff] %v376_v19 }
  0x3d   : > { %379 = vst [vmem:[%s1589_s28 + $0x90] sm:$0xff] %v378_v20 }
  0x3e   : > { %381 = vst [vmem:[%s1589_s28 + $0x98] sm:$0xff] %v380_v21 }
  0x3f   : > { %383 = vst [vmem:[%s1589_s28 + $0xa0] sm:$0xff] %v382_v22 }
  0x40   : > { %385 = vst [vmem:[%s1589_s28 + $0xa8] sm:$0xff] %v384_v23 }
  0x41   : > { %387 = vst [vmem:[%s1589_s28 + $0xb0] sm:$0xff] %v386_v24 }
  0x42   : > { %389 = vst [vmem:[%s1589_s28 + $0xb8] sm:$0xff] %v388_v25 }
  0x43   : > { %391 = vst [vmem:[%s1589_s28 + $0xc0] sm:$0xff] %v390_v26 }
  0x44   : > { %393 = vst [vmem:[%s1589_s28 + $0xc8] sm:$0xff] %v392_v27 }
  0x45   : > { %395 = vst [vmem:[%s1589_s28 + $0xd0] sm:$0xff] %v394_v28 }
  0x46   : > { %397 = vst [vmem:[%s1589_s28 + $0xd8] sm:$0xff] %v396_v29 }
  0x47   : > { %399 = vst [vmem:[%s1589_s28 + $0xe0] sm:$0xff] %v398_v30 }
  0x48   : > { %401 = vst [vmem:[%s1589_s28 + $0xe8] sm:$0xff] %v400_v31 }
  0x49   : > { %403 = vst [vmem:[%s1589_s28 + $0xf0] sm:$0xff] %v402_v32 }
  0x4a   : > { %405 = vst [vmem:[%s1589_s28 + $0xf8] sm:$0xff] %v404_v33 }
  0x4b PF: > { %p1081_p0 = scmp.ge.s32.totalorder %s1442_s25, 1  ;;  %p410_p1 = scmp.lt.s32.totalorder %s1442_s25, 19 }
  0x4d   : > { %p411_p2 = pnand %p1081_p0, %p410_p1 }
  0x4e   : > { %s417_s20 = sand.u32 (!%p411_p2), 1, %s1418_s19   ;;  %s424_s27 = sand.u32 (!%p411_p2), 1, %s1410_s17  }
  0x4f   : > { %414 = sbr.rel (%p411_p2) target bundleno = 309 (0x135), region = 96  ;;  %s1082_s7 = sshll.u32 (!%p411_p2), %s417_s20, 4 }
  0x50   : > { %s1083_s10 = sshll.u32 (!%p411_p2), %s424_s27, 8  ;;  %s445_s8 = sand.u32 (!%p411_p2), 1, %s1402_s15  }
  0x51   : > { %s1085_s11 = sshll.u32 (!%p411_p2), %s1430_s22, 1  ;;  %s1084_s26 = sshll.u32 (!%p411_p2), %s445_s8, 4 }
  0x52   : > { %p477_p3 = scmp.lt.s32.totalorder (!%p411_p2), %s1085_s11, 3  ;;  %s1668_s19 = scalar_lea.vmem (!%p411_p2), [#allocation3], %s1082_s7 }
  0x53   : > { %s1670_s17 = scalar_lea.vmem (!%p411_p2), [#allocation4], %s1083_s10  ;;  %s1672_s15 = scalar_lea.vmem (!%p411_p2), [#allocation5], %s1084_s26 }
  0x54   : > { %s1831_s11 = smov (!%p477_p3, %s1085_s11), 3  ;;  %p1087_p4 = scmp.ne.s32.totalorder %s1426_s21, 0 }
  0x55   : > { %s481_s6 = scalar_lea.vmem %s1800_s3, %s1831_s11  ;;  %s490_s28 = scalar_lea.vmem %s1801_s4, %s1831_s11 }
  0x56   : > { %495 = sbr.rel (%p1087_p4) target bundleno = 96 (0x60), region = 108 }
  0x5b   : > { %v1444_v34 = vmov 0.0  }
  0x5c   : > { %496 = vst [vmem:[#allocation2 + $0x10] sm:$0xff] %v1444_v34 }
  0x5d   : > { %497 = vst [vmem:[#allocation2] sm:$0xff] %v1444_v34 }
  0x5e   : > { %498 = vst [vmem:[#allocation2 + $0x18] sm:$0xff] %v1444_v34 }
  0x5f   : > { %499 = vst [vmem:[#allocation2 + $0x8] sm:$0xff] %v1444_v34 }
  0x60 PF: > { %v1154_v35 = vld [vmem:[%s1670_s17 + $0x70] sm:$0xf]  ;;  %v1249_v36 = vld [vmem:[%s1670_s17 + $0x74] sm:$0xf0]  ;;  %v1248_v40 = vld [vmem:[%s1670_s17 + $0x74] sm:$0xf] }
  0x61   : > { %v1218_v37 = vld [vmem:[%s1670_s17 + $0xf0] sm:$0xf]  ;;  %v1155_v38 = vor.u32 %v1249_v36, %v1154_v35  ;;  %v1265_v39 = vld [vmem:[%s1670_s17 + $0xf4] sm:$0xf0]  ;;  %v1156_v41 = vld [vmem:[%s1670_s17 + $0x78] sm:$0xf0] }
  0x62   : > { %v1219_v42 = vor.u32 %v1265_v39, %v1218_v37  ;;  %v1159_v43 = vor.u32 %v1248_v40, %v1156_v41  ;;  %v1264_v44 = vld [vmem:[%s1670_s17 + $0xf4] sm:$0xf]  ;;  %v1220_v45 = vld [vmem:[%s1670_s17 + $0xf8] sm:$0xf0]  ;;  %v1146_v46 = vld [vmem:[%s1670_s17 + $0x60] sm:$0xf] }
  0x63   : > { %708 = vmatpush.bf16.msra.mxu0 %v1155_v38  ;;  %v1223_v47 = vor.u32 %v1264_v44, %v1220_v45  ;;  %v1247_v48 = vld [vmem:[%s1670_s17 + $0x64] sm:$0xf0]  ;;  %v1210_v49 = vld [vmem:[%s1670_s17 + $0xe0] sm:$0xf]  ;;  %v1246_v53 = vld [vmem:[%s1670_s17 + $0x64] sm:$0xf] }
  0x64   : > { %v1263_v50 = vld [vmem:[%s1670_s17 + $0xe4] sm:$0xf0]  ;;  %722 = vmatpush.bf16.msra.mxu1 %v1219_v42  ;;  %736 = vmatpush.bf16.msra.mxu2 %v1159_v43  ;;  %v1147_v51 = vor.u32 %v1247_v48, %v1146_v46  ;;  %v1148_v54 = vld [vmem:[%s1670_s17 + $0x68] sm:$0xf0]  ;;  %v1262_v55 = vld [vmem:[%s1670_s17 + $0xe4] sm:$0xf] }
  0x65   : > { %v1211_v52 = vor.u32 %v1263_v50, %v1210_v49  ;;  %750 = vmatpush.bf16.msra.mxu3 %v1223_v47  ;;  %v1151_v56 = vor.u32 %v1246_v53, %v1148_v54  ;;  %v1212_v57 = vld [vmem:[%s1670_s17 + $0xe8] sm:$0xf0]  ;;  %v1138_v58 = vld [vmem:[%s1670_s17 + $0x50] sm:$0xf]  ;;  %v1245_v59 = vld [vmem:[%s1670_s17 + $0x54] sm:$0xf0] }
  0x66   : > { %v1215_v60 = vor.u32 %v1262_v55, %v1212_v57  ;;  %v1202_v61 = vld [vmem:[%s1670_s17 + $0xd0] sm:$0xf]  ;;  %v1261_v62 = vld [vmem:[%s1670_s17 + $0xd4] sm:$0xf0]  ;;  %v1244_v63 = vld [vmem:[%s1670_s17 + $0x54] sm:$0xf]  ;;  %v1139_v0 = vor.u32 %v1245_v59, %v1138_v58 }
  0x67   : > { %709 = vmatpush.bf16.msra.mxu0 %v1147_v51  ;;  %v1140_v1 = vld [vmem:[%s1670_s17 + $0x58] sm:$0xf0]  ;;  %v1260_v2 = vld [vmem:[%s1670_s17 + $0xd4] sm:$0xf]  ;;  %v1203_v4 = vor.u32 %v1261_v62, %v1202_v61  ;;  %v1130_v6 = vld [vmem:[%s1670_s17 + $0x40] sm:$0xf] }
  0x68   : > { %v1204_v3 = vld [vmem:[%s1670_s17 + $0xd8] sm:$0xf0]  ;;  %723 = vmatpush.bf16.msra.mxu1 %v1211_v52  ;;  %737 = vmatpush.bf16.msra.mxu2 %v1151_v56  ;;  %v1143_v5 = vor.u32 %v1244_v63, %v1140_v1  ;;  %v1243_v7 = vld [vmem:[%s1670_s17 + $0x44] sm:$0xf0]  ;;  %v1194_v8 = vld [vmem:[%s1670_s17 + $0xc0] sm:$0xf] }
  0x69   : > { %751 = vmatpush.bf16.msra.mxu3 %v1215_v60  ;;  %v1207_v9 = vor.u32 %v1260_v2, %v1204_v3  ;;  %v1259_v10 = vld [vmem:[%s1670_s17 + $0xc4] sm:$0xf0]  ;;  %v1242_v11 = vld [vmem:[%s1670_s17 + $0x44] sm:$0xf]  ;;  %v1132_v12 = vld [vmem:[%s1670_s17 + $0x48] sm:$0xf0]  ;;  %v1131_v15 = vor.u32 %v1243_v7, %v1130_v6 }
  0x6a   : > { %v1258_v13 = vld [vmem:[%s1670_s17 + $0xc4] sm:$0xf]  ;;  %v1196_v14 = vld [vmem:[%s1670_s17 + $0xc8] sm:$0xf0]  ;;  %v1195_v16 = vor.u32 %v1259_v10, %v1194_v8  ;;  %v1135_v17 = vor.u32 %v1242_v11, %v1132_v12  ;;  %v1122_v18 = vld [vmem:[%s1670_s17 + $0x30] sm:$0xf] }
  0x6b   : > { %710 = vmatpush.bf16.msra.mxu0 %v1139_v0  ;;  %v1241_v19 = vld [vmem:[%s1670_s17 + $0x34] sm:$0xf0]  ;;  %v1186_v20 = vld [vmem:[%s1670_s17 + $0xb0] sm:$0xf]  ;;  %v1199_v21 = vor.u32 %v1258_v13, %v1196_v14  ;;  %v1240_v23 = vld [vmem:[%s1670_s17 + $0x34] sm:$0xf] }
  0x6c   : > { %724 = vmatpush.bf16.msra.mxu1 %v1203_v4  ;;  %738 = vmatpush.bf16.msra.mxu2 %v1143_v5  ;;  %v1257_v22 = vld [vmem:[%s1670_s17 + $0xb4] sm:$0xf0]  ;;  %v1124_v24 = vld [vmem:[%s1670_s17 + $0x38] sm:$0xf0]  ;;  %v1256_v25 = vld [vmem:[%s1670_s17 + $0xb4] sm:$0xf]  ;;  %v1123_v27 = vor.u32 %v1241_v19, %v1122_v18 }
  0x6d   : > { %752 = vmatpush.bf16.msra.mxu3 %v1207_v9  ;;  %v1188_v26 = vld [vmem:[%s1670_s17 + $0xb8] sm:$0xf0]  ;;  %v1187_v28 = vor.u32 %v1257_v22, %v1186_v20  ;;  %v1127_v29 = vor.u32 %v1240_v23, %v1124_v24  ;;  %v1114_v30 = vld [vmem:[%s1670_s17 + $0x20] sm:$0xf]  ;;  %v1239_v31 = vld [vmem:[%s1670_s17 + $0x24] sm:$0xf0] }
  0x6e   : > { %v1178_v32 = vld [vmem:[%s1670_s17 + $0xa0] sm:$0xf]  ;;  %v1191_v33 = vor.u32 %v1256_v25, %v1188_v26  ;;  %v1255_v34 = vld [vmem:[%s1670_s17 + $0xa4] sm:$0xf0]  ;;  %v1238_v35 = vld [vmem:[%s1670_s17 + $0x24] sm:$0xf]  ;;  %v1115_v39 = vor.u32 %v1239_v31, %v1114_v30 }
  0x6f   : > { %711 = vmatpush.bf16.msra.mxu0 %v1131_v15  ;;  %v1116_v36 = vld [vmem:[%s1670_s17 + $0x28] sm:$0xf0]  ;;  %v1254_v37 = vld [vmem:[%s1670_s17 + $0xa4] sm:$0xf]  ;;  %v1179_v40 = vor.u32 %v1255_v34, %v1178_v32  ;;  %v1106_v42 = vld [vmem:[%s1670_s17 + $0x10] sm:$0xf] }
  0x70   : > { %725 = vmatpush.bf16.msra.mxu1 %v1195_v16  ;;  %739 = vmatpush.bf16.msra.mxu2 %v1135_v17  ;;  %v1180_v38 = vld [vmem:[%s1670_s17 + $0xa8] sm:$0xf0]  ;;  %v1119_v41 = vor.u32 %v1238_v35, %v1116_v36  ;;  %v1237_v43 = vld [vmem:[%s1670_s17 + $0x14] sm:$0xf0]  ;;  %v1170_v44 = vld [vmem:[%s1670_s17 + $0x90] sm:$0xf] }
  0x71   : > { %753 = vmatpush.bf16.msra.mxu3 %v1199_v21  ;;  %v1183_v45 = vor.u32 %v1254_v37, %v1180_v38  ;;  %v1253_v46 = vld [vmem:[%s1670_s17 + $0x94] sm:$0xf0]  ;;  %v1236_v47 = vld [vmem:[%s1670_s17 + $0x14] sm:$0xf]  ;;  %v1108_v48 = vld [vmem:[%s1670_s17 + $0x18] sm:$0xf0]  ;;  %v1107_v51 = vor.u32 %v1237_v43, %v1106_v42 }
  0x72   : > { %v1252_v49 = vld [vmem:[%s1670_s17 + $0x94] sm:$0xf]  ;;  %v1172_v50 = vld [vmem:[%s1670_s17 + $0x98] sm:$0xf0]  ;;  %v1171_v52 = vor.u32 %v1253_v46, %v1170_v44  ;;  %v1111_v53 = vor.u32 %v1236_v47, %v1108_v48  ;;  %v1098_v54 = vld [vmem:[%s1670_s17] sm:$0xf] }
  0x73   : > { %712 = vmatpush.bf16.msra.mxu0 %v1123_v27  ;;  %v1235_v55 = vld [vmem:[%s1670_s17 + $0x4] sm:$0xf0]  ;;  %v1162_v56 = vld [vmem:[%s1670_s17 + $0x80] sm:$0xf]  ;;  %v1175_v57 = vor.u32 %v1252_v49, %v1172_v50  ;;  %v1234_v59 = vld [vmem:[%s1670_s17 + $0x4] sm:$0xf] }
  0x74   : > { %726 = vmatpush.bf16.msra.mxu1 %v1187_v28  ;;  %740 = vmatpush.bf16.msra.mxu2 %v1127_v29  ;;  %v1251_v58 = vld [vmem:[%s1670_s17 + $0x84] sm:$0xf0]  ;;  %v1100_v60 = vld [vmem:[%s1670_s17 + $0x8] sm:$0xf0]  ;;  %v1250_v61 = vld [vmem:[%s1670_s17 + $0x84] sm:$0xf]  ;;  %v1099_v63 = vor.u32 %v1235_v55, %v1098_v54 }
  0x75   : > { %754 = vmatpush.bf16.msra.mxu3 %v1191_v33  ;;  %v1164_v62 = vld [vmem:[%s1670_s17 + $0x88] sm:$0xf0]  ;;  %v1090_v0 = vld [vmem:[%s1668_s19] sm:$0xf]  ;;  %v1233_v1 = vld [vmem:[%s1668_s19 + $0x4] sm:$0xf0]  ;;  %v1163_v2 = vor.u32 %v1251_v58, %v1162_v56  ;;  %v1103_v3 = vor.u32 %v1234_v59, %v1100_v60 }
  0x76   : > { %v1232_v4 = vld [vmem:[%s1668_s19 + $0x4] sm:$0xf]  ;;  %v1092_v5 = vld [vmem:[%s1668_s19 + $0x8] sm:$0xf0]  ;;  %v1167_v6 = vor.u32 %v1250_v61, %v1164_v62  ;;  %v1091_v7 = vor.u32 %v1233_v1, %v1090_v0  ;;  %p1224_p5 = scmp.ne.s32.totalorder %s1426_s21, 8 }
  0x77   : > { %713 = vmatpush.bf16.msra.mxu0 %v1115_v39  ;;  %v1095_v8 = vor.u32 %v1232_v4, %v1092_v5  ;;  %v500_v10 = vld [vmem:[#allocation2 + $0x10] sm:$0xff]  ;;  %v501_v15 = vld [vmem:[#allocation2] sm:$0xff]  ;;  %v502_v19 = vld [vmem:[#allocation2 + $0x18] sm:$0xff] }
  0x78   : > { %727 = vmatpush.bf16.msra.mxu1 %v1179_v40  ;;  %741 = vmatpush.bf16.msra.mxu2 %v1119_v41  ;;  %v503_v25 = vld [vmem:[#allocation2 + $0x8] sm:$0xff] }
  0x79   : > { %755 = vmatpush.bf16.msra.mxu3 %v1183_v45 }
  0x7b   : > { %714 = vmatpush.bf16.msra.mxu0 %v1107_v51 }
  0x7c   : > { %728 = vmatpush.bf16.msra.mxu1 %v1171_v52  ;;  %742 = vmatpush.bf16.msra.mxu2 %v1111_v53 }
  0x7d   : > { %756 = vmatpush.bf16.msra.mxu3 %v1175_v57 }
  0x7f   : > { %715 = vmatpush.bf16.msra.mxu0 %v1099_v63 }
  0x80   : > { %729 = vmatpush.bf16.msra.mxu1 %v1163_v2  ;;  %743 = vmatpush.bf16.msra.mxu2 %v1103_v3 }
  0x81   : > { %757 = vmatpush.bf16.msra.mxu3 %v1167_v6 }
  0x82   : > { %716 = vmatmul.bf16.vlgmr.msra.gmra.mxu0 %v1091_v7 }
  0x83   : > { %730 = vmatmul.bf16.vlgmr.msra.gmra.mxu1 %v1095_v8  ;;  %744 = vmatmul.bf16.vlgmr.msra.gmra.mxu2 %v1091_v7 }
  0x84   : > { %758 = vmatmul.bf16.vlgmr.msra.gmra.mxu3 %v1095_v8 }
  0xff   : > { %v717_v9 = vpop.f32.mrf.mxu0 }
 0x100   : > { %v731_v11 = vpop.f32.mrf.mxu1 }
 0x101   : > { %v732_v12 = vadd.f32 %v731_v11, %v717_v9 }
 0x103   : > { %v764_v13 = vadd.f32 %v732_v12, %v500_v10 }
 0x105   : > { %768 = vst [vmem:[#allocation2 + $0x10] sm:$0xff] %v764_v13 }
 0x106   : > { %v745_v14 = vpop.f32.mrf.mxu2 }
 0x107   : > { %v759_v16 = vpop.f32.mrf.mxu3  ;;  %v719_v17 = vpop.f32.mrf.mxu0 }
 0x108   : > { %v760_v18 = vadd.f32 %v759_v16, %v745_v14  ;;  %v733_v20 = vpop.f32.mrf.mxu1 }
 0x109   : > { %v734_v21 = vadd.f32 %v733_v20, %v719_v17 }
 0x10a   : > { %v765_v22 = vadd.f32 %v760_v18, %v501_v15 }
 0x10b   : > { %v766_v23 = vadd.f32 %v734_v21, %v502_v19 }
 0x10c   : > { %769 = vst [vmem:[#allocation2] sm:$0xff] %v765_v22 }
 0x10d   : > { %770 = vst [vmem:[#allocation2 + $0x18] sm:$0xff] %v766_v23 }
 0x10e   : > { %v747_v24 = vpop.f32.mrf.mxu2 }
 0x10f   : > { %v761_v26 = vpop.f32.mrf.mxu3 }
 0x110   : > { %v762_v27 = vadd.f32 %v761_v26, %v747_v24  ;;  %775 = sbr.rel (%p1224_p5) target bundleno = 304 (0x130), region = 112 }
 0x112   : > { %v767_v28 = vadd.f32 %v762_v27, %v503_v25 }
 0x114   : > { %771 = vst [vmem:[#allocation2 + $0x8] sm:$0xff] %v767_v28 }
 0x115   : > { %v776_v29 = vld [vmem:[#allocation2 + $0x10] sm:$0xff]  ;;  %v777_v30 = vld [vmem:[#allocation2] sm:$0xff]  ;;  %v778_v31 = vld [vmem:[#allocation2 + $0x18] sm:$0xff]  ;;  %v800_v60 = vlaneseq  ;;  %vm797_vm0 = vcmask 1040384  }
 0x116   : > { %v780_v33 = vadd.f32 %v778_v31, %v776_v29  ;;  %v805_v34 = vmul.f32 %v776_v29, %v776_v29  ;;  %v806_v35 = vmul.f32 %v777_v30, %v777_v30  ;;  %v807_v36 = vmul.f32 %v778_v31, %v778_v31 }
 0x117   : > { %v829_v39 = vpack.c.bf16 %v777_v30, %v776_v29  ;;  %vm802_vm1 = vcmp.lt.s32.totalorder %v800_v60, 256 }
 0x118   : > { %v781_v40 = vrot.slane %v780_v33, 4  ;;  %v809_v41 = vadd.f32 %v807_v36, %v805_v34 }
 0x119   : > { %831 = vst [vmem:[%s1672_s15] sm:$0xff] %v829_v39 }
 0x11a   : > { %v782_v45 = vadd.f32 %v781_v40, %v780_v33  ;;  %v810_v46 = vrot.slane %v809_v41, 4 }
 0x11b   : > { %v779_v32 = vld [vmem:[#allocation2 + $0x8] sm:$0xff] }
 0x11c   : > { %v787_v37 = vadd.f32 %v779_v32, %v777_v30  ;;  %v808_v38 = vmul.f32 %v779_v32, %v779_v32  ;;  %v830_v42 = vpack.c.bf16 %v779_v32, %v778_v31  ;;  %v783_v49 = vrot.slane %v782_v45, 2 }
 0x11d   : > { %v811_v50 = vadd.f32 %v810_v46, %v809_v41 }
 0x11e   : > { %v788_v43 = vrot.slane %v787_v37, 4  ;;  %v816_v44 = vadd.f32 %v808_v38, %v806_v35  ;;  %832 = vst [vmem:[%s1672_s15 + $0x8] sm:$0xff] %v830_v42  ;;  %v784_v53 = vadd.f32 %v783_v49, %v782_v45 }
 0x11f   : > { %v812_v54 = vrot.slane %v811_v50, 2 }
 0x120   : > { %v789_v47 = vadd.f32 %v788_v43, %v787_v37  ;;  %v817_v48 = vrot.slane %v816_v44, 4  ;;  %v785_v57 = vrot.slane %v784_v53, 1 }
 0x121   : > { %v813_v58 = vadd.f32 %v812_v54, %v811_v50 }
 0x122   : > { %v790_v51 = vrot.slane %v789_v47, 2  ;;  %v818_v52 = vadd.f32 %v817_v48, %v816_v44  ;;  %v786_v63 = vadd.f32 %v785_v57, %v784_v53 }
 0x123   : > { %v814_v62 = vrot.slane %v813_v58, 1 }
 0x124   : > { %v791_v55 = vadd.f32 %v790_v51, %v789_v47  ;;  %v819_v56 = vrot.slane %v818_v52, 2 }
 0x125   : > { %v815_v3 = vadd.f32 %v814_v62, %v813_v58 }
 0x126   : > { %v792_v59 = vrot.slane %v791_v55, 1  ;;  %v820_v61 = vadd.f32 %v819_v56, %v818_v52 }
 0x128   : > { %v793_v0 = vadd.f32 %v792_v59, %v791_v55  ;;  %v821_v1 = vrot.slane %v820_v61, 1 }
 0x12a   : > { %v796_v2 = vrot.slane %v793_v0, 7  ;;  %v822_v4 = vadd.f32 %v821_v1, %v820_v61 }
 0x12c   : > { %v798_v5 = vsel %vm797_vm0, %v786_v63, %v796_v2  ;;  %v825_v6 = vrot.slane %v822_v4, 7 }
 0x12d   : > { %804 = vst.msk [vmem:[%s481_s6] sm:$0x3] %vm802_vm1, %v798_v5 }
 0x12e   : > { %v826_v7 = vsel %vm797_vm0, %v815_v3, %v825_v6 }
 0x12f   : > { %828 = vst.msk [vmem:[%s490_s28] sm:$0x3] %vm802_vm1, %v826_v7 }
 0x130 PF: > { %855 = sbr.rel (!%p1564_p12) target bundleno = 309 (0x135), region = 116  ;;  %s1266_s10 = sshll.u32 (%p1564_p12), %s1430_s22, 3  ;;  %v892_v8 = vld [vmem:[%s1672_s15] sm:$0xff] (%p1564_p12)  ;;  %v894_v9 = vld [vmem:[%s1672_s15 + $0x8] sm:$0xff] (%p1564_p12) }
 0x131   : > { %s861_s5 = scalar_lea.vmem (%p1564_p12), %s1799_s2, %s1266_s10 }
 0x132   : > { %893 = vst [vmem:[%s861_s5] sm:$0xff] (%p1564_p12), %v892_v8 }
 0x133   : > { %895 = vst [vmem:[%s861_s5 + $0x10] sm:$0xff] (%p1564_p12), %v894_v9 }
 0x135 PF: > { %s15_s25 = sadd.s32 1, %s1442_s25   ;;  %s1812_s19 = sld [smem:[#allocation6_spill]] }
 0x136   : > { %p12_p6 = scmp.ge.s32.totalorder %s15_s25, 20   ;;  %s1813_s20 = sld [smem:[#allocation9_spill]] }
 0x137   : > { %s1814_s14 = sld [smem:[#allocation7_spill]]  ;;  %s1816_s15 = smov %s1406_s16 }
 0x138   : > { %s1815_s11 = sld [smem:[#allocation8_spill]]  ;;  %s1817_s16 = smov %s1562_s13 }
 0x139   : > { %s1818_s17 = smov %s1414_s18  ;;  %s1819_s18 = smov %s1559_s12 }
 0x13a   : > { %s1820_s21 = smov %s1434_s23  ;;  %s1821_s22 = smov %s1438_s24 }
 0x13b   :  { %14 = sbr.rel (!%p12_p6) target bundleno = 6 (0x6), region = 217 }
 0x13d   : > { %s1822_s23 = smov %s1814_s14 }
 0x13e   : > { %s1823_s24 = smov %s1815_s11 }

// kernel: model_pretrain_forward.82
= control target key start
LH: loop header
LB: loop body
LE: loop exit
PB: predicated region body
PF: predicated region fallthrough
CT: control target
= control target key end

     0   :  { %s1334_s15 = smov 0   ;;  %s1336_s16 = smov 0   ;;  %s1569_s0 = inlined_call_operand.vmem [shape: bf16[16,256], index: 0, kind: input, shape index: {}]   ;;  %s1570_s1 = inlined_call_operand.vmem [shape: bf16[256,512], index: 1, kind: input, shape index: {}]   ;;  %s1571_s2 = inlined_call_operand.vmem [shape: bf16[16,512], index: 2, kind: output, shape index: {0}]   ;;  %s1572_s3 = inlined_call_operand.vmem [shape: f32[1,1,512], index: 3, kind: output, shape index: {1}]   ;;  %s1573_s4 = inlined_call_operand.vmem [shape: f32[1,1,512], index: 4, kind: output, shape index: {2}]  }
   0x1   :  { %s1338_s17 = smov 0   ;;  %s1340_s18 = smov 0  }
   0x2   :  { %s1342_s19 = smov 0  }
   0x3 LB: > { %s30_s20 = sadd.s32 1, %s1303_s18  ;;  %s1039_s21 = sadd.s32 4294967295, %s1307_s19   ;;  %s1307_s19 = sphi %s1342_s19, %s15_s19   ;;  %s1303_s18 = sphi %s1340_s18, %s1578_s18   ;;  %s1299_s17 = sphi %s1338_s17, %s1577_s17   ;;  %s1295_s16 = sphi %s1336_s16, %s1576_s16   ;;  %s1291_s15 = sphi %s1334_s15, %s1575_s15  }
   0x4   : > { %p32_p0 = scmp.ge.s32.totalorder %s30_s20, 2  ;;  %p78_p1 = scmp.ne.s32.totalorder %s1295_s16, %s1291_s15 }
   0x5   : > { %p79_p2 = scmp.eq.s32.totalorder %s1307_s19, 0  ;;  %p110_p4 = scmp.eq.s32.totalorder %s1039_s21, 1 }
   0x6   : > { %s1580_s20 = smov (%p32_p0, %s30_s20), 0  ;;  %s71_s23 = sadd.s32 1, %s1295_s16 }
   0x7   : > { %p80_p3 = por %p79_p2, %p78_p1  ;;  %s67_s22 = ssub.s32 %s1303_s18, %s1580_s20 }
   0x8   : > { %p69_p5 = scmp.eq.s32.totalorder %s67_s22, 0  ;;  %p1369_p6 = por %p110_p4, %p78_p1 }
   0x9   : > { %p1043_p7 = scmp.ge.s32.totalorder %s1307_s19, 2 }
   0xa   : > { %s1374_s25 = scalar_select %p69_p5, %s1295_s16, %s71_s23  }
   0xb   : > { %203 = sbr.rel (%p1043_p7) target bundleno = 52 (0x34), region = 20 }
  0x10   : > { %206 = sbr.rel (!%p80_p3) target bundleno = 52 (0x34), region = 24  ;;  %s208_s26 = sand.u32 (%p80_p3), 1, %s1295_s16  }
  0x11   : > { %s1193_s27 = sshll.u32 (%p80_p3), %s1303_s18, 3  ;;  %s1044_s28 = sshll.u32 (%p80_p3), %s208_s26, 8 }
  0x12   : > { %s1382_s5 = scalar_lea.vmem (%p80_p3), %s1570_s1, %s1193_s27  ;;  %s1387_s6 = scalar_lea.vmem (%p80_p3), [#allocation3], %s1044_s28 }
  0x13   : > { %v307_v0 = vld [vmem:[%s1382_s5] sm:$0xff] (%p80_p3)  ;;  %v309_v1 = vld [vmem:[%s1382_s5 + $0x10] sm:$0xff] (%p80_p3) }
  0x14   : > { %v311_v2 = vld [vmem:[%s1382_s5 + $0x20] sm:$0xff] (%p80_p3)  ;;  %308 = vst [vmem:[%s1387_s6] sm:$0xff] (%p80_p3), %v307_v0  ;;  %v313_v3 = vld [vmem:[%s1382_s5 + $0x30] sm:$0xff] (%p80_p3) }
  0x15   : > { %310 = vst [vmem:[%s1387_s6 + $0x8] sm:$0xff] %v309_v1  ;;  %v315_v4 = vld [vmem:[%s1382_s5 + $0x40] sm:$0xff]  ;;  %v317_v5 = vld [vmem:[%s1382_s5 + $0x50] sm:$0xff] }
  0x16   : > { %312 = vst [vmem:[%s1387_s6 + $0x10] sm:$0xff] %v311_v2  ;;  %v319_v6 = vld [vmem:[%s1382_s5 + $0x60] sm:$0xff]  ;;  %v321_v7 = vld [vmem:[%s1382_s5 + $0x70] sm:$0xff] }
  0x17   : > { %314 = vst [vmem:[%s1387_s6 + $0x18] sm:$0xff] %v313_v3  ;;  %v323_v8 = vld [vmem:[%s1382_s5 + $0x80] sm:$0xff]  ;;  %v325_v9 = vld [vmem:[%s1382_s5 + $0x90] sm:$0xff] }
  0x18   : > { %316 = vst [vmem:[%s1387_s6 + $0x20] sm:$0xff] %v315_v4  ;;  %v327_v10 = vld [vmem:[%s1382_s5 + $0xa0] sm:$0xff]  ;;  %v329_v11 = vld [vmem:[%s1382_s5 + $0xb0] sm:$0xff] }
  0x19   : > { %318 = vst [vmem:[%s1387_s6 + $0x28] sm:$0xff] %v317_v5  ;;  %v331_v12 = vld [vmem:[%s1382_s5 + $0xc0] sm:$0xff]  ;;  %v333_v13 = vld [vmem:[%s1382_s5 + $0xd0] sm:$0xff] }
  0x1a   : > { %320 = vst [vmem:[%s1387_s6 + $0x30] sm:$0xff] %v319_v6  ;;  %v335_v14 = vld [vmem:[%s1382_s5 + $0xe0] sm:$0xff]  ;;  %v337_v15 = vld [vmem:[%s1382_s5 + $0xf0] sm:$0xff] }
  0x1b   : > { %322 = vst [vmem:[%s1387_s6 + $0x38] sm:$0xff] %v321_v7  ;;  %v339_v16 = vld [vmem:[%s1382_s5 + $0x100] sm:$0xff]  ;;  %v341_v17 = vld [vmem:[%s1382_s5 + $0x110] sm:$0xff] }
  0x1c   : > { %324 = vst [vmem:[%s1387_s6 + $0x40] sm:$0xff] %v323_v8  ;;  %v343_v18 = vld [vmem:[%s1382_s5 + $0x120] sm:$0xff]  ;;  %v345_v19 = vld [vmem:[%s1382_s5 + $0x130] sm:$0xff] }
  0x1d   : > { %326 = vst [vmem:[%s1387_s6 + $0x48] sm:$0xff] %v325_v9  ;;  %v347_v20 = vld [vmem:[%s1382_s5 + $0x140] sm:$0xff]  ;;  %v349_v21 = vld [vmem:[%s1382_s5 + $0x150] sm:$0xff] }
  0x1e   : > { %328 = vst [vmem:[%s1387_s6 + $0x50] sm:$0xff] %v327_v10  ;;  %v351_v22 = vld [vmem:[%s1382_s5 + $0x160] sm:$0xff]  ;;  %v353_v23 = vld [vmem:[%s1382_s5 + $0x170] sm:$0xff] }
  0x1f   : > { %330 = vst [vmem:[%s1387_s6 + $0x58] sm:$0xff] %v329_v11  ;;  %v355_v24 = vld [vmem:[%s1382_s5 + $0x180] sm:$0xff]  ;;  %v357_v25 = vld [vmem:[%s1382_s5 + $0x190] sm:$0xff] }
  0x20   : > { %332 = vst [vmem:[%s1387_s6 + $0x60] sm:$0xff] %v331_v12  ;;  %v359_v26 = vld [vmem:[%s1382_s5 + $0x1a0] sm:$0xff]  ;;  %v361_v27 = vld [vmem:[%s1382_s5 + $0x1b0] sm:$0xff] }
  0x21   : > { %334 = vst [vmem:[%s1387_s6 + $0x68] sm:$0xff] %v333_v13  ;;  %v363_v28 = vld [vmem:[%s1382_s5 + $0x1c0] sm:$0xff]  ;;  %v365_v29 = vld [vmem:[%s1382_s5 + $0x1d0] sm:$0xff] }
  0x22   : > { %336 = vst [vmem:[%s1387_s6 + $0x70] sm:$0xff] %v335_v14  ;;  %v367_v30 = vld [vmem:[%s1382_s5 + $0x1e0] sm:$0xff]  ;;  %v369_v31 = vld [vmem:[%s1382_s5 + $0x1f0] sm:$0xff] }
  0x23   : > { %338 = vst [vmem:[%s1387_s6 + $0x78] sm:$0xff] %v337_v15 }
  0x24   : > { %340 = vst [vmem:[%s1387_s6 + $0x80] sm:$0xff] %v339_v16 }
  0x25   : > { %342 = vst [vmem:[%s1387_s6 + $0x88] sm:$0xff] %v341_v17 }
  0x26   : > { %344 = vst [vmem:[%s1387_s6 + $0x90] sm:$0xff] %v343_v18 }
  0x27   : > { %346 = vst [vmem:[%s1387_s6 + $0x98] sm:$0xff] %v345_v19 }
  0x28   : > { %348 = vst [vmem:[%s1387_s6 + $0xa0] sm:$0xff] %v347_v20 }
  0x29   : > { %350 = vst [vmem:[%s1387_s6 + $0xa8] sm:$0xff] %v349_v21 }
  0x2a   : > { %352 = vst [vmem:[%s1387_s6 + $0xb0] sm:$0xff] %v351_v22 }
  0x2b   : > { %354 = vst [vmem:[%s1387_s6 + $0xb8] sm:$0xff] %v353_v23 }
  0x2c   : > { %356 = vst [vmem:[%s1387_s6 + $0xc0] sm:$0xff] %v355_v24 }
  0x2d   : > { %358 = vst [vmem:[%s1387_s6 + $0xc8] sm:$0xff] %v357_v25 }
  0x2e   : > { %360 = vst [vmem:[%s1387_s6 + $0xd0] sm:$0xff] %v359_v26 }
  0x2f   : > { %362 = vst [vmem:[%s1387_s6 + $0xd8] sm:$0xff] %v361_v27 }
  0x30   : > { %364 = vst [vmem:[%s1387_s6 + $0xe0] sm:$0xff] %v363_v28 }
  0x31   : > { %366 = vst [vmem:[%s1387_s6 + $0xe8] sm:$0xff] %v365_v29 }
  0x32   : > { %368 = vst [vmem:[%s1387_s6 + $0xf0] sm:$0xff] %v367_v30 }
  0x33   : > { %370 = vst [vmem:[%s1387_s6 + $0xf8] sm:$0xff] %v369_v31 }
  0x34 PF: > { %p1047_p8 = scmp.ge.s32.totalorder %s1307_s19, 1  ;;  %p375_p9 = scmp.lt.s32.totalorder %s1307_s19, 3 }
  0x36   : > { %p376_p10 = pnand %p1047_p8, %p375_p9 }
  0x37   : > { %s382_s7 = sand.u32 (!%p376_p10), 1, %s1291_s15   ;;  %s1050_s15 = sshll.u32 (!%p376_p10), %s1299_s17, 1 }
  0x38   : > { %379 = sbr.rel (%p376_p10) target bundleno = 259 (0x103), region = 62  ;;  %s1048_s8 = sshll.u32 (!%p376_p10), %s382_s7, 8 }
  0x39   : > { %s1455_s9 = scalar_lea.vmem (!%p376_p10), [#allocation3], %s1048_s8  ;;  %s1049_s26 = sshll.u32 (!%p376_p10), %s382_s7, 4 }
  0x3a   : > { %s1535_s27 = scalar_lea.vmem (!%p376_p10), [#allocation4], %s1049_s26  ;;  %p451_p11 = scmp.lt.s32.totalorder (!%p376_p10), %s1050_s15, 3 }
  0x3d   : > { %v1118_v32 = vld [vmem:[%s1455_s9 + $0x70] sm:$0xf]  ;;  %v1211_v33 = vld [vmem:[%s1455_s9 + $0x74] sm:$0xf0]  ;;  %v1210_v37 = vld [vmem:[%s1455_s9 + $0x74] sm:$0xf] }
  0x3e   : > { %v1182_v34 = vld [vmem:[%s1455_s9 + $0xf0] sm:$0xf]  ;;  %v1119_v35 = vor.u32 %v1211_v33, %v1118_v32  ;;  %v1227_v36 = vld [vmem:[%s1455_s9 + $0xf4] sm:$0xf0]  ;;  %v1120_v38 = vld [vmem:[%s1455_s9 + $0x78] sm:$0xf0] }
  0x3f   : > { %v1183_v39 = vor.u32 %v1227_v36, %v1182_v34  ;;  %v1123_v40 = vor.u32 %v1210_v37, %v1120_v38  ;;  %v1226_v41 = vld [vmem:[%s1455_s9 + $0xf4] sm:$0xf]  ;;  %v1184_v42 = vld [vmem:[%s1455_s9 + $0xf8] sm:$0xf0]  ;;  %v1110_v43 = vld [vmem:[%s1455_s9 + $0x60] sm:$0xf] }
  0x40   : > { %682 = vmatpush.bf16.msra.mxu0 %v1119_v35  ;;  %v1187_v44 = vor.u32 %v1226_v41, %v1184_v42  ;;  %v1209_v45 = vld [vmem:[%s1455_s9 + $0x64] sm:$0xf0]  ;;  %v1174_v46 = vld [vmem:[%s1455_s9 + $0xe0] sm:$0xf]  ;;  %v1208_v50 = vld [vmem:[%s1455_s9 + $0x64] sm:$0xf] }
  0x41   : > { %v1225_v47 = vld [vmem:[%s1455_s9 + $0xe4] sm:$0xf0]  ;;  %696 = vmatpush.bf16.msra.mxu1 %v1183_v39  ;;  %710 = vmatpush.bf16.msra.mxu2 %v1123_v40  ;;  %v1111_v48 = vor.u32 %v1209_v45, %v1110_v43  ;;  %v1112_v51 = vld [vmem:[%s1455_s9 + $0x68] sm:$0xf0]  ;;  %v1224_v52 = vld [vmem:[%s1455_s9 + $0xe4] sm:$0xf] }
  0x42   : > { %v1175_v49 = vor.u32 %v1225_v47, %v1174_v46  ;;  %724 = vmatpush.bf16.msra.mxu3 %v1187_v44  ;;  %v1115_v53 = vor.u32 %v1208_v50, %v1112_v51  ;;  %v1176_v54 = vld [vmem:[%s1455_s9 + $0xe8] sm:$0xf0]  ;;  %v1102_v55 = vld [vmem:[%s1455_s9 + $0x50] sm:$0xf]  ;;  %v1207_v56 = vld [vmem:[%s1455_s9 + $0x54] sm:$0xf0] }
  0x43   : > { %v1179_v57 = vor.u32 %v1224_v52, %v1176_v54  ;;  %v1166_v58 = vld [vmem:[%s1455_s9 + $0xd0] sm:$0xf]  ;;  %v1223_v59 = vld [vmem:[%s1455_s9 + $0xd4] sm:$0xf0]  ;;  %v1206_v60 = vld [vmem:[%s1455_s9 + $0x54] sm:$0xf]  ;;  %v1103_v61 = vor.u32 %v1207_v56, %v1102_v55 }
  0x44   : > { %683 = vmatpush.bf16.msra.mxu0 %v1111_v48  ;;  %v1104_v62 = vld [vmem:[%s1455_s9 + $0x58] sm:$0xf0]  ;;  %v1222_v63 = vld [vmem:[%s1455_s9 + $0xd4] sm:$0xf]  ;;  %v1167_v1 = vor.u32 %v1223_v59, %v1166_v58  ;;  %v1094_v3 = vld [vmem:[%s1455_s9 + $0x40] sm:$0xf] }
  0x45   : > { %v1168_v0 = vld [vmem:[%s1455_s9 + $0xd8] sm:$0xf0]  ;;  %697 = vmatpush.bf16.msra.mxu1 %v1175_v49  ;;  %711 = vmatpush.bf16.msra.mxu2 %v1115_v53  ;;  %v1107_v2 = vor.u32 %v1206_v60, %v1104_v62  ;;  %v1205_v4 = vld [vmem:[%s1455_s9 + $0x44] sm:$0xf0]  ;;  %v1158_v5 = vld [vmem:[%s1455_s9 + $0xc0] sm:$0xf] }
  0x46   : > { %725 = vmatpush.bf16.msra.mxu3 %v1179_v57  ;;  %v1171_v6 = vor.u32 %v1222_v63, %v1168_v0  ;;  %v1221_v7 = vld [vmem:[%s1455_s9 + $0xc4] sm:$0xf0]  ;;  %v1204_v8 = vld [vmem:[%s1455_s9 + $0x44] sm:$0xf]  ;;  %v1096_v9 = vld [vmem:[%s1455_s9 + $0x48] sm:$0xf0]  ;;  %v1095_v12 = vor.u32 %v1205_v4, %v1094_v3 }
  0x47   : > { %v1220_v10 = vld [vmem:[%s1455_s9 + $0xc4] sm:$0xf]  ;;  %v1160_v11 = vld [vmem:[%s1455_s9 + $0xc8] sm:$0xf0]  ;;  %v1159_v13 = vor.u32 %v1221_v7, %v1158_v5  ;;  %v1099_v14 = vor.u32 %v1204_v8, %v1096_v9  ;;  %v1086_v15 = vld [vmem:[%s1455_s9 + $0x30] sm:$0xf] }
  0x48   : > { %684 = vmatpush.bf16.msra.mxu0 %v1103_v61  ;;  %v1203_v16 = vld [vmem:[%s1455_s9 + $0x34] sm:$0xf0]  ;;  %v1150_v17 = vld [vmem:[%s1455_s9 + $0xb0] sm:$0xf]  ;;  %v1163_v18 = vor.u32 %v1220_v10, %v1160_v11  ;;  %v1202_v20 = vld [vmem:[%s1455_s9 + $0x34] sm:$0xf] }
  0x49   : > { %698 = vmatpush.bf16.msra.mxu1 %v1167_v1  ;;  %712 = vmatpush.bf16.msra.mxu2 %v1107_v2  ;;  %v1219_v19 = vld [vmem:[%s1455_s9 + $0xb4] sm:$0xf0]  ;;  %v1088_v21 = vld [vmem:[%s1455_s9 + $0x38] sm:$0xf0]  ;;  %v1218_v22 = vld [vmem:[%s1455_s9 + $0xb4] sm:$0xf]  ;;  %v1087_v24 = vor.u32 %v1203_v16, %v1086_v15 }
  0x4a   : > { %726 = vmatpush.bf16.msra.mxu3 %v1171_v6  ;;  %v1152_v23 = vld [vmem:[%s1455_s9 + $0xb8] sm:$0xf0]  ;;  %v1151_v25 = vor.u32 %v1219_v19, %v1150_v17  ;;  %v1091_v26 = vor.u32 %v1202_v20, %v1088_v21  ;;  %v1078_v27 = vld [vmem:[%s1455_s9 + $0x20] sm:$0xf]  ;;  %v1201_v28 = vld [vmem:[%s1455_s9 + $0x24] sm:$0xf0] }
  0x4b   : > { %v1142_v29 = vld [vmem:[%s1455_s9 + $0xa0] sm:$0xf]  ;;  %v1155_v30 = vor.u32 %v1218_v22, %v1152_v23  ;;  %v1217_v31 = vld [vmem:[%s1455_s9 + $0xa4] sm:$0xf0]  ;;  %v1200_v32 = vld [vmem:[%s1455_s9 + $0x24] sm:$0xf]  ;;  %v1079_v36 = vor.u32 %v1201_v28, %v1078_v27 }
  0x4c   : > { %685 = vmatpush.bf16.msra.mxu0 %v1095_v12  ;;  %v1080_v33 = vld [vmem:[%s1455_s9 + $0x28] sm:$0xf0]  ;;  %v1216_v34 = vld [vmem:[%s1455_s9 + $0xa4] sm:$0xf]  ;;  %v1143_v37 = vor.u32 %v1217_v31, %v1142_v29  ;;  %v1070_v39 = vld [vmem:[%s1455_s9 + $0x10] sm:$0xf] }
  0x4d   : > { %699 = vmatpush.bf16.msra.mxu1 %v1159_v13  ;;  %713 = vmatpush.bf16.msra.mxu2 %v1099_v14  ;;  %v1144_v35 = vld [vmem:[%s1455_s9 + $0xa8] sm:$0xf0]  ;;  %v1083_v38 = vor.u32 %v1200_v32, %v1080_v33  ;;  %v1199_v40 = vld [vmem:[%s1455_s9 + $0x14] sm:$0xf0]  ;;  %v1134_v41 = vld [vmem:[%s1455_s9 + $0x90] sm:$0xf] }
  0x4e   : > { %727 = vmatpush.bf16.msra.mxu3 %v1163_v18  ;;  %v1147_v42 = vor.u32 %v1216_v34, %v1144_v35  ;;  %v1215_v43 = vld [vmem:[%s1455_s9 + $0x94] sm:$0xf0]  ;;  %v1198_v44 = vld [vmem:[%s1455_s9 + $0x14] sm:$0xf]  ;;  %v1072_v45 = vld [vmem:[%s1455_s9 + $0x18] sm:$0xf0]  ;;  %v1071_v48 = vor.u32 %v1199_v40, %v1070_v39 }
  0x4f   : > { %v1214_v46 = vld [vmem:[%s1455_s9 + $0x94] sm:$0xf]  ;;  %v1136_v47 = vld [vmem:[%s1455_s9 + $0x98] sm:$0xf0]  ;;  %v1135_v49 = vor.u32 %v1215_v43, %v1134_v41  ;;  %v1075_v50 = vor.u32 %v1198_v44, %v1072_v45  ;;  %v1062_v51 = vld [vmem:[%s1455_s9] sm:$0xf]  ;;  %v773_v45 = vlaneseq }
  0x50   : > { %686 = vmatpush.bf16.msra.mxu0 %v1087_v24  ;;  %v1197_v52 = vld [vmem:[%s1455_s9 + $0x4] sm:$0xf0]  ;;  %v1126_v53 = vld [vmem:[%s1455_s9 + $0x80] sm:$0xf]  ;;  %v1139_v54 = vor.u32 %v1214_v46, %v1136_v47  ;;  %v1196_v56 = vld [vmem:[%s1455_s9 + $0x4] sm:$0xf] }
  0x51   : > { %700 = vmatpush.bf16.msra.mxu1 %v1151_v25  ;;  %714 = vmatpush.bf16.msra.mxu2 %v1091_v26  ;;  %v1213_v55 = vld [vmem:[%s1455_s9 + $0x84] sm:$0xf0]  ;;  %v1064_v57 = vld [vmem:[%s1455_s9 + $0x8] sm:$0xf0]  ;;  %v1212_v58 = vld [vmem:[%s1455_s9 + $0x84] sm:$0xf]  ;;  %v1063_v60 = vor.u32 %v1197_v52, %v1062_v51 }
  0x52   : > { %728 = vmatpush.bf16.msra.mxu3 %v1155_v30  ;;  %v1128_v59 = vld [vmem:[%s1455_s9 + $0x88] sm:$0xf0]  ;;  %v1054_v61 = vld [vmem:[%s1569_s0] sm:$0xf]  ;;  %v1195_v62 = vld [vmem:[%s1569_s0 + $0x4] sm:$0xf0]  ;;  %v1127_v63 = vor.u32 %v1213_v55, %v1126_v53  ;;  %v1067_v0 = vor.u32 %v1196_v56, %v1064_v57 }
  0x53   : > { %v1194_v1 = vld [vmem:[%s1569_s0 + $0x4] sm:$0xf]  ;;  %v1056_v2 = vld [vmem:[%s1569_s0 + $0x8] sm:$0xf0]  ;;  %v1131_v3 = vor.u32 %v1212_v58, %v1128_v59  ;;  %v1055_v4 = vor.u32 %v1195_v62, %v1054_v61  ;;  %s1582_s15 = smov (!%p451_p11, %s1050_s15), 3  ;;  %vm770_vm0 = vcmask 1040384  }
  0x54   : > { %687 = vmatpush.bf16.msra.mxu0 %v1079_v36  ;;  %v1059_v5 = vor.u32 %v1194_v1, %v1056_v2  ;;  %s455_s30 = scalar_lea.vmem %s1572_s3, %s1582_s15  ;;  %vm775_vm1 = vcmp.lt.s32.totalorder %v773_v45, 256  ;;  %s464_s7 = scalar_lea.vmem %s1573_s4, %s1582_s15 }
  0x55   : > { %701 = vmatpush.bf16.msra.mxu1 %v1143_v37  ;;  %715 = vmatpush.bf16.msra.mxu2 %v1083_v38  ;;  %s1228_s8 = sshll.u32 (%p1369_p6), %s1299_s17, 3 }
  0x56   : > { %729 = vmatpush.bf16.msra.mxu3 %v1147_v42  ;;  %s834_s11 = scalar_lea.vmem (%p1369_p6), %s1571_s2, %s1228_s8 }
  0x58   : > { %688 = vmatpush.bf16.msra.mxu0 %v1071_v48 }
  0x59   : > { %702 = vmatpush.bf16.msra.mxu1 %v1135_v49  ;;  %716 = vmatpush.bf16.msra.mxu2 %v1075_v50 }
  0x5a   : > { %730 = vmatpush.bf16.msra.mxu3 %v1139_v54 }
  0x5c   : > { %689 = vmatpush.bf16.msra.mxu0 %v1063_v60 }
  0x5d   : > { %703 = vmatpush.bf16.msra.mxu1 %v1127_v63  ;;  %717 = vmatpush.bf16.msra.mxu2 %v1067_v0 }
  0x5e   : > { %731 = vmatpush.bf16.msra.mxu3 %v1131_v3 }
  0x5f   : > { %690 = vmatmul.bf16.vlgmr.msra.gmra.mxu0 %v1055_v4 }
  0x60   : > { %704 = vmatmul.bf16.vlgmr.msra.gmra.mxu1 %v1059_v5  ;;  %718 = vmatmul.bf16.vlgmr.msra.gmra.mxu2 %v1055_v4 }
  0x61   : > { %732 = vmatmul.bf16.vlgmr.msra.gmra.mxu3 %v1059_v5 }
  0xdc   : > { %v691_v6 = vpop.f32.mrf.mxu0 }
  0xdd   : > { %v705_v7 = vpop.f32.mrf.mxu1 }
  0xde   : > { %v706_v8 = vadd.f32 %v705_v7, %v691_v6 }
  0xe0   : > { %v778_v14 = vmul.f32 %v706_v8, %v706_v8 }
  0xe3   : > { %v719_v9 = vpop.f32.mrf.mxu2 }
  0xe4   : > { %v733_v10 = vpop.f32.mrf.mxu3  ;;  %v693_v11 = vpop.f32.mrf.mxu0 }
  0xe5   : > { %v734_v12 = vadd.f32 %v733_v10, %v719_v9  ;;  %v707_v13 = vpop.f32.mrf.mxu1 }
  0xe6   : > { %v708_v15 = vadd.f32 %v707_v13, %v693_v11 }
  0xe7   : > { %v802_v16 = vpack.c.bf16 %v734_v12, %v706_v8  ;;  %v779_v26 = vmul.f32 %v734_v12, %v734_v12 }
  0xe8   : > { %v753_v17 = vadd.f32 %v708_v15, %v706_v8  ;;  %v780_v18 = vmul.f32 %v708_v15, %v708_v15 }
  0xe9   : > { %804 = vst [vmem:[%s1535_s27] sm:$0xff] %v802_v16 }
  0xea   : > { %v754_v19 = vrot.slane %v753_v17, 4  ;;  %v782_v20 = vadd.f32 %v780_v18, %v778_v14 }
  0xeb   : > { %v721_v21 = vpop.f32.mrf.mxu2 }
  0xec   : > { %v783_v22 = vrot.slane %v782_v20, 4  ;;  %v735_v23 = vpop.f32.mrf.mxu3  ;;  %v755_v24 = vadd.f32 %v754_v19, %v753_v17 }
  0xed   : > { %v736_v25 = vadd.f32 %v735_v23, %v721_v21 }
  0xee   : > { %v784_v27 = vadd.f32 %v783_v22, %v782_v20  ;;  %v756_v31 = vrot.slane %v755_v24, 2 }
  0xef   : > { %v760_v28 = vadd.f32 %v736_v25, %v734_v12  ;;  %v781_v29 = vmul.f32 %v736_v25, %v736_v25  ;;  %v803_v30 = vpack.c.bf16 %v736_v25, %v708_v15 }
  0xf0   : > { %v785_v34 = vrot.slane %v784_v27, 2  ;;  %v757_v37 = vadd.f32 %v756_v31, %v755_v24  ;;  %v865_v57 = vld [vmem:[%s1535_s27] sm:$0xff] (%p1369_p6) }
  0xf1   : > { %v761_v32 = vrot.slane %v760_v28, 4  ;;  %v789_v33 = vadd.f32 %v781_v29, %v779_v26  ;;  %805 = vst [vmem:[%s1535_s27 + $0x8] sm:$0xff] %v803_v30 }
  0xf2   : > { %v786_v40 = vadd.f32 %v785_v34, %v784_v27  ;;  %v758_v43 = vrot.slane %v757_v37, 1  ;;  %866 = vst [vmem:[%s834_s11] sm:$0xff] (%p1369_p6), %v865_v57 }
  0xf3   : > { %v762_v35 = vadd.f32 %v761_v32, %v760_v28  ;;  %v790_v36 = vrot.slane %v789_v33, 4 }
  0xf4   : > { %v787_v47 = vrot.slane %v786_v40, 1  ;;  %v759_v50 = vadd.f32 %v758_v43, %v757_v37 }
  0xf5   : > { %v763_v38 = vrot.slane %v762_v35, 2  ;;  %v791_v39 = vadd.f32 %v790_v36, %v789_v33 }
  0xf6   : > { %v788_v53 = vadd.f32 %v787_v47, %v786_v40 }
  0xf7   : > { %v764_v41 = vadd.f32 %v763_v38, %v762_v35  ;;  %v792_v42 = vrot.slane %v791_v39, 2 }
  0xf8   : > { %v867_v58 = vld [vmem:[%s1535_s27 + $0x8] sm:$0xff] (%p1369_p6) }
  0xf9   : > { %v765_v44 = vrot.slane %v764_v41, 1  ;;  %v793_v46 = vadd.f32 %v792_v42, %v791_v39  ;;  %868 = vst [vmem:[%s834_s11 + $0x10] sm:$0xff] (%p1369_p6), %v867_v58 }
  0xfb   : > { %v766_v48 = vadd.f32 %v765_v44, %v764_v41  ;;  %v794_v49 = vrot.slane %v793_v46, 1 }
  0xfd   : > { %v769_v51 = vrot.slane %v766_v48, 7  ;;  %v795_v52 = vadd.f32 %v794_v49, %v793_v46 }
  0xfe   : > { %828 = sbr.rel (!%p1369_p6) target bundleno = 259 (0x103), region = 78 }
  0xff   : > { %v771_v54 = vsel %vm770_vm0, %v759_v50, %v769_v51  ;;  %v798_v55 = vrot.slane %v795_v52, 7 }
 0x100   : > { %777 = vst.msk [vmem:[%s455_s30] sm:$0x3] %vm775_vm1, %v771_v54 }
 0x101   : > { %v799_v56 = vsel %vm770_vm0, %v788_v53, %v798_v55 }
 0x102   : > { %801 = vst.msk [vmem:[%s464_s7] sm:$0x3] %vm775_vm1, %v799_v56 }
 0x103 PF: > { %s15_s19 = sadd.s32 1, %s1307_s19   ;;  %s1575_s15 = smov %s1295_s16 }
 0x104   : > { %p12_p12 = scmp.ge.s32.totalorder %s15_s19, 4   ;;  %s1576_s16 = smov %s1374_s25 }
 0x105   : > { %s1577_s17 = smov %s1303_s18  ;;  %s1578_s18 = smov %s1580_s20 }
 0x106   :  { %14 = sbr.rel (!%p12_p12) target bundleno = 3 (0x3), region = 174 }

// kernel: model_pretrain_forward.80
= control target key start
LH: loop header
LB: loop body
LE: loop exit
PB: predicated region body
PF: predicated region fallthrough
CT: control target
= control target key end

     0   :  { %s98_s0 = inlined_call_operand.vmem [shape: bf16[8,512], index: 0, kind: input, shape index: {}]   ;;  %s99_s1 = inlined_call_operand.vmem [shape: f32[1,512], index: 1, kind: input, shape index: {}]   ;;  %s100_s2 = inlined_call_operand.vmem [shape: f32[1,512], index: 2, kind: input, shape index: {}]   ;;  %s101_s3 = inlined_call_operand.vmem [shape: bf16[8,512], index: 3, kind: output, shape index: {}]  }
   0x1   :  { %v14_v0 = vld [vmem:[%s98_s0] sm:$0xff]  ;;  %v15_v7 = vld [vmem:[%s98_s0 + $0x8] sm:$0xff] }
   0x2   :  { %v20_v1 = vld [vmem:[%s99_s1] sm:$0xf]  ;;  %v16_v3 = vunpack.c.l.bf16 %v14_v0  ;;  %v17_v4 = vunpack.c.h.bf16 %v14_v0  ;;  %v18_v10 = vunpack.c.l.bf16 %v15_v7  ;;  %v19_v11 = vunpack.c.h.bf16 %v15_v7 }
   0x3   :  { %v34_v2 = vld [vmem:[%s100_s2] sm:$0xf]  ;;  %v22_v5 = vperm.slane %v20_v1, 0  ;;  %v23_v6 = vperm.slane %v20_v1, 1  ;;  %v24_v14 = vperm.slane %v20_v1, 2  ;;  %v25_v15 = vperm.slane %v20_v1, 3 }
   0x4   :  { %v36_v8 = vperm.slane %v34_v2, 0  ;;  %v37_v9 = vperm.slane %v34_v2, 1  ;;  %v38_v16 = vperm.slane %v34_v2, 2  ;;  %v39_v17 = vperm.slane %v34_v2, 3 }
   0x5   :  { %v30_v12 = vmul.f32 %v22_v5, %v16_v3  ;;  %v31_v13 = vmul.f32 %v23_v6, %v17_v4  ;;  %v32_v20 = vmul.f32 %v24_v14, %v18_v10  ;;  %v33_v21 = vmul.f32 %v25_v15, %v19_v11 }
   0x7   :  { %v44_v18 = vadd.f32 %v36_v8, %v30_v12  ;;  %v45_v19 = vadd.f32 %v37_v9, %v31_v13  ;;  %v46_v24 = vadd.f32 %v38_v16, %v32_v20  ;;  %v47_v25 = vadd.f32 %v39_v17, %v33_v21 }
   0x9   :  { %v48_v22 = vmax.f32 %v44_v18, 0.0  ;;  %v49_v23 = vmax.f32 %v45_v19, 0.0  ;;  %v50_v27 = vmax.f32 %v46_v24, 0.0  ;;  %v51_v28 = vmax.f32 %v47_v25, 0.0 }
   0xb   :  { %v52_v26 = vpack.c.bf16 %v49_v23, %v48_v22  ;;  %v53_v29 = vpack.c.bf16 %v51_v28, %v50_v27 }
   0xd   :  { %54 = vst [vmem:[%s101_s3] sm:$0xff] %v52_v26 }
   0xe   :  { %55 = vst [vmem:[%s101_s3 + $0x8] sm:$0xff] %v53_v29 }

// kernel: model_pretrain_forward.81
= control target key start
LH: loop header
LB: loop body
LE: loop exit
PB: predicated region body
PF: predicated region fallthrough
CT: control target
= control target key end

     0   :  { %s1470_s15 = smov 0   ;;  %s1472_s16 = smov 0   ;;  %s1797_s0 = inlined_call_operand.vmem [shape: bf16[16,4608], index: 0, kind: input, shape index: {}]   ;;  %s1798_s1 = inlined_call_operand.vmem [shape: bf16[4608,512], index: 1, kind: input, shape index: {}]   ;;  %s1799_s2 = inlined_call_operand.vmem [shape: bf16[16,512], index: 2, kind: output, shape index: {0}]   ;;  %s1800_s3 = inlined_call_operand.vmem [shape: f32[1,1,512], index: 3, kind: output, shape index: {1}]   ;;  %s1801_s4 = inlined_call_operand.vmem [shape: f32[1,1,512], index: 4, kind: output, shape index: {2}]  }
   0x1   :  { %s1474_s17 = smov 0   ;;  %s1476_s18 = smov 0  }
   0x2   :  { %s1478_s19 = smov 0   ;;  %s1480_s20 = smov 0  }
   0x3   :  { %s1482_s21 = smov 0   ;;  %s1484_s22 = smov 0  }
   0x4   :  { %s1486_s23 = smov 0   ;;  %s1488_s24 = smov 0  }
   0x5   :  { %s1490_s25 = smov 0  }
   0x6 LB: > { %1805 = sst [smem:[#allocation6_spill]] %s1422_s20  ;;  %s1069_s26 = sadd.s32 4294967295, %s1442_s25   ;;  %s1442_s25 = sphi %s1490_s25, %s15_s25   ;;  %s1438_s24 = sphi %s1488_s24, %s1823_s24   ;;  %s1434_s23 = sphi %s1486_s23, %s1822_s23   ;;  %s1430_s22 = sphi %s1484_s22, %s1821_s22   ;;  %s1426_s21 = sphi %s1482_s21, %s1820_s21   ;;  %s1422_s20 = sphi %s1480_s20, %s1813_s20   ;;  %s1418_s19 = sphi %s1478_s19, %s1812_s19   ;;  %s1414_s18 = sphi %s1476_s18, %s1819_s18   ;;  %s1410_s17 = sphi %s1474_s17, %s1818_s17   ;;  %s1406_s16 = sphi %s1472_s16, %s1817_s16   ;;  %s1402_s15 = sphi %s1470_s15, %s1816_s15  }
   0x7   : > { %s27_s27 = sadd.s32 1, %s1434_s23  ;;  %s30_s28 = sadd.s32 1, %s1438_s24 }
   0x8   : > { %p28_p0 = scmp.ge.s32.totalorder %s27_s27, 18  ;;  %s43_s29 = sadd.s32 1, %s1422_s20 }
   0x9   : > { %p50_p1 = scmp.ne.s32.totalorder %s1422_s20, %s1418_s19  ;;  %p51_p2 = scmp.eq.s32.totalorder %s1442_s25, 0 }
   0xa   : > { %s1825_s27 = smov (%p28_p0, %s27_s27), 0  ;;  %s1827_s28 = smov (!%p28_p0, %s30_s28), %s1438_s24 }
   0xb   : > { %1806 = sst [smem:[#allocation7_spill]] %s1825_s27  ;;  %s39_s30 = ssub.s32 %s1434_s23, %s1825_s27 }
   0xc   : > { %p32_p3 = scmp.ge.s32.totalorder %s1827_s28, 2  ;;  %p41_p4 = scmp.eq.s32.totalorder %s39_s30, 0 }
   0xd   : > { %p1537_p5 = por %p51_p2, %p50_p1  ;;  %s71_s6 = sadd.s32 1, %s1414_s18 }
   0xe   : > { %s1829_s28 = smov (%p32_p3, %s1827_s28), 0  ;;  %p78_p6 = scmp.ne.s32.totalorder %s1414_s18, %s1410_s17 }
   0xf   : > { %1808 = sst [smem:[#allocation8_spill]] %s1829_s28  ;;  %s67_s8 = ssub.s32 %s1438_s24, %s1829_s28 }
  0x10   : > { %s1545_s7 = scalar_select %p41_p4, %s1422_s20, %s43_s29  }
  0x11   : > { %s68_s9 = sor.u32 %s67_s8, %s39_s30  ;;  %p97_p7 = scmp.eq.s32.totalorder %s67_s8, 0 }
  0x12   : > { %1809 = sst [smem:[#allocation9_spill]] %s1545_s7  ;;  %p69_p8 = scmp.eq.s32.totalorder %s68_s9, 0 }
  0x13   : > { %p1551_p9 = por %p78_p6, %p51_p2  ;;  %s99_s11 = sadd.s32 1, %s1406_s16 }
  0x14   : > { %p109_p10 = scmp.ne.s32.totalorder %s1406_s16, %s1402_s15  ;;  %p110_p11 = scmp.eq.s32.totalorder %s1069_s26, 35 }
  0x15   : > { %s1559_s12 = scalar_select %p69_p8, %s1414_s18, %s71_s6  }
  0x16   : > { %s1562_s13 = scalar_select %p97_p7, %s1406_s16, %s99_s11  }
  0x17   : > { %p1564_p12 = por %p110_p11, %p109_p10  ;;  %p1072_p13 = scmp.ge.s32.totalorder %s1442_s25, 36 }
  0x19   : > { %188 = sbr.rel (%p1072_p13) target bundleno = 75 (0x4b), region = 16 }
  0x1e   : > { %191 = sbr.rel (!%p1537_p5) target bundleno = 36 (0x24), region = 20  ;;  %s193_s29 = sand.u32 (%p1537_p5), 1, %s1422_s20  }
  0x1f   : > { %s1230_s30 = sshll.u32 (%p1537_p5), %s1434_s23, 3  ;;  %s1073_s8 = sshll.u32 (%p1537_p5), %s193_s29, 4 }
  0x20   : > { %s201_s11 = scalar_lea.vmem (%p1537_p5), %s1797_s0, %s1230_s30  ;;  %s195_s26 = scalar_lea.vmem (%p1537_p5), [#allocation3], %s1073_s8 }
  0x21   : > { %v232_v0 = vld [vmem:[%s201_s11] sm:$0xff] (%p1537_p5)  ;;  %v234_v1 = vld [vmem:[%s201_s11 + $0x90] sm:$0xff] (%p1537_p5) }
  0x22   : > { %233 = vst [vmem:[%s195_s26] sm:$0xff] (%p1537_p5), %v232_v0 }
  0x23   : > { %235 = vst [vmem:[%s195_s26 + $0x8] sm:$0xff] %v234_v1 }
  0x24 PF: > { %241 = sbr.rel (!%p1551_p9) target bundleno = 75 (0x4b), region = 58  ;;  %s243_s5 = sand.u32 (%p1551_p9), 1, %s1414_s18  }
  0x25   : > { %s1078_s28 = sshll.u32 (%p1551_p9), %s1438_s24, 1  ;;  %s1076_s27 = sshll.u32 (%p1551_p9), %s243_s5, 8 }
  0x26   : > { %s1231_s29 = sshll.u32 (%p1551_p9), %s1434_s23, 7 }
  0x27   : > { %s249_s7 = sadd.s32 (%p1551_p9), %s1231_s29, %s1078_s28  ;;  %s1589_s28 = scalar_lea.vmem (%p1551_p9), [#allocation4], %s1076_s27 }
  0x28   : > { %s1080_s20 = sshll.u32 (%p1551_p9), %s249_s7, 2 }
  0x29   : > { %s1584_s9 = scalar_lea.vmem %s1798_s1, %s1080_s20 }
  0x2a   : > { %v342_v2 = vld [vmem:[%s1584_s9] sm:$0xff]  ;;  %v344_v3 = vld [vmem:[%s1584_s9 + $0x10] sm:$0xff] }
  0x2b   : > { %v346_v4 = vld [vmem:[%s1584_s9 + $0x20] sm:$0xff]  ;;  %343 = vst [vmem:[%s1589_s28] sm:$0xff] %v342_v2  ;;  %v348_v5 = vld [vmem:[%s1584_s9 + $0x30] sm:$0xff] }
  0x2c   : > { %345 = vst [vmem:[%s1589_s28 + $0x8] sm:$0xff] %v344_v3  ;;  %v350_v6 = vld [vmem:[%s1584_s9 + $0x40] sm:$0xff]  ;;  %v352_v7 = vld [vmem:[%s1584_s9 + $0x50] sm:$0xff] }
  0x2d   : > { %347 = vst [vmem:[%s1589_s28 + $0x10] sm:$0xff] %v346_v4  ;;  %v354_v8 = vld [vmem:[%s1584_s9 + $0x60] sm:$0xff]  ;;  %v356_v9 = vld [vmem:[%s1584_s9 + $0x70] sm:$0xff] }
  0x2e   : > { %349 = vst [vmem:[%s1589_s28 + $0x18] sm:$0xff] %v348_v5  ;;  %v358_v10 = vld [vmem:[%s1584_s9 + $0x80] sm:$0xff]  ;;  %v360_v11 = vld [vmem:[%s1584_s9 + $0x90] sm:$0xff] }
  0x2f   : > { %351 = vst [vmem:[%s1589_s28 + $0x20] sm:$0xff] %v350_v6  ;;  %v362_v12 = vld [vmem:[%s1584_s9 + $0xa0] sm:$0xff]  ;;  %v364_v13 = vld [vmem:[%s1584_s9 + $0xb0] sm:$0xff] }
  0x30   : > { %353 = vst [vmem:[%s1589_s28 + $0x28] sm:$0xff] %v352_v7  ;;  %v366_v14 = vld [vmem:[%s1584_s9 + $0xc0] sm:$0xff]  ;;  %v368_v15 = vld [vmem:[%s1584_s9 + $0xd0] sm:$0xff] }
  0x31   : > { %355 = vst [vmem:[%s1589_s28 + $0x30] sm:$0xff] %v354_v8  ;;  %v370_v16 = vld [vmem:[%s1584_s9 + $0xe0] sm:$0xff]  ;;  %v372_v17 = vld [vmem:[%s1584_s9 + $0xf0] sm:$0xff] }
  0x32   : > { %357 = vst [vmem:[%s1589_s28 + $0x38] sm:$0xff] %v356_v9  ;;  %v374_v18 = vld [vmem:[%s1584_s9 + $0x100] sm:$0xff]  ;;  %v376_v19 = vld [vmem:[%s1584_s9 + $0x110] sm:$0xff] }
  0x33   : > { %359 = vst [vmem:[%s1589_s28 + $0x40] sm:$0xff] %v358_v10  ;;  %v378_v20 = vld [vmem:[%s1584_s9 + $0x120] sm:$0xff]  ;;  %v380_v21 = vld [vmem:[%s1584_s9 + $0x130] sm:$0xff] }
  0x34   : > { %361 = vst [vmem:[%s1589_s28 + $0x48] sm:$0xff] %v360_v11  ;;  %v382_v22 = vld [vmem:[%s1584_s9 + $0x140] sm:$0xff]  ;;  %v384_v23 = vld [vmem:[%s1584_s9 + $0x150] sm:$0xff] }
  0x35   : > { %363 = vst [vmem:[%s1589_s28 + $0x50] sm:$0xff] %v362_v12  ;;  %v386_v24 = vld [vmem:[%s1584_s9 + $0x160] sm:$0xff]  ;;  %v388_v25 = vld [vmem:[%s1584_s9 + $0x170] sm:$0xff] }
  0x36   : > { %365 = vst [vmem:[%s1589_s28 + $0x58] sm:$0xff] %v364_v13  ;;  %v390_v26 = vld [vmem:[%s1584_s9 + $0x180] sm:$0xff]  ;;  %v392_v27 = vld [vmem:[%s1584_s9 + $0x190] sm:$0xff] }
  0x37   : > { %367 = vst [vmem:[%s1589_s28 + $0x60] sm:$0xff] %v366_v14  ;;  %v394_v28 = vld [vmem:[%s1584_s9 + $0x1a0] sm:$0xff]  ;;  %v396_v29 = vld [vmem:[%s1584_s9 + $0x1b0] sm:$0xff] }
  0x38   : > { %369 = vst [vmem:[%s1589_s28 + $0x68] sm:$0xff] %v368_v15  ;;  %v398_v30 = vld [vmem:[%s1584_s9 + $0x1c0] sm:$0xff]  ;;  %v400_v31 = vld [vmem:[%s1584_s9 + $0x1d0] sm:$0xff] }
  0x39   : > { %371 = vst [vmem:[%s1589_s28 + $0x70] sm:$0xff] %v370_v16  ;;  %v402_v32 = vld [vmem:[%s1584_s9 + $0x1e0] sm:$0xff]  ;;  %v404_v33 = vld [vmem:[%s1584_s9 + $0x1f0] sm:$0xff] }
  0x3a   : > { %373 = vst [vmem:[%s1589_s28 + $0x78] sm:$0xff] %v372_v17 }
  0x3b   : > { %375 = vst [vmem:[%s1589_s28 + $0x80] sm:$0xff] %v374_v18 }
  0x3c   : > { %377 = vst [vmem:[%s1589_s28 + $0x88] sm:$0xff] %v376_v19 }
  0x3d   : > { %379 = vst [vmem:[%s1589_s28 + $0x90] sm:$0xff] %v378_v20 }
  0x3e   : > { %381 = vst [vmem:[%s1589_s28 + $0x98] sm:$0xff] %v380_v21 }
  0x3f   : > { %383 = vst [vmem:[%s1589_s28 + $0xa0] sm:$0xff] %v382_v22 }
  0x40   : > { %385 = vst [vmem:[%s1589_s28 + $0xa8] sm:$0xff] %v384_v23 }
  0x41   : > { %387 = vst [vmem:[%s1589_s28 + $0xb0] sm:$0xff] %v386_v24 }
  0x42   : > { %389 = vst [vmem:[%s1589_s28 + $0xb8] sm:$0xff] %v388_v25 }
  0x43   : > { %391 = vst [vmem:[%s1589_s28 + $0xc0] sm:$0xff] %v390_v26 }
  0x44   : > { %393 = vst [vmem:[%s1589_s28 + $0xc8] sm:$0xff] %v392_v27 }
  0x45   : > { %395 = vst [vmem:[%s1589_s28 + $0xd0] sm:$0xff] %v394_v28 }
  0x46   : > { %397 = vst [vmem:[%s1589_s28 + $0xd8] sm:$0xff] %v396_v29 }
  0x47   : > { %399 = vst [vmem:[%s1589_s28 + $0xe0] sm:$0xff] %v398_v30 }
  0x48   : > { %401 = vst [vmem:[%s1589_s28 + $0xe8] sm:$0xff] %v400_v31 }
  0x49   : > { %403 = vst [vmem:[%s1589_s28 + $0xf0] sm:$0xff] %v402_v32 }
  0x4a   : > { %405 = vst [vmem:[%s1589_s28 + $0xf8] sm:$0xff] %v404_v33 }
  0x4b PF: > { %p1081_p0 = scmp.ge.s32.totalorder %s1442_s25, 1  ;;  %p410_p1 = scmp.lt.s32.totalorder %s1442_s25, 37 }
  0x4d   : > { %p411_p2 = pnand %p1081_p0, %p410_p1 }
  0x4e   : > { %s417_s20 = sand.u32 (!%p411_p2), 1, %s1418_s19   ;;  %s424_s27 = sand.u32 (!%p411_p2), 1, %s1410_s17  }
  0x4f   : > { %414 = sbr.rel (%p411_p2) target bundleno = 309 (0x135), region = 96  ;;  %s1082_s7 = sshll.u32 (!%p411_p2), %s417_s20, 4 }
  0x50   : > { %s1083_s10 = sshll.u32 (!%p411_p2), %s424_s27, 8  ;;  %s445_s8 = sand.u32 (!%p411_p2), 1, %s1402_s15  }
  0x51   : > { %s1085_s11 = sshll.u32 (!%p411_p2), %s1430_s22, 1  ;;  %s1084_s26 = sshll.u32 (!%p411_p2), %s445_s8, 4 }
  0x52   : > { %p477_p3 = scmp.lt.s32.totalorder (!%p411_p2), %s1085_s11, 3  ;;  %s1668_s19 = scalar_lea.vmem (!%p411_p2), [#allocation3], %s1082_s7 }
  0x53   : > { %s1670_s17 = scalar_lea.vmem (!%p411_p2), [#allocation4], %s1083_s10  ;;  %s1672_s15 = scalar_lea.vmem (!%p411_p2), [#allocation5], %s1084_s26 }
  0x54   : > { %s1831_s11 = smov (!%p477_p3, %s1085_s11), 3  ;;  %p1087_p4 = scmp.ne.s32.totalorder %s1426_s21, 0 }
  0x55   : > { %s481_s6 = scalar_lea.vmem %s1800_s3, %s1831_s11  ;;  %s490_s28 = scalar_lea.vmem %s1801_s4, %s1831_s11 }
  0x56   : > { %495 = sbr.rel (%p1087_p4) target bundleno = 96 (0x60), region = 108 }
  0x5b   : > { %v1444_v34 = vmov 0.0  }
  0x5c   : > { %496 = vst [vmem:[#allocation2 + $0x10] sm:$0xff] %v1444_v34 }
  0x5d   : > { %497 = vst [vmem:[#allocation2] sm:$0xff] %v1444_v34 }
  0x5e   : > { %498 = vst [vmem:[#allocation2 + $0x18] sm:$0xff] %v1444_v34 }
  0x5f   : > { %499 = vst [vmem:[#allocation2 + $0x8] sm:$0xff] %v1444_v34 }
  0x60 PF: > { %v1154_v35 = vld [vmem:[%s1670_s17 + $0x70] sm:$0xf]  ;;  %v1249_v36 = vld [vmem:[%s1670_s17 + $0x74] sm:$0xf0]  ;;  %v1248_v40 = vld [vmem:[%s1670_s17 + $0x74] sm:$0xf] }
  0x61   : > { %v1218_v37 = vld [vmem:[%s1670_s17 + $0xf0] sm:$0xf]  ;;  %v1155_v38 = vor.u32 %v1249_v36, %v1154_v35  ;;  %v1265_v39 = vld [vmem:[%s1670_s17 + $0xf4] sm:$0xf0]  ;;  %v1156_v41 = vld [vmem:[%s1670_s17 + $0x78] sm:$0xf0] }
  0x62   : > { %v1219_v42 = vor.u32 %v1265_v39, %v1218_v37  ;;  %v1159_v43 = vor.u32 %v1248_v40, %v1156_v41  ;;  %v1264_v44 = vld [vmem:[%s1670_s17 + $0xf4] sm:$0xf]  ;;  %v1220_v45 = vld [vmem:[%s1670_s17 + $0xf8] sm:$0xf0]  ;;  %v1146_v46 = vld [vmem:[%s1670_s17 + $0x60] sm:$0xf] }
  0x63   : > { %708 = vmatpush.bf16.msra.mxu0 %v1155_v38  ;;  %v1223_v47 = vor.u32 %v1264_v44, %v1220_v45  ;;  %v1247_v48 = vld [vmem:[%s1670_s17 + $0x64] sm:$0xf0]  ;;  %v1210_v49 = vld [vmem:[%s1670_s17 + $0xe0] sm:$0xf]  ;;  %v1246_v53 = vld [vmem:[%s1670_s17 + $0x64] sm:$0xf] }
  0x64   : > { %v1263_v50 = vld [vmem:[%s1670_s17 + $0xe4] sm:$0xf0]  ;;  %722 = vmatpush.bf16.msra.mxu1 %v1219_v42  ;;  %736 = vmatpush.bf16.msra.mxu2 %v1159_v43  ;;  %v1147_v51 = vor.u32 %v1247_v48, %v1146_v46  ;;  %v1148_v54 = vld [vmem:[%s1670_s17 + $0x68] sm:$0xf0]  ;;  %v1262_v55 = vld [vmem:[%s1670_s17 + $0xe4] sm:$0xf] }
  0x65   : > { %v1211_v52 = vor.u32 %v1263_v50, %v1210_v49  ;;  %750 = vmatpush.bf16.msra.mxu3 %v1223_v47  ;;  %v1151_v56 = vor.u32 %v1246_v53, %v1148_v54  ;;  %v1212_v57 = vld [vmem:[%s1670_s17 + $0xe8] sm:$0xf0]  ;;  %v1138_v58 = vld [vmem:[%s1670_s17 + $0x50] sm:$0xf]  ;;  %v1245_v59 = vld [vmem:[%s1670_s17 + $0x54] sm:$0xf0] }
  0x66   : > { %v1215_v60 = vor.u32 %v1262_v55, %v1212_v57  ;;  %v1202_v61 = vld [vmem:[%s1670_s17 + $0xd0] sm:$0xf]  ;;  %v1261_v62 = vld [vmem:[%s1670_s17 + $0xd4] sm:$0xf0]  ;;  %v1244_v63 = vld [vmem:[%s1670_s17 + $0x54] sm:$0xf]  ;;  %v1139_v0 = vor.u32 %v1245_v59, %v1138_v58 }
  0x67   : > { %709 = vmatpush.bf16.msra.mxu0 %v1147_v51  ;;  %v1140_v1 = vld [vmem:[%s1670_s17 + $0x58] sm:$0xf0]  ;;  %v1260_v2 = vld [vmem:[%s1670_s17 + $0xd4] sm:$0xf]  ;;  %v1203_v4 = vor.u32 %v1261_v62, %v1202_v61  ;;  %v1130_v6 = vld [vmem:[%s1670_s17 + $0x40] sm:$0xf] }
  0x68   : > { %v1204_v3 = vld [vmem:[%s1670_s17 + $0xd8] sm:$0xf0]  ;;  %723 = vmatpush.bf16.msra.mxu1 %v1211_v52  ;;  %737 = vmatpush.bf16.msra.mxu2 %v1151_v56  ;;  %v1143_v5 = vor.u32 %v1244_v63, %v1140_v1  ;;  %v1243_v7 = vld [vmem:[%s1670_s17 + $0x44] sm:$0xf0]  ;;  %v1194_v8 = vld [vmem:[%s1670_s17 + $0xc0] sm:$0xf] }
  0x69   : > { %751 = vmatpush.bf16.msra.mxu3 %v1215_v60  ;;  %v1207_v9 = vor.u32 %v1260_v2, %v1204_v3  ;;  %v1259_v10 = vld [vmem:[%s1670_s17 + $0xc4] sm:$0xf0]  ;;  %v1242_v11 = vld [vmem:[%s1670_s17 + $0x44] sm:$0xf]  ;;  %v1132_v12 = vld [vmem:[%s1670_s17 + $0x48] sm:$0xf0]  ;;  %v1131_v15 = vor.u32 %v1243_v7, %v1130_v6 }
  0x6a   : > { %v1258_v13 = vld [vmem:[%s1670_s17 + $0xc4] sm:$0xf]  ;;  %v1196_v14 = vld [vmem:[%s1670_s17 + $0xc8] sm:$0xf0]  ;;  %v1195_v16 = vor.u32 %v1259_v10, %v1194_v8  ;;  %v1135_v17 = vor.u32 %v1242_v11, %v1132_v12  ;;  %v1122_v18 = vld [vmem:[%s1670_s17 + $0x30] sm:$0xf] }
  0x6b   : > { %710 = vmatpush.bf16.msra.mxu0 %v1139_v0  ;;  %v1241_v19 = vld [vmem:[%s1670_s17 + $0x34] sm:$0xf0]  ;;  %v1186_v20 = vld [vmem:[%s1670_s17 + $0xb0] sm:$0xf]  ;;  %v1199_v21 = vor.u32 %v1258_v13, %v1196_v14  ;;  %v1240_v23 = vld [vmem:[%s1670_s17 + $0x34] sm:$0xf] }
  0x6c   : > { %724 = vmatpush.bf16.msra.mxu1 %v1203_v4  ;;  %738 = vmatpush.bf16.msra.mxu2 %v1143_v5  ;;  %v1257_v22 = vld [vmem:[%s1670_s17 + $0xb4] sm:$0xf0]  ;;  %v1124_v24 = vld [vmem:[%s1670_s17 + $0x38] sm:$0xf0]  ;;  %v1256_v25 = vld [vmem:[%s1670_s17 + $0xb4] sm:$0xf]  ;;  %v1123_v27 = vor.u32 %v1241_v19, %v1122_v18 }
  0x6d   : > { %752 = vmatpush.bf16.msra.mxu3 %v1207_v9  ;;  %v1188_v26 = vld [vmem:[%s1670_s17 + $0xb8] sm:$0xf0]  ;;  %v1187_v28 = vor.u32 %v1257_v22, %v1186_v20  ;;  %v1127_v29 = vor.u32 %v1240_v23, %v1124_v24  ;;  %v1114_v30 = vld [vmem:[%s1670_s17 + $0x20] sm:$0xf]  ;;  %v1239_v31 = vld [vmem:[%s1670_s17 + $0x24] sm:$0xf0] }
  0x6e   : > { %v1178_v32 = vld [vmem:[%s1670_s17 + $0xa0] sm:$0xf]  ;;  %v1191_v33 = vor.u32 %v1256_v25, %v1188_v26  ;;  %v1255_v34 = vld [vmem:[%s1670_s17 + $0xa4] sm:$0xf0]  ;;  %v1238_v35 = vld [vmem:[%s1670_s17 + $0x24] sm:$0xf]  ;;  %v1115_v39 = vor.u32 %v1239_v31, %v1114_v30 }
  0x6f   : > { %711 = vmatpush.bf16.msra.mxu0 %v1131_v15  ;;  %v1116_v36 = vld [vmem:[%s1670_s17 + $0x28] sm:$0xf0]  ;;  %v1254_v37 = vld [vmem:[%s1670_s17 + $0xa4] sm:$0xf]  ;;  %v1179_v40 = vor.u32 %v1255_v34, %v1178_v32  ;;  %v1106_v42 = vld [vmem:[%s1670_s17 + $0x10] sm:$0xf] }
  0x70   : > { %725 = vmatpush.bf16.msra.mxu1 %v1195_v16  ;;  %739 = vmatpush.bf16.msra.mxu2 %v1135_v17  ;;  %v1180_v38 = vld [vmem:[%s1670_s17 + $0xa8] sm:$0xf0]  ;;  %v1119_v41 = vor.u32 %v1238_v35, %v1116_v36  ;;  %v1237_v43 = vld [vmem:[%s1670_s17 + $0x14] sm:$0xf0]  ;;  %v1170_v44 = vld [vmem:[%s1670_s17 + $0x90] sm:$0xf] }
  0x71   : > { %753 = vmatpush.bf16.msra.mxu3 %v1199_v21  ;;  %v1183_v45 = vor.u32 %v1254_v37, %v1180_v38  ;;  %v1253_v46 = vld [vmem:[%s1670_s17 + $0x94] sm:$0xf0]  ;;  %v1236_v47 = vld [vmem:[%s1670_s17 + $0x14] sm:$0xf]  ;;  %v1108_v48 = vld [vmem:[%s1670_s17 + $0x18] sm:$0xf0]  ;;  %v1107_v51 = vor.u32 %v1237_v43, %v1106_v42 }
  0x72   : > { %v1252_v49 = vld [vmem:[%s1670_s17 + $0x94] sm:$0xf]  ;;  %v1172_v50 = vld [vmem:[%s1670_s17 + $0x98] sm:$0xf0]  ;;  %v1171_v52 = vor.u32 %v1253_v46, %v1170_v44  ;;  %v1111_v53 = vor.u32 %v1236_v47, %v1108_v48  ;;  %v1098_v54 = vld [vmem:[%s1670_s17] sm:$0xf] }
  0x73   : > { %712 = vmatpush.bf16.msra.mxu0 %v1123_v27  ;;  %v1235_v55 = vld [vmem:[%s1670_s17 + $0x4] sm:$0xf0]  ;;  %v1162_v56 = vld [vmem:[%s1670_s17 + $0x80] sm:$0xf]  ;;  %v1175_v57 = vor.u32 %v1252_v49, %v1172_v50  ;;  %v1234_v59 = vld [vmem:[%s1670_s17 + $0x4] sm:$0xf] }
  0x74   : > { %726 = vmatpush.bf16.msra.mxu1 %v1187_v28  ;;  %740 = vmatpush.bf16.msra.mxu2 %v1127_v29  ;;  %v1251_v58 = vld [vmem:[%s1670_s17 + $0x84] sm:$0xf0]  ;;  %v1100_v60 = vld [vmem:[%s1670_s17 + $0x8] sm:$0xf0]  ;;  %v1250_v61 = vld [vmem:[%s1670_s17 + $0x84] sm:$0xf]  ;;  %v1099_v63 = vor.u32 %v1235_v55, %v1098_v54 }
  0x75   : > { %754 = vmatpush.bf16.msra.mxu3 %v1191_v33  ;;  %v1164_v62 = vld [vmem:[%s1670_s17 + $0x88] sm:$0xf0]  ;;  %v1090_v0 = vld [vmem:[%s1668_s19] sm:$0xf]  ;;  %v1233_v1 = vld [vmem:[%s1668_s19 + $0x4] sm:$0xf0]  ;;  %v1163_v2 = vor.u32 %v1251_v58, %v1162_v56  ;;  %v1103_v3 = vor.u32 %v1234_v59, %v1100_v60 }
  0x76   : > { %v1232_v4 = vld [vmem:[%s1668_s19 + $0x4] sm:$0xf]  ;;  %v1092_v5 = vld [vmem:[%s1668_s19 + $0x8] sm:$0xf0]  ;;  %v1167_v6 = vor.u32 %v1250_v61, %v1164_v62  ;;  %v1091_v7 = vor.u32 %v1233_v1, %v1090_v0  ;;  %p1224_p5 = scmp.ne.s32.totalorder %s1426_s21, 17 }
  0x77   : > { %713 = vmatpush.bf16.msra.mxu0 %v1115_v39  ;;  %v1095_v8 = vor.u32 %v1232_v4, %v1092_v5  ;;  %v500_v10 = vld [vmem:[#allocation2 + $0x10] sm:$0xff]  ;;  %v501_v15 = vld [vmem:[#allocation2] sm:$0xff]  ;;  %v502_v19 = vld [vmem:[#allocation2 + $0x18] sm:$0xff] }
  0x78   : > { %727 = vmatpush.bf16.msra.mxu1 %v1179_v40  ;;  %741 = vmatpush.bf16.msra.mxu2 %v1119_v41  ;;  %v503_v25 = vld [vmem:[#allocation2 + $0x8] sm:$0xff] }
  0x79   : > { %755 = vmatpush.bf16.msra.mxu3 %v1183_v45 }
  0x7b   : > { %714 = vmatpush.bf16.msra.mxu0 %v1107_v51 }
  0x7c   : > { %728 = vmatpush.bf16.msra.mxu1 %v1171_v52  ;;  %742 = vmatpush.bf16.msra.mxu2 %v1111_v53 }
  0x7d   : > { %756 = vmatpush.bf16.msra.mxu3 %v1175_v57 }
  0x7f   : > { %715 = vmatpush.bf16.msra.mxu0 %v1099_v63 }
  0x80   : > { %729 = vmatpush.bf16.msra.mxu1 %v1163_v2  ;;  %743 = vmatpush.bf16.msra.mxu2 %v1103_v3 }
  0x81   : > { %757 = vmatpush.bf16.msra.mxu3 %v1167_v6 }
  0x82   : > { %716 = vmatmul.bf16.vlgmr.msra.gmra.mxu0 %v1091_v7 }
  0x83   : > { %730 = vmatmul.bf16.vlgmr.msra.gmra.mxu1 %v1095_v8  ;;  %744 = vmatmul.bf16.vlgmr.msra.gmra.mxu2 %v1091_v7 }
  0x84   : > { %758 = vmatmul.bf16.vlgmr.msra.gmra.mxu3 %v1095_v8 }
  0xff   : > { %v717_v9 = vpop.f32.mrf.mxu0 }
 0x100   : > { %v731_v11 = vpop.f32.mrf.mxu1 }
 0x101   : > { %v732_v12 = vadd.f32 %v731_v11, %v717_v9 }
 0x103   : > { %v764_v13 = vadd.f32 %v732_v12, %v500_v10 }
 0x105   : > { %768 = vst [vmem:[#allocation2 + $0x10] sm:$0xff] %v764_v13 }
 0x106   : > { %v745_v14 = vpop.f32.mrf.mxu2 }
 0x107   : > { %v759_v16 = vpop.f32.mrf.mxu3  ;;  %v719_v17 = vpop.f32.mrf.mxu0 }
 0x108   : > { %v760_v18 = vadd.f32 %v759_v16, %v745_v14  ;;  %v733_v20 = vpop.f32.mrf.mxu1 }
 0x109   : > { %v734_v21 = vadd.f32 %v733_v20, %v719_v17 }
 0x10a   : > { %v765_v22 = vadd.f32 %v760_v18, %v501_v15 }
 0x10b   : > { %v766_v23 = vadd.f32 %v734_v21, %v502_v19 }
 0x10c   : > { %769 = vst [vmem:[#allocation2] sm:$0xff] %v765_v22 }
 0x10d   : > { %770 = vst [vmem:[#allocation2 + $0x18] sm:$0xff] %v766_v23 }
 0x10e   : > { %v747_v24 = vpop.f32.mrf.mxu2 }
 0x10f   : > { %v761_v26 = vpop.f32.mrf.mxu3 }
 0x110   : > { %v762_v27 = vadd.f32 %v761_v26, %v747_v24  ;;  %775 = sbr.rel (%p1224_p5) target bundleno = 304 (0x130), region = 112 }
 0x112   : > { %v767_v28 = vadd.f32 %v762_v27, %v503_v25 }
 0x114   : > { %771 = vst [vmem:[#allocation2 + $0x8] sm:$0xff] %v767_v28 }
 0x115   : > { %v776_v29 = vld [vmem:[#allocation2 + $0x10] sm:$0xff]  ;;  %v777_v30 = vld [vmem:[#allocation2] sm:$0xff]  ;;  %v778_v31 = vld [vmem:[#allocation2 + $0x18] sm:$0xff]  ;;  %v800_v60 = vlaneseq  ;;  %vm797_vm0 = vcmask 1040384  }
 0x116   : > { %v780_v33 = vadd.f32 %v778_v31, %v776_v29  ;;  %v805_v34 = vmul.f32 %v776_v29, %v776_v29  ;;  %v806_v35 = vmul.f32 %v777_v30, %v777_v30  ;;  %v807_v36 = vmul.f32 %v778_v31, %v778_v31 }
 0x117   : > { %v829_v39 = vpack.c.bf16 %v777_v30, %v776_v29  ;;  %vm802_vm1 = vcmp.lt.s32.totalorder %v800_v60, 256 }
 0x118   : > { %v781_v40 = vrot.slane %v780_v33, 4  ;;  %v809_v41 = vadd.f32 %v807_v36, %v805_v34 }
 0x119   : > { %831 = vst [vmem:[%s1672_s15] sm:$0xff] %v829_v39 }
 0x11a   : > { %v782_v45 = vadd.f32 %v781_v40, %v780_v33  ;;  %v810_v46 = vrot.slane %v809_v41, 4 }
 0x11b   : > { %v779_v32 = vld [vmem:[#allocation2 + $0x8] sm:$0xff] }
 0x11c   : > { %v787_v37 = vadd.f32 %v779_v32, %v777_v30  ;;  %v808_v38 = vmul.f32 %v779_v32, %v779_v32  ;;  %v830_v42 = vpack.c.bf16 %v779_v32, %v778_v31  ;;  %v783_v49 = vrot.slane %v782_v45, 2 }
 0x11d   : > { %v811_v50 = vadd.f32 %v810_v46, %v809_v41 }
 0x11e   : > { %v788_v43 = vrot.slane %v787_v37, 4  ;;  %v816_v44 = vadd.f32 %v808_v38, %v806_v35  ;;  %832 = vst [vmem:[%s1672_s15 + $0x8] sm:$0xff] %v830_v42  ;;  %v784_v53 = vadd.f32 %v783_v49, %v782_v45 }
 0x11f   : > { %v812_v54 = vrot.slane %v811_v50, 2 }
 0x120   : > { %v789_v47 = vadd.f32 %v788_v43, %v787_v37  ;;  %v817_v48 = vrot.slane %v816_v44, 4  ;;  %v785_v57 = vrot.slane %v784_v53, 1 }
 0x121   : > { %v813_v58 = vadd.f32 %v812_v54, %v811_v50 }
 0x122   : > { %v790_v51 = vrot.slane %v789_v47, 2  ;;  %v818_v52 = vadd.f32 %v817_v48, %v816_v44  ;;  %v786_v63 = vadd.f32 %v785_v57, %v784_v53 }
 0x123   : > { %v814_v62 = vrot.slane %v813_v58, 1 }
 0x124   : > { %v791_v55 = vadd.f32 %v790_v51, %v789_v47  ;;  %v819_v56 = vrot.slane %v818_v52, 2 }
 0x125   : > { %v815_v3 = vadd.f32 %v814_v62, %v813_v58 }
 0x126   : > { %v792_v59 = vrot.slane %v791_v55, 1  ;;  %v820_v61 = vadd.f32 %v819_v56, %v818_v52 }
 0x128   : > { %v793_v0 = vadd.f32 %v792_v59, %v791_v55  ;;  %v821_v1 = vrot.slane %v820_v61, 1 }
 0x12a   : > { %v796_v2 = vrot.slane %v793_v0, 7  ;;  %v822_v4 = vadd.f32 %v821_v1, %v820_v61 }
 0x12c   : > { %v798_v5 = vsel %vm797_vm0, %v786_v63, %v796_v2  ;;  %v825_v6 = vrot.slane %v822_v4, 7 }
 0x12d   : > { %804 = vst.msk [vmem:[%s481_s6] sm:$0x3] %vm802_vm1, %v798_v5 }
 0x12e   : > { %v826_v7 = vsel %vm797_vm0, %v815_v3, %v825_v6 }
 0x12f   : > { %828 = vst.msk [vmem:[%s490_s28] sm:$0x3] %vm802_vm1, %v826_v7 }
 0x130 PF: > { %855 = sbr.rel (!%p1564_p12) target bundleno = 309 (0x135), region = 116  ;;  %s1266_s10 = sshll.u32 (%p1564_p12), %s1430_s22, 3  ;;  %v892_v8 = vld [vmem:[%s1672_s15] sm:$0xff] (%p1564_p12)  ;;  %v894_v9 = vld [vmem:[%s1672_s15 + $0x8] sm:$0xff] (%p1564_p12) }
 0x131   : > { %s861_s5 = scalar_lea.vmem (%p1564_p12), %s1799_s2, %s1266_s10 }
 0x132   : > { %893 = vst [vmem:[%s861_s5] sm:$0xff] (%p1564_p12), %v892_v8 }
 0x133   : > { %895 = vst [vmem:[%s861_s5 + $0x10] sm:$0xff] (%p1564_p12), %v894_v9 }
 0x135 PF: > { %s15_s25 = sadd.s32 1, %s1442_s25   ;;  %s1812_s19 = sld [smem:[#allocation6_spill]] }
 0x136   : > { %p12_p6 = scmp.ge.s32.totalorder %s15_s25, 38   ;;  %s1813_s20 = sld [smem:[#allocation9_spill]] }
 0x137   : > { %s1814_s14 = sld [smem:[#allocation7_spill]]  ;;  %s1816_s15 = smov %s1406_s16 }
 0x138   : > { %s1815_s11 = sld [smem:[#allocation8_spill]]  ;;  %s1817_s16 = smov %s1562_s13 }
 0x139   : > { %s1818_s17 = smov %s1414_s18  ;;  %s1819_s18 = smov %s1559_s12 }
 0x13a   : > { %s1820_s21 = smov %s1434_s23  ;;  %s1821_s22 = smov %s1438_s24 }
 0x13b   :  { %14 = sbr.rel (!%p12_p6) target bundleno = 6 (0x6), region = 217 }
 0x13d   : > { %s1822_s23 = smov %s1814_s14 }
 0x13e   : > { %s1823_s24 = smov %s1815_s11 }

// kernel: model_pretrain_forward.83
= control target key start
LH: loop header
LB: loop body
LE: loop exit
PB: predicated region body
PF: predicated region fallthrough
CT: control target
= control target key end

     0   :  { %s94_s0 = inlined_call_operand.vmem [shape: bf16[8,512], index: 0, kind: input, shape index: {}]   ;;  %s95_s1 = inlined_call_operand.vmem [shape: f32[1,512], index: 1, kind: input, shape index: {}]   ;;  %s96_s2 = inlined_call_operand.vmem [shape: f32[1,512], index: 2, kind: input, shape index: {}]   ;;  %s97_s3 = inlined_call_operand.vmem [shape: bf16[8,512], index: 3, kind: output, shape index: {}]  }
   0x1   :  { %v14_v0 = vld [vmem:[%s94_s0] sm:$0xff]  ;;  %v15_v7 = vld [vmem:[%s94_s0 + $0x8] sm:$0xff] }
   0x2   :  { %v20_v1 = vld [vmem:[%s95_s1] sm:$0xf]  ;;  %v16_v3 = vunpack.c.l.bf16 %v14_v0  ;;  %v17_v4 = vunpack.c.h.bf16 %v14_v0  ;;  %v18_v10 = vunpack.c.l.bf16 %v15_v7  ;;  %v19_v11 = vunpack.c.h.bf16 %v15_v7 }
   0x3   :  { %v34_v2 = vld [vmem:[%s96_s2] sm:$0xf]  ;;  %v22_v5 = vperm.slane %v20_v1, 0  ;;  %v23_v6 = vperm.slane %v20_v1, 1  ;;  %v24_v14 = vperm.slane %v20_v1, 2  ;;  %v25_v15 = vperm.slane %v20_v1, 3 }
   0x4   :  { %v36_v8 = vperm.slane %v34_v2, 0  ;;  %v37_v9 = vperm.slane %v34_v2, 1  ;;  %v38_v16 = vperm.slane %v34_v2, 2  ;;  %v39_v17 = vperm.slane %v34_v2, 3 }
   0x5   :  { %v30_v12 = vmul.f32 %v22_v5, %v16_v3  ;;  %v31_v13 = vmul.f32 %v23_v6, %v17_v4  ;;  %v32_v20 = vmul.f32 %v24_v14, %v18_v10  ;;  %v33_v21 = vmul.f32 %v25_v15, %v19_v11 }
   0x7   :  { %v44_v18 = vadd.f32 %v36_v8, %v30_v12  ;;  %v45_v19 = vadd.f32 %v37_v9, %v31_v13  ;;  %v46_v23 = vadd.f32 %v38_v16, %v32_v20  ;;  %v47_v24 = vadd.f32 %v39_v17, %v33_v21 }
   0x9   :  { %v48_v22 = vpack.c.bf16 %v45_v19, %v44_v18  ;;  %v49_v25 = vpack.c.bf16 %v47_v24, %v46_v23 }
   0xb   :  { %50 = vst [vmem:[%s97_s3] sm:$0xff] %v48_v22 }
   0xc   :  { %51 = vst [vmem:[%s97_s3 + $0x8] sm:$0xff] %v49_v25 }

// kernel: model_pretrain_forward.84
= control target key start
LH: loop header
LB: loop body
LE: loop exit
PB: predicated region body
PF: predicated region fallthrough
CT: control target
= control target key end

     0   :  { %s122_s0 = inlined_call_operand.vmem [shape: bf16[8,512], index: 0, kind: input, shape index: {}]   ;;  %s123_s1 = inlined_call_operand.vmem [shape: bf16[8,512], index: 1, kind: input, shape index: {}]   ;;  %s124_s2 = inlined_call_operand.vmem [shape: f32[1,512], index: 2, kind: input, shape index: {}]   ;;  %s125_s3 = inlined_call_operand.vmem [shape: f32[1,512], index: 3, kind: input, shape index: {}]   ;;  %s126_s4 = inlined_call_operand.vmem [shape: bf16[8,512], index: 4, kind: output, shape index: {}]  }
   0x1   :  { %v17_v0 = vld [vmem:[%s122_s0] sm:$0xff]  ;;  %v18_v8 = vld [vmem:[%s122_s0 + $0x8] sm:$0xff] }
   0x2   :  { %v23_v1 = vld [vmem:[%s124_s2] sm:$0xf]  ;;  %v19_v3 = vunpack.c.l.bf16 %v17_v0  ;;  %v20_v4 = vunpack.c.h.bf16 %v17_v0  ;;  %v21_v15 = vunpack.c.l.bf16 %v18_v8  ;;  %v22_v16 = vunpack.c.h.bf16 %v18_v8  ;;  %v52_v17 = vld [vmem:[%s123_s1 + $0x8] sm:$0xff] }
   0x3   :  { %v37_v2 = vld [vmem:[%s125_s3] sm:$0xf]  ;;  %v25_v5 = vperm.slane %v23_v1, 0  ;;  %v26_v6 = vperm.slane %v23_v1, 1  ;;  %v27_v18 = vperm.slane %v23_v1, 2  ;;  %v28_v19 = vperm.slane %v23_v1, 3 }
   0x4   :  { %v51_v7 = vld [vmem:[%s123_s1] sm:$0xff]  ;;  %v39_v9 = vperm.slane %v37_v2, 0  ;;  %v40_v10 = vperm.slane %v37_v2, 1  ;;  %v41_v20 = vperm.slane %v37_v2, 2  ;;  %v42_v21 = vperm.slane %v37_v2, 3 }
   0x5   :  { %v53_v11 = vunpack.c.l.bf16 %v51_v7  ;;  %v54_v12 = vunpack.c.h.bf16 %v51_v7  ;;  %v33_v13 = vmul.f32 %v25_v5, %v19_v3  ;;  %v34_v14 = vmul.f32 %v26_v6, %v20_v4 }
   0x6   :  { %v35_v24 = vmul.f32 %v27_v18, %v21_v15  ;;  %v36_v25 = vmul.f32 %v28_v19, %v22_v16  ;;  %v55_v26 = vunpack.c.l.bf16 %v52_v17  ;;  %v56_v27 = vunpack.c.h.bf16 %v52_v17 }
   0x7   :  { %v47_v22 = vadd.f32 %v39_v9, %v33_v13  ;;  %v48_v23 = vadd.f32 %v40_v10, %v34_v14 }
   0x8   :  { %v49_v30 = vadd.f32 %v41_v20, %v35_v24  ;;  %v50_v31 = vadd.f32 %v42_v21, %v36_v25 }
   0x9   :  { %v57_v28 = vadd.f32 %v53_v11, %v47_v22  ;;  %v58_v29 = vadd.f32 %v54_v12, %v48_v23 }
   0xa   :  { %v59_v34 = vadd.f32 %v55_v26, %v49_v30  ;;  %v60_v35 = vadd.f32 %v56_v27, %v50_v31 }
   0xb   :  { %v61_v32 = vmax.f32 %v57_v28, 0.0  ;;  %v62_v33 = vmax.f32 %v58_v29, 0.0 }
   0xc   :  { %v63_v37 = vmax.f32 %v59_v34, 0.0  ;;  %v64_v38 = vmax.f32 %v60_v35, 0.0 }
   0xd   :  { %v65_v36 = vpack.c.bf16 %v62_v33, %v61_v32 }
   0xe   :  { %v66_v39 = vpack.c.bf16 %v64_v38, %v63_v37 }
   0xf   :  { %67 = vst [vmem:[%s126_s4] sm:$0xff] %v65_v36 }
  0x10   :  { %68 = vst [vmem:[%s126_s4 + $0x8] sm:$0xff] %v66_v39 }

// kernel: model_pretrain_forward.91
= control target key start
LH: loop header
LB: loop body
LE: loop exit
PB: predicated region body
PF: predicated region fallthrough
CT: control target
= control target key end

     0   :  { %s931_s15 = smov 0   ;;  %s933_s16 = smov 0   ;;  %s1031_s0 = inlined_call_operand.vmem [shape: bf16[16,512], index: 0, kind: input, shape index: {}]   ;;  %s1032_s1 = inlined_call_operand.vmem [shape: bf16[512,128], index: 1, kind: input, shape index: {}]   ;;  %s1033_s2 = inlined_call_operand.vmem [shape: bf16[16,128], index: 2, kind: output, shape index: {0}]   ;;  %s1034_s3 = inlined_call_operand.vmem [shape: f32[1,1,128], index: 3, kind: output, shape index: {1}]   ;;  %s1035_s4 = inlined_call_operand.vmem [shape: f32[1,1,128], index: 4, kind: output, shape index: {2}]  }
   0x1   :  { %s935_s17 = smov 0   ;;  %s937_s18 = smov 0  }
   0x2   :  { %s939_s19 = smov 0  }
   0x3 LB: > { %s27_s20 = sadd.s32 1, %s899_s18  ;;  %p50_p1 = scmp.ne.s32.totalorder %s891_s16, %s887_s15  ;;  %s903_s19 = sphi %s939_s19, %s15_s19   ;;  %s899_s18 = sphi %s937_s18, %s1039_s18   ;;  %s895_s17 = sphi %s935_s17, %s1038_s17   ;;  %s891_s16 = sphi %s933_s16, %s1037_s16   ;;  %s887_s15 = sphi %s931_s15, %s1036_s15  }
   0x4   : > { %p28_p0 = scmp.ge.s32.totalorder %s27_s20, 2  ;;  %p51_p2 = scmp.eq.s32.totalorder %s903_s19, 0 }
   0x5   : > { %s43_s22 = sadd.s32 1, %s891_s16  ;;  %p712_p5 = scmp.ge.s32.totalorder %s903_s19, 2 }
   0x6   : > { %s1041_s20 = smov (%p28_p0, %s27_s20), 0  ;;  %p52_p3 = por %p51_p2, %p50_p1 }
   0x7   : > { %s39_s21 = ssub.s32 %s899_s18, %s1041_s20  ;;  %188 = sbr.rel (%p712_p5) target bundleno = 18 (0x12), region = 16 }
   0x8   : > { %p41_p4 = scmp.eq.s32.totalorder %s39_s21, 0 }
   0xa   : > { %s966_s23 = scalar_select %p41_p4, %s891_s16, %s43_s22  }
   0xc   : > { %191 = sbr.rel (!%p52_p3) target bundleno = 18 (0x12), region = 20  ;;  %s193_s24 = sand.u32 (%p52_p3), 1, %s891_s16  }
   0xd   : > { %s800_s25 = sshll.u32 (%p52_p3), %s899_s18, 3  ;;  %s713_s26 = sshll.u32 (%p52_p3), %s193_s24, 4 }
   0xe   : > { %s201_s29 = scalar_lea.vmem (%p52_p3), %s1031_s0, %s800_s25  ;;  %s195_s30 = scalar_lea.vmem (%p52_p3), [#allocation3], %s713_s26 }
   0xf   : > { %v232_v0 = vld [vmem:[%s201_s29] sm:$0xff] (%p52_p3)  ;;  %v234_v1 = vld [vmem:[%s201_s29 + $0x10] sm:$0xff] (%p52_p3) }
  0x10   : > { %233 = vst [vmem:[%s195_s30] sm:$0xff] (%p52_p3), %v232_v0 }
  0x11   : > { %235 = vst [vmem:[%s195_s30 + $0x8] sm:$0xff] %v234_v1 }
  0x12 PF: > { %p716_p6 = scmp.ge.s32.totalorder %s903_s19, 1  ;;  %p252_p7 = scmp.lt.s32.totalorder %s903_s19, 3 }
  0x14   : > { %p253_p8 = pnand %p716_p6, %p252_p7 }
  0x15   : > { %s259_s5 = sand.u32 (!%p253_p8), 1, %s887_s15   ;;  %s718_s6 = sshll.u32 (!%p253_p8), %s895_s17, 5 }
  0x16   : > { %256 = sbr.rel (%p253_p8) target bundleno = 231 (0xe7), region = 62  ;;  %s717_s7 = sshll.u32 (!%p253_p8), %s259_s5, 4 }
  0x17   : > { %p310_p9 = scmp.lt.s32.totalorder (!%p253_p8), %s718_s6, 63  ;;  %s983_s12 = scalar_lea.vmem (!%p253_p8), [#allocation3], %s717_s7 }
  0x18   : > { %p720_p10 = scmp.ne.s32.totalorder (!%p253_p8), %s895_s17, 0 }
  0x1b   : > { %s1043_s6 = smov (!%p310_p9, %s718_s6), 63  ;;  %342 = sbr.rel (%p720_p10) target bundleno = 35 (0x23), region = 70 }
  0x1c   : > { %s719_s8 = sshll.u32 %s1043_s6, 2 }
  0x1d   : > { %s981_s11 = scalar_lea.vmem %s1032_s1, %s719_s8 }
  0x20   : > { %v905_v2 = vmov 0.0  }
  0x21   : > { %343 = vst [vmem:[#allocation2] sm:$0xff] %v905_v2 }
  0x22   : > { %344 = vst [vmem:[#allocation2 + $0x8] sm:$0xff] %v905_v2 }
  0x23 PF: > { %v810_v3 = vld [vmem:[%s981_s11 + $0x38] sm:$0xff]  ;;  %v809_v5 = vld [vmem:[%s981_s11 + $0x30] sm:$0xff]  ;;  %v808_v7 = vld [vmem:[%s981_s11 + $0x28] sm:$0xff]  ;;  %p793_p11 = scmp.ne.s32.totalorder %s895_s17, 1 }
  0x24   : > { %v818_v4 = vld [vmem:[%s981_s11 + $0x78] sm:$0xff]  ;;  %487 = vmatpush.bf16.msra.mxu0 %v810_v3  ;;  %v817_v6 = vld [vmem:[%s981_s11 + $0x70] sm:$0xff]  ;;  %v816_v8 = vld [vmem:[%s981_s11 + $0x68] sm:$0xff] }
  0x25   : > { %501 = vmatpush.bf16.msra.mxu1 %v818_v4  ;;  %v807_v9 = vld [vmem:[%s981_s11 + $0x20] sm:$0xff]  ;;  %v806_v11 = vld [vmem:[%s981_s11 + $0x18] sm:$0xff]  ;;  %v805_v13 = vld [vmem:[%s981_s11 + $0x10] sm:$0xff] }
  0x26   : > { %v815_v10 = vld [vmem:[%s981_s11 + $0x60] sm:$0xff]  ;;  %v814_v12 = vld [vmem:[%s981_s11 + $0x58] sm:$0xff]  ;;  %v813_v14 = vld [vmem:[%s981_s11 + $0x50] sm:$0xff] }
  0x27   : > { %v804_v15 = vld [vmem:[%s981_s11 + $0x8] sm:$0xff]  ;;  %v803_v17 = vld [vmem:[%s981_s11] sm:$0xff] }
  0x28   : > { %488 = vmatpush.bf16.msra.mxu0 %v809_v5  ;;  %v812_v16 = vld [vmem:[%s981_s11 + $0x48] sm:$0xff]  ;;  %v811_v18 = vld [vmem:[%s981_s11 + $0x40] sm:$0xff] }
  0x29   : > { %502 = vmatpush.bf16.msra.mxu1 %v817_v6  ;;  %v723_v19 = vld [vmem:[%s983_s12] sm:$0xf]  ;;  %v802_v20 = vld [vmem:[%s983_s12 + $0x4] sm:$0xf0]  ;;  %v801_v21 = vld [vmem:[%s983_s12 + $0x4] sm:$0xf] }
  0x2a   : > { %v725_v22 = vld [vmem:[%s983_s12 + $0x8] sm:$0xf0]  ;;  %v724_v23 = vor.u32 %v802_v20, %v723_v19  ;;  %v345_v26 = vld [vmem:[#allocation2] sm:$0xff] }
  0x2b   : > { %v728_v24 = vor.u32 %v801_v21, %v725_v22  ;;  %v346_v31 = vld [vmem:[#allocation2 + $0x8] sm:$0xff] }
  0x2c   : > { %489 = vmatpush.bf16.msra.mxu0 %v808_v7 }
  0x2d   : > { %503 = vmatpush.bf16.msra.mxu1 %v816_v8 }
  0x30   : > { %490 = vmatpush.bf16.msra.mxu0 %v807_v9 }
  0x31   : > { %504 = vmatpush.bf16.msra.mxu1 %v815_v10 }
  0x34   : > { %491 = vmatpush.bf16.msra.mxu0 %v806_v11 }
  0x35   : > { %505 = vmatpush.bf16.msra.mxu1 %v814_v12 }
  0x38   : > { %492 = vmatpush.bf16.msra.mxu0 %v805_v13 }
  0x39   : > { %506 = vmatpush.bf16.msra.mxu1 %v813_v14 }
  0x3c   : > { %493 = vmatpush.bf16.msra.mxu0 %v804_v15 }
  0x3d   : > { %507 = vmatpush.bf16.msra.mxu1 %v812_v16 }
  0x40   : > { %494 = vmatpush.bf16.msra.mxu0 %v803_v17 }
  0x41   : > { %508 = vmatpush.bf16.msra.mxu1 %v811_v18 }
  0x43   : > { %495 = vmatmul.bf16.vlgmr.msra.gmra.mxu0 %v724_v23 }
  0x44   : > { %509 = vmatmul.bf16.vlgmr.msra.gmra.mxu1 %v728_v24 }
  0xc0   : > { %v496_v25 = vpop.f32.mrf.mxu0 }
  0xc1   : > { %v510_v27 = vpop.f32.mrf.mxu1 }
  0xc2   : > { %v511_v28 = vadd.f32 %v510_v27, %v496_v25 }
  0xc4   : > { %v515_v29 = vadd.f32 %v511_v28, %v345_v26 }
  0xc6   : > { %517 = vst [vmem:[#allocation2] sm:$0xff] %v515_v29 }
  0xc8   : > { %v498_v30 = vpop.f32.mrf.mxu0 }
  0xc9   : > { %v512_v32 = vpop.f32.mrf.mxu1 }
  0xca   : > { %v513_v33 = vadd.f32 %v512_v32, %v498_v30  ;;  %522 = sbr.rel (%p793_p11) target bundleno = 231 (0xe7), region = 74 }
  0xcc   : > { %v516_v34 = vadd.f32 %v513_v33, %v346_v31 }
  0xce   : > { %518 = vst [vmem:[#allocation2 + $0x8] sm:$0xff] %v516_v34 }
  0xcf   : > { %v523_v35 = vld [vmem:[#allocation2] sm:$0xff] }
  0xd0   : > { %v533_v38 = vmul.f32 %v523_v35, %v523_v35 }
  0xd5   : > { %v524_v36 = vld [vmem:[#allocation2 + $0x8] sm:$0xff] }
  0xd6   : > { %v525_v37 = vadd.f32 %v524_v36, %v523_v35  ;;  %v534_v39 = vmul.f32 %v524_v36, %v524_v36  ;;  %v822_v40 = vpack.c.bf16 %v524_v36, %v523_v35 }
  0xd8   : > { %v526_v41 = vrot.slane %v525_v37, 4  ;;  %v535_v42 = vadd.f32 %v534_v39, %v533_v38  ;;  %823 = vst [vmem:[%s1033_s2] sm:$0xff] %v822_v40  }
  0xda   : > { %v527_v43 = vadd.f32 %v526_v41, %v525_v37  ;;  %v536_v44 = vrot.slane %v535_v42, 4 }
  0xdc   : > { %v528_v45 = vrot.slane %v527_v43, 2  ;;  %v537_v46 = vadd.f32 %v536_v44, %v535_v42 }
  0xde   : > { %v529_v47 = vadd.f32 %v528_v45, %v527_v43  ;;  %v538_v48 = vrot.slane %v537_v46, 2 }
  0xe0   : > { %v530_v49 = vrot.slane %v529_v47, 1  ;;  %v539_v50 = vadd.f32 %v538_v48, %v537_v46 }
  0xe2   : > { %v531_v51 = vadd.f32 %v530_v49, %v529_v47  ;;  %v540_v52 = vrot.slane %v539_v50, 1 }
  0xe4   : > { %532 = vst [vmem:[%s1034_s3] sm:$0x1] %v531_v51  ;;  %v541_v53 = vadd.f32 %v540_v52, %v539_v50 }
  0xe6   : > { %542 = vst [vmem:[%s1035_s4] sm:$0x1] %v541_v53 }
  0xe7 PF: > { %s15_s19 = sadd.s32 1, %s903_s19   ;;  %s1036_s15 = smov %s891_s16 }
  0xe8   : > { %p12_p12 = scmp.ge.s32.totalorder %s15_s19, 4   ;;  %s1037_s16 = smov %s966_s23 }
  0xe9   : > { %s1038_s17 = smov %s899_s18  ;;  %s1039_s18 = smov %s1041_s20 }
  0xea   :  { %14 = sbr.rel (!%p12_p12) target bundleno = 3 (0x3), region = 136 }

// kernel: model_pretrain_forward.92
= control target key start
LH: loop header
LB: loop body
LE: loop exit
PB: predicated region body
PF: predicated region fallthrough
CT: control target
= control target key end

     0   :  { %s67_s0 = inlined_call_operand.vmem [shape: bf16[8,128], index: 0, kind: input, shape index: {}]   ;;  %s68_s1 = inlined_call_operand.vmem [shape: f32[1,128], index: 1, kind: input, shape index: {}]   ;;  %s69_s2 = inlined_call_operand.vmem [shape: f32[1,128], index: 2, kind: input, shape index: {}]   ;;  %s70_s3 = inlined_call_operand.vmem [shape: bf16[8,128], index: 3, kind: output, shape index: {}]  }
   0x1   :  { %v14_v0 = vld [vmem:[%s67_s0] sm:$0xf] }
   0x2   :  { %v33_v1 = vld [vmem:[%s68_s1] ss:$0 sm:$0xff]  ;;  %v15_v2 = vunpack.c.l.bf16 %v14_v0 }
   0x3   :  { %v34_v3 = vld [vmem:[%s69_s2] ss:$0 sm:$0xff] }
   0x4   :  { %v20_v4 = vmul.f32 %v33_v1, %v15_v2 }
   0x6   :  { %v25_v5 = vadd.f32 %v34_v3, %v20_v4 }
   0x8   :  { %v26_v6 = vmax.f32 %v25_v5, 0.0 }
   0xa   :  { %v27_v7 = vpack.c.bf16 %v26_v6, %v26_v6 }
   0xc   :  { %28 = vst [vmem:[%s70_s3] sm:$0xf] %v27_v7 }

// kernel: model_pretrain_forward.93
= control target key start
LH: loop header
LB: loop body
LE: loop exit
PB: predicated region body
PF: predicated region fallthrough
CT: control target
= control target key end

     0   :  { %s262_s1 = inlined_call_operand.vmem [shape: bf16[128,128], index: 1, kind: input, shape index: {}]   ;;  %s263_s0 = inlined_call_operand.vmem [shape: bf16[16,128], index: 0, kind: input, shape index: {}]   ;;  %s264_s2 = inlined_call_operand.vmem [shape: bf16[16,128], index: 2, kind: output, shape index: {0}]   ;;  %s265_s3 = inlined_call_operand.vmem [shape: f32[1,1,128], index: 3, kind: output, shape index: {1}]   ;;  %s266_s4 = inlined_call_operand.vmem [shape: f32[1,1,128], index: 4, kind: output, shape index: {2}]  }
   0x1   :  { %v195_v0 = vld [vmem:[%s262_s1 + $0x38] sm:$0xff]  ;;  %v194_v1 = vld [vmem:[%s262_s1 + $0x30] sm:$0xff]  ;;  %v193_v2 = vld [vmem:[%s262_s1 + $0x28] sm:$0xff] }
   0x2   :  { %94 = vmatpush.bf16.msra.mxu0 %v195_v0  ;;  %v192_v3 = vld [vmem:[%s262_s1 + $0x20] sm:$0xff]  ;;  %v191_v4 = vld [vmem:[%s262_s1 + $0x18] sm:$0xff]  ;;  %v190_v5 = vld [vmem:[%s262_s1 + $0x10] sm:$0xff] }
   0x3   :  { %v189_v6 = vld [vmem:[%s262_s1 + $0x8] sm:$0xff]  ;;  %v188_v7 = vld [vmem:[%s262_s1] sm:$0xff] }
   0x4   :  { %v187_v8 = vld [vmem:[%s263_s0] sm:$0xff] }
   0x6   :  { %95 = vmatpush.bf16.msra.mxu0 %v194_v1 }
   0xa   :  { %96 = vmatpush.bf16.msra.mxu0 %v193_v2 }
   0xe   :  { %97 = vmatpush.bf16.msra.mxu0 %v192_v3 }
  0x12   :  { %98 = vmatpush.bf16.msra.mxu0 %v191_v4 }
  0x16   :  { %99 = vmatpush.bf16.msra.mxu0 %v190_v5 }
  0x1a   :  { %100 = vmatpush.bf16.msra.mxu0 %v189_v6 }
  0x1e   :  { %101 = vmatpush.bf16.msra.mxu0 %v188_v7 }
  0x21   :  { %102 = vmatmul.bf16.vlgmr.msra.gmra.mxu0 %v187_v8 }
  0x9e   :  { %v103_v9 = vpop.f32.mrf.mxu0 }
  0x9f   :  { %v125_v11 = vmul.f32 %v103_v9, %v103_v9 }
  0xa6   :  { %v105_v10 = vpop.f32.mrf.mxu0 }
  0xa7   :  { %v117_v12 = vadd.f32 %v105_v10, %v103_v9  ;;  %v126_v13 = vmul.f32 %v105_v10, %v105_v10  ;;  %v199_v14 = vpack.c.bf16 %v105_v10, %v103_v9 }
  0xa9   :  { %v118_v15 = vrot.slane %v117_v12, 4  ;;  %v127_v16 = vadd.f32 %v126_v13, %v125_v11  ;;  %200 = vst [vmem:[%s264_s2] sm:$0xff] %v199_v14  }
  0xab   :  { %v119_v17 = vadd.f32 %v118_v15, %v117_v12  ;;  %v128_v18 = vrot.slane %v127_v16, 4 }
  0xad   :  { %v120_v19 = vrot.slane %v119_v17, 2  ;;  %v129_v20 = vadd.f32 %v128_v18, %v127_v16 }
  0xaf   :  { %v121_v21 = vadd.f32 %v120_v19, %v119_v17  ;;  %v130_v22 = vrot.slane %v129_v20, 2 }
  0xb1   :  { %v122_v23 = vrot.slane %v121_v21, 1  ;;  %v131_v24 = vadd.f32 %v130_v22, %v129_v20 }
  0xb3   :  { %v123_v25 = vadd.f32 %v122_v23, %v121_v21  ;;  %v132_v26 = vrot.slane %v131_v24, 1 }
  0xb5   :  { %124 = vst [vmem:[%s265_s3] sm:$0x1] %v123_v25  ;;  %v133_v27 = vadd.f32 %v132_v26, %v131_v24 }
  0xb7   :  { %134 = vst [vmem:[%s266_s4] sm:$0x1] %v133_v27 }

// kernel: model_pretrain_forward.95
= control target key start
LH: loop header
LB: loop body
LE: loop exit
PB: predicated region body
PF: predicated region fallthrough
CT: control target
= control target key end

     0   :  { %s213_s1 = inlined_call_operand.vmem [shape: bf16[128,128], index: 1, kind: input, shape index: {}]   ;;  %s214_s0 = inlined_call_operand.vmem [shape: bf16[16,128], index: 0, kind: input, shape index: {}]   ;;  %s215_s2 = inlined_call_operand.vmem [shape: f32[16,128], index: 2, kind: output, shape index: {}]  }
   0x1   :  { %v164_v0 = vld [vmem:[%s213_s1 + $0x38] sm:$0xff]  ;;  %v163_v1 = vld [vmem:[%s213_s1 + $0x30] sm:$0xff]  ;;  %v162_v2 = vld [vmem:[%s213_s1 + $0x28] sm:$0xff] }
   0x2   :  { %91 = vmatpush.bf16.msra.mxu0 %v164_v0  ;;  %v161_v3 = vld [vmem:[%s213_s1 + $0x20] sm:$0xff]  ;;  %v160_v4 = vld [vmem:[%s213_s1 + $0x18] sm:$0xff]  ;;  %v159_v5 = vld [vmem:[%s213_s1 + $0x10] sm:$0xff] }
   0x3   :  { %v158_v6 = vld [vmem:[%s213_s1 + $0x8] sm:$0xff]  ;;  %v157_v7 = vld [vmem:[%s213_s1] sm:$0xff] }
   0x4   :  { %v156_v8 = vld [vmem:[%s214_s0] sm:$0xff] }
   0x6   :  { %92 = vmatpush.bf16.msra.mxu0 %v163_v1 }
   0xa   :  { %93 = vmatpush.bf16.msra.mxu0 %v162_v2 }
   0xe   :  { %94 = vmatpush.bf16.msra.mxu0 %v161_v3 }
  0x12   :  { %95 = vmatpush.bf16.msra.mxu0 %v160_v4 }
  0x16   :  { %96 = vmatpush.bf16.msra.mxu0 %v159_v5 }
  0x1a   :  { %97 = vmatpush.bf16.msra.mxu0 %v158_v6 }
  0x1e   :  { %98 = vmatpush.bf16.msra.mxu0 %v157_v7 }
  0x21   :  { %99 = vmatmul.bf16.vlgmr.msra.gmra.mxu0 %v156_v8 }
  0x9e   :  { %v100_v9 = vpop.f32.mrf.mxu0 }
  0x9f   :  { %114 = vst [vmem:[%s215_s2] sm:$0xff] %v100_v9 }
  0xa6   :  { %v102_v10 = vpop.f32.mrf.mxu0 }
  0xa7   :  { %115 = vst [vmem:[%s215_s2 + $0x8] sm:$0xff] %v102_v10 }

// kernel: model_pretrain_forward.89
= control target key start
LH: loop header
LB: loop body
LE: loop exit
PB: predicated region body
PF: predicated region fallthrough
CT: control target
= control target key end

     0   :  { %s1299_s12 = smov 0   ;;  %s1301_s13 = smov 0   ;;  %s1617_s0 = inlined_call_operand.vmem [shape: bf16[16,512], index: 0, kind: input, shape index: {}]   ;;  %s1618_s1 = inlined_call_operand.vmem [shape: bf16[512,512], index: 1, kind: input, shape index: {}]   ;;  %s1619_s2 = inlined_call_operand.vmem [shape: f32[1,512], index: 2, kind: input, shape index: {}]   ;;  %s1620_s3 = inlined_call_operand.vmem [shape: bf16[16,512], index: 3, kind: output, shape index: {}]  }
   0x1   :  { %s1303_s14 = smov 0   ;;  %s1305_s15 = smov 0  }
   0x2   :  { %s1307_s16 = smov 0   ;;  %s1309_s17 = smov 0  }
   0x3   :  { %s1311_s18 = smov 0   ;;  %s1313_s19 = smov 0  }
   0x4   :  { %s1315_s20 = smov 0   ;;  %s1317_s21 = smov 0  }
   0x5   :  { %s1319_s22 = smov 0  }
   0x6 LB: > { %s904_s23 = sadd.s32 4294967295, %s1276_s22   ;;  %s25_s24 = sadd.s32 1, %s1268_s20  ;;  %s1276_s22 = sphi %s1319_s22, %s13_s22   ;;  %s1272_s21 = sphi %s1317_s21, %s1641_s21   ;;  %s1268_s20 = sphi %s1315_s20, %s1640_s20   ;;  %s1264_s19 = sphi %s1313_s19, %s1639_s19   ;;  %s1260_s18 = sphi %s1311_s18, %s1638_s18   ;;  %s1256_s17 = sphi %s1309_s17, %s1637_s17   ;;  %s1252_s16 = sphi %s1307_s16, %s1636_s16   ;;  %s1248_s15 = sphi %s1305_s15, %s1635_s15   ;;  %s1244_s14 = sphi %s1303_s14, %s1634_s14   ;;  %s1240_s13 = sphi %s1301_s13, %s1633_s13   ;;  %s1236_s12 = sphi %s1299_s12, %s1632_s12  }
   0x7   : > { %p26_p0 = scmp.ge.s32.totalorder %s25_s24, 2  ;;  %s28_s25 = sadd.s32 1, %s1272_s21 }
   0x8   : > { %s41_s26 = sadd.s32 1, %s1256_s17  ;;  %p48_p1 = scmp.ne.s32.totalorder %s1256_s17, %s1252_s16 }
   0x9   : > { %s1643_s24 = smov (%p26_p0, %s25_s24), 0  ;;  %s1645_s25 = smov (!%p26_p0, %s28_s25), %s1272_s21 }
   0xa   : > { %1623 = sst [smem:[#allocation6_spill]] %s1643_s24  ;;  %s37_s27 = ssub.s32 %s1268_s20, %s1643_s24 }
   0xb   : > { %p49_p2 = scmp.eq.s32.totalorder %s1276_s22, 0  ;;  %p30_p3 = scmp.ge.s32.totalorder %s1645_s25, 2 }
   0xc   : > { %p39_p4 = scmp.eq.s32.totalorder %s37_s27, 0  ;;  %s69_s29 = sadd.s32 1, %s1248_s15 }
   0xd   : > { %p1366_p5 = por %p49_p2, %p48_p1  ;;  %s1647_s25 = smov (%p30_p3, %s1645_s25), 0 }
   0xe   : > { %1625 = sst [smem:[#allocation7_spill]] %s1647_s25  ;;  %s65_s4 = ssub.s32 %s1272_s21, %s1647_s25 }
   0xf   : > { %s1374_s30 = scalar_select %p39_p4, %s1256_s17, %s41_s26  }
  0x10   : > { %p76_p6 = scmp.ne.s32.totalorder %s1248_s15, %s1244_s14  ;;  %s66_s5 = sor.u32 %s65_s4, %s37_s27 }
  0x11   : > { %1626 = sst [smem:[#allocation8_spill]] %s1374_s30  ;;  %p121_p7 = scmp.eq.s32.totalorder %s65_s4, 0 }
  0x12   : > { %p67_p8 = scmp.eq.s32.totalorder %s66_s5, 0  ;;  %p1380_p9 = por %p76_p6, %p49_p2 }
  0x13   : > { %s123_s7 = sadd.s32 1, %s1240_s13  ;;  %p133_p10 = scmp.ne.s32.totalorder %s1240_s13, %s1236_s12 }
  0x14   : > { %s1388_s8 = scalar_select %p67_p8, %s1248_s15, %s69_s29  }
  0x15   : > { %s1391_s9 = scalar_select %p121_p7, %s1240_s13, %s123_s7  }
  0x16   : > { %p134_p11 = scmp.eq.s32.totalorder %s904_s23, 3  ;;  %p907_p13 = scmp.ge.s32.totalorder %s1276_s22, 4 }
  0x18   : > { %p1393_p12 = por %p134_p11, %p133_p10  ;;  %156 = sbr.rel (%p907_p13) target bundleno = 74 (0x4a), region = 16 }
  0x1d   : > { %159 = sbr.rel (!%p1366_p5) target bundleno = 35 (0x23), region = 20  ;;  %s161_s11 = sand.u32 (%p1366_p5), 1, %s1256_s17  }
  0x1e   : > { %s1064_s26 = sshll.u32 (%p1366_p5), %s1268_s20, 3  ;;  %s908_s27 = sshll.u32 (%p1366_p5), %s161_s11, 4 }
  0x1f   : > { %s169_s5 = scalar_lea.vmem (%p1366_p5), %s1617_s0, %s1064_s26  ;;  %s163_s23 = scalar_lea.vmem (%p1366_p5), [#allocation3], %s908_s27 }
  0x20   : > { %v200_v0 = vld [vmem:[%s169_s5] sm:$0xff] (%p1366_p5)  ;;  %v202_v1 = vld [vmem:[%s169_s5 + $0x10] sm:$0xff] (%p1366_p5) }
  0x21   : > { %201 = vst [vmem:[%s163_s23] sm:$0xff] (%p1366_p5), %v200_v0 }
  0x22   : > { %203 = vst [vmem:[%s163_s23 + $0x8] sm:$0xff] %v202_v1 }
  0x23 PF: > { %209 = sbr.rel (!%p1380_p9) target bundleno = 74 (0x4a), region = 58  ;;  %s211_s28 = sand.u32 (%p1380_p9), 1, %s1248_s15  }
  0x24   : > { %s913_s7 = sshll.u32 (%p1380_p9), %s1272_s21, 1  ;;  %s911_s25 = sshll.u32 (%p1380_p9), %s211_s28, 8 }
  0x25   : > { %s1065_s11 = sshll.u32 (%p1380_p9), %s1268_s20, 7  ;;  %s1418_s6 = scalar_lea.vmem (%p1380_p9), [#allocation4], %s911_s25 }
  0x26   : > { %s217_s24 = sadd.s32 (%p1380_p9), %s1065_s11, %s913_s7 }
  0x27   : > { %s915_s30 = sshll.u32 (%p1380_p9), %s217_s24, 2 }
  0x28   : > { %s1413_s4 = scalar_lea.vmem %s1618_s1, %s915_s30 }
  0x29   : > { %v310_v2 = vld [vmem:[%s1413_s4] sm:$0xff]  ;;  %v312_v3 = vld [vmem:[%s1413_s4 + $0x10] sm:$0xff] }
  0x2a   : > { %v314_v4 = vld [vmem:[%s1413_s4 + $0x20] sm:$0xff]  ;;  %311 = vst [vmem:[%s1418_s6] sm:$0xff] %v310_v2  ;;  %v316_v5 = vld [vmem:[%s1413_s4 + $0x30] sm:$0xff] }
  0x2b   : > { %313 = vst [vmem:[%s1418_s6 + $0x8] sm:$0xff] %v312_v3  ;;  %v318_v6 = vld [vmem:[%s1413_s4 + $0x40] sm:$0xff]  ;;  %v320_v7 = vld [vmem:[%s1413_s4 + $0x50] sm:$0xff] }
  0x2c   : > { %315 = vst [vmem:[%s1418_s6 + $0x10] sm:$0xff] %v314_v4  ;;  %v322_v8 = vld [vmem:[%s1413_s4 + $0x60] sm:$0xff]  ;;  %v324_v9 = vld [vmem:[%s1413_s4 + $0x70] sm:$0xff] }
  0x2d   : > { %317 = vst [vmem:[%s1418_s6 + $0x18] sm:$0xff] %v316_v5  ;;  %v326_v10 = vld [vmem:[%s1413_s4 + $0x80] sm:$0xff]  ;;  %v328_v11 = vld [vmem:[%s1413_s4 + $0x90] sm:$0xff] }
  0x2e   : > { %319 = vst [vmem:[%s1418_s6 + $0x20] sm:$0xff] %v318_v6  ;;  %v330_v12 = vld [vmem:[%s1413_s4 + $0xa0] sm:$0xff]  ;;  %v332_v13 = vld [vmem:[%s1413_s4 + $0xb0] sm:$0xff] }
  0x2f   : > { %321 = vst [vmem:[%s1418_s6 + $0x28] sm:$0xff] %v320_v7  ;;  %v334_v14 = vld [vmem:[%s1413_s4 + $0xc0] sm:$0xff]  ;;  %v336_v15 = vld [vmem:[%s1413_s4 + $0xd0] sm:$0xff] }
  0x30   : > { %323 = vst [vmem:[%s1418_s6 + $0x30] sm:$0xff] %v322_v8  ;;  %v338_v16 = vld [vmem:[%s1413_s4 + $0xe0] sm:$0xff]  ;;  %v340_v17 = vld [vmem:[%s1413_s4 + $0xf0] sm:$0xff] }
  0x31   : > { %325 = vst [vmem:[%s1418_s6 + $0x38] sm:$0xff] %v324_v9  ;;  %v342_v18 = vld [vmem:[%s1413_s4 + $0x100] sm:$0xff]  ;;  %v344_v19 = vld [vmem:[%s1413_s4 + $0x110] sm:$0xff] }
  0x32   : > { %327 = vst [vmem:[%s1418_s6 + $0x40] sm:$0xff] %v326_v10  ;;  %v346_v20 = vld [vmem:[%s1413_s4 + $0x120] sm:$0xff]  ;;  %v348_v21 = vld [vmem:[%s1413_s4 + $0x130] sm:$0xff] }
  0x33   : > { %329 = vst [vmem:[%s1418_s6 + $0x48] sm:$0xff] %v328_v11  ;;  %v350_v22 = vld [vmem:[%s1413_s4 + $0x140] sm:$0xff]  ;;  %v352_v23 = vld [vmem:[%s1413_s4 + $0x150] sm:$0xff] }
  0x34   : > { %331 = vst [vmem:[%s1418_s6 + $0x50] sm:$0xff] %v330_v12  ;;  %v354_v24 = vld [vmem:[%s1413_s4 + $0x160] sm:$0xff]  ;;  %v356_v25 = vld [vmem:[%s1413_s4 + $0x170] sm:$0xff] }
  0x35   : > { %333 = vst [vmem:[%s1418_s6 + $0x58] sm:$0xff] %v332_v13  ;;  %v358_v26 = vld [vmem:[%s1413_s4 + $0x180] sm:$0xff]  ;;  %v360_v27 = vld [vmem:[%s1413_s4 + $0x190] sm:$0xff] }
  0x36   : > { %335 = vst [vmem:[%s1418_s6 + $0x60] sm:$0xff] %v334_v14  ;;  %v362_v28 = vld [vmem:[%s1413_s4 + $0x1a0] sm:$0xff]  ;;  %v364_v29 = vld [vmem:[%s1413_s4 + $0x1b0] sm:$0xff] }
  0x37   : > { %337 = vst [vmem:[%s1418_s6 + $0x68] sm:$0xff] %v336_v15  ;;  %v366_v30 = vld [vmem:[%s1413_s4 + $0x1c0] sm:$0xff]  ;;  %v368_v31 = vld [vmem:[%s1413_s4 + $0x1d0] sm:$0xff] }
  0x38   : > { %339 = vst [vmem:[%s1418_s6 + $0x70] sm:$0xff] %v338_v16  ;;  %v370_v32 = vld [vmem:[%s1413_s4 + $0x1e0] sm:$0xff]  ;;  %v372_v33 = vld [vmem:[%s1413_s4 + $0x1f0] sm:$0xff] }
  0x39   : > { %341 = vst [vmem:[%s1418_s6 + $0x78] sm:$0xff] %v340_v17 }
  0x3a   : > { %343 = vst [vmem:[%s1418_s6 + $0x80] sm:$0xff] %v342_v18 }
  0x3b   : > { %345 = vst [vmem:[%s1418_s6 + $0x88] sm:$0xff] %v344_v19 }
  0x3c   : > { %347 = vst [vmem:[%s1418_s6 + $0x90] sm:$0xff] %v346_v20 }
  0x3d   : > { %349 = vst [vmem:[%s1418_s6 + $0x98] sm:$0xff] %v348_v21 }
  0x3e   : > { %351 = vst [vmem:[%s1418_s6 + $0xa0] sm:$0xff] %v350_v22 }
  0x3f   : > { %353 = vst [vmem:[%s1418_s6 + $0xa8] sm:$0xff] %v352_v23 }
  0x40   : > { %355 = vst [vmem:[%s1418_s6 + $0xb0] sm:$0xff] %v354_v24 }
  0x41   : > { %357 = vst [vmem:[%s1418_s6 + $0xb8] sm:$0xff] %v356_v25 }
  0x42   : > { %359 = vst [vmem:[%s1418_s6 + $0xc0] sm:$0xff] %v358_v26 }
  0x43   : > { %361 = vst [vmem:[%s1418_s6 + $0xc8] sm:$0xff] %v360_v27 }
  0x44   : > { %363 = vst [vmem:[%s1418_s6 + $0xd0] sm:$0xff] %v362_v28 }
  0x45   : > { %365 = vst [vmem:[%s1418_s6 + $0xd8] sm:$0xff] %v364_v29 }
  0x46   : > { %367 = vst [vmem:[%s1418_s6 + $0xe0] sm:$0xff] %v366_v30 }
  0x47   : > { %369 = vst [vmem:[%s1418_s6 + $0xe8] sm:$0xff] %v368_v31 }
  0x48   : > { %371 = vst [vmem:[%s1418_s6 + $0xf0] sm:$0xff] %v370_v32 }
  0x49   : > { %373 = vst [vmem:[%s1418_s6 + $0xf8] sm:$0xff] %v372_v33 }
  0x4a PF: > { %p916_p0 = scmp.ge.s32.totalorder %s1276_s22, 1  ;;  %p386_p1 = scmp.lt.s32.totalorder %s1276_s22, 5 }
  0x4c   : > { %p387_p2 = pnand %p916_p0, %p386_p1 }
  0x4d   : > { %s393_s24 = sand.u32 (!%p387_p2), 1, %s1252_s16   ;;  %s400_s25 = sand.u32 (!%p387_p2), 1, %s1244_s14  }
  0x4e   : > { %390 = sbr.rel (%p387_p2) target bundleno = 298 (0x12a), region = 100  ;;  %s917_s30 = sshll.u32 (!%p387_p2), %s393_s24, 4 }
  0x4f   : > { %s918_s27 = sshll.u32 (!%p387_p2), %s400_s25, 8  ;;  %s427_s5 = sand.u32 (!%p387_p2), 1, %s1236_s12  }
  0x50   : > { %s920_s23 = sshll.u32 (!%p387_p2), %s1264_s19, 1  ;;  %s919_s28 = sshll.u32 (!%p387_p2), %s427_s5, 4 }
  0x51   : > { %p435_p3 = scmp.lt.s32.totalorder (!%p387_p2), %s920_s23, 3  ;;  %s1493_s26 = scalar_lea.vmem (!%p387_p2), [#allocation3], %s917_s30 }
  0x52   : > { %s1495_s4 = scalar_lea.vmem (!%p387_p2), [#allocation4], %s918_s27  ;;  %s1497_s6 = scalar_lea.vmem (!%p387_p2), [#allocation5], %s919_s28 }
  0x53   : > { %s1649_s23 = smov (!%p435_p3, %s920_s23), 3  ;;  %p921_p4 = scmp.ne.s32.totalorder %s1260_s18, 0 }
  0x54   : > { %s437_s29 = scalar_lea.vmem %s1619_s2, %s1649_s23 }
  0x55   : > { %444 = sbr.rel (%p921_p4) target bundleno = 95 (0x5f), region = 112 }
  0x5a   : > { %v1278_v34 = vmov 0.0  }
  0x5b   : > { %445 = vst [vmem:[#allocation2 + $0x10] sm:$0xff] %v1278_v34 }
  0x5c   : > { %446 = vst [vmem:[#allocation2] sm:$0xff] %v1278_v34 }
  0x5d   : > { %447 = vst [vmem:[#allocation2 + $0x18] sm:$0xff] %v1278_v34 }
  0x5e   : > { %448 = vst [vmem:[#allocation2 + $0x8] sm:$0xff] %v1278_v34 }
  0x5f PF: > { %v988_v35 = vld [vmem:[%s1495_s4 + $0x70] sm:$0xf]  ;;  %v1083_v36 = vld [vmem:[%s1495_s4 + $0x74] sm:$0xf0]  ;;  %v1082_v40 = vld [vmem:[%s1495_s4 + $0x74] sm:$0xf] }
  0x60   : > { %v1052_v37 = vld [vmem:[%s1495_s4 + $0xf0] sm:$0xf]  ;;  %v989_v38 = vor.u32 %v1083_v36, %v988_v35  ;;  %v1099_v39 = vld [vmem:[%s1495_s4 + $0xf4] sm:$0xf0]  ;;  %v990_v41 = vld [vmem:[%s1495_s4 + $0x78] sm:$0xf0] }
  0x61   : > { %v1053_v42 = vor.u32 %v1099_v39, %v1052_v37  ;;  %v993_v43 = vor.u32 %v1082_v40, %v990_v41  ;;  %v1098_v44 = vld [vmem:[%s1495_s4 + $0xf4] sm:$0xf]  ;;  %v1054_v45 = vld [vmem:[%s1495_s4 + $0xf8] sm:$0xf0]  ;;  %v980_v46 = vld [vmem:[%s1495_s4 + $0x60] sm:$0xf] }
  0x62   : > { %657 = vmatpush.bf16.msra.mxu0 %v989_v38  ;;  %v1057_v47 = vor.u32 %v1098_v44, %v1054_v45  ;;  %v1081_v48 = vld [vmem:[%s1495_s4 + $0x64] sm:$0xf0]  ;;  %v1044_v49 = vld [vmem:[%s1495_s4 + $0xe0] sm:$0xf]  ;;  %v1080_v53 = vld [vmem:[%s1495_s4 + $0x64] sm:$0xf] }
  0x63   : > { %v1097_v50 = vld [vmem:[%s1495_s4 + $0xe4] sm:$0xf0]  ;;  %671 = vmatpush.bf16.msra.mxu1 %v1053_v42  ;;  %685 = vmatpush.bf16.msra.mxu2 %v993_v43  ;;  %v981_v51 = vor.u32 %v1081_v48, %v980_v46  ;;  %v982_v54 = vld [vmem:[%s1495_s4 + $0x68] sm:$0xf0]  ;;  %v1096_v55 = vld [vmem:[%s1495_s4 + $0xe4] sm:$0xf] }
  0x64   : > { %v1045_v52 = vor.u32 %v1097_v50, %v1044_v49  ;;  %699 = vmatpush.bf16.msra.mxu3 %v1057_v47  ;;  %v985_v56 = vor.u32 %v1080_v53, %v982_v54  ;;  %v1046_v57 = vld [vmem:[%s1495_s4 + $0xe8] sm:$0xf0]  ;;  %v972_v58 = vld [vmem:[%s1495_s4 + $0x50] sm:$0xf]  ;;  %v1079_v59 = vld [vmem:[%s1495_s4 + $0x54] sm:$0xf0] }
  0x65   : > { %v1049_v60 = vor.u32 %v1096_v55, %v1046_v57  ;;  %v1036_v61 = vld [vmem:[%s1495_s4 + $0xd0] sm:$0xf]  ;;  %v1095_v62 = vld [vmem:[%s1495_s4 + $0xd4] sm:$0xf0]  ;;  %v1078_v63 = vld [vmem:[%s1495_s4 + $0x54] sm:$0xf]  ;;  %v973_v0 = vor.u32 %v1079_v59, %v972_v58 }
  0x66   : > { %658 = vmatpush.bf16.msra.mxu0 %v981_v51  ;;  %v974_v1 = vld [vmem:[%s1495_s4 + $0x58] sm:$0xf0]  ;;  %v1094_v2 = vld [vmem:[%s1495_s4 + $0xd4] sm:$0xf]  ;;  %v1037_v4 = vor.u32 %v1095_v62, %v1036_v61  ;;  %v964_v6 = vld [vmem:[%s1495_s4 + $0x40] sm:$0xf] }
  0x67   : > { %v1038_v3 = vld [vmem:[%s1495_s4 + $0xd8] sm:$0xf0]  ;;  %672 = vmatpush.bf16.msra.mxu1 %v1045_v52  ;;  %686 = vmatpush.bf16.msra.mxu2 %v985_v56  ;;  %v977_v5 = vor.u32 %v1078_v63, %v974_v1  ;;  %v1077_v7 = vld [vmem:[%s1495_s4 + $0x44] sm:$0xf0]  ;;  %v1028_v8 = vld [vmem:[%s1495_s4 + $0xc0] sm:$0xf] }
  0x68   : > { %700 = vmatpush.bf16.msra.mxu3 %v1049_v60  ;;  %v1041_v9 = vor.u32 %v1094_v2, %v1038_v3  ;;  %v1093_v10 = vld [vmem:[%s1495_s4 + $0xc4] sm:$0xf0]  ;;  %v1076_v11 = vld [vmem:[%s1495_s4 + $0x44] sm:$0xf]  ;;  %v966_v12 = vld [vmem:[%s1495_s4 + $0x48] sm:$0xf0]  ;;  %v965_v15 = vor.u32 %v1077_v7, %v964_v6 }
  0x69   : > { %v1092_v13 = vld [vmem:[%s1495_s4 + $0xc4] sm:$0xf]  ;;  %v1030_v14 = vld [vmem:[%s1495_s4 + $0xc8] sm:$0xf0]  ;;  %v1029_v16 = vor.u32 %v1093_v10, %v1028_v8  ;;  %v969_v17 = vor.u32 %v1076_v11, %v966_v12  ;;  %v956_v18 = vld [vmem:[%s1495_s4 + $0x30] sm:$0xf] }
  0x6a   : > { %659 = vmatpush.bf16.msra.mxu0 %v973_v0  ;;  %v1075_v19 = vld [vmem:[%s1495_s4 + $0x34] sm:$0xf0]  ;;  %v1020_v20 = vld [vmem:[%s1495_s4 + $0xb0] sm:$0xf]  ;;  %v1033_v21 = vor.u32 %v1092_v13, %v1030_v14  ;;  %v1074_v23 = vld [vmem:[%s1495_s4 + $0x34] sm:$0xf] }
  0x6b   : > { %673 = vmatpush.bf16.msra.mxu1 %v1037_v4  ;;  %687 = vmatpush.bf16.msra.mxu2 %v977_v5  ;;  %v1091_v22 = vld [vmem:[%s1495_s4 + $0xb4] sm:$0xf0]  ;;  %v958_v24 = vld [vmem:[%s1495_s4 + $0x38] sm:$0xf0]  ;;  %v1090_v25 = vld [vmem:[%s1495_s4 + $0xb4] sm:$0xf]  ;;  %v957_v27 = vor.u32 %v1075_v19, %v956_v18 }
  0x6c   : > { %701 = vmatpush.bf16.msra.mxu3 %v1041_v9  ;;  %v1022_v26 = vld [vmem:[%s1495_s4 + $0xb8] sm:$0xf0]  ;;  %v1021_v28 = vor.u32 %v1091_v22, %v1020_v20  ;;  %v961_v29 = vor.u32 %v1074_v23, %v958_v24  ;;  %v948_v30 = vld [vmem:[%s1495_s4 + $0x20] sm:$0xf]  ;;  %v1073_v31 = vld [vmem:[%s1495_s4 + $0x24] sm:$0xf0] }
  0x6d   : > { %v1012_v32 = vld [vmem:[%s1495_s4 + $0xa0] sm:$0xf]  ;;  %v1025_v33 = vor.u32 %v1090_v25, %v1022_v26  ;;  %v1089_v34 = vld [vmem:[%s1495_s4 + $0xa4] sm:$0xf0]  ;;  %v1072_v35 = vld [vmem:[%s1495_s4 + $0x24] sm:$0xf]  ;;  %v949_v39 = vor.u32 %v1073_v31, %v948_v30 }
  0x6e   : > { %660 = vmatpush.bf16.msra.mxu0 %v965_v15  ;;  %v950_v36 = vld [vmem:[%s1495_s4 + $0x28] sm:$0xf0]  ;;  %v1088_v37 = vld [vmem:[%s1495_s4 + $0xa4] sm:$0xf]  ;;  %v1013_v40 = vor.u32 %v1089_v34, %v1012_v32  ;;  %v940_v42 = vld [vmem:[%s1495_s4 + $0x10] sm:$0xf] }
  0x6f   : > { %674 = vmatpush.bf16.msra.mxu1 %v1029_v16  ;;  %688 = vmatpush.bf16.msra.mxu2 %v969_v17  ;;  %v1014_v38 = vld [vmem:[%s1495_s4 + $0xa8] sm:$0xf0]  ;;  %v953_v41 = vor.u32 %v1072_v35, %v950_v36  ;;  %v1071_v43 = vld [vmem:[%s1495_s4 + $0x14] sm:$0xf0]  ;;  %v1004_v44 = vld [vmem:[%s1495_s4 + $0x90] sm:$0xf] }
  0x70   : > { %702 = vmatpush.bf16.msra.mxu3 %v1033_v21  ;;  %v1017_v45 = vor.u32 %v1088_v37, %v1014_v38  ;;  %v1087_v46 = vld [vmem:[%s1495_s4 + $0x94] sm:$0xf0]  ;;  %v1070_v47 = vld [vmem:[%s1495_s4 + $0x14] sm:$0xf]  ;;  %v942_v48 = vld [vmem:[%s1495_s4 + $0x18] sm:$0xf0]  ;;  %v941_v51 = vor.u32 %v1071_v43, %v940_v42 }
  0x71   : > { %v1086_v49 = vld [vmem:[%s1495_s4 + $0x94] sm:$0xf]  ;;  %v1006_v50 = vld [vmem:[%s1495_s4 + $0x98] sm:$0xf0]  ;;  %v1005_v52 = vor.u32 %v1087_v46, %v1004_v44  ;;  %v945_v53 = vor.u32 %v1070_v47, %v942_v48  ;;  %v932_v54 = vld [vmem:[%s1495_s4] sm:$0xf] }
  0x72   : > { %661 = vmatpush.bf16.msra.mxu0 %v957_v27  ;;  %v1069_v55 = vld [vmem:[%s1495_s4 + $0x4] sm:$0xf0]  ;;  %v996_v56 = vld [vmem:[%s1495_s4 + $0x80] sm:$0xf]  ;;  %v1009_v57 = vor.u32 %v1086_v49, %v1006_v50  ;;  %v1068_v59 = vld [vmem:[%s1495_s4 + $0x4] sm:$0xf] }
  0x73   : > { %675 = vmatpush.bf16.msra.mxu1 %v1021_v28  ;;  %689 = vmatpush.bf16.msra.mxu2 %v961_v29  ;;  %v1085_v58 = vld [vmem:[%s1495_s4 + $0x84] sm:$0xf0]  ;;  %v934_v60 = vld [vmem:[%s1495_s4 + $0x8] sm:$0xf0]  ;;  %v1084_v61 = vld [vmem:[%s1495_s4 + $0x84] sm:$0xf]  ;;  %v933_v63 = vor.u32 %v1069_v55, %v932_v54 }
  0x74   : > { %703 = vmatpush.bf16.msra.mxu3 %v1025_v33  ;;  %v998_v62 = vld [vmem:[%s1495_s4 + $0x88] sm:$0xf0]  ;;  %v924_v0 = vld [vmem:[%s1493_s26] sm:$0xf]  ;;  %v1067_v1 = vld [vmem:[%s1493_s26 + $0x4] sm:$0xf0]  ;;  %v997_v2 = vor.u32 %v1085_v58, %v996_v56  ;;  %v937_v3 = vor.u32 %v1068_v59, %v934_v60 }
  0x75   : > { %v1066_v4 = vld [vmem:[%s1493_s26 + $0x4] sm:$0xf]  ;;  %v926_v5 = vld [vmem:[%s1493_s26 + $0x8] sm:$0xf0]  ;;  %v1001_v6 = vor.u32 %v1084_v61, %v998_v62  ;;  %v925_v7 = vor.u32 %v1067_v1, %v924_v0  ;;  %p1058_p5 = scmp.ne.s32.totalorder %s1260_s18, 1 }
  0x76   : > { %662 = vmatpush.bf16.msra.mxu0 %v949_v39  ;;  %v929_v8 = vor.u32 %v1066_v4, %v926_v5  ;;  %v449_v10 = vld [vmem:[#allocation2 + $0x10] sm:$0xff]  ;;  %v450_v15 = vld [vmem:[#allocation2] sm:$0xff]  ;;  %v451_v19 = vld [vmem:[#allocation2 + $0x18] sm:$0xff] }
  0x77   : > { %676 = vmatpush.bf16.msra.mxu1 %v1013_v40  ;;  %690 = vmatpush.bf16.msra.mxu2 %v953_v41  ;;  %v452_v25 = vld [vmem:[#allocation2 + $0x8] sm:$0xff] }
  0x78   : > { %704 = vmatpush.bf16.msra.mxu3 %v1017_v45 }
  0x7a   : > { %663 = vmatpush.bf16.msra.mxu0 %v941_v51 }
  0x7b   : > { %677 = vmatpush.bf16.msra.mxu1 %v1005_v52  ;;  %691 = vmatpush.bf16.msra.mxu2 %v945_v53 }
  0x7c   : > { %705 = vmatpush.bf16.msra.mxu3 %v1009_v57 }
  0x7e   : > { %664 = vmatpush.bf16.msra.mxu0 %v933_v63 }
  0x7f   : > { %678 = vmatpush.bf16.msra.mxu1 %v997_v2  ;;  %692 = vmatpush.bf16.msra.mxu2 %v937_v3 }
  0x80   : > { %706 = vmatpush.bf16.msra.mxu3 %v1001_v6 }
  0x81   : > { %665 = vmatmul.bf16.vlgmr.msra.gmra.mxu0 %v925_v7 }
  0x82   : > { %679 = vmatmul.bf16.vlgmr.msra.gmra.mxu1 %v929_v8  ;;  %693 = vmatmul.bf16.vlgmr.msra.gmra.mxu2 %v925_v7 }
  0x83   : > { %707 = vmatmul.bf16.vlgmr.msra.gmra.mxu3 %v929_v8 }
  0xfe   : > { %v666_v9 = vpop.f32.mrf.mxu0 }
  0xff   : > { %v680_v11 = vpop.f32.mrf.mxu1 }
 0x100   : > { %v681_v12 = vadd.f32 %v680_v11, %v666_v9 }
 0x102   : > { %v713_v13 = vadd.f32 %v681_v12, %v449_v10 }
 0x104   : > { %717 = vst [vmem:[#allocation2 + $0x10] sm:$0xff] %v713_v13 }
 0x105   : > { %v694_v14 = vpop.f32.mrf.mxu2 }
 0x106   : > { %v708_v16 = vpop.f32.mrf.mxu3  ;;  %v668_v17 = vpop.f32.mrf.mxu0 }
 0x107   : > { %v709_v18 = vadd.f32 %v708_v16, %v694_v14  ;;  %v682_v20 = vpop.f32.mrf.mxu1 }
 0x108   : > { %v683_v21 = vadd.f32 %v682_v20, %v668_v17 }
 0x109   : > { %v714_v22 = vadd.f32 %v709_v18, %v450_v15 }
 0x10a   : > { %v715_v23 = vadd.f32 %v683_v21, %v451_v19 }
 0x10b   : > { %718 = vst [vmem:[#allocation2] sm:$0xff] %v714_v22 }
 0x10c   : > { %719 = vst [vmem:[#allocation2 + $0x18] sm:$0xff] %v715_v23 }
 0x10d   : > { %v696_v24 = vpop.f32.mrf.mxu2 }
 0x10e   : > { %v710_v26 = vpop.f32.mrf.mxu3 }
 0x10f   : > { %v711_v27 = vadd.f32 %v710_v26, %v696_v24  ;;  %724 = sbr.rel (%p1058_p5) target bundleno = 290 (0x122), region = 116 }
 0x111   : > { %v716_v28 = vadd.f32 %v711_v27, %v452_v25 }
 0x113   : > { %720 = vst [vmem:[#allocation2 + $0x8] sm:$0xff] %v716_v28 }
 0x114   : > { %v725_v29 = vld [vmem:[#allocation2 + $0x10] sm:$0xff]  ;;  %v726_v30 = vld [vmem:[#allocation2] sm:$0xff]  ;;  %v727_v34 = vld [vmem:[#allocation2 + $0x18] sm:$0xff] }
 0x115   : > { %v729_v31 = vld [vmem:[%s437_s29] sm:$0x3] }
 0x116   : > { %v731_v32 = vperm.slane %v729_v31, 0  ;;  %v732_v33 = vperm.slane %v729_v31, 1 }
 0x118   : > { %v735_v36 = vadd.f32 %v731_v32, %v725_v29  ;;  %v736_v37 = vadd.f32 %v732_v33, %v726_v30  ;;  %v737_v38 = vadd.f32 %v731_v32, %v727_v34 }
 0x11a   : > { %v728_v35 = vld [vmem:[#allocation2 + $0x8] sm:$0xff]  ;;  %v739_v40 = vmax.f32 %v735_v36, 0.0  ;;  %v740_v41 = vmax.f32 %v736_v37, 0.0  ;;  %v741_v42 = vmax.f32 %v737_v38, 0.0 }
 0x11b   : > { %v738_v39 = vadd.f32 %v732_v33, %v728_v35 }
 0x11c   : > { %v743_v44 = vpack.c.bf16 %v740_v41, %v739_v40 }
 0x11d   : > { %v742_v43 = vmax.f32 %v738_v39, 0.0 }
 0x11e   : > { %745 = vst [vmem:[%s1497_s6] sm:$0xff] %v743_v44 }
 0x11f   : > { %v744_v45 = vpack.c.bf16 %v742_v43, %v741_v42 }
 0x121   : > { %746 = vst [vmem:[%s1497_s6 + $0x8] sm:$0xff] %v744_v45 }
 0x122 PF: > { %753 = sbr.rel (!%p1393_p12) target bundleno = 298 (0x12a), region = 120  ;;  %s1100_s16 = sshll.u32 (%p1393_p12), %s1264_s19, 3 }
 0x123   : > { %s759_s25 = scalar_lea.vmem (%p1393_p12), %s1620_s3, %s1100_s16 }
 0x125   : > { %v790_v46 = vld [vmem:[%s1497_s6] sm:$0xff] (%p1393_p12) }
 0x126   : > { %791 = vst [vmem:[%s759_s25] sm:$0xff] (%p1393_p12), %v790_v46 }
 0x128   : > { %v792_v47 = vld [vmem:[%s1497_s6 + $0x8] sm:$0xff] }
 0x129   : > { %793 = vst [vmem:[%s759_s25 + $0x10] sm:$0xff] %v792_v47 }
 0x12a PF: > { %s13_s22 = sadd.s32 1, %s1276_s22   ;;  %s1629_s10 = sld [smem:[#allocation8_spill]] }
 0x12b   : > { %p10_p6 = scmp.ge.s32.totalorder %s13_s22, 6   ;;  %s1630_s30 = sld [smem:[#allocation6_spill]] }
 0x12c   : > { %s1631_s27 = sld [smem:[#allocation7_spill]]  ;;  %s1632_s12 = smov %s1240_s13 }
 0x12d   : > { %s1633_s13 = smov %s1391_s9  ;;  %s1634_s14 = smov %s1248_s15 }
 0x12e   : > { %s1635_s15 = smov %s1388_s8  ;;  %s1636_s16 = smov %s1256_s17 }
 0x12f   : > { %s1638_s18 = smov %s1268_s20  ;;  %s1639_s19 = smov %s1272_s21 }
 0x130   : > { %s1637_s17 = smov %s1629_s10  ;;  %12 = sbr.rel (!%p10_p6) target bundleno = 6 (0x6), region = 200 }
 0x131   : > { %s1640_s20 = smov %s1630_s30 }
 0x132   : > { %s1641_s21 = smov %s1631_s27 }

// kernel: model_pretrain_forward.90
= control target key start
LH: loop header
LB: loop body
LE: loop exit
PB: predicated region body
PF: predicated region fallthrough
CT: control target
= control target key end

     0   :  { %s809_s12 = smov 0   ;;  %s811_s13 = smov 0   ;;  %s909_s0 = inlined_call_operand.vmem [shape: bf16[16,512], index: 0, kind: input, shape index: {}]   ;;  %s910_s1 = inlined_call_operand.vmem [shape: bf16[512,128], index: 1, kind: input, shape index: {}]   ;;  %s911_s2 = inlined_call_operand.vmem [shape: f32[1,128], index: 2, kind: input, shape index: {}]   ;;  %s912_s3 = inlined_call_operand.vmem [shape: f32[16,128], index: 3, kind: output, shape index: {}]  }
   0x1   :  { %s813_s14 = smov 0   ;;  %s815_s15 = smov 0  }
   0x2   :  { %s817_s16 = smov 0  }
   0x3 LB: > { %s25_s17 = sadd.s32 1, %s782_s15  ;;  %p48_p1 = scmp.ne.s32.totalorder %s774_s13, %s770_s12  ;;  %s786_s16 = sphi %s817_s16, %s13_s16   ;;  %s782_s15 = sphi %s815_s15, %s916_s15   ;;  %s778_s14 = sphi %s813_s14, %s915_s14   ;;  %s774_s13 = sphi %s811_s13, %s914_s13   ;;  %s770_s12 = sphi %s809_s12, %s913_s12  }
   0x4   : > { %p26_p0 = scmp.ge.s32.totalorder %s25_s17, 2  ;;  %p49_p2 = scmp.eq.s32.totalorder %s786_s16, 0 }
   0x5   : > { %s41_s19 = sadd.s32 1, %s774_s13  ;;  %p601_p5 = scmp.ge.s32.totalorder %s786_s16, 2 }
   0x6   : > { %s918_s17 = smov (%p26_p0, %s25_s17), 0  ;;  %p50_p3 = por %p49_p2, %p48_p1 }
   0x7   : > { %s37_s18 = ssub.s32 %s782_s15, %s918_s17  ;;  %162 = sbr.rel (%p601_p5) target bundleno = 18 (0x12), region = 20 }
   0x8   : > { %p39_p4 = scmp.eq.s32.totalorder %s37_s18, 0 }
   0xa   : > { %s844_s20 = scalar_select %p39_p4, %s774_s13, %s41_s19  }
   0xc   : > { %165 = sbr.rel (!%p50_p3) target bundleno = 18 (0x12), region = 24  ;;  %s167_s21 = sand.u32 (%p50_p3), 1, %s774_s13  }
   0xd   : > { %s687_s22 = sshll.u32 (%p50_p3), %s782_s15, 3  ;;  %s602_s23 = sshll.u32 (%p50_p3), %s167_s21, 4 }
   0xe   : > { %s175_s26 = scalar_lea.vmem (%p50_p3), %s909_s0, %s687_s22  ;;  %s169_s27 = scalar_lea.vmem (%p50_p3), [#allocation3], %s602_s23 }
   0xf   : > { %v206_v0 = vld [vmem:[%s175_s26] sm:$0xff] (%p50_p3)  ;;  %v208_v1 = vld [vmem:[%s175_s26 + $0x10] sm:$0xff] (%p50_p3) }
  0x10   : > { %207 = vst [vmem:[%s169_s27] sm:$0xff] (%p50_p3), %v206_v0 }
  0x11   : > { %209 = vst [vmem:[%s169_s27 + $0x8] sm:$0xff] %v208_v1 }
  0x12 PF: > { %p605_p6 = scmp.ge.s32.totalorder %s786_s16, 1  ;;  %p226_p7 = scmp.lt.s32.totalorder %s786_s16, 3 }
  0x14   : > { %p227_p8 = pnand %p605_p6, %p226_p7 }
  0x15   : > { %s233_s28 = sand.u32 (!%p227_p8), 1, %s770_s12   ;;  %s607_s29 = sshll.u32 (!%p227_p8), %s778_s14, 5 }
  0x16   : > { %230 = sbr.rel (%p227_p8) target bundleno = 217 (0xd9), region = 66  ;;  %s606_s30 = sshll.u32 (!%p227_p8), %s233_s28, 4 }
  0x17   : > { %p273_p9 = scmp.lt.s32.totalorder (!%p227_p8), %s607_s29, 63  ;;  %s861_s8 = scalar_lea.vmem (!%p227_p8), [#allocation3], %s606_s30 }
  0x18   : > { %p609_p10 = scmp.ne.s32.totalorder (!%p227_p8), %s778_s14, 0 }
  0x1b   : > { %s920_s29 = smov (!%p273_p9, %s607_s29), 63  ;;  %296 = sbr.rel (%p609_p10) target bundleno = 35 (0x23), region = 74 }
  0x1c   : > { %s608_s4 = sshll.u32 %s920_s29, 2 }
  0x1d   : > { %s859_s7 = scalar_lea.vmem %s910_s1, %s608_s4 }
  0x20   : > { %v788_v2 = vmov 0.0  }
  0x21   : > { %297 = vst [vmem:[#allocation2] sm:$0xff] %v788_v2 }
  0x22   : > { %298 = vst [vmem:[#allocation2 + $0x8] sm:$0xff] %v788_v2 }
  0x23 PF: > { %v697_v3 = vld [vmem:[%s859_s7 + $0x38] sm:$0xff]  ;;  %v696_v5 = vld [vmem:[%s859_s7 + $0x30] sm:$0xff]  ;;  %v695_v7 = vld [vmem:[%s859_s7 + $0x28] sm:$0xff]  ;;  %p682_p11 = scmp.ne.s32.totalorder %s778_s14, 1 }
  0x24   : > { %v705_v4 = vld [vmem:[%s859_s7 + $0x78] sm:$0xff]  ;;  %441 = vmatpush.bf16.msra.mxu0 %v697_v3  ;;  %v704_v6 = vld [vmem:[%s859_s7 + $0x70] sm:$0xff]  ;;  %v703_v8 = vld [vmem:[%s859_s7 + $0x68] sm:$0xff] }
  0x25   : > { %455 = vmatpush.bf16.msra.mxu1 %v705_v4  ;;  %v694_v9 = vld [vmem:[%s859_s7 + $0x20] sm:$0xff]  ;;  %v693_v11 = vld [vmem:[%s859_s7 + $0x18] sm:$0xff]  ;;  %v692_v13 = vld [vmem:[%s859_s7 + $0x10] sm:$0xff] }
  0x26   : > { %v702_v10 = vld [vmem:[%s859_s7 + $0x60] sm:$0xff]  ;;  %v701_v12 = vld [vmem:[%s859_s7 + $0x58] sm:$0xff]  ;;  %v700_v14 = vld [vmem:[%s859_s7 + $0x50] sm:$0xff] }
  0x27   : > { %v691_v15 = vld [vmem:[%s859_s7 + $0x8] sm:$0xff]  ;;  %v690_v17 = vld [vmem:[%s859_s7] sm:$0xff] }
  0x28   : > { %442 = vmatpush.bf16.msra.mxu0 %v696_v5  ;;  %v699_v16 = vld [vmem:[%s859_s7 + $0x48] sm:$0xff]  ;;  %v698_v18 = vld [vmem:[%s859_s7 + $0x40] sm:$0xff] }
  0x29   : > { %456 = vmatpush.bf16.msra.mxu1 %v704_v6  ;;  %v612_v19 = vld [vmem:[%s861_s8] sm:$0xf]  ;;  %v689_v20 = vld [vmem:[%s861_s8 + $0x4] sm:$0xf0]  ;;  %v688_v21 = vld [vmem:[%s861_s8 + $0x4] sm:$0xf] }
  0x2a   : > { %v614_v22 = vld [vmem:[%s861_s8 + $0x8] sm:$0xf0]  ;;  %v613_v23 = vor.u32 %v689_v20, %v612_v19  ;;  %v299_v26 = vld [vmem:[#allocation2] sm:$0xff] }
  0x2b   : > { %v617_v24 = vor.u32 %v688_v21, %v614_v22  ;;  %v300_v31 = vld [vmem:[#allocation2 + $0x8] sm:$0xff] }
  0x2c   : > { %443 = vmatpush.bf16.msra.mxu0 %v695_v7 }
  0x2d   : > { %457 = vmatpush.bf16.msra.mxu1 %v703_v8 }
  0x30   : > { %444 = vmatpush.bf16.msra.mxu0 %v694_v9 }
  0x31   : > { %458 = vmatpush.bf16.msra.mxu1 %v702_v10 }
  0x34   : > { %445 = vmatpush.bf16.msra.mxu0 %v693_v11 }
  0x35   : > { %459 = vmatpush.bf16.msra.mxu1 %v701_v12 }
  0x38   : > { %446 = vmatpush.bf16.msra.mxu0 %v692_v13 }
  0x39   : > { %460 = vmatpush.bf16.msra.mxu1 %v700_v14 }
  0x3c   : > { %447 = vmatpush.bf16.msra.mxu0 %v691_v15 }
  0x3d   : > { %461 = vmatpush.bf16.msra.mxu1 %v699_v16 }
  0x40   : > { %448 = vmatpush.bf16.msra.mxu0 %v690_v17 }
  0x41   : > { %462 = vmatpush.bf16.msra.mxu1 %v698_v18 }
  0x43   : > { %449 = vmatmul.bf16.vlgmr.msra.gmra.mxu0 %v613_v23 }
  0x44   : > { %463 = vmatmul.bf16.vlgmr.msra.gmra.mxu1 %v617_v24 }
  0xc0   : > { %v450_v25 = vpop.f32.mrf.mxu0 }
  0xc1   : > { %v464_v27 = vpop.f32.mrf.mxu1 }
  0xc2   : > { %v465_v28 = vadd.f32 %v464_v27, %v450_v25 }
  0xc4   : > { %v469_v29 = vadd.f32 %v465_v28, %v299_v26 }
  0xc6   : > { %471 = vst [vmem:[#allocation2] sm:$0xff] %v469_v29 }
  0xc8   : > { %v452_v30 = vpop.f32.mrf.mxu0 }
  0xc9   : > { %v466_v32 = vpop.f32.mrf.mxu1 }
  0xca   : > { %v467_v33 = vadd.f32 %v466_v32, %v452_v30  ;;  %476 = sbr.rel (%p682_p11) target bundleno = 217 (0xd9), region = 78 }
  0xcc   : > { %v470_v34 = vadd.f32 %v467_v33, %v300_v31 }
  0xce   : > { %472 = vst [vmem:[#allocation2 + $0x8] sm:$0xff] %v470_v34 }
  0xcf   : > { %v477_v35 = vld [vmem:[#allocation2] sm:$0xff] }
  0xd0   : > { %v747_v36 = vld [vmem:[%s911_s2] ss:$0 sm:$0xff] }
  0xd1   : > { %v483_v38 = vadd.f32 %v747_v36, %v477_v35 }
  0xd3   : > { %485 = vst [vmem:[%s912_s3] sm:$0xff] %v483_v38 }
  0xd5   : > { %v478_v37 = vld [vmem:[#allocation2 + $0x8] sm:$0xff] }
  0xd6   : > { %v484_v39 = vadd.f32 %v747_v36, %v478_v37 }
  0xd8   : > { %486 = vst [vmem:[%s912_s3 + $0x8] sm:$0xff] %v484_v39 }
  0xd9 PF: > { %s13_s16 = sadd.s32 1, %s786_s16   ;;  %s913_s12 = smov %s774_s13 }
  0xda   : > { %p10_p12 = scmp.ge.s32.totalorder %s13_s16, 4   ;;  %s914_s13 = smov %s844_s20 }
  0xdb   : > { %s915_s14 = smov %s782_s15  ;;  %s916_s15 = smov %s918_s17 }
  0xdc   :  { %12 = sbr.rel (!%p10_p12) target bundleno = 3 (0x3), region = 119 }

</bundles_post_ra>
